<compile_context>
chip_gen: v6e
topology: v6e:2x2x1
jax: 0.10.0
libtpu: 0.0.40
codegen_flags: <defaults>
</compile_context>

<pallas_src>
import jax
import jax.numpy as jnp
from jax import lax
from jax.experimental import pallas as pl
from jax.experimental.pallas import tpu as pltpu

SEQ = 31           # last 31 input columns are token ids for the conv branch
VOCAB = 21
EMB_DIM = 21
BN_EPS = 1e-5
MAX_BATCH_TILE = 128   # rows per grid step (cap). Full MXU rows on v5e; batches >= 256 keep
                       # grid >= 2 so the "parallel" axis can still shard across v7x's 2 TCs.

# ---- channel-slab column layout (all store offsets / widths are 8-lane aligned) ----
SLAB_W = 96
EMB_BAND = 24      # 21 real embedding channels + 3 zero pad
CONV_BAND = 16     # 10 real conv output channels + 6 zero pad
COL_EMB = 0        # [ 0:24)  embedding
COL_OUT1 = 24      # [24:40)  res_block1 output
COL_OUT2 = 40      # [40:56)  res_block2 output
COL_OUT3 = 56      # [56:72)  res_block3 output
COL_TMP = 72       # [72:88)  intra-block conv1 activation
                   # [88:96)  always zero


def _round_up(n, m):
    return ((n + m - 1) // m) * m


# ----------------------------- conv-branch helpers (channel slab) -----------------------------
def _conv3_relu(slab, L, bt, convw_ref, ci, bias):
    """Conv1d(kernel=3, padding=1) + bias + ReLU on the channel slab.

    Slab rows are padded-seq-major: row p*bt + b = padded position p of sample b (p=0 and
    p=L+1 are permanent zero pad rows), so each tap is one 8-aligned row window and one
    (L*bt, 96) @ (96, 16) MXU matmul.  Channels outside this conv's input are killed by zero
    rows in its pre-placed weight (the slab is fully zero-initialised -> no NaN leakage)."""
    acc = jnp.dot(slab[0:L * bt, :], convw_ref[ci, 0], preferred_element_type=jnp.float32)
    acc = acc + jnp.dot(slab[bt:(L + 1) * bt, :], convw_ref[ci, 1],
                        preferred_element_type=jnp.float32)
    acc = acc + jnp.dot(slab[2 * bt:(L + 2) * bt, :], convw_ref[ci, 2],
                        preferred_element_type=jnp.float32)
    return jnp.maximum(acc + bias, 0.0)


def _res_block(slab, L, bt, convw_ref, convb_ref, block_idx, col_out):
    """ResidualBlock: conv1+relu -> conv2+relu -> cat(out, residual).
    The residual already lives in the slab, so the torch channel-concat is just a store of
    the new output band into its static (8-aligned) column range."""
    ci = 2 * block_idx
    mid = _conv3_relu(slab, L, bt, convw_ref, ci,
                      convb_ref[0:1, CONV_BAND * ci:CONV_BAND * (ci + 1)])
    slab[bt:(L + 1) * bt, COL_TMP:COL_TMP + CONV_BAND] = mid
    out = _conv3_relu(slab, L, bt, convw_ref, ci + 1,
                      convb_ref[0:1, CONV_BAND * (ci + 1):CONV_BAND * (ci + 2)])
    slab[bt:(L + 1) * bt, col_out:col_out + CONV_BAND] = out


def _maxpool2(slab, L, bt):
    """MaxPool1d(kernel_size=2) along the seq axis (floor(L/2)); pools the full slab width
    (unused columns are zero / rewritten later) so both load and store are unmasked."""
    L2 = L // 2
    x = slab[bt:(1 + 2 * L2) * bt, :].reshape(L2, 2 * bt, SLAB_W)
    pooled = jnp.maximum(x[:, :bt, :], x[:, bt:, :]).reshape(L2 * bt, SLAB_W)
    slab[bt:(L2 + 1) * bt, :] = pooled
    slab[(L2 + 1) * bt:(L2 + 2) * bt, :] = jnp.zeros((bt, SLAB_W), jnp.float32)  # new l=L2 pad row
    return L2


# ----------------------------------------- kernel body -----------------------------------------
def _classifier_kernel(x_ann_ref, ids_ref,
                       emb_ref, convw_ref, convb_ref, fccw_ref,
                       fc1w_ref, fc2w_ref, fcmw_ref, fcow_ref, fcb_ref,
                       o_ref, slab):
    bt = x_ann_ref.shape[0]

    # ---------------- ANN branch (bn1/bn2 folded into fc1/fc2; dropout = identity) ----------------
    # bf16 operands, f32 accumulation: these two matmuls dominate the model's FLOPs.
    h = jnp.dot(x_ann_ref[...].astype(jnp.bfloat16), fc1w_ref[...],
                preferred_element_type=jnp.float32) + fcb_ref[:, 0:512]
    h = jnp.maximum(h, 0.0)                                            # (bt, 512)
    h = jnp.dot(h.astype(jnp.bfloat16), fc2w_ref[...],
                preferred_element_type=jnp.float32) + fcb_ref[:, 512:768]
    h = jnp.maximum(h, 0.0)                                            # (bt, 256)

    # ---------------- Conv branch on one zero-initialised channel slab ----------------
    slab[...] = jnp.zeros(slab.shape, jnp.float32)                     # pad rows + no-NaN guarantee

    ids = ids_ref[...].reshape(SEQ * bt, 1).astype(jnp.int32)          # trunc toward 0 == .int()
    onehot = (lax.broadcasted_iota(jnp.int32, (SEQ * bt, VOCAB), 1) == ids).astype(jnp.float32)
    xe = jnp.dot(onehot, emb_ref[...], preferred_element_type=jnp.float32)   # (31*bt, 24)
    slab[bt:(SEQ + 1) * bt, COL_EMB:COL_EMB + EMB_BAND] = xe

    L = SEQ
    _res_block(slab, L, bt, convw_ref, convb_ref, 0, COL_OUT1)
    L = _maxpool2(slab, L, bt)                                         # 31 -> 15
    _res_block(slab, L, bt, convw_ref, convb_ref, 1, COL_OUT2)
    L = _maxpool2(slab, L, bt)                                         # 15 -> 7
    _res_block(slab, L, bt, convw_ref, convb_ref, 2, COL_OUT3)
    L = _maxpool2(slab, L, bt)                                         # 7 -> 3

    # fc_conv1 (+ folded bn_conv1) over the NCL flatten: 3 matmuls across the full slab width.
    xc = jnp.dot(slab[bt:2 * bt, :], fccw_ref[0], preferred_element_type=jnp.float32)
    xc = xc + jnp.dot(slab[2 * bt:3 * bt, :], fccw_ref[1], preferred_element_type=jnp.float32)
    xc = xc + jnp.dot(slab[3 * bt:4 * bt, :], fccw_ref[2], preferred_element_type=jnp.float32)
    xc = jnp.maximum(xc + convb_ref[8:9, 0:32], 0.0)                   # (bt, 32)

    # ---------------- Combine: fc_combined1 weight sliced per source -> no (bt, 288) concat ----------------
    hc = (jnp.dot(xc.astype(jnp.bfloat16), fcmw_ref[0:32, :], preferred_element_type=jnp.float32)
          + jnp.dot(h.astype(jnp.bfloat16), fcmw_ref[32:288, :], preferred_element_type=jnp.float32)
          + fcb_ref[:, 768:896])
    hc = jnp.maximum(hc, 0.0)                                          # (bt, 128)
    logit = jnp.dot(hc.astype(jnp.bfloat16), fcow_ref[...],
                    preferred_element_type=jnp.float32) + fcb_ref[:, 896:897]
    o_ref[...] = 1.0 / (1.0 + jnp.exp(-logit))                         # sigmoid, (bt, 1)


# ----------------------------------------- wrapper -----------------------------------------
def binary_classifier_weighted(x, params):
    b, d = x.shape
    d_ann = d - SEQ
    bt = min(MAX_BATCH_TILE, _round_up(b, 8))
    bp = _round_up(b, bt)
    if bp != b:
        x = jnp.concatenate([x, jnp.zeros((bp - b, d), x.dtype)], axis=0)
    x_ann = x[:, :d_ann]                                               # (bp, d_ann)
    ids = jnp.transpose(x[:, d_ann:])[:, :, None]                      # (SEQ, bp, 1), seq-major

    weights = tuple(params)

    def const_spec(arr):                                               # VMEM-resident, fetched once
        nd = arr.ndim
        return pl.BlockSpec(arr.shape, lambda i, _nd=nd: (0,) * _nd)

    out = pl.pallas_call(
        _classifier_kernel,
        out_shape=jax.ShapeDtypeStruct((bp, 1), jnp.float32),
        grid=(bp // bt,),
        in_specs=[pl.BlockSpec((bt, d_ann), lambda i: (i, 0)),
                  pl.BlockSpec((SEQ, bt, 1), lambda i: (0, i, 0))]
                 + [const_spec(p) for p in weights],
        out_specs=pl.BlockSpec((bt, 1), lambda i: (i, 0)),
        scratch_shapes=[pltpu.VMEM(((SEQ + 2) * bt, SLAB_W), jnp.float32)],
        compiler_params=pltpu.CompilerParams(
            dimension_semantics=("parallel",),                # megacore-shardable on v7x
            vmem_limit_bytes=32 * 1024 * 1024),               # raise v5e's 16 MiB scoped default
    )(x_ann, ids, *weights)
    return out[:b]


# ------------------------------------------------------------------
# Deterministic synthetic parameters: torch-layout weights -> BN folding -> packed slab layouts.
# ------------------------------------------------------------------
def _bn_fold(gamma, beta, mean, var):
    scale = gamma / jnp.sqrt(var + BN_EPS)
    shift = beta - mean * scale
    return scale, shift


def make_params(key, input_size):
    d_ann = input_size - SEQ
    keys = iter(jax.random.split(key, 64))

    def w(shape, s=0.1):
        return jax.random.normal(next(keys), shape, jnp.float32) * s

    def bn(n):
        gamma = 1.0 + 0.1 * jax.random.normal(next(keys), (n,), jnp.float32)
        beta = 0.1 * jax.random.normal(next(keys), (n,), jnp.float32)
        mean = 0.05 * jax.random.normal(next(keys), (n,), jnp.float32)
        var = jnp.abs(jax.random.normal(next(keys), (n,), jnp.float32)) + 0.5
        return _bn_fold(gamma, beta, mean, var)

    # embedding table, lane-padded to the 24-wide slab band
    emb = jnp.zeros((VOCAB, EMB_BAND), jnp.float32).at[:, :EMB_DIM].set(w((VOCAB, EMB_DIM), 0.5))

    # torch-Cin-order -> slab-column maps
    cols_emb = list(range(COL_EMB, COL_EMB + EMB_DIM))
    cols_out1 = list(range(COL_OUT1, COL_OUT1 + 10))
    cols_out2 = list(range(COL_OUT2, COL_OUT2 + 10))
    cols_out3 = list(range(COL_OUT3, COL_OUT3 + 10))
    cols_tmp = list(range(COL_TMP, COL_TMP + 10))

    conv_biases = []

    def conv_to_slab(cout, cin_cols):
        cin = len(cin_cols)
        wt = w((cout, cin, 3))                        # torch Conv1d weight (Cout, Cin, 3)
        conv_biases.append(w((cout,), 0.05))          # torch Conv1d bias
        wk = jnp.transpose(wt, (2, 1, 0))             # (3, Cin, Cout)
        slabw = jnp.zeros((3, SLAB_W, CONV_BAND), jnp.float32)
        return slabw.at[:, jnp.array(cin_cols), 0:cout].set(wk)

    convw = jnp.stack([
        conv_to_slab(10, cols_emb),                          # res1.conv1 (Cin=21)
        conv_to_slab(10, cols_tmp),                          # res1.conv2 (Cin=10)
        conv_to_slab(10, cols_out1 + cols_emb),              # res2.conv1 (Cin=31, torch order [out1, emb])
        conv_to_slab(10, cols_tmp),                          # res2.conv2
        conv_to_slab(10, cols_out2 + cols_out1 + cols_emb),  # res3.conv1 (Cin=41)
        conv_to_slab(10, cols_tmp),                          # res3.conv2
    ])                                                       # (6, 3, 96, 16)

    # fc_conv1 (32, 153), flatten index = c*3 + l, c in torch order [out3, out2, out1, emb];
    # fold bn_conv1 and scatter the 51 channels to their slab columns.
    fcc_wt = w((32, 51 * 3))
    fcc_bt = w((32,), 0.05)
    sc, sh = bn(32)
    wlk = jnp.transpose(fcc_wt.reshape(32, 51, 3), (2, 1, 0)) * sc[None, None, :]   # (3, 51, 32)
    fcc_cols = jnp.array(cols_out3 + cols_out2 + cols_out1 + cols_emb)
    fccw = jnp.zeros((3, SLAB_W, 32), jnp.float32).at[:, fcc_cols, :].set(wlk)
    fcc_b = fcc_bt * sc + sh

    # conv-branch biases packed into one tiny tensor: row 0 = six conv biases, row 8 = fc_conv1
    convb = jnp.zeros((16, SLAB_W), jnp.float32)
    for i, bias in enumerate(conv_biases):
        convb = convb.at[0, CONV_BAND * i:CONV_BAND * i + 10].set(bias)
    convb = convb.at[8, 0:32].set(fcc_b)

    def fc_bn(out_f, in_f):                           # Linear + folded BatchNorm1d (eval stats)
        wt = w((out_f, in_f))
        bias = w((out_f,), 0.05)
        sc_, sh_ = bn(out_f)
        return jnp.transpose(wt) * sc_[None, :], bias * sc_ + sh_

    fc1_w, fc1_b = fc_bn(512, d_ann)
    fc2_w, fc2_b = fc_bn(256, 512)
    fcm_w, fcm_b = fc_bn(128, 256 + 32)               # rows [0:32)=conv branch, [32:288)=ann branch
    fco_w = jnp.transpose(w((1, 128)))                # (128, 1)
    fco_b = w((1,), 0.05)

    # all large-FC biases packed into one lane-aligned row
    fcb = jnp.zeros((1, 1024), jnp.float32)
    fcb = fcb.at[0, 0:512].set(fc1_b)
    fcb = fcb.at[0, 512:768].set(fc2_b)
    fcb = fcb.at[0, 768:896].set(fcm_b)
    fcb = fcb.at[0, 896:897].set(fco_b)

    return (emb, convw, convb, fccw,
            fc1_w.astype(jnp.bfloat16), fc2_w.astype(jnp.bfloat16),
            fcm_w.astype(jnp.bfloat16), fco_w.astype(jnp.bfloat16),
            fcb)


if __name__ == "__main__":
    B = 16
    INPUT_SIZE = 95                    # ANN branch gets 64 features, conv branch gets 31 token ids
    root = jax.random.PRNGKey(0)
    k_params, k_ann, k_idx = jax.random.split(root, 3)

    params = make_params(k_params, INPUT_SIZE)

    x_ann = jax.random.normal(k_ann, (B, INPUT_SIZE - SEQ), jnp.float32)
    idx = jax.random.randint(k_idx, (B, SEQ), 0, VOCAB).astype(jnp.float32)
    x = jnp.concatenate([x_ann, idx], axis=1)                 # (B, INPUT_SIZE)

    out = binary_classifier_weighted(x, params)
    out = jax.block_until_ready(out)
    assert out.shape == (B, 1)
    assert bool(jnp.all((out >= 0.0) & (out <= 1.0)))
    print("KERNEL_OK")
</pallas_src>

<mosaic_0001>
module attributes {stable_mosaic.version = 11 : i64} {
  func.func @_classifier_kernel(%arg0: i32, %arg1: memref<16x64xf32, #tpu.memory_space<vmem>>, %arg2: memref<31x16x1xf32, #tpu.memory_space<vmem>>, %arg3: memref<21x24xf32, #tpu.memory_space<vmem>>, %arg4: memref<6x3x96x16xf32, #tpu.memory_space<vmem>>, %arg5: memref<16x96xf32, #tpu.memory_space<vmem>>, %arg6: memref<3x96x32xf32, #tpu.memory_space<vmem>>, %arg7: memref<64x512xbf16, #tpu.memory_space<vmem>>, %arg8: memref<512x256xbf16, #tpu.memory_space<vmem>>, %arg9: memref<288x128xbf16, #tpu.memory_space<vmem>>, %arg10: memref<128x1xbf16, #tpu.memory_space<vmem>>, %arg11: memref<1x1024xf32, #tpu.memory_space<vmem>>, %arg12: memref<16x1xf32, #tpu.memory_space<vmem>>, %arg13: memref<528x96xf32, #tpu.memory_space<vmem>>) attributes {dimension_semantics = [#tpu.dimension_semantics<parallel>], iteration_bounds = array<i64: 1>, scalar_prefetch = 0 : i64, scratch_operands = 1 : i64, tpu.core_type = #tpu.core_type<tc>, window_params = [{transform_indices = @transform_0, window_bounds = array<i64: 16, 64>}, {transform_indices = @transform_1, window_bounds = array<i64: 31, 16, 1>}, {pipeline_mode = #tpu.pipeline_mode<synchronous>, transform_indices = @transform_2, window_bounds = array<i64: 21, 24>}, {pipeline_mode = #tpu.pipeline_mode<synchronous>, transform_indices = @transform_3, window_bounds = array<i64: 6, 3, 96, 16>}, {pipeline_mode = #tpu.pipeline_mode<synchronous>, transform_indices = @transform_4, window_bounds = array<i64: 16, 96>}, {pipeline_mode = #tpu.pipeline_mode<synchronous>, transform_indices = @transform_5, window_bounds = array<i64: 3, 96, 32>}, {pipeline_mode = #tpu.pipeline_mode<synchronous>, transform_indices = @transform_6, window_bounds = array<i64: 64, 512>}, {pipeline_mode = #tpu.pipeline_mode<synchronous>, transform_indices = @transform_7, window_bounds = array<i64: 512, 256>}, {pipeline_mode = #tpu.pipeline_mode<synchronous>, transform_indices = @transform_8, window_bounds = array<i64: 288, 128>}, {pipeline_mode = #tpu.pipeline_mode<synchronous>, transform_indices = @transform_9, window_bounds = array<i64: 128, 1>}, {pipeline_mode = #tpu.pipeline_mode<synchronous>, transform_indices = @transform_10, window_bounds = array<i64: 1, 1024>}, {transform_indices = @transform_11, window_bounds = array<i64: 16, 1>}]} {
    %c0 = arith.constant 0 : index
    %c0_0 = arith.constant 0 : index
    %0 = vector.load %arg1[%c0, %c0_0] : memref<16x64xf32, #tpu.memory_space<vmem>>, vector<16x64xf32>
    %1 = arith.truncf %0 : vector<16x64xf32> to vector<16x64xbf16>
    %c0_1 = arith.constant 0 : index
    %c0_2 = arith.constant 0 : index
    %2 = vector.load %arg7[%c0_1, %c0_2] : memref<64x512xbf16, #tpu.memory_space<vmem>>, vector<64x512xbf16>
    %cst = arith.constant dense<0.000000e+00> : vector<16x512xf32>
    %3 = tpu.matmul %1, %2, %cst {dimension_numbers = #tpu.dot_dimension_numbers<[1], [0], [0], [1], [0, 0, 1, 1], [], []>} : vector<16x64xbf16>, vector<64x512xbf16>, vector<16x512xf32> -> vector<16x512xf32>
    %c0_3 = arith.constant 0 : index
    %c0_4 = arith.constant 0 : index
    %4 = vector.load %arg11[%c0_3, %c0_4] : memref<1x1024xf32, #tpu.memory_space<vmem>>, vector<1x512xf32>
    %5 = vector.broadcast %4 : vector<1x512xf32> to vector<16x512xf32>
    %6 = arith.addf %3, %5 : vector<16x512xf32>
    %cst_5 = arith.constant 0.000000e+00 : f32
    %7 = vector.broadcast %cst_5 : f32 to vector<16x512xf32>
    %8 = arith.maximumf %6, %7 : vector<16x512xf32>
    %9 = arith.truncf %8 : vector<16x512xf32> to vector<16x512xbf16>
    %c0_6 = arith.constant 0 : index
    %c0_7 = arith.constant 0 : index
    %10 = vector.load %arg8[%c0_6, %c0_7] : memref<512x256xbf16, #tpu.memory_space<vmem>>, vector<512x256xbf16>
    %cst_8 = arith.constant dense<0.000000e+00> : vector<16x256xf32>
    %11 = tpu.matmul %9, %10, %cst_8 {dimension_numbers = #tpu.dot_dimension_numbers<[1], [0], [0], [1], [0, 0, 1, 1], [], []>} : vector<16x512xbf16>, vector<512x256xbf16>, vector<16x256xf32> -> vector<16x256xf32>
    %c0_9 = arith.constant 0 : index
    %c512 = arith.constant 512 : index
    %12 = vector.load %arg11[%c0_9, %c512] : memref<1x1024xf32, #tpu.memory_space<vmem>>, vector<1x256xf32>
    %13 = vector.broadcast %12 : vector<1x256xf32> to vector<16x256xf32>
    %14 = arith.addf %11, %13 : vector<16x256xf32>
    %cst_10 = arith.constant 0.000000e+00 : f32
    %15 = vector.broadcast %cst_10 : f32 to vector<16x256xf32>
    %16 = arith.maximumf %14, %15 : vector<16x256xf32>
    %cst_11 = arith.constant 0.000000e+00 : f32
    %17 = vector.broadcast %cst_11 : f32 to vector<528x96xf32>
    %c0_12 = arith.constant 0 : index
    %c0_13 = arith.constant 0 : index
    %18 = vector.load %arg13[%c0_12, %c0_13] : memref<528x96xf32, #tpu.memory_space<vmem>>, vector<528x96xf32>
    tpu.vector_store %arg13[%c0_12, %c0_13], %17 {strides = array<i32>} : memref<528x96xf32, #tpu.memory_space<vmem>>, vector<528x96xf32>,
    %c0_14 = arith.constant 0 : index
    %c0_15 = arith.constant 0 : index
    %c0_16 = arith.constant 0 : index
    %19 = vector.load %arg2[%c0_14, %c0_15, %c0_16] : memref<31x16x1xf32, #tpu.memory_space<vmem>>, vector<31x16x1xf32>
    %20 = vector.shape_cast %19 : vector<31x16x1xf32> to vector<496x1xf32>
    %21 = arith.fptosi %20 : vector<496x1xf32> to vector<496x1xi32>
    %22 = tpu.iota {dimensions = array<i32: 1>} : vector<496x21xi32>
    %23 = vector.broadcast %21 : vector<496x1xi32> to vector<496x21xi32>
    %24 = arith.cmpi eq, %22, %23 : vector<496x21xi32>
    %25 = arith.extui %24 : vector<496x21xi1> to vector<496x21xi32>
    %26 = arith.sitofp %25 : vector<496x21xi32> to vector<496x21xf32>
    %c0_17 = arith.constant 0 : index
    %c0_18 = arith.constant 0 : index
    %27 = vector.load %arg3[%c0_17, %c0_18] : memref<21x24xf32, #tpu.memory_space<vmem>>, vector<21x24xf32>
    %cst_19 = arith.constant dense<0.000000e+00> : vector<496x24xf32>
    %28 = tpu.matmul %26, %27, %cst_19 {dimension_numbers = #tpu.dot_dimension_numbers<[1], [0], [0], [1], [0, 0, 1, 1], [], []>} : vector<496x21xf32>, vector<21x24xf32>, vector<496x24xf32> -> vector<496x24xf32>
    %c16 = arith.constant 16 : index
    %c0_20 = arith.constant 0 : index
    %29 = vector.load %arg13[%c16, %c0_20] : memref<528x96xf32, #tpu.memory_space<vmem>>, vector<496x24xf32>
    tpu.vector_store %arg13[%c16, %c0_20], %28 {strides = array<i32>} : memref<528x96xf32, #tpu.memory_space<vmem>>, vector<496x24xf32>,
    %c0_21 = arith.constant 0 : index
    %c0_22 = arith.constant 0 : index
    %30 = vector.load %arg5[%c0_21, %c0_22] : memref<16x96xf32, #tpu.memory_space<vmem>>, vector<1x16xf32>
    %c0_23 = arith.constant 0 : index
    %c0_24 = arith.constant 0 : index
    %31 = vector.load %arg13[%c0_23, %c0_24] : memref<528x96xf32, #tpu.memory_space<vmem>>, vector<496x96xf32>
    %c0_25 = arith.constant 0 : index
    %c0_26 = arith.constant 0 : index
    %c0_27 = arith.constant 0 : index
    %c0_28 = arith.constant 0 : index
    %32 = vector.load %arg4[%c0_25, %c0_26, %c0_27, %c0_28] : memref<6x3x96x16xf32, #tpu.memory_space<vmem>>, vector<1x1x96x16xf32>
    %33 = vector.shape_cast %32 : vector<1x1x96x16xf32> to vector<96x16xf32>
    %cst_29 = arith.constant dense<0.000000e+00> : vector<496x16xf32>
    %34 = tpu.matmul %31, %33, %cst_29 {dimension_numbers = #tpu.dot_dimension_numbers<[1], [0], [0], [1], [0, 0, 1, 1], [], []>} : vector<496x96xf32>, vector<96x16xf32>, vector<496x16xf32> -> vector<496x16xf32>
    %c16_30 = arith.constant 16 : index
    %c0_31 = arith.constant 0 : index
    %35 = vector.load %arg13[%c16_30, %c0_31] : memref<528x96xf32, #tpu.memory_space<vmem>>, vector<496x96xf32>
    %c0_32 = arith.constant 0 : index
    %c1 = arith.constant 1 : index
    %c0_33 = arith.constant 0 : index
    %c0_34 = arith.constant 0 : index
    %36 = vector.load %arg4[%c0_32, %c1, %c0_33, %c0_34] : memref<6x3x96x16xf32, #tpu.memory_space<vmem>>, vector<1x1x96x16xf32>
    %37 = vector.shape_cast %36 : vector<1x1x96x16xf32> to vector<96x16xf32>
    %cst_35 = arith.constant dense<0.000000e+00> : vector<496x16xf32>
    %38 = tpu.matmul %35, %37, %cst_35 {dimension_numbers = #tpu.dot_dimension_numbers<[1], [0], [0], [1], [0, 0, 1, 1], [], []>} : vector<496x96xf32>, vector<96x16xf32>, vector<496x16xf32> -> vector<496x16xf32>
    %39 = arith.addf %34, %38 : vector<496x16xf32>
    %c32 = arith.constant 32 : index
    %c0_36 = arith.constant 0 : index
    %40 = vector.load %arg13[%c32, %c0_36] : memref<528x96xf32, #tpu.memory_space<vmem>>, vector<496x96xf32>
    %c0_37 = arith.constant 0 : index
    %c2 = arith.constant 2 : index
    %c0_38 = arith.constant 0 : index
    %c0_39 = arith.constant 0 : index
    %41 = vector.load %arg4[%c0_37, %c2, %c0_38, %c0_39] : memref<6x3x96x16xf32, #tpu.memory_space<vmem>>, vector<1x1x96x16xf32>
    %42 = vector.shape_cast %41 : vector<1x1x96x16xf32> to vector<96x16xf32>
    %cst_40 = arith.constant dense<0.000000e+00> : vector<496x16xf32>
    %43 = tpu.matmul %40, %42, %cst_40 {dimension_numbers = #tpu.dot_dimension_numbers<[1], [0], [0], [1], [0, 0, 1, 1], [], []>} : vector<496x96xf32>, vector<96x16xf32>, vector<496x16xf32> -> vector<496x16xf32>
    %44 = arith.addf %39, %43 : vector<496x16xf32>
    %45 = vector.broadcast %30 : vector<1x16xf32> to vector<496x16xf32>
    %46 = arith.addf %44, %45 : vector<496x16xf32>
    %cst_41 = arith.constant 0.000000e+00 : f32
    %47 = vector.broadcast %cst_41 : f32 to vector<496x16xf32>
    %48 = arith.maximumf %46, %47 : vector<496x16xf32>
    %c16_42 = arith.constant 16 : index
    %c72 = arith.constant 72 : index
    %49 = vector.load %arg13[%c16_42, %c72] : memref<528x96xf32, #tpu.memory_space<vmem>>, vector<496x16xf32>
    tpu.vector_store %arg13[%c16_42, %c72], %48 {strides = array<i32>} : memref<528x96xf32, #tpu.memory_space<vmem>>, vector<496x16xf32>,
    %c0_43 = arith.constant 0 : index
    %c16_44 = arith.constant 16 : index
    %50 = vector.load %arg5[%c0_43, %c16_44] : memref<16x96xf32, #tpu.memory_space<vmem>>, vector<1x16xf32>
    %c0_45 = arith.constant 0 : index
    %c0_46 = arith.constant 0 : index
    %51 = vector.load %arg13[%c0_45, %c0_46] : memref<528x96xf32, #tpu.memory_space<vmem>>, vector<496x96xf32>
    %c1_47 = arith.constant 1 : index
    %c0_48 = arith.constant 0 : index
    %c0_49 = arith.constant 0 : index
    %c0_50 = arith.constant 0 : index
    %52 = vector.load %arg4[%c1_47, %c0_48, %c0_49, %c0_50] : memref<6x3x96x16xf32, #tpu.memory_space<vmem>>, vector<1x1x96x16xf32>
    %53 = vector.shape_cast %52 : vector<1x1x96x16xf32> to vector<96x16xf32>
    %cst_51 = arith.constant dense<0.000000e+00> : vector<496x16xf32>
    %54 = tpu.matmul %51, %53, %cst_51 {dimension_numbers = #tpu.dot_dimension_numbers<[1], [0], [0], [1], [0, 0, 1, 1], [], []>} : vector<496x96xf32>, vector<96x16xf32>, vector<496x16xf32> -> vector<496x16xf32>
    %c16_52 = arith.constant 16 : index
    %c0_53 = arith.constant 0 : index
    %55 = vector.load %arg13[%c16_52, %c0_53] : memref<528x96xf32, #tpu.memory_space<vmem>>, vector<496x96xf32>
    %c1_54 = arith.constant 1 : index
    %c1_55 = arith.constant 1 : index
    %c0_56 = arith.constant 0 : index
    %c0_57 = arith.constant 0 : index
    %56 = vector.load %arg4[%c1_54, %c1_55, %c0_56, %c0_57] : memref<6x3x96x16xf32, #tpu.memory_space<vmem>>, vector<1x1x96x16xf32>
    %57 = vector.shape_cast %56 : vector<1x1x96x16xf32> to vector<96x16xf32>
    %cst_58 = arith.constant dense<0.000000e+00> : vector<496x16xf32>
    %58 = tpu.matmul %55, %57, %cst_58 {dimension_numbers = #tpu.dot_dimension_numbers<[1], [0], [0], [1], [0, 0, 1, 1], [], []>} : vector<496x96xf32>, vector<96x16xf32>, vector<496x16xf32> -> vector<496x16xf32>
    %59 = arith.addf %54, %58 : vector<496x16xf32>
    %c32_59 = arith.constant 32 : index
    %c0_60 = arith.constant 0 : index
    %60 = vector.load %arg13[%c32_59, %c0_60] : memref<528x96xf32, #tpu.memory_space<vmem>>, vector<496x96xf32>
    %c1_61 = arith.constant 1 : index
    %c2_62 = arith.constant 2 : index
    %c0_63 = arith.constant 0 : index
    %c0_64 = arith.constant 0 : index
    %61 = vector.load %arg4[%c1_61, %c2_62, %c0_63, %c0_64] : memref<6x3x96x16xf32, #tpu.memory_space<vmem>>, vector<1x1x96x16xf32>
    %62 = vector.shape_cast %61 : vector<1x1x96x16xf32> to vector<96x16xf32>
    %cst_65 = arith.constant dense<0.000000e+00> : vector<496x16xf32>
    %63 = tpu.matmul %60, %62, %cst_65 {dimension_numbers = #tpu.dot_dimension_numbers<[1], [0], [0], [1], [0, 0, 1, 1], [], []>} : vector<496x96xf32>, vector<96x16xf32>, vector<496x16xf32> -> vector<496x16xf32>
    %64 = arith.addf %59, %63 : vector<496x16xf32>
    %65 = vector.broadcast %50 : vector<1x16xf32> to vector<496x16xf32>
    %66 = arith.addf %64, %65 : vector<496x16xf32>
    %cst_66 = arith.constant 0.000000e+00 : f32
    %67 = vector.broadcast %cst_66 : f32 to vector<496x16xf32>
    %68 = arith.maximumf %66, %67 : vector<496x16xf32>
    %c16_67 = arith.constant 16 : index
    %c24 = arith.constant 24 : index
    %69 = vector.load %arg13[%c16_67, %c24] : memref<528x96xf32, #tpu.memory_space<vmem>>, vector<496x16xf32>
    tpu.vector_store %arg13[%c16_67, %c24], %68 {strides = array<i32>} : memref<528x96xf32, #tpu.memory_space<vmem>>, vector<496x16xf32>,
    %c16_68 = arith.constant 16 : index
    %c0_69 = arith.constant 0 : index
    %70 = vector.load %arg13[%c16_68, %c0_69] : memref<528x96xf32, #tpu.memory_space<vmem>>, vector<480x96xf32>
    %71 = vector.shape_cast %70 : vector<480x96xf32> to vector<15x32x96xf32>
    %72 = vector.extract_strided_slice %71 {offsets = [0, 0, 0], sizes = [15, 16, 96], strides = [1, 1, 1]} : vector<15x32x96xf32> to vector<15x16x96xf32>
    %73 = vector.extract_strided_slice %71 {offsets = [0, 16, 0], sizes = [15, 16, 96], strides = [1, 1, 1]} : vector<15x32x96xf32> to vector<15x16x96xf32>
    %74 = arith.maximumf %72, %73 : vector<15x16x96xf32>
    %75 = vector.shape_cast %74 : vector<15x16x96xf32> to vector<240x96xf32>
    %c16_70 = arith.constant 16 : index
    %c0_71 = arith.constant 0 : index
    %76 = vector.load %arg13[%c16_70, %c0_71] : memref<528x96xf32, #tpu.memory_space<vmem>>, vector<240x96xf32>
    tpu.vector_store %arg13[%c16_70, %c0_71], %75 {strides = array<i32>} : memref<528x96xf32, #tpu.memory_space<vmem>>, vector<240x96xf32>,
    %cst_72 = arith.constant 0.000000e+00 : f32
    %77 = vector.broadcast %cst_72 : f32 to vector<16x96xf32>
    %c256 = arith.constant 256 : index
    %c0_73 = arith.constant 0 : index
    %78 = vector.load %arg13[%c256, %c0_73] : memref<528x96xf32, #tpu.memory_space<vmem>>, vector<16x96xf32>
    tpu.vector_store %arg13[%c256, %c0_73], %77 {strides = array<i32>} : memref<528x96xf32, #tpu.memory_space<vmem>>, vector<16x96xf32>,
    %c0_74 = arith.constant 0 : index
    %c32_75 = arith.constant 32 : index
    %79 = vector.load %arg5[%c0_74, %c32_75] : memref<16x96xf32, #tpu.memory_space<vmem>>, vector<1x16xf32>
    %c0_76 = arith.constant 0 : index
    %c0_77 = arith.constant 0 : index
    %80 = vector.load %arg13[%c0_76, %c0_77] : memref<528x96xf32, #tpu.memory_space<vmem>>, vector<240x96xf32>
    %c2_78 = arith.constant 2 : index
    %c0_79 = arith.constant 0 : index
    %c0_80 = arith.constant 0 : index
    %c0_81 = arith.constant 0 : index
    %81 = vector.load %arg4[%c2_78, %c0_79, %c0_80, %c0_81] : memref<6x3x96x16xf32, #tpu.memory_space<vmem>>, vector<1x1x96x16xf32>
    %82 = vector.shape_cast %81 : vector<1x1x96x16xf32> to vector<96x16xf32>
    %cst_82 = arith.constant dense<0.000000e+00> : vector<240x16xf32>
    %83 = tpu.matmul %80, %82, %cst_82 {dimension_numbers = #tpu.dot_dimension_numbers<[1], [0], [0], [1], [0, 0, 1, 1], [], []>} : vector<240x96xf32>, vector<96x16xf32>, vector<240x16xf32> -> vector<240x16xf32>
    %c16_83 = arith.constant 16 : index
    %c0_84 = arith.constant 0 : index
    %84 = vector.load %arg13[%c16_83, %c0_84] : memref<528x96xf32, #tpu.memory_space<vmem>>, vector<240x96xf32>
    %c2_85 = arith.constant 2 : index
    %c1_86 = arith.constant 1 : index
    %c0_87 = arith.constant 0 : index
    %c0_88 = arith.constant 0 : index
    %85 = vector.load %arg4[%c2_85, %c1_86, %c0_87, %c0_88] : memref<6x3x96x16xf32, #tpu.memory_space<vmem>>, vector<1x1x96x16xf32>
    %86 = vector.shape_cast %85 : vector<1x1x96x16xf32> to vector<96x16xf32>
    %cst_89 = arith.constant dense<0.000000e+00> : vector<240x16xf32>
    %87 = tpu.matmul %84, %86, %cst_89 {dimension_numbers = #tpu.dot_dimension_numbers<[1], [0], [0], [1], [0, 0, 1, 1], [], []>} : vector<240x96xf32>, vector<96x16xf32>, vector<240x16xf32> -> vector<240x16xf32>
    %88 = arith.addf %83, %87 : vector<240x16xf32>
    %c32_90 = arith.constant 32 : index
    %c0_91 = arith.constant 0 : index
    %89 = vector.load %arg13[%c32_90, %c0_91] : memref<528x96xf32, #tpu.memory_space<vmem>>, vector<240x96xf32>
    %c2_92 = arith.constant 2 : index
    %c2_93 = arith.constant 2 : index
    %c0_94 = arith.constant 0 : index
    %c0_95 = arith.constant 0 : index
    %90 = vector.load %arg4[%c2_92, %c2_93, %c0_94, %c0_95] : memref<6x3x96x16xf32, #tpu.memory_space<vmem>>, vector<1x1x96x16xf32>
    %91 = vector.shape_cast %90 : vector<1x1x96x16xf32> to vector<96x16xf32>
    %cst_96 = arith.constant dense<0.000000e+00> : vector<240x16xf32>
    %92 = tpu.matmul %89, %91, %cst_96 {dimension_numbers = #tpu.dot_dimension_numbers<[1], [0], [0], [1], [0, 0, 1, 1], [], []>} : vector<240x96xf32>, vector<96x16xf32>, vector<240x16xf32> -> vector<240x16xf32>
    %93 = arith.addf %88, %92 : vector<240x16xf32>
    %94 = vector.broadcast %79 : vector<1x16xf32> to vector<240x16xf32>
    %95 = arith.addf %93, %94 : vector<240x16xf32>
    %cst_97 = arith.constant 0.000000e+00 : f32
    %96 = vector.broadcast %cst_97 : f32 to vector<240x16xf32>
    %97 = arith.maximumf %95, %96 : vector<240x16xf32>
    %c16_98 = arith.constant 16 : index
    %c72_99 = arith.constant 72 : index
    %98 = vector.load %arg13[%c16_98, %c72_99] : memref<528x96xf32, #tpu.memory_space<vmem>>, vector<240x16xf32>
    tpu.vector_store %arg13[%c16_98, %c72_99], %97 {strides = array<i32>} : memref<528x96xf32, #tpu.memory_space<vmem>>, vector<240x16xf32>,
    %c0_100 = arith.constant 0 : index
    %c48 = arith.constant 48 : index
    %99 = vector.load %arg5[%c0_100, %c48] : memref<16x96xf32, #tpu.memory_space<vmem>>, vector<1x16xf32>
    %c0_101 = arith.constant 0 : index
    %c0_102 = arith.constant 0 : index
    %100 = vector.load %arg13[%c0_101, %c0_102] : memref<528x96xf32, #tpu.memory_space<vmem>>, vector<240x96xf32>
    %c3 = arith.constant 3 : index
    %c0_103 = arith.constant 0 : index
    %c0_104 = arith.constant 0 : index
    %c0_105 = arith.constant 0 : index
    %101 = vector.load %arg4[%c3, %c0_103, %c0_104, %c0_105] : memref<6x3x96x16xf32, #tpu.memory_space<vmem>>, vector<1x1x96x16xf32>
    %102 = vector.shape_cast %101 : vector<1x1x96x16xf32> to vector<96x16xf32>
    %cst_106 = arith.constant dense<0.000000e+00> : vector<240x16xf32>
    %103 = tpu.matmul %100, %102, %cst_106 {dimension_numbers = #tpu.dot_dimension_numbers<[1], [0], [0], [1], [0, 0, 1, 1], [], []>} : vector<240x96xf32>, vector<96x16xf32>, vector<240x16xf32> -> vector<240x16xf32>
    %c16_107 = arith.constant 16 : index
    %c0_108 = arith.constant 0 : index
    %104 = vector.load %arg13[%c16_107, %c0_108] : memref<528x96xf32, #tpu.memory_space<vmem>>, vector<240x96xf32>
    %c3_109 = arith.constant 3 : index
    %c1_110 = arith.constant 1 : index
    %c0_111 = arith.constant 0 : index
    %c0_112 = arith.constant 0 : index
    %105 = vector.load %arg4[%c3_109, %c1_110, %c0_111, %c0_112] : memref<6x3x96x16xf32, #tpu.memory_space<vmem>>, vector<1x1x96x16xf32>
    %106 = vector.shape_cast %105 : vector<1x1x96x16xf32> to vector<96x16xf32>
    %cst_113 = arith.constant dense<0.000000e+00> : vector<240x16xf32>
    %107 = tpu.matmul %104, %106, %cst_113 {dimension_numbers = #tpu.dot_dimension_numbers<[1], [0], [0], [1], [0, 0, 1, 1], [], []>} : vector<240x96xf32>, vector<96x16xf32>, vector<240x16xf32> -> vector<240x16xf32>
    %108 = arith.addf %103, %107 : vector<240x16xf32>
    %c32_114 = arith.constant 32 : index
    %c0_115 = arith.constant 0 : index
    %109 = vector.load %arg13[%c32_114, %c0_115] : memref<528x96xf32, #tpu.memory_space<vmem>>, vector<240x96xf32>
    %c3_116 = arith.constant 3 : index
    %c2_117 = arith.constant 2 : index
    %c0_118 = arith.constant 0 : index
    %c0_119 = arith.constant 0 : index
    %110 = vector.load %arg4[%c3_116, %c2_117, %c0_118, %c0_119] : memref<6x3x96x16xf32, #tpu.memory_space<vmem>>, vector<1x1x96x16xf32>
    %111 = vector.shape_cast %110 : vector<1x1x96x16xf32> to vector<96x16xf32>
    %cst_120 = arith.constant dense<0.000000e+00> : vector<240x16xf32>
    %112 = tpu.matmul %109, %111, %cst_120 {dimension_numbers = #tpu.dot_dimension_numbers<[1], [0], [0], [1], [0, 0, 1, 1], [], []>} : vector<240x96xf32>, vector<96x16xf32>, vector<240x16xf32> -> vector<240x16xf32>
    %113 = arith.addf %108, %112 : vector<240x16xf32>
    %114 = vector.broadcast %99 : vector<1x16xf32> to vector<240x16xf32>
    %115 = arith.addf %113, %114 : vector<240x16xf32>
    %cst_121 = arith.constant 0.000000e+00 : f32
    %116 = vector.broadcast %cst_121 : f32 to vector<240x16xf32>
    %117 = arith.maximumf %115, %116 : vector<240x16xf32>
    %c16_122 = arith.constant 16 : index
    %c40 = arith.constant 40 : index
    %118 = vector.load %arg13[%c16_122, %c40] : memref<528x96xf32, #tpu.memory_space<vmem>>, vector<240x16xf32>
    tpu.vector_store %arg13[%c16_122, %c40], %117 {strides = array<i32>} : memref<528x96xf32, #tpu.memory_space<vmem>>, vector<240x16xf32>,
    %c16_123 = arith.constant 16 : index
    %c0_124 = arith.constant 0 : index
    %119 = vector.load %arg13[%c16_123, %c0_124] : memref<528x96xf32, #tpu.memory_space<vmem>>, vector<224x96xf32>
    %120 = vector.shape_cast %119 : vector<224x96xf32> to vector<7x32x96xf32>
    %121 = vector.extract_strided_slice %120 {offsets = [0, 0, 0], sizes = [7, 16, 96], strides = [1, 1, 1]} : vector<7x32x96xf32> to vector<7x16x96xf32>
    %122 = vector.extract_strided_slice %120 {offsets = [0, 16, 0], sizes = [7, 16, 96], strides = [1, 1, 1]} : vector<7x32x96xf32> to vector<7x16x96xf32>
    %123 = arith.maximumf %121, %122 : vector<7x16x96xf32>
    %124 = vector.shape_cast %123 : vector<7x16x96xf32> to vector<112x96xf32>
    %c16_125 = arith.constant 16 : index
    %c0_126 = arith.constant 0 : index
    %125 = vector.load %arg13[%c16_125, %c0_126] : memref<528x96xf32, #tpu.memory_space<vmem>>, vector<112x96xf32>
    tpu.vector_store %arg13[%c16_125, %c0_126], %124 {strides = array<i32>} : memref<528x96xf32, #tpu.memory_space<vmem>>, vector<112x96xf32>,
    %cst_127 = arith.constant 0.000000e+00 : f32
    %126 = vector.broadcast %cst_127 : f32 to vector<16x96xf32>
    %c128 = arith.constant 128 : index
    %c0_128 = arith.constant 0 : index
    %127 = vector.load %arg13[%c128, %c0_128] : memref<528x96xf32, #tpu.memory_space<vmem>>, vector<16x96xf32>
    tpu.vector_store %arg13[%c128, %c0_128], %126 {strides = array<i32>} : memref<528x96xf32, #tpu.memory_space<vmem>>, vector<16x96xf32>,
    %c0_129 = arith.constant 0 : index
    %c64 = arith.constant 64 : index
    %128 = vector.load %arg5[%c0_129, %c64] : memref<16x96xf32, #tpu.memory_space<vmem>>, vector<1x16xf32>
    %c0_130 = arith.constant 0 : index
    %c0_131 = arith.constant 0 : index
    %129 = vector.load %arg13[%c0_130, %c0_131] : memref<528x96xf32, #tpu.memory_space<vmem>>, vector<112x96xf32>
    %c4 = arith.constant 4 : index
    %c0_132 = arith.constant 0 : index
    %c0_133 = arith.constant 0 : index
    %c0_134 = arith.constant 0 : index
    %130 = vector.load %arg4[%c4, %c0_132, %c0_133, %c0_134] : memref<6x3x96x16xf32, #tpu.memory_space<vmem>>, vector<1x1x96x16xf32>
    %131 = vector.shape_cast %130 : vector<1x1x96x16xf32> to vector<96x16xf32>
    %cst_135 = arith.constant dense<0.000000e+00> : vector<112x16xf32>
    %132 = tpu.matmul %129, %131, %cst_135 {dimension_numbers = #tpu.dot_dimension_numbers<[1], [0], [0], [1], [0, 0, 1, 1], [], []>} : vector<112x96xf32>, vector<96x16xf32>, vector<112x16xf32> -> vector<112x16xf32>
    %c16_136 = arith.constant 16 : index
    %c0_137 = arith.constant 0 : index
    %133 = vector.load %arg13[%c16_136, %c0_137] : memref<528x96xf32, #tpu.memory_space<vmem>>, vector<112x96xf32>
    %c4_138 = arith.constant 4 : index
    %c1_139 = arith.constant 1 : index
    %c0_140 = arith.constant 0 : index
    %c0_141 = arith.constant 0 : index
    %134 = vector.load %arg4[%c4_138, %c1_139, %c0_140, %c0_141] : memref<6x3x96x16xf32, #tpu.memory_space<vmem>>, vector<1x1x96x16xf32>
    %135 = vector.shape_cast %134 : vector<1x1x96x16xf32> to vector<96x16xf32>
    %cst_142 = arith.constant dense<0.000000e+00> : vector<112x16xf32>
    %136 = tpu.matmul %133, %135, %cst_142 {dimension_numbers = #tpu.dot_dimension_numbers<[1], [0], [0], [1], [0, 0, 1, 1], [], []>} : vector<112x96xf32>, vector<96x16xf32>, vector<112x16xf32> -> vector<112x16xf32>
    %137 = arith.addf %132, %136 : vector<112x16xf32>
    %c32_143 = arith.constant 32 : index
    %c0_144 = arith.constant 0 : index
    %138 = vector.load %arg13[%c32_143, %c0_144] : memref<528x96xf32, #tpu.memory_space<vmem>>, vector<112x96xf32>
    %c4_145 = arith.constant 4 : index
    %c2_146 = arith.constant 2 : index
    %c0_147 = arith.constant 0 : index
    %c0_148 = arith.constant 0 : index
    %139 = vector.load %arg4[%c4_145, %c2_146, %c0_147, %c0_148] : memref<6x3x96x16xf32, #tpu.memory_space<vmem>>, vector<1x1x96x16xf32>
    %140 = vector.shape_cast %139 : vector<1x1x96x16xf32> to vector<96x16xf32>
    %cst_149 = arith.constant dense<0.000000e+00> : vector<112x16xf32>
    %141 = tpu.matmul %138, %140, %cst_149 {dimension_numbers = #tpu.dot_dimension_numbers<[1], [0], [0], [1], [0, 0, 1, 1], [], []>} : vector<112x96xf32>, vector<96x16xf32>, vector<112x16xf32> -> vector<112x16xf32>
    %142 = arith.addf %137, %141 : vector<112x16xf32>
    %143 = vector.broadcast %128 : vector<1x16xf32> to vector<112x16xf32>
    %144 = arith.addf %142, %143 : vector<112x16xf32>
    %cst_150 = arith.constant 0.000000e+00 : f32
    %145 = vector.broadcast %cst_150 : f32 to vector<112x16xf32>
    %146 = arith.maximumf %144, %145 : vector<112x16xf32>
    %c16_151 = arith.constant 16 : index
    %c72_152 = arith.constant 72 : index
    %147 = vector.load %arg13[%c16_151, %c72_152] : memref<528x96xf32, #tpu.memory_space<vmem>>, vector<112x16xf32>
    tpu.vector_store %arg13[%c16_151, %c72_152], %146 {strides = array<i32>} : memref<528x96xf32, #tpu.memory_space<vmem>>, vector<112x16xf32>,
    %c0_153 = arith.constant 0 : index
    %c80 = arith.constant 80 : index
    %148 = vector.load %arg5[%c0_153, %c80] : memref<16x96xf32, #tpu.memory_space<vmem>>, vector<1x16xf32>
    %c0_154 = arith.constant 0 : index
    %c0_155 = arith.constant 0 : index
    %149 = vector.load %arg13[%c0_154, %c0_155] : memref<528x96xf32, #tpu.memory_space<vmem>>, vector<112x96xf32>
    %c5 = arith.constant 5 : index
    %c0_156 = arith.constant 0 : index
    %c0_157 = arith.constant 0 : index
    %c0_158 = arith.constant 0 : index
    %150 = vector.load %arg4[%c5, %c0_156, %c0_157, %c0_158] : memref<6x3x96x16xf32, #tpu.memory_space<vmem>>, vector<1x1x96x16xf32>
    %151 = vector.shape_cast %150 : vector<1x1x96x16xf32> to vector<96x16xf32>
    %cst_159 = arith.constant dense<0.000000e+00> : vector<112x16xf32>
    %152 = tpu.matmul %149, %151, %cst_159 {dimension_numbers = #tpu.dot_dimension_numbers<[1], [0], [0], [1], [0, 0, 1, 1], [], []>} : vector<112x96xf32>, vector<96x16xf32>, vector<112x16xf32> -> vector<112x16xf32>
    %c16_160 = arith.constant 16 : index
    %c0_161 = arith.constant 0 : index
    %153 = vector.load %arg13[%c16_160, %c0_161] : memref<528x96xf32, #tpu.memory_space<vmem>>, vector<112x96xf32>
    %c5_162 = arith.constant 5 : index
    %c1_163 = arith.constant 1 : index
    %c0_164 = arith.constant 0 : index
    %c0_165 = arith.constant 0 : index
    %154 = vector.load %arg4[%c5_162, %c1_163, %c0_164, %c0_165] : memref<6x3x96x16xf32, #tpu.memory_space<vmem>>, vector<1x1x96x16xf32>
    %155 = vector.shape_cast %154 : vector<1x1x96x16xf32> to vector<96x16xf32>
    %cst_166 = arith.constant dense<0.000000e+00> : vector<112x16xf32>
    %156 = tpu.matmul %153, %155, %cst_166 {dimension_numbers = #tpu.dot_dimension_numbers<[1], [0], [0], [1], [0, 0, 1, 1], [], []>} : vector<112x96xf32>, vector<96x16xf32>, vector<112x16xf32> -> vector<112x16xf32>
    %157 = arith.addf %152, %156 : vector<112x16xf32>
    %c32_167 = arith.constant 32 : index
    %c0_168 = arith.constant 0 : index
    %158 = vector.load %arg13[%c32_167, %c0_168] : memref<528x96xf32, #tpu.memory_space<vmem>>, vector<112x96xf32>
    %c5_169 = arith.constant 5 : index
    %c2_170 = arith.constant 2 : index
    %c0_171 = arith.constant 0 : index
    %c0_172 = arith.constant 0 : index
    %159 = vector.load %arg4[%c5_169, %c2_170, %c0_171, %c0_172] : memref<6x3x96x16xf32, #tpu.memory_space<vmem>>, vector<1x1x96x16xf32>
    %160 = vector.shape_cast %159 : vector<1x1x96x16xf32> to vector<96x16xf32>
    %cst_173 = arith.constant dense<0.000000e+00> : vector<112x16xf32>
    %161 = tpu.matmul %158, %160, %cst_173 {dimension_numbers = #tpu.dot_dimension_numbers<[1], [0], [0], [1], [0, 0, 1, 1], [], []>} : vector<112x96xf32>, vector<96x16xf32>, vector<112x16xf32> -> vector<112x16xf32>
    %162 = arith.addf %157, %161 : vector<112x16xf32>
    %163 = vector.broadcast %148 : vector<1x16xf32> to vector<112x16xf32>
    %164 = arith.addf %162, %163 : vector<112x16xf32>
    %cst_174 = arith.constant 0.000000e+00 : f32
    %165 = vector.broadcast %cst_174 : f32 to vector<112x16xf32>
    %166 = arith.maximumf %164, %165 : vector<112x16xf32>
    %c16_175 = arith.constant 16 : index
    %c56 = arith.constant 56 : index
    %167 = vector.load %arg13[%c16_175, %c56] : memref<528x96xf32, #tpu.memory_space<vmem>>, vector<112x16xf32>
    tpu.vector_store %arg13[%c16_175, %c56], %166 {strides = array<i32>} : memref<528x96xf32, #tpu.memory_space<vmem>>, vector<112x16xf32>,
    %c16_176 = arith.constant 16 : index
    %c0_177 = arith.constant 0 : index
    %168 = vector.load %arg13[%c16_176, %c0_177] : memref<528x96xf32, #tpu.memory_space<vmem>>, vector<96x96xf32>
    %169 = vector.shape_cast %168 : vector<96x96xf32> to vector<3x32x96xf32>
    %170 = vector.extract_strided_slice %169 {offsets = [0, 0, 0], sizes = [3, 16, 96], strides = [1, 1, 1]} : vector<3x32x96xf32> to vector<3x16x96xf32>
    %171 = vector.extract_strided_slice %169 {offsets = [0, 16, 0], sizes = [3, 16, 96], strides = [1, 1, 1]} : vector<3x32x96xf32> to vector<3x16x96xf32>
    %172 = arith.maximumf %170, %171 : vector<3x16x96xf32>
    %173 = vector.shape_cast %172 : vector<3x16x96xf32> to vector<48x96xf32>
    %c16_178 = arith.constant 16 : index
    %c0_179 = arith.constant 0 : index
    %174 = vector.load %arg13[%c16_178, %c0_179] : memref<528x96xf32, #tpu.memory_space<vmem>>, vector<48x96xf32>
    tpu.vector_store %arg13[%c16_178, %c0_179], %173 {strides = array<i32>} : memref<528x96xf32, #tpu.memory_space<vmem>>, vector<48x96xf32>,
    %cst_180 = arith.constant 0.000000e+00 : f32
    %175 = vector.broadcast %cst_180 : f32 to vector<16x96xf32>
    %c64_181 = arith.constant 64 : index
    %c0_182 = arith.constant 0 : index
    %176 = vector.load %arg13[%c64_181, %c0_182] : memref<528x96xf32, #tpu.memory_space<vmem>>, vector<16x96xf32>
    tpu.vector_store %arg13[%c64_181, %c0_182], %175 {strides = array<i32>} : memref<528x96xf32, #tpu.memory_space<vmem>>, vector<16x96xf32>,
    %c16_183 = arith.constant 16 : index
    %c0_184 = arith.constant 0 : index
    %177 = vector.load %arg13[%c16_183, %c0_184] : memref<528x96xf32, #tpu.memory_space<vmem>>, vector<16x96xf32>
    %c0_185 = arith.constant 0 : index
    %c0_186 = arith.constant 0 : index
    %c0_187 = arith.constant 0 : index
    %178 = vector.load %arg6[%c0_185, %c0_186, %c0_187] : memref<3x96x32xf32, #tpu.memory_space<vmem>>, vector<1x96x32xf32>
    %179 = vector.shape_cast %178 : vector<1x96x32xf32> to vector<96x32xf32>
    %cst_188 = arith.constant dense<0.000000e+00> : vector<16x32xf32>
    %180 = tpu.matmul %177, %179, %cst_188 {dimension_numbers = #tpu.dot_dimension_numbers<[1], [0], [0], [1], [0, 0, 1, 1], [], []>} : vector<16x96xf32>, vector<96x32xf32>, vector<16x32xf32> -> vector<16x32xf32>
    %c32_189 = arith.constant 32 : index
    %c0_190 = arith.constant 0 : index
    %181 = vector.load %arg13[%c32_189, %c0_190] : memref<528x96xf32, #tpu.memory_space<vmem>>, vector<16x96xf32>
    %c1_191 = arith.constant 1 : index
    %c0_192 = arith.constant 0 : index
    %c0_193 = arith.constant 0 : index
    %182 = vector.load %arg6[%c1_191, %c0_192, %c0_193] : memref<3x96x32xf32, #tpu.memory_space<vmem>>, vector<1x96x32xf32>
    %183 = vector.shape_cast %182 : vector<1x96x32xf32> to vector<96x32xf32>
    %cst_194 = arith.constant dense<0.000000e+00> : vector<16x32xf32>
    %184 = tpu.matmul %181, %183, %cst_194 {dimension_numbers = #tpu.dot_dimension_numbers<[1], [0], [0], [1], [0, 0, 1, 1], [], []>} : vector<16x96xf32>, vector<96x32xf32>, vector<16x32xf32> -> vector<16x32xf32>
    %185 = arith.addf %180, %184 : vector<16x32xf32>
    %c48_195 = arith.constant 48 : index
    %c0_196 = arith.constant 0 : index
    %186 = vector.load %arg13[%c48_195, %c0_196] : memref<528x96xf32, #tpu.memory_space<vmem>>, vector<16x96xf32>
    %c2_197 = arith.constant 2 : index
    %c0_198 = arith.constant 0 : index
    %c0_199 = arith.constant 0 : index
    %187 = vector.load %arg6[%c2_197, %c0_198, %c0_199] : memref<3x96x32xf32, #tpu.memory_space<vmem>>, vector<1x96x32xf32>
    %188 = vector.shape_cast %187 : vector<1x96x32xf32> to vector<96x32xf32>
    %cst_200 = arith.constant dense<0.000000e+00> : vector<16x32xf32>
    %189 = tpu.matmul %186, %188, %cst_200 {dimension_numbers = #tpu.dot_dimension_numbers<[1], [0], [0], [1], [0, 0, 1, 1], [], []>} : vector<16x96xf32>, vector<96x32xf32>, vector<16x32xf32> -> vector<16x32xf32>
    %190 = arith.addf %185, %189 : vector<16x32xf32>
    %c8 = arith.constant 8 : index
    %c0_201 = arith.constant 0 : index
    %191 = vector.load %arg5[%c8, %c0_201] : memref<16x96xf32, #tpu.memory_space<vmem>>, vector<1x32xf32>
    %192 = vector.broadcast %191 : vector<1x32xf32> to vector<16x32xf32>
    %193 = arith.addf %190, %192 : vector<16x32xf32>
    %cst_202 = arith.constant 0.000000e+00 : f32
    %194 = vector.broadcast %cst_202 : f32 to vector<16x32xf32>
    %195 = arith.maximumf %193, %194 : vector<16x32xf32>
    %196 = arith.truncf %195 : vector<16x32xf32> to vector<16x32xbf16>
    %c0_203 = arith.constant 0 : index
    %c0_204 = arith.constant 0 : index
    %197 = vector.load %arg9[%c0_203, %c0_204] : memref<288x128xbf16, #tpu.memory_space<vmem>>, vector<32x128xbf16>
    %cst_205 = arith.constant dense<0.000000e+00> : vector<16x128xf32>
    %198 = tpu.matmul %196, %197, %cst_205 {dimension_numbers = #tpu.dot_dimension_numbers<[1], [0], [0], [1], [0, 0, 1, 1], [], []>} : vector<16x32xbf16>, vector<32x128xbf16>, vector<16x128xf32> -> vector<16x128xf32>
    %199 = arith.truncf %16 : vector<16x256xf32> to vector<16x256xbf16>
    %c32_206 = arith.constant 32 : index
    %c0_207 = arith.constant 0 : index
    %200 = vector.load %arg9[%c32_206, %c0_207] : memref<288x128xbf16, #tpu.memory_space<vmem>>, vector<256x128xbf16>
    %cst_208 = arith.constant dense<0.000000e+00> : vector<16x128xf32>
    %201 = tpu.matmul %199, %200, %cst_208 {dimension_numbers = #tpu.dot_dimension_numbers<[1], [0], [0], [1], [0, 0, 1, 1], [], []>} : vector<16x256xbf16>, vector<256x128xbf16>, vector<16x128xf32> -> vector<16x128xf32>
    %202 = arith.addf %198, %201 : vector<16x128xf32>
    %c0_209 = arith.constant 0 : index
    %c768 = arith.constant 768 : index
    %203 = vector.load %arg11[%c0_209, %c768] : memref<1x1024xf32, #tpu.memory_space<vmem>>, vector<1x128xf32>
    %204 = vector.broadcast %203 : vector<1x128xf32> to vector<16x128xf32>
    %205 = arith.addf %202, %204 : vector<16x128xf32>
    %cst_210 = arith.constant 0.000000e+00 : f32
    %206 = vector.broadcast %cst_210 : f32 to vector<16x128xf32>
    %207 = arith.maximumf %205, %206 : vector<16x128xf32>
    %208 = arith.truncf %207 : vector<16x128xf32> to vector<16x128xbf16>
    %c0_211 = arith.constant 0 : index
    %c0_212 = arith.constant 0 : index
    %209 = vector.load %arg10[%c0_211, %c0_212] : memref<128x1xbf16, #tpu.memory_space<vmem>>, vector<128x1xbf16>
    %cst_213 = arith.constant dense<0.000000e+00> : vector<16x1xf32>
    %210 = tpu.matmul %208, %209, %cst_213 {dimension_numbers = #tpu.dot_dimension_numbers<[1], [0], [0], [1], [0, 0, 1, 1], [], []>} : vector<16x128xbf16>, vector<128x1xbf16>, vector<16x1xf32> -> vector<16x1xf32>
    %c0_214 = arith.constant 0 : index
    %c896 = arith.constant 896 : index
    %211 = vector.load %arg11[%c0_214, %c896] : memref<1x1024xf32, #tpu.memory_space<vmem>>, vector<1x1xf32>
    %212 = vector.broadcast %211 : vector<1x1xf32> to vector<16x1xf32>
    %213 = arith.addf %210, %212 : vector<16x1xf32>
    %cst_215 = arith.constant 0.000000e+00 : f32
    %214 = vector.broadcast %cst_215 : f32 to vector<16x1xf32>
    %215 = arith.subf %214, %213 : vector<16x1xf32>
    %216 = math.exp %215 : vector<16x1xf32>
    %cst_216 = arith.constant 1.000000e+00 : f32
    %217 = vector.broadcast %cst_216 : f32 to vector<16x1xf32>
    %218 = arith.addf %217, %216 : vector<16x1xf32>
    %cst_217 = arith.constant 1.000000e+00 : f32
    %219 = vector.broadcast %cst_217 : f32 to vector<16x1xf32>
    %220 = arith.divf %219, %218 : vector<16x1xf32>
    %c0_218 = arith.constant 0 : index
    %c0_219 = arith.constant 0 : index
    %221 = vector.load %arg12[%c0_218, %c0_219] : memref<16x1xf32, #tpu.memory_space<vmem>>, vector<16x1xf32>
    tpu.vector_store %arg12[%c0_218, %c0_219], %220 {strides = array<i32>} : memref<16x1xf32, #tpu.memory_space<vmem>>, vector<16x1xf32>,
    return
  }
  func.func @transform_0(%arg0: i32) -> (i32, i32) {
    %c0_i32 = arith.constant 0 : i32
    %c0_i32_0 = arith.constant 0 : i32
    return %arg0, %c0_i32 : i32, i32
  }
  func.func @transform_1(%arg0: i32) -> (i32, i32, i32) {
    %c0_i32 = arith.constant 0 : i32
    %c0_i32_0 = arith.constant 0 : i32
    %c0_i32_1 = arith.constant 0 : i32
    return %c0_i32, %arg0, %c0_i32_0 : i32, i32, i32
  }
  func.func @transform_2(%arg0: i32) -> (i32, i32) {
    %c0_i32 = arith.constant 0 : i32
    %c0_i32_0 = arith.constant 0 : i32
    %c0_i32_1 = arith.constant 0 : i32
    return %c0_i32, %c0_i32_0 : i32, i32
  }
  func.func @transform_3(%arg0: i32) -> (i32, i32, i32, i32) {
    %c0_i32 = arith.constant 0 : i32
    %c0_i32_0 = arith.constant 0 : i32
    %c0_i32_1 = arith.constant 0 : i32
    %c0_i32_2 = arith.constant 0 : i32
    %c0_i32_3 = arith.constant 0 : i32
    return %c0_i32, %c0_i32_0, %c0_i32_1, %c0_i32_2 : i32, i32, i32, i32
  }
  func.func @transform_4(%arg0: i32) -> (i32, i32) {
    %c0_i32 = arith.constant 0 : i32
    %c0_i32_0 = arith.constant 0 : i32
    %c0_i32_1 = arith.constant 0 : i32
    return %c0_i32, %c0_i32_0 : i32, i32
  }
  func.func @transform_5(%arg0: i32) -> (i32, i32, i32) {
    %c0_i32 = arith.constant 0 : i32
    %c0_i32_0 = arith.constant 0 : i32
    %c0_i32_1 = arith.constant 0 : i32
    %c0_i32_2 = arith.constant 0 : i32
    return %c0_i32, %c0_i32_0, %c0_i32_1 : i32, i32, i32
  }
  func.func @transform_6(%arg0: i32) -> (i32, i32) {
    %c0_i32 = arith.constant 0 : i32
    %c0_i32_0 = arith.constant 0 : i32
    %c0_i32_1 = arith.constant 0 : i32
    return %c0_i32, %c0_i32_0 : i32, i32
  }
  func.func @transform_7(%arg0: i32) -> (i32, i32) {
    %c0_i32 = arith.constant 0 : i32
    %c0_i32_0 = arith.constant 0 : i32
    %c0_i32_1 = arith.constant 0 : i32
    return %c0_i32, %c0_i32_0 : i32, i32
  }
  func.func @transform_8(%arg0: i32) -> (i32, i32) {
    %c0_i32 = arith.constant 0 : i32
    %c0_i32_0 = arith.constant 0 : i32
    %c0_i32_1 = arith.constant 0 : i32
    return %c0_i32, %c0_i32_0 : i32, i32
  }
  func.func @transform_9(%arg0: i32) -> (i32, i32) {
    %c0_i32 = arith.constant 0 : i32
    %c0_i32_0 = arith.constant 0 : i32
    %c0_i32_1 = arith.constant 0 : i32
    return %c0_i32, %c0_i32_0 : i32, i32
  }
  func.func @transform_10(%arg0: i32) -> (i32, i32) {
    %c0_i32 = arith.constant 0 : i32
    %c0_i32_0 = arith.constant 0 : i32
    %c0_i32_1 = arith.constant 0 : i32
    return %c0_i32, %c0_i32_0 : i32, i32
  }
  func.func @transform_11(%arg0: i32) -> (i32, i32) {
    %c0_i32 = arith.constant 0 : i32
    %c0_i32_0 = arith.constant 0 : i32
    return %arg0, %c0_i32 : i32, i32
  }
}

</mosaic_0001>

<bundles_post_ra>
// kernel: tpu_custom_call.1
= control target key start
LH: loop header
LB: loop body
LE: loop exit
PB: predicated region body
PF: predicated region fallthrough
CT: control target
= control target key end

     0   :  { %v14895_v1 = vmov 0   ;;  %vm160_vm0 = vcmask 523264   ;;  %vm1503_vm1 = vcmask 1044480   ;;  %vm1316_vm3 = vcmask 171008   ;;  %s14898_s27 = smov 112   ;;  %s14900_s16 = smov 96   ;;  %s20173_s6 = inlined_call_operand.vmem [shape: bf16[64,512], index: 6, kind: input, shape index: {}]   ;;  %s20174_s1 = inlined_call_operand.vmem [shape: f32[31,16,1], index: 1, kind: input, shape index: {}]   ;;  %s20175_s0 = inlined_call_operand.vmem [shape: f32[16,64], index: 0, kind: input, shape index: {}]   ;;  %s20176_s7 = inlined_call_operand.vmem [shape: bf16[512,256], index: 7, kind: input, shape index: {}]   ;;  %s20177_s2 = inlined_call_operand.vmem [shape: f32[21,24], index: 2, kind: input, shape index: {}]   ;;  %s20178_s10 = inlined_call_operand.vmem [shape: f32[1,1024], index: 10, kind: input, shape index: {}]   ;;  %s20179_s3 = inlined_call_operand.vmem [shape: f32[6,3,96,16], index: 3, kind: input, shape index: {}]   ;;  %s20180_s4 = inlined_call_operand.vmem [shape: f32[16,96], index: 4, kind: input, shape index: {}]   ;;  %s20181_s5 = inlined_call_operand.vmem [shape: f32[3,96,32], index: 5, kind: input, shape index: {}]   ;;  %s20182_s8 = inlined_call_operand.vmem [shape: bf16[288,128], index: 8, kind: input, shape index: {}]   ;;  %s20183_s9 = inlined_call_operand.vmem [shape: bf16[128,1], index: 9, kind: input, shape index: {}]   ;;  %s20184_s11 = inlined_call_operand.vmem [shape: f32[16,1], index: 11, kind: output, shape index: {}]  }
   0x1   :  { %v14740_v0 = vld [vmem:[%s20173_s6 + $0x64] ss:$16 sps:$4 sm:$0xff]   ;;  %14739 = vset.pattern.permute.xlu1 %v14895_v1  ;;  %14738 = vset.pattern.permute.xlu0 %v14895_v1  ;;  %v14742_v2 = vld [vmem:[%s20173_s6 + $0x60] ss:$16 sps:$4 sm:$0xff]   ;;  %v14743_v3 = vld [vmem:[%s20173_s6 + $0x6c] ss:$16 sps:$4 sm:$0xff]  }
   0x2   :  { %196 = vmatprep.mubr.bf16.mxu0 %v14895_v1  ;;  %239 = vmatprep.mubr.bf16.mxu1 %v14895_v1  ;;  %v817_v4 = vld [vmem:[%s20174_s1 + $0x10] sm:$0xff]  ;;  %v815_v5 = vld [vmem:[%s20174_s1] sm:$0xff]  ;;  %v14745_v8 = vld [vmem:[%s20173_s6 + $0x68] ss:$16 sps:$4 sm:$0xff]   ;;  %s14901_s23 = smov 80   ;;  %s14902_s30 = smov 40  }
   0x3   :  { %172 = vmatprep.subr.bf16.mxu0 %v14740_v0  ;;  %v14606_v6 = vtrunc.f32 %v817_v4  ;;  %v14602_v7 = vtrunc.f32 %v815_v5  ;;  %215 = vmatprep.subr.bf16.mxu1 %v14743_v3  ;;  %v14746_v9 = vld [vmem:[%s20173_s6 + $0x44] ss:$16 sps:$4 sm:$0xff]   ;;  %v14748_v10 = vld [vmem:[%s20173_s6 + $0x40] ss:$16 sps:$4 sm:$0xff]   ;;  %v14749_v13 = vld [vmem:[%s20173_s6 + $0x4c] ss:$16 sps:$4 sm:$0xff]  }
   0x4   :  { %173 = vmatpush1.bf16.msra.mxu0 %v14742_v2  ;;  %216 = vmatpush1.bf16.msra.mxu1 %v14745_v8  ;;  %v818_v14 = vld [vmem:[%s20174_s1 + $0x18] sm:$0xff]  ;;  %v816_v16 = vld [vmem:[%s20174_s1 + $0x8] sm:$0xff]  ;;  %v14752_v19 = vld [vmem:[%s20173_s6 + $0x24] ss:$16 sps:$4 sm:$0xff]   ;;  %s14903_s15 = smov 64   ;;  %s14904_s22 = smov 48  }
   0x5   :  { %v14607_v11 = vcvt.f32.s32 %v14606_v6  ;;  %v14603_v12 = vcvt.f32.s32 %v14602_v7  ;;  %174 = vmatprep.subr.bf16.mxu0 %v14746_v9  ;;  %v14608_v15 = vtrunc.f32 %v818_v14  ;;  %v14751_v17 = vld [vmem:[%s20173_s6 + $0x48] ss:$16 sps:$4 sm:$0xff]   ;;  %v14604_v18 = vtrunc.f32 %v816_v16  ;;  %v14754_v20 = vld [vmem:[%s20173_s6 + $0x20] ss:$16 sps:$4 sm:$0xff]   ;;  %217 = vmatprep.subr.bf16.mxu1 %v14749_v13  ;;  %v14755_v22 = vld [vmem:[%s20173_s6 + $0x2c] ss:$16 sps:$4 sm:$0xff]  }
   0x6   :  { %v820_v24 = vld [vmem:[%s20174_s1 + $0x28] sm:$0xff]  ;;  %v819_v25 = vld [vmem:[%s20174_s1 + $0x20] sm:$0xff]  ;;  %v822_v34 = vld [vmem:[%s20174_s1 + $0x38] sm:$0xff]  ;;  %s14905_s18 = smov 56  }
   0x7   :  { %948 = vperm.xlu1 %14739, %v14607_v11   ;;  %942 = vperm.xlu0 %14738, %v14603_v12   ;;  %v14609_v21 = vcvt.f32.s32 %v14608_v15  ;;  %v14605_v23 = vcvt.f32.s32 %v14604_v18  ;;  %v14757_v26 = vld [vmem:[%s20173_s6 + $0x28] ss:$16 sps:$4 sm:$0xff]   ;;  %v14612_v27 = vtrunc.f32 %v820_v24  ;;  %v14610_v28 = vtrunc.f32 %v819_v25  ;;  %v14758_v29 = vld [vmem:[%s20173_s6 + $0x4] ss:$16 sps:$4 sm:$0xff]   ;;  %v14760_v30 = vld [vmem:[%s20173_s6] ss:$16 sps:$4 sm:$0xff]  }
   0x8   :  { %175 = vmatpush1.bf16.msra.mxu0 %v14748_v10  ;;  %218 = vmatpush1.bf16.msra.mxu1 %v14751_v17  ;;  %v14761_v33 = vld [vmem:[%s20173_s6 + $0xc] ss:$16 sps:$4 sm:$0xff]   ;;  %v821_v35 = vld [vmem:[%s20174_s1 + $0x30] sm:$0xff]  ;;  %v14616_v36 = vtrunc.f32 %v822_v34  ;;  %v14763_v38 = vld [vmem:[%s20173_s6 + $0x8] ss:$16 sps:$4 sm:$0xff]  }
   0x9   :  { %176 = vmatprep.subr.bf16.mxu0 %v14752_v19  ;;  %219 = vmatprep.subr.bf16.mxu1 %v14755_v22  ;;  %v14613_v31 = vcvt.f32.s32 %v14612_v27  ;;  %v14611_v32 = vcvt.f32.s32 %v14610_v28  ;;  %v14614_v37 = vtrunc.f32 %v821_v35  ;;  %v39_v39 = vld [vmem:[%s20175_s0] sm:$0xff]  ;;  %v40_v40 = vld [vmem:[%s20175_s0 + $0x8] sm:$0xff]  ;;  %v826_v48 = vld [vmem:[%s20174_s1 + $0x58] sm:$0xff] }
   0xa   :  { %v824_v41 = vld [vmem:[%s20174_s1 + $0x48] sm:$0xff]  ;;  %v823_v42 = vld [vmem:[%s20174_s1 + $0x40] sm:$0xff]  ;;  %v14617_v43 = vcvt.f32.s32 %v14616_v36  ;;  %v41_v47 = vpack.c.bf16 %v40_v40, %v39_v39  ;;  %v825_v49 = vld [vmem:[%s20174_s1 + $0x50] sm:$0xff]  ;;  %v14624_v52 = vtrunc.f32 %v826_v48 }
   0xb   :  { %951 = vperm.xlu1 %14739, %v14609_v21   ;;  %945 = vperm.xlu0 %14738, %v14605_v23   ;;  %v14615_v44 = vcvt.f32.s32 %v14614_v37  ;;  %v14620_v45 = vtrunc.f32 %v824_v41  ;;  %v14618_v46 = vtrunc.f32 %v823_v42  ;;  %v14622_v53 = vtrunc.f32 %v825_v49  ;;  %v828_v54 = vld [vmem:[%s20174_s1 + $0x68] sm:$0xff]  ;;  %v827_v55 = vld [vmem:[%s20174_s1 + $0x60] sm:$0xff]  ;;  %v830_v60 = vld [vmem:[%s20174_s1 + $0x78] sm:$0xff] }
   0xc   :  { %177 = vmatpush1.bf16.msra.mxu0 %v14754_v20  ;;  %220 = vmatpush1.bf16.msra.mxu1 %v14757_v26  ;;  %v14625_v56 = vcvt.f32.s32 %v14624_v52  ;;  %v14628_v58 = vtrunc.f32 %v828_v54  ;;  %v14626_v59 = vtrunc.f32 %v827_v55  ;;  %v829_v61 = vld [vmem:[%s20174_s1 + $0x70] sm:$0xff]  ;;  %v14632_v0 = vtrunc.f32 %v830_v60  ;;  %v832_v2 = vld [vmem:[%s20174_s1 + $0x88] sm:$0xff]  ;;  %v831_v3 = vld [vmem:[%s20174_s1 + $0x80] sm:$0xff] }
   0xd   :  { %178 = vmatprep.subr.bf16.mxu0 %v14758_v29  ;;  %221 = vmatprep.subr.bf16.mxu1 %v14761_v33  ;;  %v14621_v50 = vcvt.f32.s32 %v14620_v45  ;;  %v14619_v51 = vcvt.f32.s32 %v14618_v46  ;;  %v14623_v57 = vcvt.f32.s32 %v14622_v53  ;;  %v14630_v1 = vtrunc.f32 %v829_v61  ;;  %v834_v8 = vld [vmem:[%s20174_s1 + $0x98] sm:$0xff]  ;;  %v833_v9 = vld [vmem:[%s20174_s1 + $0x90] sm:$0xff]  ;;  %v836_v12 = vld [vmem:[%s20174_s1 + $0xa8] sm:$0xff] }
   0xe   :  { %v14629_v62 = vcvt.f32.s32 %v14628_v58  ;;  %v14627_v63 = vcvt.f32.s32 %v14626_v59  ;;  %v14633_v4 = vcvt.f32.s32 %v14632_v0  ;;  %v14636_v6 = vtrunc.f32 %v832_v2  ;;  %v14764_v10 = vld [vmem:[%s20176_s7 + $0x70] ss:$8 sps:$4 sm:$0xff]   ;;  %v14766_v11 = vld [vmem:[%s20176_s7 + $0x74] ss:$8 sps:$4 sm:$0xff]   ;;  %v835_v13 = vld [vmem:[%s20174_s1 + $0xa0] sm:$0xff] }
   0xf   :  { %957 = vperm.xlu1 %14739, %v14613_v31   ;;  %954 = vperm.xlu0 %14738, %v14611_v32   ;;  %v14631_v5 = vcvt.f32.s32 %v14630_v1  ;;  %v14634_v7 = vtrunc.f32 %v831_v3  ;;  %v14769_v14 = vld [vmem:[%s20176_s7 + $0x174] ss:$8 sps:$4 sm:$0xff]   ;;  %v14640_v17 = vtrunc.f32 %v834_v8  ;;  %v14638_v18 = vtrunc.f32 %v833_v9  ;;  %v14767_v19 = vld [vmem:[%s20176_s7 + $0x170] ss:$8 sps:$4 sm:$0xff]   ;;  %v14772_v20 = vld [vmem:[%s20176_s7 + $0x64] ss:$8 sps:$4 sm:$0xff]  }
  0x10   :  { %179 = vmatpush1.bf16.msra.mxu0 %v14760_v30  ;;  %222 = vmatpush1.bf16.msra.mxu1 %v14763_v38  ;;  %v14637_v15 = vcvt.f32.s32 %v14636_v6  ;;  %v14770_v21 = vld [vmem:[%s20176_s7 + $0x60] ss:$8 sps:$4 sm:$0xff]   ;;  %v838_v22 = vld [vmem:[%s20174_s1 + $0xb8] sm:$0xff]  ;;  %v837_v23 = vld [vmem:[%s20174_s1 + $0xb0] sm:$0xff]  ;;  %v14644_v27 = vtrunc.f32 %v836_v12  ;;  %v14642_v28 = vtrunc.f32 %v835_v13 }
  0x11   :  { %v14635_v16 = vcvt.f32.s32 %v14634_v7  ;;  %658 = vmatprep.subr.bf16.mxu0 %v14766_v11  ;;  %701 = vmatprep.subr.bf16.mxu1 %v14769_v14  ;;  %v14775_v24 = vld [vmem:[%s20176_s7 + $0x164] ss:$8 sps:$4 sm:$0xff]   ;;  %v14641_v25 = vcvt.f32.s32 %v14640_v17  ;;  %v14639_v26 = vcvt.f32.s32 %v14638_v18  ;;  %v14773_v29 = vld [vmem:[%s20176_s7 + $0x160] ss:$8 sps:$4 sm:$0xff]   ;;  %v14778_v30 = vld [vmem:[%s20176_s7 + $0x54] ss:$8 sps:$4 sm:$0xff]   ;;  %v14648_v37 = vtrunc.f32 %v838_v22 }
  0x12   :  { %v14776_v31 = vld [vmem:[%s20176_s7 + $0x50] ss:$8 sps:$4 sm:$0xff]   ;;  %v840_v32 = vld [vmem:[%s20174_s1 + $0xc8] sm:$0xff]  ;;  %v839_v33 = vld [vmem:[%s20174_s1 + $0xc0] sm:$0xff]  ;;  %v14645_v35 = vcvt.f32.s32 %v14644_v27  ;;  %v14643_v36 = vcvt.f32.s32 %v14642_v28  ;;  %v14646_v38 = vtrunc.f32 %v837_v23 }
  0x13   :  { %963 = vperm.xlu1 %14739, %v14617_v43   ;;  %960 = vperm.xlu0 %14738, %v14615_v44   ;;  %v14781_v34 = vld [vmem:[%s20176_s7 + $0x154] ss:$8 sps:$4 sm:$0xff]   ;;  %v14779_v39 = vld [vmem:[%s20176_s7 + $0x150] ss:$8 sps:$4 sm:$0xff]   ;;  %v14784_v40 = vld [vmem:[%s20176_s7 + $0x44] ss:$8 sps:$4 sm:$0xff]   ;;  %v14649_v45 = vcvt.f32.s32 %v14648_v37  ;;  %v14650_v48 = vtrunc.f32 %v839_v33 }
  0x14   :  { %10918 = vmatmul.mubr.msk.bf16.vlgmr.msra.gmra.mxu0 %vm160_vm0, %v41_v47  ;;  %10919 = vmatmul.mubr.msk.bf16.vlgmr.msra.gmra.mxu1 %vm160_vm0, %v41_v47  ;;  %v14782_v41 = vld [vmem:[%s20176_s7 + $0x40] ss:$8 sps:$4 sm:$0xff]   ;;  %v842_v42 = vld [vmem:[%s20174_s1 + $0xd8] sm:$0xff]  ;;  %v841_v43 = vld [vmem:[%s20174_s1 + $0xd0] sm:$0xff]  ;;  %v14647_v46 = vcvt.f32.s32 %v14646_v38  ;;  %v14652_v47 = vtrunc.f32 %v840_v32 }
  0x15   :  { %659 = vmatpush1.bf16.msra.mxu0 %v14764_v10  ;;  %702 = vmatpush1.bf16.msra.mxu1 %v14767_v19  ;;  %v14787_v44 = vld [vmem:[%s20176_s7 + $0x144] ss:$8 sps:$4 sm:$0xff]   ;;  %v14785_v49 = vld [vmem:[%s20176_s7 + $0x140] ss:$8 sps:$4 sm:$0xff]   ;;  %v14793_v54 = vld [vmem:[%s20176_s7 + $0x134] ss:$8 sps:$4 sm:$0xff]   ;;  %v14654_v58 = vtrunc.f32 %v841_v43 }
  0x16   :  { %660 = vmatprep.subr.bf16.mxu0 %v14772_v20  ;;  %703 = vmatprep.subr.bf16.mxu1 %v14775_v24  ;;  %v844_v52 = vld [vmem:[%s20174_s1 + $0xe8] sm:$0xff]  ;;  %v843_v53 = vld [vmem:[%s20174_s1 + $0xe0] sm:$0xff]  ;;  %v14653_v55 = vcvt.f32.s32 %v14652_v47  ;;  %v14791_v59 = vld [vmem:[%s20176_s7 + $0x130] ss:$8 sps:$4 sm:$0xff]  }
  0x17   :  { %969 = vperm.xlu1 %14739, %v14621_v50   ;;  %966 = vperm.xlu0 %14738, %v14619_v51   ;;  %v14790_v50 = vld [vmem:[%s20176_s7 + $0x34] ss:$8 sps:$4 sm:$0xff]   ;;  %v14788_v51 = vld [vmem:[%s20176_s7 + $0x30] ss:$8 sps:$4 sm:$0xff]   ;;  %v14796_v60 = vld [vmem:[%s20176_s7 + $0x24] ss:$8 sps:$4 sm:$0xff]   ;;  %v14655_v2 = vcvt.f32.s32 %v14654_v58  ;;  %v14660_v3 = vtrunc.f32 %v844_v52 }
  0x18   :  { %v14794_v61 = vld [vmem:[%s20176_s7 + $0x20] ss:$8 sps:$4 sm:$0xff]   ;;  %v14799_v0 = vld [vmem:[%s20176_s7 + $0x124] ss:$8 sps:$4 sm:$0xff]   ;;  %v14802_v6 = vld [vmem:[%s20176_s7 + $0x14] ss:$8 sps:$4 sm:$0xff]  }
  0x19   :  { %661 = vmatpush1.bf16.msra.mxu0 %v14770_v21  ;;  %704 = vmatpush1.bf16.msra.mxu1 %v14773_v29  ;;  %v14800_v7 = vld [vmem:[%s20176_s7 + $0x10] ss:$8 sps:$4 sm:$0xff]   ;;  %v848_v8 = vld [vmem:[%s20174_s1 + $0x108] sm:$0xff]  ;;  %v847_v9 = vld [vmem:[%s20174_s1 + $0x100] sm:$0xff]  ;;  %v14661_v11 = vcvt.f32.s32 %v14660_v3 }
  0x1a   :  { %662 = vmatprep.subr.bf16.mxu0 %v14778_v30  ;;  %705 = vmatprep.subr.bf16.mxu1 %v14781_v34  ;;  %v14805_v10 = vld [vmem:[%s20176_s7 + $0x114] ss:$8 sps:$4 sm:$0xff]   ;;  %v14806_v17 = vld [vmem:[%s20176_s7] ss:$8 sps:$4 sm:$0xff]   ;;  %v14811_v18 = vld [vmem:[%s20176_s7 + $0x104] ss:$8 sps:$4 sm:$0xff]   ;;  %v14668_v21 = vtrunc.f32 %v848_v8  ;;  %v14666_v22 = vtrunc.f32 %v847_v9 }
  0x1b   :  { %975 = vperm.xlu1 %14739, %v14625_v56   ;;  %972 = vperm.xlu0 %14738, %v14623_v57   ;;  %v14651_v56 = vcvt.f32.s32 %v14650_v48  ;;  %v14656_v57 = vtrunc.f32 %v842_v42  ;;  %v14809_v23 = vld [vmem:[%s20176_s7 + $0x100] ss:$8 sps:$4 sm:$0xff]   ;;  %v850_v24 = vld [vmem:[%s20174_s1 + $0x118] sm:$0xff]  ;;  %v14823_v38 = vld [vmem:[%s20176_s7 + $0x1e4] ss:$8 sps:$4 sm:$0xff]  }
  0x1c   :  { %v14812_v27 = vld [vmem:[%s20176_s7 + $0xf0] ss:$8 sps:$4 sm:$0xff]   ;;  %v14817_v28 = vld [vmem:[%s20176_s7 + $0x1f4] ss:$8 sps:$4 sm:$0xff]   ;;  %v14669_v29 = vcvt.f32.s32 %v14668_v21  ;;  %v14667_v30 = vcvt.f32.s32 %v14666_v22  ;;  %v852_v34 = vld [vmem:[%s20174_s1 + $0x128] sm:$0xff] }
  0x1d   :  { %663 = vmatpush1.bf16.msra.mxu0 %v14776_v31  ;;  %706 = vmatpush1.bf16.msra.mxu1 %v14779_v39  ;;  %v14657_v1 = vcvt.f32.s32 %v14656_v57  ;;  %v14672_v31 = vtrunc.f32 %v850_v24  ;;  %v14815_v33 = vld [vmem:[%s20176_s7 + $0x1f0] ss:$8 sps:$4 sm:$0xff]   ;;  %v14818_v37 = vld [vmem:[%s20176_s7 + $0xe0] ss:$8 sps:$4 sm:$0xff]   ;;  %v14829_v48 = vld [vmem:[%s20176_s7 + $0x1d4] ss:$8 sps:$4 sm:$0xff]  }
  0x1e   :  { %664 = vmatprep.subr.bf16.mxu0 %v14784_v40  ;;  %707 = vmatprep.subr.bf16.mxu1 %v14787_v44  ;;  %v14821_v43 = vld [vmem:[%s20176_s7 + $0x1e0] ss:$8 sps:$4 sm:$0xff]   ;;  %v854_v44 = vld [vmem:[%s20174_s1 + $0x138] sm:$0xff]  ;;  %v14835_v58 = vld [vmem:[%s20176_s7 + $0x1c4] ss:$8 sps:$4 sm:$0xff]  }
  0x1f   :  { %981 = vperm.xlu1 %14739, %v14629_v62   ;;  %978 = vperm.xlu0 %14738, %v14627_v63   ;;  %v846_v62 = vld [vmem:[%s20174_s1 + $0xf8] sm:$0xff]  ;;  %v845_v63 = vld [vmem:[%s20174_s1 + $0xf0] sm:$0xff]  ;;  %v14673_v39 = vcvt.f32.s32 %v14672_v31  ;;  %v14830_v57 = vld [vmem:[%s20176_s7 + $0xc0] ss:$8 sps:$4 sm:$0xff]  }
  0x20   :  { %v14664_v13 = vtrunc.f32 %v846_v62  ;;  %v14662_v14 = vtrunc.f32 %v845_v63  ;;  %v14824_v47 = vld [vmem:[%s20176_s7 + $0xd0] ss:$8 sps:$4 sm:$0xff]   ;;  %v14833_v63 = vld [vmem:[%s20176_s7 + $0x1c0] ss:$8 sps:$4 sm:$0xff]   ;;  %v14850_v22 = vld [vmem:[%s20176_s7 + $0x94] ss:$8 sps:$4 sm:$0xff]  }
  0x21   :  { %665 = vmatpush1.bf16.msra.mxu0 %v14782_v41  ;;  %708 = vmatpush1.bf16.msra.mxu1 %v14785_v49  ;;  %v14676_v41 = vtrunc.f32 %v852_v34  ;;  %v14836_v3 = vld [vmem:[%s20176_s7 + $0xb0] ss:$8 sps:$4 sm:$0xff]   ;;  %v14845_v21 = vld [vmem:[%s20176_s7 + $0x1a0] ss:$8 sps:$4 sm:$0xff]  }
  0x22   :  { %666 = vmatprep.subr.bf16.mxu0 %v14790_v50  ;;  %709 = vmatprep.subr.bf16.mxu1 %v14793_v54  ;;  %v14665_v19 = vcvt.f32.s32 %v14664_v13  ;;  %v14663_v20 = vcvt.f32.s32 %v14662_v14  ;;  %v856_v54 = vld [vmem:[%s20174_s1 + $0x148] sm:$0xff]  ;;  %v14839_v9 = vld [vmem:[%s20176_s7 + $0x1b0] ss:$8 sps:$4 sm:$0xff]  }
  0x23   :  { %987 = vperm.xlu1 %14739, %v14633_v4   ;;  %984 = vperm.xlu0 %14738, %v14631_v5   ;;  %v14658_v4 = vtrunc.f32 %v843_v53  ;;  %v14797_v5 = vld [vmem:[%s20176_s7 + $0x120] ss:$8 sps:$4 sm:$0xff]   ;;  %v14677_v49 = vcvt.f32.s32 %v14676_v41  ;;  %v14827_v53 = vld [vmem:[%s20176_s7 + $0x1d0] ss:$8 sps:$4 sm:$0xff]  }
  0x24   :  { %v14842_v13 = vld [vmem:[%s20176_s7 + $0xa0] ss:$8 sps:$4 sm:$0xff]   ;;  %v14851_v31 = vld [vmem:[%s20176_s7 + $0x190] ss:$8 sps:$4 sm:$0xff]  }
  0x25   :  { %667 = vmatpush1.bf16.msra.mxu0 %v14788_v51  ;;  %710 = vmatpush1.bf16.msra.mxu1 %v14791_v59  ;;  %v14659_v12 = vcvt.f32.s32 %v14658_v4  ;;  %v14680_v51 = vtrunc.f32 %v854_v44  ;;  %v14841_v4 = vld [vmem:[%s20176_s7 + $0x1b4] ss:$8 sps:$4 sm:$0xff]   ;;  %v14857_v41 = vld [vmem:[%s20176_s7 + $0x180] ss:$8 sps:$4 sm:$0xff]  }
  0x26   :  { %668 = vmatprep.subr.bf16.mxu0 %v14796_v60  ;;  %711 = vmatprep.subr.bf16.mxu1 %v14799_v0  ;;  %v858_v0 = vld [vmem:[%s20174_s1 + $0x158] sm:$0xff] }
  0x27   :  { %993 = vperm.xlu1 %14739, %v14637_v15   ;;  %990 = vperm.xlu0 %14738, %v14635_v16   ;;  %v14803_v15 = vld [vmem:[%s20176_s7 + $0x110] ss:$8 sps:$4 sm:$0xff]   ;;  %v14808_v16 = vld [vmem:[%s20176_s7 + $0x4] ss:$8 sps:$4 sm:$0xff]   ;;  %v14681_v59 = vcvt.f32.s32 %v14680_v51 }
  0x29   :  { %669 = vmatpush1.bf16.msra.mxu0 %v14794_v61  ;;  %712 = vmatpush1.bf16.msra.mxu1 %v14797_v5  ;;  %v14684_v61 = vtrunc.f32 %v856_v54  ;;  %v869_v54 = vld [vmem:[%s20174_s1 + $0x1b0] sm:$0xff] }
  0x2a   :  { %670 = vmatprep.subr.bf16.mxu0 %v14802_v6  ;;  %713 = vmatprep.subr.bf16.mxu1 %v14805_v10  ;;  %v860_v10 = vld [vmem:[%s20174_s1 + $0x168] sm:$0xff] }
  0x2b   :  { %999 = vperm.xlu1 %14739, %v14641_v25   ;;  %996 = vperm.xlu0 %14738, %v14639_v26   ;;  %v849_v25 = vld [vmem:[%s20174_s1 + $0x110] sm:$0xff]  ;;  %v14685_v5 = vcvt.f32.s32 %v14684_v61 }
  0x2c   :  { %v14814_v26 = vld [vmem:[%s20176_s7 + $0xf4] ss:$8 sps:$4 sm:$0xff]   ;;  %v14670_v32 = vtrunc.f32 %v849_v25 }
  0x2d   :  { %671 = vmatpush1.bf16.msra.mxu0 %v14800_v7  ;;  %714 = vmatpush1.bf16.msra.mxu1 %v14803_v15  ;;  %v14688_v7 = vtrunc.f32 %v858_v0 }
  0x2e   :  { %672 = vmatprep.subr.bf16.mxu0 %v14808_v16  ;;  %715 = vmatprep.subr.bf16.mxu1 %v14811_v18  ;;  %v14671_v40 = vcvt.f32.s32 %v14670_v32  ;;  %v14692_v16 = vtrunc.f32 %v860_v10  ;;  %v14847_v18 = vld [vmem:[%s20176_s7 + $0x1a4] ss:$8 sps:$4 sm:$0xff]  }
  0x2f   :  { %1005 = vperm.xlu1 %14739, %v14645_v35   ;;  %1002 = vperm.xlu0 %14738, %v14643_v36   ;;  %v851_v35 = vld [vmem:[%s20174_s1 + $0x120] sm:$0xff]  ;;  %v14689_v14 = vcvt.f32.s32 %v14688_v7  ;;  %v876_v7 = vld [vmem:[%s20174_s1 + $0x1e8] sm:$0xff] }
  0x30   :  { %v14820_v36 = vld [vmem:[%s20176_s7 + $0xe4] ss:$8 sps:$4 sm:$0xff]   ;;  %v14674_v42 = vtrunc.f32 %v851_v35  ;;  %v14693_v24 = vcvt.f32.s32 %v14692_v16 }
  0x31   :  { %673 = vmatpush1.bf16.msra.mxu0 %v14806_v17  ;;  %716 = vmatpush1.bf16.msra.mxu1 %v14809_v23  ;;  %v14848_v23 = vld [vmem:[%s20176_s7 + $0x90] ss:$8 sps:$4 sm:$0xff]   ;;  %v14856_v32 = vld [vmem:[%s20176_s7 + $0x84] ss:$8 sps:$4 sm:$0xff]  }
  0x32   :  { %674 = vmatprep.subr.bf16.mxu0 %v14814_v26  ;;  %717 = vmatprep.subr.bf16.mxu1 %v14817_v28  ;;  %v14675_v50 = vcvt.f32.s32 %v14674_v42  ;;  %v14853_v28 = vld [vmem:[%s20176_s7 + $0x194] ss:$8 sps:$4 sm:$0xff]  }
  0x33   :  { %1011 = vperm.xlu1 %14739, %v14649_v45   ;;  %1008 = vperm.xlu0 %14738, %v14647_v46   ;;  %v853_v45 = vld [vmem:[%s20174_s1 + $0x130] sm:$0xff] }
  0x34   :  { %v14826_v46 = vld [vmem:[%s20176_s7 + $0xd4] ss:$8 sps:$4 sm:$0xff]   ;;  %v14678_v52 = vtrunc.f32 %v853_v45 }
  0x35   :  { %675 = vmatpush2.bf16.msra.mxu0 %v14812_v27  ;;  %718 = vmatpush2.bf16.msra.mxu1 %v14815_v33  ;;  %v14854_v33 = vld [vmem:[%s20176_s7 + $0x80] ss:$8 sps:$4 sm:$0xff]  }
  0x36   :  { %676 = vmatprep.subr.bf16.mxu0 %v14820_v36  ;;  %719 = vmatprep.subr.bf16.mxu1 %v14823_v38  ;;  %v14679_v60 = vcvt.f32.s32 %v14678_v52  ;;  %v14859_v38 = vld [vmem:[%s20176_s7 + $0x184] ss:$8 sps:$4 sm:$0xff]  }
  0x37   :  { %1017 = vperm.xlu1 %14739, %v14653_v55   ;;  %1014 = vperm.xlu0 %14738, %v14651_v56   ;;  %v855_v55 = vld [vmem:[%s20174_s1 + $0x140] sm:$0xff] }
  0x38   :  { %v14832_v56 = vld [vmem:[%s20176_s7 + $0xc4] ss:$8 sps:$4 sm:$0xff]   ;;  %v14682_v62 = vtrunc.f32 %v855_v55 }
  0x39   :  { %677 = vmatpush2.bf16.msra.mxu0 %v14818_v37  ;;  %720 = vmatpush2.bf16.msra.mxu1 %v14821_v43 }
  0x3a   :  { %678 = vmatprep.subr.bf16.mxu0 %v14826_v46  ;;  %721 = vmatprep.subr.bf16.mxu1 %v14829_v48  ;;  %v14683_v6 = vcvt.f32.s32 %v14682_v62  ;;  %v868_v46 = vld [vmem:[%s20174_s1 + $0x1a8] sm:$0xff]  ;;  %v15378_v48 = vld [vmem:[%s20177_s2 + $0x10] sm:$0x1f] }
  0x3b   :  { %1023 = vperm.xlu1 %14739, %v14657_v1   ;;  %1020 = vperm.xlu0 %14738, %v14655_v2   ;;  %v857_v1 = vld [vmem:[%s20174_s1 + $0x150] sm:$0xff]  ;;  %v14708_v51 = vtrunc.f32 %v868_v46 }
  0x3c   :  { %v14838_v2 = vld [vmem:[%s20176_s7 + $0xb4] ss:$8 sps:$4 sm:$0xff]   ;;  %v14686_v8 = vtrunc.f32 %v857_v1 }
  0x3d   :  { %679 = vmatpush2.bf16.msra.mxu0 %v14824_v47  ;;  %722 = vmatpush2.bf16.msra.mxu1 %v14827_v53  ;;  %v867_v47 = vld [vmem:[%s20174_s1 + $0x1a0] sm:$0xff]  ;;  %v870_v53 = vld [vmem:[%s20174_s1 + $0x1b8] sm:$0xff]  ;;  %v14709_v55 = vcvt.f32.s32 %v14708_v51 }
  0x3e   :  { %680 = vmatprep.subr.bf16.mxu0 %v14832_v56  ;;  %723 = vmatprep.subr.bf16.mxu1 %v14835_v58  ;;  %v14687_v15 = vcvt.f32.s32 %v14686_v8  ;;  %v14706_v52 = vtrunc.f32 %v867_v47  ;;  %v14710_v58 = vtrunc.f32 %v869_v54  ;;  %v874_v1 = vld [vmem:[%s20174_s1 + $0x1d8] sm:$0xff]  ;;  %v875_v8 = vld [vmem:[%s20174_s1 + $0x1e0] sm:$0xff] }
  0x3f   :  { %1029 = vperm.xlu1 %14739, %v14661_v11   ;;  %1026 = vperm.xlu0 %14738, %v14659_v12   ;;  %v859_v11 = vld [vmem:[%s20174_s1 + $0x160] sm:$0xff] }
  0x40   :  { %v14844_v12 = vld [vmem:[%s20176_s7 + $0xa4] ss:$8 sps:$4 sm:$0xff]   ;;  %v14690_v17 = vtrunc.f32 %v859_v11  ;;  %v14707_v56 = vcvt.f32.s32 %v14706_v52  ;;  %v14711_v62 = vcvt.f32.s32 %v14710_v58  ;;  %v14724_v11 = vtrunc.f32 %v876_v7  ;;  %s14899_s7 = smov 24  }
  0x41   :  { %681 = vmatpush2.bf16.msra.mxu0 %v14830_v57  ;;  %724 = vmatpush2.bf16.msra.mxu1 %v14833_v63  ;;  %v14712_v57 = vtrunc.f32 %v870_v53 }
  0x42   :  { %682 = vmatprep.subr.bf16.mxu0 %v14838_v2  ;;  %725 = vmatprep.subr.bf16.mxu1 %v14841_v4  ;;  %v14691_v25 = vcvt.f32.s32 %v14690_v17  ;;  %v873_v2 = vld [vmem:[%s20174_s1 + $0x1d0] sm:$0xff] }
  0x43   :  { %1035 = vperm.xlu1 %14739, %v14665_v19   ;;  %1032 = vperm.xlu0 %14738, %v14663_v20   ;;  %v862_v19 = vld [vmem:[%s20174_s1 + $0x178] sm:$0xff]  ;;  %v861_v20 = vld [vmem:[%s20174_s1 + $0x170] sm:$0xff]  ;;  %v14713_v61 = vcvt.f32.s32 %v14712_v57 }
  0x44   :  { %v14696_v26 = vtrunc.f32 %v862_v19  ;;  %v14694_v27 = vtrunc.f32 %v861_v20 }
  0x45   :  { %683 = vmatpush2.bf16.msra.mxu0 %v14836_v3  ;;  %726 = vmatpush2.bf16.msra.mxu1 %v14839_v9 }
  0x46   :  { %684 = vmatprep.subr.bf16.mxu0 %v14844_v12  ;;  %727 = vmatprep.subr.bf16.mxu1 %v14847_v18  ;;  %v14697_v34 = vcvt.f32.s32 %v14696_v26  ;;  %v14695_v35 = vcvt.f32.s32 %v14694_v27  ;;  %v14722_v12 = vtrunc.f32 %v875_v8 }
  0x47   :  { %1041 = vperm.xlu1 %14739, %v14669_v29   ;;  %1038 = vperm.xlu0 %14738, %v14667_v30   ;;  %v864_v29 = vld [vmem:[%s20174_s1 + $0x188] sm:$0xff]  ;;  %v863_v30 = vld [vmem:[%s20174_s1 + $0x180] sm:$0xff] }
  0x48   :  { %v14700_v36 = vtrunc.f32 %v864_v29  ;;  %v14698_v37 = vtrunc.f32 %v863_v30 }
  0x49   :  { %685 = vmatpush2.bf16.msra.mxu0 %v14842_v13  ;;  %728 = vmatpush2.bf16.msra.mxu1 %v14845_v21  ;;  %v14725_v13 = vcvt.f32.s32 %v14724_v11 }
  0x4a   :  { %686 = vmatprep.subr.bf16.mxu0 %v14850_v22  ;;  %729 = vmatprep.subr.bf16.mxu1 %v14853_v28  ;;  %v14701_v42 = vcvt.f32.s32 %v14700_v36  ;;  %v14699_v43 = vcvt.f32.s32 %v14698_v37  ;;  %v60_v28 = vlaneseq  ;;  %v58_v37 = vld [vmem:[%s20178_s10] sm:$0xf] }
  0x4b   :  { %1047 = vperm.xlu1 %14739, %v14673_v39   ;;  %1044 = vperm.xlu0 %14738, %v14671_v40   ;;  %v866_v39 = vld [vmem:[%s20174_s1 + $0x198] sm:$0xff]  ;;  %v865_v40 = vld [vmem:[%s20174_s1 + $0x190] sm:$0xff] }
  0x4c   :  { %v14704_v44 = vtrunc.f32 %v866_v39  ;;  %v14702_v45 = vtrunc.f32 %v865_v40  ;;  %v15457_v57 = vand.u32 127, %v60_v28 }
  0x4d   :  { %687 = vmatpush2.bf16.msra.mxu0 %v14848_v23  ;;  %730 = vmatpush2.bf16.msra.mxu1 %v14851_v31  ;;  %v15436_v31 = vshrl.u32 %v60_v28, 7  ;;  %v1314_v28 = vld [vmem:[%s20177_s2 + $0x8] sm:$0xff] }
  0x4e   :  { %688 = vmatprep.subr.bf16.mxu0 %v14856_v32  ;;  %731 = vmatprep.subr.bf16.mxu1 %v14859_v38 }
  0x4f   :  { %1053 = vperm.xlu1 %14739, %v14677_v49   ;;  %1050 = vperm.xlu0 %14738, %v14675_v50   ;;  %v14705_v49 = vcvt.f32.s32 %v14704_v44  ;;  %v14703_v50 = vcvt.f32.s32 %v14702_v45  ;;  %20192 = vst [vmem:[#allocation3_spill] sm:$0xff] %v15436_v31  ;;  %v70_v32 = vsub.s32 2, %v15436_v31  ;;  %v62_v38 = vsub.s32 0, %v15436_v31 }
  0x51   :  { %689 = vmatpush2.bf16.msra.mxu0 %v14854_v33  ;;  %732 = vmatpush2.bf16.msra.mxu1 %v14857_v41  ;;  %v74_v33 = vsub.s32 3, %v15436_v31  ;;  %v71_v40 = vrot.slane %v58_v37, %v70_v32  ;;  %v63_v44 = vrot.slane %v58_v37, %v62_v38  ;;  %v1313_v32 = vld [vmem:[%s20177_s2] sm:$0xff]  ;;  %s14897_s2 = smov 72  }
  0x52   :  { %13008 = vmatprep.subr.msk.mxu0 %vm1503_vm1, %v15378_v48 }
  0x53   :  { %1059 = vperm.xlu1 %14739, %v14681_v59   ;;  %1056 = vperm.xlu0 %14738, %v14679_v60   ;;  %v872_v59 = vld [vmem:[%s20174_s1 + $0x1c8] sm:$0xff]  ;;  %v871_v60 = vld [vmem:[%s20174_s1 + $0x1c0] sm:$0xff] }
  0x54   :  { %v14716_v63 = vtrunc.f32 %v872_v59  ;;  %v14714_v0 = vtrunc.f32 %v871_v60 }
  0x56   :  { %v14717_v3 = vcvt.f32.s32 %v14716_v63  ;;  %v14715_v4 = vcvt.f32.s32 %v14714_v0 }
  0x57   :  { %1065 = vperm.xlu1 %14739, %v14685_v5   ;;  %1062 = vperm.xlu0 %14738, %v14683_v6   ;;  %v14720_v5 = vtrunc.f32 %v874_v1  ;;  %v14718_v6 = vtrunc.f32 %v873_v2 }
  0x59   :  { %v14721_v9 = vcvt.f32.s32 %v14720_v5  ;;  %v14719_v10 = vcvt.f32.s32 %v14718_v6 }
  0x5b   :  { %1071 = vperm.xlu1 %14739, %v14689_v14   ;;  %1068 = vperm.xlu0 %14738, %v14687_v15   ;;  %v14723_v14 = vcvt.f32.s32 %v14722_v12 }
  0x5f   :  { %1077 = vperm.xlu1 %14739, %v14693_v24   ;;  %1074 = vperm.xlu0 %14738, %v14691_v25  }
  0x63   :  { %1083 = vperm.xlu1 %14739, %v14697_v34   ;;  %1080 = vperm.xlu0 %14738, %v14695_v35   ;;  %v20185_v35 = vsub.s32 1, %v15436_v31 }
  0x67   :  { %1089 = vperm.xlu1 %14739, %v14701_v42   ;;  %1086 = vperm.xlu0 %14738, %v14699_v43   ;;  %v75_v42 = vrot.slane %v58_v37, %v74_v33  ;;  %v67_v43 = vrot.slane %v58_v37, %v20185_v35  ;;  %v11120_v33 = vld [vmem:[%s20179_s3 + $0xb8] sm:$0xff]  ;;  %v11119_v37 = vld [vmem:[%s20179_s3 + $0xb0] sm:$0xff] }
  0x68   :  { %13107 = vmatprep.subr.mxu1 %v11120_v33 }
  0x6b   :  { %1095 = vperm.xlu1 %14739, %v14705_v49   ;;  %1092 = vperm.xlu0 %14738, %v14703_v50  }
  0x6f   :  { %1101 = vperm.xlu1 %14739, %v14709_v55   ;;  %1098 = vperm.xlu0 %14738, %v14707_v56  }
  0x73   :  { %1107 = vperm.xlu1 %14739, %v14713_v61   ;;  %1104 = vperm.xlu0 %14738, %v14711_v62  }
  0x77   :  { %1113 = vperm.xlu1 %14739, %v14717_v3   ;;  %1110 = vperm.xlu0 %14738, %v14715_v4  }
  0x7b   :  { %1119 = vperm.xlu1 %14739, %v14721_v9   ;;  %1116 = vperm.xlu0 %14738, %v14719_v10  }
  0x7f   :  { %1125 = vperm.xlu1 %14739, %v14725_v13   ;;  %1122 = vperm.xlu0 %14738, %v14723_v14   ;;  %v20186_v13 = vmov 0.0  }
  0x82   :  { %v15406_v15 = vpop.permute.xlu0 %942  ;;  %v15408_v16 = vpop.permute.xlu1 %948 }
  0x83   :  { %vm1127_vm2 = vcmp.eq.s32.totalorder %v15457_v57, %v15406_v15  ;;  %vm1129_vm4 = vcmp.eq.s32.totalorder %v15457_v57, %v15408_v16 }
  0x84   :  { %v10984_v14 = vsel %vm1127_vm2, 1.0, %v20186_v13  ;;  %v10986_v16 = vsel %vm1129_vm4, 1.0, %v20186_v13 }
  0x86   :  { %v15410_v17 = vpop.permute.xlu0 %945  ;;  %v15412_v18 = vpop.permute.xlu1 %951 }
  0x87   :  { %vm1128_vm5 = vcmp.eq.s32.totalorder %v15457_v57, %v15410_v17  ;;  %v2018_v17 = vld [vmem:[%s20179_s3 + $0x50] sm:$0xff]  ;;  %vm1130_vm6 = vcmp.eq.s32.totalorder %v15457_v57, %v15412_v18  ;;  %v2016_v18 = vld [vmem:[%s20179_s3 + $0x40] sm:$0xff] }
  0x8a   :  { %v15414_v19 = vpop.permute.xlu0 %954  ;;  %v15416_v20 = vpop.permute.xlu1 %957 }
  0x8b   :  { %vm1131_vm7 = vcmp.eq.s32.totalorder %v15457_v57, %v15414_v19  ;;  %vm1132_vm8 = vcmp.eq.s32.totalorder %v15457_v57, %v15416_v20 }
  0x8c   :  { %v10988_v19 = vsel %vm1131_vm7, 1.0, %v20186_v13 }
  0x8e   :  { %v15418_v21 = vpop.permute.xlu0 %960  ;;  %v15420_v22 = vpop.permute.xlu1 %963 }
  0x8f   :  { %vm1133_vm9 = vcmp.eq.s32.totalorder %v15457_v57, %v15418_v21  ;;  %vm1134_vm10 = vcmp.eq.s32.totalorder %v15457_v57, %v15420_v22 }
  0x90   :  { %v10990_v20 = vsel %vm1133_vm9, 1.0, %v20186_v13  ;;  %v10991_v21 = vsel %vm1134_vm10, 1.0, %v20186_v13 }
  0x92   :  { %v15422_v23 = vpop.permute.xlu0 %966  ;;  %v15424_v24 = vpop.permute.xlu1 %969 }
  0x93   :  { %vm1135_vm11 = vcmp.eq.s32.totalorder %v15457_v57, %v15422_v23  ;;  %vm1136_vm12 = vcmp.eq.s32.totalorder %v15457_v57, %v15424_v24 }
  0x94   :  { %v10992_v22 = vsel %vm1135_vm11, 1.0, %v20186_v13  ;;  %v10993_v23 = vsel %vm1136_vm12, 1.0, %v20186_v13 }
  0x96   :  { %v15426_v25 = vpop.permute.xlu0 %972  ;;  %v15428_v26 = vpop.permute.xlu1 %975 }
  0x97   :  { %vm1137_vm13 = vcmp.eq.s32.totalorder %v15457_v57, %v15426_v25  ;;  %vm1138_vm14 = vcmp.eq.s32.totalorder %v15457_v57, %v15428_v26 }
  0x98   :  { %v10995_v25 = vsel %vm1138_vm14, 1.0, %v20186_v13 }
  0x9a   :  { %v15430_v27 = vpop.permute.xlu0 %978  ;;  %v15432_v29 = vpop.permute.xlu1 %981 }
  0x9b   :  { %vm1139_vm15 = vcmp.eq.s32.totalorder %v15457_v57, %v15430_v27  ;;  %vm1140_vm0 = vcmp.eq.s32.totalorder %v15457_v57, %v15432_v29 }
  0x9c   :  { %v10997_v26 = vsel %vm1140_vm0, 1.0, %v20186_v13 }
  0x9e   :  { %v15434_v30 = vpop.permute.xlu0 %984  ;;  %v15440_v34 = vpop.permute.xlu1 %987 }
  0x9f   :  { %vm1142_vm2 = vcmp.eq.s32.totalorder %v15457_v57, %v15440_v34 }
  0xa2   :  { %v15443_v36 = vpop.permute.xlu0 %990  ;;  %v15453_v47 = vpop.permute.xlu1 %993 }
  0xa3   :  { %vm1143_vm4 = vcmp.eq.s32.totalorder %v15457_v57, %v15443_v36 }
  0xa6   :  { %v15455_v53 = vpop.permute.xlu0 %996  ;;  %v15459_v3 = vpop.permute.xlu1 %999 }
  0xa7   :  { %vm1146_vm7 = vcmp.eq.s32.totalorder %v15457_v57, %v15459_v3 }
  0xaa   :  { %v15463_v10 = vpop.permute.xlu0 %1002  ;;  %v15469_v15 = vpop.permute.xlu1 %1005 }
  0xab   :  { %vm1148_vm9 = vcmp.eq.s32.totalorder %v15457_v57, %v15469_v15 }
  0xd4   :  { %v198_v39 = vpop.f32.mrf.mxu0  ;;  %v241_v41 = vpop.f32.mrf.mxu1 }
  0xd5   :  { %v242_v49 = vadd.f32 %v241_v41, %v71_v40  ;;  %v199_v58 = vadd.f32 %v198_v39, %v63_v44  ;;  %v15490_v39 = vpop.permute.xlu0 %1008  ;;  %v10985_v41 = vsel %vm1128_vm5, 1.0, %v20186_v13  ;;  %vm1144_vm5 = vcmp.eq.s32.totalorder %v15457_v57, %v15453_v47 }
  0xd6   :  { %v200_v45 = vpop.f32.mrf.mxu0  ;;  %v243_v46 = vpop.f32.mrf.mxu1  ;;  %v11001_v36 = vsel %vm1144_vm5, 1.0, %v20186_v13  ;;  %v11003_v47 = vsel %vm1146_vm7, 1.0, %v20186_v13  ;;  %vm1149_vm10 = vcmp.eq.s32.totalorder %v15457_v57, %v15490_v39 }
  0xd7   :  { %v244_v51 = vadd.f32 %v243_v46, %v75_v42  ;;  %v201_v54 = vadd.f32 %v200_v45, %v67_v43  ;;  %v252_v61 = vmax.f32 %v242_v49, 0.0  ;;  %v250_v6 = vmax.f32 %v199_v58, 0.0 }
  0xd8   :  { %v202_v50 = vpop.f32.mrf.mxu0  ;;  %v245_v52 = vpop.f32.mrf.mxu1  ;;  %v10987_v45 = vsel %vm1130_vm6, 1.0, %v20186_v13  ;;  %v10989_v49 = vsel %vm1132_vm8, 1.0, %v20186_v13  ;;  %vm1145_vm6 = vcmp.eq.s32.totalorder %v15457_v57, %v15455_v53  ;;  %vm1147_vm8 = vcmp.eq.s32.totalorder %v15457_v57, %v15463_v10 }
  0xd9   :  { %v203_v55 = vadd.f32 %v202_v50, %v63_v44  ;;  %v246_v56 = vadd.f32 %v245_v52, %v71_v40  ;;  %v253_v0 = vmax.f32 %v244_v51, 0.0  ;;  %v251_v4 = vmax.f32 %v201_v54, 0.0  ;;  %v11118_v40 = vld [vmem:[%s20179_s3 + $0xa8] sm:$0xff]  ;;  %v15511_v44 = vpop.permute.xlu0 %1014 }
  0xda   :  { %v204_v59 = vpop.f32.mrf.mxu0  ;;  %v247_v60 = vpop.f32.mrf.mxu1  ;;  %v10994_v54 = vsel %vm1137_vm13, 1.0, %v20186_v13  ;;  %vm1151_vm12 = vcmp.eq.s32.totalorder %v15457_v57, %v15511_v44 }
  0xdb   :  { %v205_v62 = vadd.f32 %v204_v59, %v67_v43  ;;  %v254_v63 = vmax.f32 %v203_v55, 0.0  ;;  %v256_v1 = vmax.f32 %v246_v56, 0.0  ;;  %v248_v2 = vadd.f32 %v247_v60, %v75_v42  ;;  %v15497_v42 = vpop.permute.xlu1 %1011  ;;  %v2017_v43 = vld [vmem:[%s20179_s3 + $0x48] sm:$0xff] }
  0xdc   :  { %v10996_v55 = vsel %vm1139_vm15, 1.0, %v20186_v13  ;;  %v11000_v59 = vsel %vm1143_vm4, 1.0, %v20186_v13  ;;  %v11002_v60 = vsel %vm1145_vm6, 1.0, %v20186_v13  ;;  %vm1150_vm11 = vcmp.eq.s32.totalorder %v15457_v57, %v15497_v42  ;;  %v11115_v42 = vld [vmem:[%s20179_s3 + $0x90] sm:$0xff] }
  0xdd   :  { %v255_v5 = vmax.f32 %v205_v62, 0.0  ;;  %v257_v7 = vmax.f32 %v248_v2, 0.0  ;;  %v260_v8 = vpack.c.bf16 %v256_v1, %v252_v61  ;;  %v258_v11 = vpack.c.bf16 %v254_v63, %v250_v6  ;;  %v15530_v50 = vpop.permute.xlu0 %1020 }
  0xde   :  { %v11004_v62 = vsel %vm1147_vm8, 1.0, %v20186_v13  ;;  %v11006_v1 = vsel %vm1149_vm10, 1.0, %v20186_v13  ;;  %v11007_v3 = vsel %vm1150_vm11, 1.0, %v20186_v13  ;;  %vm1153_vm14 = vcmp.eq.s32.totalorder %v15457_v57, %v15530_v50  ;;  %v2010_v50 = vld [vmem:[%s20179_s3 + $0x10] sm:$0xff] }
  0xdf   :  { %v259_v9 = vpack.c.bf16 %v255_v5, %v251_v4  ;;  %v261_v12 = vpack.c.bf16 %v257_v7, %v253_v0  ;;  %v15523_v46 = vpop.permute.xlu1 %1017  ;;  %v11005_v0 = vsel %vm1148_vm9, 1.0, %v20186_v13  ;;  %v11008_v4 = vsel %vm1151_vm12, 1.0, %v20186_v13 }
  0xe0   :  { %vm1152_vm13 = vcmp.eq.s32.totalorder %v15457_v57, %v15523_v46  ;;  %vm748_vm8 = vcmask 785408  }
  0xe1   :  { %690 = vmatprep.mubr.bf16.mxu0 %v259_v9  ;;  %733 = vmatprep.mubr.bf16.mxu1 %v261_v12  ;;  %v15546_v52 = vpop.permute.xlu0 %1026  ;;  %v11009_v6 = vsel %vm1152_vm13, 1.0, %v20186_v13  ;;  %752 = vst.msk [vmem:[#allocation2 + $0x18] sm:$0xff] %vm748_vm8, %v20186_v13  ;;  %749 = vst.msk [vmem:[#allocation2] sm:$0xff] %vm748_vm8, %v20186_v13 }
  0xe2   :  { %691 = vmatmul.mubr.bf16.vlgmr.msra.gmra.mxu0 %v258_v11  ;;  %734 = vmatmul.mubr.bf16.vlgmr.msra.gmra.mxu1 %v260_v8  ;;  %v11010_v8 = vsel %vm1153_vm14, 1.0, %v20186_v13  ;;  %vm1155_vm0 = vcmp.eq.s32.totalorder %v15457_v57, %v15546_v52  ;;  %750 = vst.msk [vmem:[#allocation2 + $0x8] sm:$0xff] %vm748_vm8, %v20186_v13  ;;  %751 = vst.msk [vmem:[#allocation2 + $0x10] sm:$0xff] %vm748_vm8, %v20186_v13  ;;  %v2009_v52 = vld [vmem:[%s20179_s3 + $0x8] sm:$0xff] }
  0xe3   :  { %13009 = vmatpush3.msk.msra.mxu0 %vm1503_vm1, %v15378_v48  ;;  %13014 = vmatprep.mubr.msk.f32.mxu0 %vm1316_vm3, %v10984_v14  ;;  %v2019_v48 = vld [vmem:[%s20179_s3 + $0x58] sm:$0xff]  ;;  %v15537_v51 = vpop.permute.xlu1 %1023  ;;  %vm1141_vm1 = vcmp.eq.s32.totalorder %v15457_v57, %v15434_v30  ;;  %v10999_v30 = vsel %vm1142_vm2, 1.0, %v20186_v13  ;;  %v11012_v11 = vsel %vm1155_vm0, 1.0, %v20186_v13  ;;  %753 = vst.msk [vmem:[#allocation2 + $0x20] sm:$0xff] %vm748_vm8, %v20186_v13  ;;  %754 = vst.msk [vmem:[#allocation2 + $0x28] sm:$0xff] %vm748_vm8, %v20186_v13 }
  0xe4   :  { %13010 = vmatprep.subr.mxu0 %v1314_v28  ;;  %13108 = vmatpush3.msra.mxu1 %v11120_v33  ;;  %v10998_v29 = vsel %vm1141_vm1, 1.0, %v20186_v13  ;;  %vm1154_vm15 = vcmp.eq.s32.totalorder %v15457_v57, %v15537_v51  ;;  %v11117_v33 = vld [vmem:[%s20179_s3 + $0xa0] sm:$0xff]  ;;  %755 = vst.msk [vmem:[#allocation2 + $0x30] sm:$0xff] %vm748_vm8, %v20186_v13  ;;  %756 = vst.msk [vmem:[#allocation2 + $0x38] sm:$0xff] %vm748_vm8, %v20186_v13 }
  0xe5   :  { %13011 = vmatpush3.msra.mxu0 %v1314_v28  ;;  %13109 = vmatprep.subr.mxu1 %v11119_v37  ;;  %v15562_v56 = vpop.permute.xlu0 %1032  ;;  %v11011_v10 = vsel %vm1154_vm15, 1.0, %v20186_v13  ;;  %v2015_v28 = vld [vmem:[%s20179_s3 + $0x38] sm:$0xff]  ;;  %757 = vst.msk [vmem:[#allocation2 + $0x40] sm:$0xff] %vm748_vm8, %v20186_v13  ;;  %758 = vst.msk [vmem:[#allocation2 + $0x48] sm:$0xff] %vm748_vm8, %v20186_v13 }
  0xe6   :  { %13012 = vmatprep.subr.mxu0 %v1313_v32  ;;  %13110 = vmatpush3.msra.mxu1 %v11119_v37  ;;  %vm1157_vm2 = vcmp.eq.s32.totalorder %v15457_v57, %v15562_v56  ;;  %v2014_v37 = vld [vmem:[%s20179_s3 + $0x30] sm:$0xff]  ;;  %759 = vst.msk [vmem:[#allocation2 + $0x50] sm:$0xff] %vm748_vm8, %v20186_v13  ;;  %760 = vst.msk [vmem:[#allocation2 + $0x58] sm:$0xff] %vm748_vm8, %v20186_v13  ;;  %v11110_v56 = vld [vmem:[%s20179_s3 + $0x68] sm:$0xff] }
  0xe7   :  { %13013 = vmatpush3.msra.mxu0 %v1313_v32  ;;  %13111 = vmatprep.subr.mxu1 %v11118_v40  ;;  %v15555_v24 = vpop.permute.xlu1 %1029  ;;  %v11014_v15 = vsel %vm1157_vm2, 1.0, %v20186_v13  ;;  %761 = vst.msk [vmem:[#allocation2 + $0x60] sm:$0xff] %vm748_vm8, %v20186_v13  ;;  %762 = vst.msk [vmem:[#allocation2 + $0x68] sm:$0xff] %vm748_vm8, %v20186_v13 }
  0xe8   :  { %13224 = vmatprep.subr.mxu0 %v2019_v48  ;;  %13112 = vmatpush3.msra.mxu1 %v11118_v40  ;;  %vm1156_vm1 = vcmp.eq.s32.totalorder %v15457_v57, %v15555_v24  ;;  %v11116_v40 = vld [vmem:[%s20179_s3 + $0x98] sm:$0xff]  ;;  %763 = vst.msk [vmem:[#allocation2 + $0x70] sm:$0xff] %vm748_vm8, %v20186_v13  ;;  %764 = vst.msk [vmem:[#allocation2 + $0x78] sm:$0xff] %vm748_vm8, %v20186_v13 }
  0xe9   :  { %v15578_v58 = vpop.permute.xlu0 %1038  ;;  %v11013_v14 = vsel %vm1156_vm1, 1.0, %v20186_v13  ;;  %13113 = vmatprep.subr.mxu1 %v11117_v33  ;;  %765 = vst.msk [vmem:[#allocation2 + $0x80] sm:$0xff] %vm748_vm8, %v20186_v13  ;;  %766 = vst.msk [vmem:[#allocation2 + $0x88] sm:$0xff] %vm748_vm8, %v20186_v13 }
  0xea   :  { %13015 = vmatmul.mubr.msk.f32.vlgmr.msra.gmra.mxu0 %vm1316_vm3, %v10985_v41  ;;  %vm1159_vm5 = vcmp.eq.s32.totalorder %v15457_v57, %v15578_v58  ;;  %13114 = vmatpush3.msra.mxu1 %v11117_v33  ;;  %767 = vst.msk [vmem:[#allocation2 + $0x90] sm:$0xff] %vm748_vm8, %v20186_v13  ;;  %768 = vst.msk [vmem:[#allocation2 + $0x98] sm:$0xff] %vm748_vm8, %v20186_v13 }
  0xeb   :  { %13017 = vmatprep.mubr.msk.f32.mxu0 %vm1316_vm3, %v10986_v16  ;;  %13225 = vmatpush3.msra.mxu0 %v2019_v48  ;;  %v15569_v27 = vpop.permute.xlu1 %1035  ;;  %v2013_v16 = vld [vmem:[%s20179_s3 + $0x28] sm:$0xff]  ;;  %v11016_v41 = vsel %vm1159_vm5, 1.0, %v20186_v13  ;;  %769 = vst.msk [vmem:[#allocation2 + $0xa0] sm:$0xff] %vm748_vm8, %v20186_v13  ;;  %770 = vst.msk [vmem:[#allocation2 + $0xa8] sm:$0xff] %vm748_vm8, %v20186_v13 }
  0xec   :  { %13226 = vmatprep.subr.mxu0 %v2018_v17  ;;  %vm1158_vm4 = vcmp.eq.s32.totalorder %v15457_v57, %v15569_v27  ;;  %13115 = vmatprep.subr.mxu1 %v11116_v40  ;;  %771 = vst.msk [vmem:[#allocation2 + $0xb0] sm:$0xff] %vm748_vm8, %v20186_v13  ;;  %772 = vst.msk [vmem:[#allocation2 + $0xb8] sm:$0xff] %vm748_vm8, %v20186_v13 }
  0xed   :  { %13227 = vmatpush3.msra.mxu0 %v2018_v17  ;;  %v15594_v61 = vpop.permute.xlu0 %1044  ;;  %v11015_v48 = vsel %vm1158_vm4, 1.0, %v20186_v13  ;;  %13116 = vmatpush3.msra.mxu1 %v11116_v40  ;;  %v15695_v17 = vld [vmem:[%s20179_s3 + $0x20] sm:$0xff]  ;;  %773 = vst.msk [vmem:[#allocation2 + $0xc0] sm:$0xff] %vm748_vm8, %v20186_v13  ;;  %774 = vst.msk [vmem:[#allocation2 + $0xc8] sm:$0xff] %vm748_vm8, %v20186_v13 }
  0xee   :  { %13018 = vmatmul.mubr.msk.f32.gmra.mxu0 %vm1316_vm3, %v10987_v45  ;;  %13228 = vmatprep.subr.mxu0 %v2017_v43  ;;  %vm1161_vm7 = vcmp.eq.s32.totalorder %v15457_v57, %v15594_v61  ;;  %v15705_v45 = vld [vmem:[%s20179_s3 + $0x88] sm:$0xff]  ;;  %775 = vst.msk [vmem:[#allocation2 + $0xd0] sm:$0xff] %vm748_vm8, %v20186_v13  ;;  %776 = vst.msk [vmem:[#allocation2 + $0xd8] sm:$0xff] %vm748_vm8, %v20186_v13 }
  0xef   :  { %13020 = vmatprep.mubr.msk.f32.mxu0 %vm1316_vm3, %v10988_v19  ;;  %13229 = vmatpush3.msra.mxu0 %v2017_v43  ;;  %v15587_v34 = vpop.permute.xlu1 %1041  ;;  %777 = vst.msk [vmem:[#allocation2 + $0xe0] sm:$0xff] %vm748_vm8, %v20186_v13  ;;  %778 = vst.msk [vmem:[#allocation2 + $0xe8] sm:$0xff] %vm748_vm8, %v20186_v13  ;;  %v2011_v19 = vld [vmem:[%s20179_s3 + $0x18] sm:$0xff] }
  0xf0   :  { %13230 = vmatprep.subr.mxu0 %v2016_v18  ;;  %vm1160_vm6 = vcmp.eq.s32.totalorder %v15457_v57, %v15587_v34  ;;  %13117 = vmatprep.subr.mxu1 %v11115_v42  ;;  %779 = vst.msk [vmem:[#allocation2 + $0xf0] sm:$0xff] %vm748_vm8, %v20186_v13  ;;  %780 = vst.msk [vmem:[#allocation2 + $0xf8] sm:$0xff] %vm748_vm8, %v20186_v13 }
  0xf1   :  { %13231 = vmatpush3.msra.mxu0 %v2016_v18  ;;  %v15610_v63 = vpop.permute.xlu0 %1050  ;;  %v15700_v44 = vsel %vm1160_vm6, 1.0, %v20186_v13  ;;  %13118 = vmatpush3.msra.mxu1 %v11115_v42  ;;  %781 = vst.msk [vmem:[#allocation2 + $0x100] sm:$0xff] %vm748_vm8, %v20186_v13  ;;  %782 = vst.msk [vmem:[#allocation2 + $0x108] sm:$0xff] %vm748_vm8, %v20186_v13  ;;  %v11018_v18 = vsel %vm1161_vm7, 1.0, %v20186_v13  ;;  %v1946_v42 = vld [vmem:[#allocation2] sm:$0xff] }
  0xf2   :  { %13021 = vmatmul.mubr.msk.f32.gmra.mxu0 %vm1316_vm3, %v10989_v49  ;;  %13232 = vmatprep.subr.mxu0 %v2015_v28  ;;  %783 = vst.msk [vmem:[#allocation2 + $0x110] sm:$0xff] %vm748_vm8, %v20186_v13  ;;  %784 = vst.msk [vmem:[#allocation2 + $0x118] sm:$0xff] %vm748_vm8, %v20186_v13  ;;  %vm1163_vm10 = vcmp.eq.s32.totalorder %v15457_v57, %v15610_v63  ;;  %v11113_v49 = vld [vmem:[%s20179_s3 + $0x80] sm:$0xff] }
  0xf3   :  { %13023 = vmatprep.mubr.msk.f32.mxu0 %vm1316_vm3, %v10990_v20  ;;  %v15601_v53 = vpop.permute.xlu1 %1047  ;;  %13233 = vmatpush3.msra.mxu0 %v2015_v28  ;;  %785 = vst.msk [vmem:[#allocation2 + $0x120] sm:$0xff] %vm748_vm8, %v20186_v13  ;;  %786 = vst.msk [vmem:[#allocation2 + $0x128] sm:$0xff] %vm748_vm8, %v20186_v13  ;;  %v11020_v51 = vsel %vm1163_vm10, 1.0, %v20186_v13 }
  0xf4   :  { %13234 = vmatprep.subr.mxu0 %v2014_v37  ;;  %787 = vst.msk [vmem:[#allocation2 + $0x130] sm:$0xff] %vm748_vm8, %v20186_v13  ;;  %788 = vst.msk [vmem:[#allocation2 + $0x138] sm:$0xff] %vm748_vm8, %v20186_v13  ;;  %vm1162_vm9 = vcmp.eq.s32.totalorder %v15457_v57, %v15601_v53  ;;  %13119 = vmatprep.subr.mxu1 %v15705_v45 }
  0xf5   :  { %v15626_v5 = vpop.permute.xlu0 %1056  ;;  %13235 = vmatpush3.msra.mxu0 %v2014_v37  ;;  %789 = vst.msk [vmem:[#allocation2 + $0x140] sm:$0xff] %vm748_vm8, %v20186_v13  ;;  %790 = vst.msk [vmem:[#allocation2 + $0x148] sm:$0xff] %vm748_vm8, %v20186_v13  ;;  %13120 = vmatpush3.msra.mxu1 %v15705_v45  ;;  %v11019_v20 = vsel %vm1162_vm9, 1.0, %v20186_v13 }
  0xf6   :  { %13024 = vmatmul.mubr.msk.f32.gmra.mxu0 %vm1316_vm3, %v10991_v21  ;;  %13236 = vmatprep.subr.mxu0 %v2013_v16  ;;  %791 = vst.msk [vmem:[#allocation2 + $0x150] sm:$0xff] %vm748_vm8, %v20186_v13  ;;  %792 = vst.msk [vmem:[#allocation2 + $0x158] sm:$0xff] %vm748_vm8, %v20186_v13  ;;  %v11112_v21 = vld [vmem:[%s20179_s3 + $0x78] sm:$0xff]  ;;  %vm1165_vm12 = vcmp.eq.s32.totalorder %v15457_v57, %v15626_v5 }
  0xf7   :  { %13026 = vmatprep.mubr.msk.f32.mxu0 %vm1316_vm3, %v10992_v22  ;;  %v15619_v2 = vpop.permute.xlu1 %1053  ;;  %13237 = vmatpush3.msra.mxu0 %v2013_v16  ;;  %793 = vst.msk [vmem:[#allocation2 + $0x160] sm:$0xff] %vm748_vm8, %v20186_v13  ;;  %794 = vst.msk [vmem:[#allocation2 + $0x168] sm:$0xff] %vm748_vm8, %v20186_v13 }
  0xf8   :  { %795 = vst.msk [vmem:[#allocation2 + $0x170] sm:$0xff] %vm748_vm8, %v20186_v13  ;;  %796 = vst.msk [vmem:[#allocation2 + $0x178] sm:$0xff] %vm748_vm8, %v20186_v13  ;;  %13238 = vmatprep.subr.mxu0 %v15695_v17  ;;  %13121 = vmatprep.subr.mxu1 %v11113_v49  ;;  %vm1164_vm11 = vcmp.eq.s32.totalorder %v15457_v57, %v15619_v2 }
  0xf9   :  { %v15642_v9 = vpop.permute.xlu0 %1062  ;;  %797 = vst.msk [vmem:[#allocation2 + $0x180] sm:$0xff] %vm748_vm8, %v20186_v13  ;;  %798 = vst.msk [vmem:[#allocation2 + $0x188] sm:$0xff] %vm748_vm8, %v20186_v13  ;;  %13239 = vmatpush3.msra.mxu0 %v15695_v17  ;;  %13122 = vmatpush3.msra.mxu1 %v11113_v49 }
  0xfa   :  { %13027 = vmatmul.mubr.msk.f32.gmra.mxu0 %vm1316_vm3, %v10993_v23  ;;  %799 = vst.msk [vmem:[#allocation2 + $0x190] sm:$0xff] %vm748_vm8, %v20186_v13  ;;  %800 = vst.msk [vmem:[#allocation2 + $0x198] sm:$0xff] %vm748_vm8, %v20186_v13  ;;  %13240 = vmatprep.subr.mxu0 %v2011_v19  ;;  %v11111_v23 = vld [vmem:[%s20179_s3 + $0x70] sm:$0xff]  ;;  %vm1167_vm14 = vcmp.eq.s32.totalorder %v15457_v57, %v15642_v9 }
  0xfb   :  { %13029 = vmatprep.mubr.msk.f32.mxu0 %vm1316_vm3, %v10994_v54  ;;  %v15633_v7 = vpop.permute.xlu1 %1059  ;;  %801 = vst.msk [vmem:[#allocation2 + $0x1a0] sm:$0xff] %vm748_vm8, %v20186_v13  ;;  %802 = vst.msk [vmem:[#allocation2 + $0x1a8] sm:$0xff] %vm748_vm8, %v20186_v13  ;;  %13241 = vmatpush3.msra.mxu0 %v2011_v19  ;;  %v11021_v54 = vsel %vm1164_vm11, 1.0, %v20186_v13  ;;  %v11024_v58 = vsel %vm1167_vm14, 1.0, %v20186_v13 }
  0xfc   :  { %803 = vst.msk [vmem:[#allocation2 + $0x1b0] sm:$0xff] %vm748_vm8, %v20186_v13  ;;  %804 = vst.msk [vmem:[#allocation2 + $0x1b8] sm:$0xff] %vm748_vm8, %v20186_v13  ;;  %13242 = vmatprep.subr.mxu0 %v2010_v50  ;;  %13123 = vmatprep.subr.mxu1 %v11112_v21  ;;  %vm1166_vm13 = vcmp.eq.s32.totalorder %v15457_v57, %v15633_v7 }
  0xfd   :  { %v15661_v32 = vpop.permute.xlu0 %1068  ;;  %805 = vst.msk [vmem:[#allocation2 + $0x1c0] sm:$0xff] %vm748_vm8, %v20186_v13  ;;  %806 = vst.msk [vmem:[#allocation2 + $0x1c8] sm:$0xff] %vm748_vm8, %v20186_v13  ;;  %13243 = vmatpush3.msra.mxu0 %v2010_v50  ;;  %13124 = vmatpush3.msra.mxu1 %v11112_v21  ;;  %v11023_v27 = vsel %vm1166_vm13, 1.0, %v20186_v13 }
  0xfe   :  { %13030 = vmatmul.mubr.msk.f32.gmra.mxu0 %vm1316_vm3, %v10995_v25  ;;  %807 = vst.msk [vmem:[#allocation2 + $0x1d0] sm:$0xff] %vm748_vm8, %v20186_v13  ;;  %808 = vst.msk [vmem:[#allocation2 + $0x1d8] sm:$0xff] %vm748_vm8, %v20186_v13  ;;  %v11022_v25 = vsel %vm1165_vm12, 1.0, %v20186_v13  ;;  %13244 = vmatprep.subr.mxu0 %v2009_v52  ;;  %vm1169_vm0 = vcmp.eq.s32.totalorder %v15457_v57, %v15661_v32 }
  0xff   :  { %13032 = vmatprep.mubr.msk.f32.mxu0 %vm1316_vm3, %v10996_v55  ;;  %v15651_v12 = vpop.permute.xlu1 %1065  ;;  %809 = vst.msk [vmem:[#allocation2 + $0x1e0] sm:$0xff] %vm748_vm8, %v20186_v13  ;;  %810 = vst.msk [vmem:[#allocation2 + $0x1e8] sm:$0xff] %vm748_vm8, %v20186_v13  ;;  %v2008_v55 = vld [vmem:[%s20179_s3] sm:$0xff]  ;;  %13125 = vmatprep.subr.mxu1 %v11111_v23 }
 0x100   :  { %811 = vst.msk [vmem:[#allocation2 + $0x1f0] sm:$0xff] %vm748_vm8, %v20186_v13  ;;  %812 = vst.msk [vmem:[#allocation2 + $0x1f8] sm:$0xff] %vm748_vm8, %v20186_v13  ;;  %13245 = vmatpush3.msra.mxu0 %v2009_v52  ;;  %13126 = vmatpush3.msra.mxu1 %v11111_v23  ;;  %vm1168_vm15 = vcmp.eq.s32.totalorder %v15457_v57, %v15651_v12 }
 0x101   :  { %v15697_v43 = vpop.permute.xlu0 %1074  ;;  %813 = vst.msk [vmem:[#allocation2 + $0x200] sm:$0xff] %vm748_vm8, %v20186_v13  ;;  %814 = vst.msk [vmem:[#allocation2 + $0x208] sm:$0xff] %vm748_vm8, %v20186_v13  ;;  %13246 = vmatprep.subr.mxu0 %v2008_v55  ;;  %13127 = vmatprep.subr.mxu1 %v11110_v56  ;;  %v11025_v34 = vsel %vm1168_vm15, 1.0, %v20186_v13 }
 0x102   :  { %13033 = vmatmul.mubr.msk.f32.gmra.mxu0 %vm1316_vm3, %v10997_v26  ;;  %13128 = vmatpush3.msra.mxu1 %v11110_v56  ;;  %vm1171_vm2 = vcmp.eq.s32.totalorder %v15457_v57, %v15697_v43  ;;  %v1947_v43 = vld [vmem:[#allocation2 + $0x8] sm:$0xff] }
 0x103   :  { %13035 = vmatprep.mubr.msk.f32.mxu0 %vm1316_vm3, %v10998_v29  ;;  %v15674_v39 = vpop.permute.xlu1 %1071  ;;  %v11109_v29 = vld [vmem:[%s20179_s3 + $0x60] sm:$0xff]  ;;  %13247 = vmatpush3.msra.mxu0 %v2008_v55  ;;  %v11028_v53 = vsel %vm1171_vm2, 1.0, %v20186_v13 }
 0x104   :  { %13129 = vmatprep.subr.mxu1 %v11109_v29  ;;  %vm1170_vm1 = vcmp.eq.s32.totalorder %v15457_v57, %v15674_v39 }
 0x105   :  { %v1081_v22 = vpop.permute.xlu0 %1080  ;;  %13130 = vmatpush3.msra.mxu1 %v11109_v29  ;;  %v11027_v61 = vsel %vm1170_vm1, 1.0, %v20186_v13 }
 0x106   :  { %13036 = vmatmul.mubr.msk.f32.gmra.mxu0 %vm1316_vm3, %v10999_v30  ;;  %vm1173_vm5 = vcmp.eq.s32.totalorder %v15457_v57, %v1081_v22 }
 0x107   :  { %13038 = vmatprep.mubr.msk.f32.mxu0 %vm1316_vm3, %v11000_v59  ;;  %v15853_v46 = vpop.permute.xlu1 %1077  ;;  %v15910_v59 = vld [vmem:[%s20179_s3 + $0x118] sm:$0xff] }
 0x108   :  { %13341 = vmatprep.subr.mxu1 %v15910_v59  ;;  %vm1172_vm4 = vcmp.eq.s32.totalorder %v15457_v57, %v15853_v46 }
 0x109   :  { %v1087_v26 = vpop.permute.xlu0 %1086  ;;  %v11029_v63 = vsel %vm1172_vm4, 1.0, %v20186_v13 }
 0x10a   :  { %13039 = vmatmul.mubr.msk.f32.gmra.mxu0 %vm1316_vm3, %v11001_v36  ;;  %v11026_v36 = vsel %vm1169_vm0, 1.0, %v20186_v13  ;;  %vm1175_vm7 = vcmp.eq.s32.totalorder %v15457_v57, %v1087_v26 }
 0x10b   :  { %13041 = vmatprep.mubr.msk.f32.mxu0 %vm1316_vm3, %v11002_v60  ;;  %v1084_v24 = vpop.permute.xlu1 %1083 }
 0x10c   :  { %vm1174_vm6 = vcmp.eq.s32.totalorder %v15457_v57, %v1084_v24 }
 0x10d   :  { %v1093_v60 = vpop.permute.xlu0 %1092  ;;  %v11031_v2 = vsel %vm1174_vm6, 1.0, %v20186_v13 }
 0x10e   :  { %13042 = vmatmul.mubr.msk.f32.gmra.mxu0 %vm1316_vm3, %v11003_v47  ;;  %vm1177_vm10 = vcmp.eq.s32.totalorder %v15457_v57, %v1093_v60 }
 0x10f   :  { %13044 = vmatprep.mubr.msk.f32.mxu0 %vm1316_vm3, %v11004_v62  ;;  %v1090_v30 = vpop.permute.xlu1 %1089  ;;  %v11034_v7 = vsel %vm1177_vm10, 1.0, %v20186_v13  ;;  %vm8742_vm10 = vcmask 458048  }
 0x110   :  { %vm1176_vm9 = vcmp.eq.s32.totalorder %v15457_v57, %v1090_v30  ;;  %v11255_v30 = vld [vmem:[%s20179_s3 + $0x110] sm:$0xff] }
 0x111   :  { %v1099_v62 = vpop.permute.xlu0 %1098  ;;  %v11033_v5 = vsel %vm1176_vm9, 1.0, %v20186_v13  ;;  %vm6225_vm9 = vcmask 326848  }
 0x112   :  { %13045 = vmatmul.mubr.msk.f32.gmra.mxu0 %vm1316_vm3, %v11005_v0  ;;  %v11030_v0 = vsel %vm1173_vm5, 1.0, %v20186_v13  ;;  %vm1179_vm12 = vcmp.eq.s32.totalorder %v15457_v57, %v1099_v62 }
 0x113   :  { %13047 = vmatprep.mubr.msk.f32.mxu0 %vm1316_vm3, %v11006_v1  ;;  %v1096_v47 = vpop.permute.xlu1 %1095 }
 0x114   :  { %vm1178_vm11 = vcmp.eq.s32.totalorder %v15457_v57, %v1096_v47  ;;  %v11254_v47 = vld [vmem:[%s20179_s3 + $0x108] sm:$0xff] }
 0x115   :  { %v11035_v9 = vsel %vm1178_vm11, 1.0, %v20186_v13  ;;  %vm10187_vm11 = vcmask 589248  }
 0x116   :  { %13048 = vmatmul.mubr.msk.f32.gmra.mxu0 %vm1316_vm3, %v11007_v3  ;;  %v11032_v3 = vsel %vm1175_vm7, 1.0, %v20186_v13  ;;  %vm4051_vm7 = vcmask 720448  }
 0x117   :  { %13050 = vmatprep.mubr.msk.f32.mxu0 %vm1316_vm3, %v11008_v4  ;;  %v1102_v1 = vpop.permute.xlu1 %1101  ;;  %v1105_v4 = vpop.permute.xlu0 %1104 }
 0x118   :  { %vm1180_vm13 = vcmp.eq.s32.totalorder %v15457_v57, %v1102_v1  ;;  %vm1181_vm14 = vcmp.eq.s32.totalorder %v15457_v57, %v1105_v4 }
 0x119   :  { %v11037_v12 = vsel %vm1180_vm13, 1.0, %v20186_v13  ;;  %vm10895_vm13 = vcmask 7168  }
 0x11a   :  { %13051 = vmatmul.mubr.msk.f32.gmra.mxu0 %vm1316_vm3, %v11009_v6 }
 0x11b   :  { %13053 = vmatprep.mubr.msk.f32.mxu0 %vm1316_vm3, %v11010_v8  ;;  %v1108_v6 = vpop.permute.xlu1 %1107  ;;  %v1111_v8 = vpop.permute.xlu0 %1110 }
 0x11c   :  { %vm1182_vm15 = vcmp.eq.s32.totalorder %v15457_v57, %v1108_v6  ;;  %vm1183_vm0 = vcmp.eq.s32.totalorder %v15457_v57, %v1111_v8 }
 0x11d   :  { %v11040_v33 = vsel %vm1183_vm0, 1.0, %v20186_v13 }
 0x11e   :  { %13054 = vmatmul.mubr.msk.f32.gmra.mxu0 %vm1316_vm3, %v11011_v10  ;;  %v11036_v10 = vsel %vm1179_vm12, 1.0, %v20186_v13  ;;  %vm10714_vm12 = vcmask 261120  }
 0x11f   :  { %13056 = vmatprep.mubr.msk.f32.mxu0 %vm1316_vm3, %v11012_v11  ;;  %v1114_v11 = vpop.permute.xlu1 %1113  ;;  %v1117_v28 = vpop.permute.xlu0 %1116 }
 0x120   :  { %vm1184_vm1 = vcmp.eq.s32.totalorder %v15457_v57, %v1114_v11  ;;  %vm1185_vm2 = vcmp.eq.s32.totalorder %v15457_v57, %v1117_v28 }
 0x121   :  { %v11042_v39 = vsel %vm1185_vm2, 1.0, %v20186_v13 }
 0x122   :  { %13057 = vmatmul.mubr.msk.f32.gmra.mxu0 %vm1316_vm3, %v11013_v14  ;;  %v11038_v14 = vsel %vm1181_vm14, 1.0, %v20186_v13 }
 0x123   :  { %13059 = vmatprep.mubr.msk.f32.mxu0 %vm1316_vm3, %v11014_v15  ;;  %v11039_v15 = vsel %vm1182_vm15, 1.0, %v20186_v13  ;;  %v1120_v32 = vpop.permute.xlu1 %1119  ;;  %v1123_v37 = vpop.permute.xlu0 %1122 }
 0x124   :  { %vm1186_vm4 = vcmp.eq.s32.totalorder %v15457_v57, %v1120_v32  ;;  %vm1187_vm5 = vcmp.eq.s32.totalorder %v15457_v57, %v1123_v37 }
 0x125   :  { %v11043_v16 = vsel %vm1186_vm4, 1.0, %v20186_v13 }
 0x126   :  { %13060 = vmatmul.mubr.msk.f32.gmra.mxu0 %vm1316_vm3, %v11015_v48  ;;  %v11041_v48 = vsel %vm1184_vm1, 1.0, %v20186_v13 }
 0x127   :  { %13062 = vmatprep.mubr.msk.f32.mxu0 %vm1316_vm3, %v11016_v41  ;;  %v1126_v40 = vpop.permute.xlu1 %1125  ;;  %v11044_v41 = vsel %vm1187_vm5, 1.0, %v20186_v13 }
 0x128   :  { %vm1188_vm6 = vcmp.eq.s32.totalorder %v15457_v57, %v1126_v40  ;;  %v326_v57 = vld [vmem:[%s20178_s10 + $0x4] sm:$0x3] }
 0x129   :  { %v11045_v17 = vsel %vm1188_vm6, 1.0, %v20186_v13 }
 0x12a   :  { %13063 = vmatmul.mubr.msk.f32.gmra.mxu0 %vm1316_vm3, %v15700_v44  ;;  %v331_v44 = vrot.slane %v326_v57, %v62_v38 }
 0x12b   :  { %13065 = vmatprep.mubr.msk.f32.mxu0 %vm1316_vm3, %v11018_v18 }
 0x12e   :  { %13066 = vmatmul.mubr.msk.f32.gmra.mxu0 %vm1316_vm3, %v11019_v20 }
 0x12f   :  { %13068 = vmatprep.mubr.msk.f32.mxu0 %vm1316_vm3, %v11020_v51 }
 0x132   :  { %13069 = vmatmul.mubr.msk.f32.gmra.mxu0 %vm1316_vm3, %v11021_v54 }
 0x133   :  { %13071 = vmatprep.mubr.msk.f32.mxu0 %vm1316_vm3, %v11022_v25 }
 0x136   :  { %13072 = vmatmul.mubr.msk.f32.gmra.mxu0 %vm1316_vm3, %v11023_v27 }
 0x137   :  { %13074 = vmatprep.mubr.msk.f32.mxu0 %vm1316_vm3, %v11024_v58 }
 0x13a   :  { %13075 = vmatmul.mubr.msk.f32.gmra.mxu0 %vm1316_vm3, %v11025_v34 }
 0x13b   :  { %13077 = vmatprep.mubr.msk.f32.mxu0 %vm1316_vm3, %v11026_v36 }
 0x13e   :  { %13078 = vmatmul.mubr.msk.f32.gmra.mxu0 %vm1316_vm3, %v11027_v61 }
 0x13f   :  { %13080 = vmatprep.mubr.msk.f32.mxu0 %vm1316_vm3, %v11028_v53 }
 0x142   :  { %13081 = vmatmul.mubr.msk.f32.gmra.mxu0 %vm1316_vm3, %v11029_v63 }
 0x143   :  { %13083 = vmatprep.mubr.msk.f32.mxu0 %vm1316_vm3, %v11030_v0  ;;  %v11253_v0 = vld [vmem:[%s20179_s3 + $0x100] sm:$0xff] }
 0x146   :  { %13084 = vmatmul.mubr.msk.f32.gmra.mxu0 %vm1316_vm3, %v11031_v2 }
 0x147   :  { %13086 = vmatprep.mubr.msk.f32.mxu0 %vm1316_vm3, %v11032_v3 }
 0x14a   :  { %13087 = vmatmul.mubr.msk.f32.gmra.mxu0 %vm1316_vm3, %v11033_v5  ;;  %v11252_v5 = vld [vmem:[%s20179_s3 + $0xf8] sm:$0xff] }
 0x14b   :  { %13089 = vmatprep.mubr.msk.f32.mxu0 %vm1316_vm3, %v11034_v7 }
 0x14e   :  { %13090 = vmatmul.mubr.msk.f32.gmra.mxu0 %vm1316_vm3, %v11035_v9 }
 0x14f   :  { %13092 = vmatprep.mubr.msk.f32.mxu0 %vm1316_vm3, %v11036_v10  ;;  %v11251_v10 = vld [vmem:[%s20179_s3 + $0xf0] sm:$0xff] }
 0x152   :  { %13093 = vmatmul.mubr.msk.f32.gmra.mxu0 %vm1316_vm3, %v11037_v12 }
 0x153   :  { %13095 = vmatprep.mubr.msk.f32.mxu0 %vm1316_vm3, %v11038_v14 }
 0x156   :  { %13096 = vmatmul.mubr.msk.f32.gmra.mxu0 %vm1316_vm3, %v11039_v15  ;;  %v11250_v15 = vld [vmem:[%s20179_s3 + $0xe8] sm:$0xff] }
 0x157   :  { %13098 = vmatprep.mubr.msk.f32.mxu0 %vm1316_vm3, %v11040_v33 }
 0x15a   :  { %13099 = vmatmul.mubr.msk.f32.gmra.mxu0 %vm1316_vm3, %v11041_v48 }
 0x15b   :  { %13101 = vmatprep.mubr.msk.f32.mxu0 %vm1316_vm3, %v11042_v39  ;;  %v11249_v39 = vld [vmem:[%s20179_s3 + $0xe0] sm:$0xff] }
 0x15e   :  { %13102 = vmatmul.mubr.msk.f32.gmra.mxu0 %vm1316_vm3, %v11043_v16 }
 0x15f   :  { %13104 = vmatprep.mubr.msk.f32.mxu0 %vm1316_vm3, %v11044_v41 }
 0x162   :  { %13105 = vmatmul.mubr.msk.f32.gmra.mxu0 %vm1316_vm3, %v11045_v17  ;;  %vm1882_vm3 = vcmask 195584   ;;  %v11248_v17 = vld [vmem:[%s20179_s3 + $0xd8] sm:$0xff] }
 0x163   :  { %13248 = vmatprep.mubr.msk.f32.mxu0 %vm748_vm8, %v1946_v42 }
 0x166   :  { %13249 = vmatmul.mubr.msk.f32.vlgmr.msra.gmra.mxu0 %vm748_vm8, %v1947_v43 }
 0x1a2   :  { %v692_v45 = vpop.f32.mrf.mxu0  ;;  %v735_v19 = vpop.f32.mrf.mxu1 }
 0x1a3   :  { %v693_v18 = vadd.f32 %v692_v45, %v331_v44 }
 0x1a4   :  { %v15984_v46 = vpop.f32.mrf.mxu0  ;;  %v15986_v20 = vpop.f32.mrf.mxu1 }
 0x1a5   :  { %20193 = vst [vmem:[#allocation4_spill] sm:$0xff] %v15984_v46  ;;  %v736_v49 = vadd.f32 %v735_v19, %v693_v18  ;;  %20194 = vst [vmem:[#allocation5_spill] sm:$0xff] %v15986_v20  ;;  %v11247_v18 = vld [vmem:[%s20179_s3 + $0xd0] sm:$0xff] }
 0x1a6   :  { %v696_v50 = vpop.f32.mrf.mxu0  ;;  %v739_v51 = vpop.f32.mrf.mxu1 }
 0x1a7   :  { %v697_v21 = vadd.f32 %v696_v50, %v331_v44  ;;  %v744_v54 = vmax.f32 %v736_v49, 0.0 }
 0x1a8   :  { %v15988_v22 = vpop.f32.mrf.mxu0 }
 0x1a9   :  { %20195 = vst [vmem:[#allocation6_spill] sm:$0xff] %v15988_v22  ;;  %v740_v52 = vadd.f32 %v739_v51, %v697_v21  ;;  %v11246_v51 = vld [vmem:[%s20179_s3 + $0xc8] sm:$0xff] }
 0x1aa   :  { %v13016_v23 = vpop.f32.mrf.mxu0 }
 0x1ab   :  { %v746_v24 = vmax.f32 %v740_v52, 0.0  ;;  %1884 = vst.msk [vmem:[#allocation2 + $0x18] sm:$0xff] %vm1882_vm3, %v13016_v23 }
 0x1ac   :  { %v1573_v38 = vpop.f32.mrf.mxu0 }
 0x1ad   :  { %v15991_v25 = vpack.c.bf16 %v746_v24, %v744_v54  ;;  %1883 = vst.msk [vmem:[#allocation2 + $0x10] sm:$0xff] %vm1882_vm3, %v1573_v38  ;;  %v11245_v38 = vld [vmem:[%s20179_s3 + $0xc0] sm:$0xff] }
 0x1ae   :  { %v13019_v55 = vpop.f32.mrf.mxu0 }
 0x1af   :  { %20196 = vst [vmem:[#allocation7_spill] sm:$0xff] %v15991_v25  ;;  %1886 = vst.msk [vmem:[#allocation2 + $0x28] sm:$0xff] %vm1882_vm3, %v13019_v55 }
 0x1b0   :  { %v1583_v56 = vpop.f32.mrf.mxu0 }
 0x1b1   :  { %1885 = vst.msk [vmem:[#allocation2 + $0x20] sm:$0xff] %vm1882_vm3, %v1583_v56 }
 0x1b2   :  { %v13022_v26 = vpop.f32.mrf.mxu0  ;;  %v1949_v58 = vld [vmem:[#allocation2 + $0x18] sm:$0xff] }
 0x1b3   :  { %1888 = vst.msk [vmem:[#allocation2 + $0x38] sm:$0xff] %vm1882_vm3, %v13022_v26 }
 0x1b4   :  { %v1593_v27 = vpop.f32.mrf.mxu0  ;;  %v1948_v29 = vld [vmem:[#allocation2 + $0x10] sm:$0xff] }
 0x1b5   :  { %1887 = vst.msk [vmem:[#allocation2 + $0x30] sm:$0xff] %vm1882_vm3, %v1593_v27  ;;  %13131 = vmatprep.mubr.msk.f32.mxu1 %vm748_vm8, %v1948_v29  ;;  %13251 = vmatprep.mubr.msk.f32.mxu0 %vm748_vm8, %v1948_v29 }
 0x1b6   :  { %v13025_v34 = vpop.f32.mrf.mxu0  ;;  %13132 = vmatmul.mubr.msk.f32.vlgmr.msra.gmra.mxu1 %vm748_vm8, %v1949_v58  ;;  %13252 = vmatmul.mubr.msk.f32.gmra.mxu0 %vm748_vm8, %v1949_v58  ;;  %v16014_v61 = vld [vmem:[#allocation2 + $0x28] sm:$0xff] }
 0x1b7   :  { %1890 = vst.msk [vmem:[#allocation2 + $0x48] sm:$0xff] %vm1882_vm3, %v13025_v34  ;;  %13342 = vmatpush3.msra.mxu1 %v15910_v59 }
 0x1b8   :  { %v1603_v36 = vpop.f32.mrf.mxu0  ;;  %v16007_v60 = vld [vmem:[#allocation2 + $0x20] sm:$0xff]  ;;  %13343 = vmatprep.subr.mxu1 %v11255_v30 }
 0x1b9   :  { %1889 = vst.msk [vmem:[#allocation2 + $0x40] sm:$0xff] %vm1882_vm3, %v1603_v36  ;;  %13134 = vmatprep.mubr.msk.f32.mxu1 %vm748_vm8, %v16007_v60  ;;  %13254 = vmatprep.mubr.msk.f32.mxu0 %vm748_vm8, %v16007_v60 }
 0x1ba   :  { %v13028_v53 = vpop.f32.mrf.mxu0  ;;  %13135 = vmatmul.mubr.msk.f32.gmra.mxu1 %vm748_vm8, %v16014_v61  ;;  %13255 = vmatmul.mubr.msk.f32.gmra.mxu0 %vm748_vm8, %v16014_v61  ;;  %v16031_v63 = vld [vmem:[#allocation2 + $0x38] sm:$0xff] }
 0x1bb   :  { %1892 = vst.msk [vmem:[#allocation2 + $0x58] sm:$0xff] %vm1882_vm3, %v13028_v53  ;;  %13344 = vmatpush3.msra.mxu1 %v11255_v30 }
 0x1bc   :  { %v1613_v59 = vpop.f32.mrf.mxu0  ;;  %v16024_v62 = vld [vmem:[#allocation2 + $0x30] sm:$0xff]  ;;  %13345 = vmatprep.subr.mxu1 %v11254_v47 }
 0x1bd   :  { %1891 = vst.msk [vmem:[#allocation2 + $0x50] sm:$0xff] %vm1882_vm3, %v1613_v59  ;;  %13137 = vmatprep.mubr.msk.f32.mxu1 %vm748_vm8, %v16024_v62  ;;  %13257 = vmatprep.mubr.msk.f32.mxu0 %vm748_vm8, %v16024_v62 }
 0x1be   :  { %v13031_v1 = vpop.f32.mrf.mxu0  ;;  %13138 = vmatmul.mubr.msk.f32.gmra.mxu1 %vm748_vm8, %v16031_v63  ;;  %13258 = vmatmul.mubr.msk.f32.gmra.mxu0 %vm748_vm8, %v16031_v63  ;;  %v16048_v4 = vld [vmem:[#allocation2 + $0x48] sm:$0xff] }
 0x1bf   :  { %1894 = vst.msk [vmem:[#allocation2 + $0x68] sm:$0xff] %vm1882_vm3, %v13031_v1  ;;  %13346 = vmatpush3.msra.mxu1 %v11254_v47 }
 0x1c0   :  { %v1623_v2 = vpop.f32.mrf.mxu0  ;;  %v16041_v3 = vld [vmem:[#allocation2 + $0x40] sm:$0xff]  ;;  %13347 = vmatprep.subr.mxu1 %v11253_v0 }
 0x1c1   :  { %1893 = vst.msk [vmem:[#allocation2 + $0x60] sm:$0xff] %vm1882_vm3, %v1623_v2  ;;  %13140 = vmatprep.mubr.msk.f32.mxu1 %vm748_vm8, %v16041_v3  ;;  %13260 = vmatprep.mubr.msk.f32.mxu0 %vm748_vm8, %v16041_v3 }
 0x1c2   :  { %v13034_v6 = vpop.f32.mrf.mxu0  ;;  %13141 = vmatmul.mubr.msk.f32.gmra.mxu1 %vm748_vm8, %v16048_v4  ;;  %13261 = vmatmul.mubr.msk.f32.gmra.mxu0 %vm748_vm8, %v16048_v4  ;;  %v16065_v9 = vld [vmem:[#allocation2 + $0x58] sm:$0xff] }
 0x1c3   :  { %1896 = vst.msk [vmem:[#allocation2 + $0x78] sm:$0xff] %vm1882_vm3, %v13034_v6  ;;  %13348 = vmatpush3.msra.mxu1 %v11253_v0 }
 0x1c4   :  { %v1633_v7 = vpop.f32.mrf.mxu0  ;;  %v16058_v8 = vld [vmem:[#allocation2 + $0x50] sm:$0xff]  ;;  %13349 = vmatprep.subr.mxu1 %v11252_v5 }
 0x1c5   :  { %1895 = vst.msk [vmem:[#allocation2 + $0x70] sm:$0xff] %vm1882_vm3, %v1633_v7  ;;  %13143 = vmatprep.mubr.msk.f32.mxu1 %vm748_vm8, %v16058_v8  ;;  %13263 = vmatprep.mubr.msk.f32.mxu0 %vm748_vm8, %v16058_v8 }
 0x1c6   :  { %v13037_v11 = vpop.f32.mrf.mxu0  ;;  %13144 = vmatmul.mubr.msk.f32.gmra.mxu1 %vm748_vm8, %v16065_v9  ;;  %13264 = vmatmul.mubr.msk.f32.gmra.mxu0 %vm748_vm8, %v16065_v9  ;;  %v16082_v28 = vld [vmem:[#allocation2 + $0x68] sm:$0xff] }
 0x1c7   :  { %1898 = vst.msk [vmem:[#allocation2 + $0x88] sm:$0xff] %vm1882_vm3, %v13037_v11  ;;  %13350 = vmatpush3.msra.mxu1 %v11252_v5 }
 0x1c8   :  { %v1643_v12 = vpop.f32.mrf.mxu0  ;;  %v16075_v14 = vld [vmem:[#allocation2 + $0x60] sm:$0xff]  ;;  %13351 = vmatprep.subr.mxu1 %v11251_v10 }
 0x1c9   :  { %1897 = vst.msk [vmem:[#allocation2 + $0x80] sm:$0xff] %vm1882_vm3, %v1643_v12  ;;  %13146 = vmatprep.mubr.msk.f32.mxu1 %vm748_vm8, %v16075_v14  ;;  %13266 = vmatprep.mubr.msk.f32.mxu0 %vm748_vm8, %v16075_v14 }
 0x1ca   :  { %v13040_v32 = vpop.f32.mrf.mxu0  ;;  %13147 = vmatmul.mubr.msk.f32.gmra.mxu1 %vm748_vm8, %v16082_v28  ;;  %13267 = vmatmul.mubr.msk.f32.gmra.mxu0 %vm748_vm8, %v16082_v28  ;;  %v16099_v48 = vld [vmem:[#allocation2 + $0x78] sm:$0xff] }
 0x1cb   :  { %1900 = vst.msk [vmem:[#allocation2 + $0x98] sm:$0xff] %vm1882_vm3, %v13040_v32  ;;  %13352 = vmatpush3.msra.mxu1 %v11251_v10 }
 0x1cc   :  { %v1653_v33 = vpop.f32.mrf.mxu0  ;;  %v16092_v37 = vld [vmem:[#allocation2 + $0x70] sm:$0xff]  ;;  %13353 = vmatprep.subr.mxu1 %v11250_v15 }
 0x1cd   :  { %1899 = vst.msk [vmem:[#allocation2 + $0x90] sm:$0xff] %vm1882_vm3, %v1653_v33  ;;  %13149 = vmatprep.mubr.msk.f32.mxu1 %vm748_vm8, %v16092_v37  ;;  %13269 = vmatprep.mubr.msk.f32.mxu0 %vm748_vm8, %v16092_v37 }
 0x1ce   :  { %v13043_v40 = vpop.f32.mrf.mxu0  ;;  %13150 = vmatmul.mubr.msk.f32.gmra.mxu1 %vm748_vm8, %v16099_v48  ;;  %13270 = vmatmul.mubr.msk.f32.gmra.mxu0 %vm748_vm8, %v16099_v48  ;;  %v16116_v42 = vld [vmem:[#allocation2 + $0x88] sm:$0xff] }
 0x1cf   :  { %1902 = vst.msk [vmem:[#allocation2 + $0xa8] sm:$0xff] %vm1882_vm3, %v13043_v40  ;;  %13354 = vmatpush3.msra.mxu1 %v11250_v15 }
 0x1d0   :  { %v1663_v16 = vpop.f32.mrf.mxu0  ;;  %v16109_v41 = vld [vmem:[#allocation2 + $0x80] sm:$0xff]  ;;  %13355 = vmatprep.subr.mxu1 %v11249_v39 }
 0x1d1   :  { %1901 = vst.msk [vmem:[#allocation2 + $0xa0] sm:$0xff] %vm1882_vm3, %v1663_v16  ;;  %13152 = vmatprep.mubr.msk.f32.mxu1 %vm748_vm8, %v16109_v41  ;;  %13272 = vmatprep.mubr.msk.f32.mxu0 %vm748_vm8, %v16109_v41 }
 0x1d2   :  { %v13046_v43 = vpop.f32.mrf.mxu0  ;;  %13153 = vmatmul.mubr.msk.f32.gmra.mxu1 %vm748_vm8, %v16116_v42  ;;  %13273 = vmatmul.mubr.msk.f32.gmra.mxu0 %vm748_vm8, %v16116_v42  ;;  %v16133_v45 = vld [vmem:[#allocation2 + $0x98] sm:$0xff] }
 0x1d3   :  { %1904 = vst.msk [vmem:[#allocation2 + $0xb8] sm:$0xff] %vm1882_vm3, %v13046_v43  ;;  %13356 = vmatpush3.msra.mxu1 %v11249_v39 }
 0x1d4   :  { %v1673_v57 = vpop.f32.mrf.mxu0  ;;  %v16126_v44 = vld [vmem:[#allocation2 + $0x90] sm:$0xff]  ;;  %13357 = vmatprep.subr.mxu1 %v11248_v17 }
 0x1d5   :  { %1903 = vst.msk [vmem:[#allocation2 + $0xb0] sm:$0xff] %vm1882_vm3, %v1673_v57  ;;  %13155 = vmatprep.mubr.msk.f32.mxu1 %vm748_vm8, %v16126_v44  ;;  %13275 = vmatprep.mubr.msk.f32.mxu0 %vm748_vm8, %v16126_v44 }
 0x1d6   :  { %v13049_v19 = vpop.f32.mrf.mxu0  ;;  %13156 = vmatmul.mubr.msk.f32.gmra.mxu1 %vm748_vm8, %v16133_v45  ;;  %13276 = vmatmul.mubr.msk.f32.gmra.mxu0 %vm748_vm8, %v16133_v45  ;;  %v16150_v21 = vld [vmem:[#allocation2 + $0xa8] sm:$0xff] }
 0x1d7   :  { %1906 = vst.msk [vmem:[#allocation2 + $0xc8] sm:$0xff] %vm1882_vm3, %v13049_v19  ;;  %13358 = vmatpush3.msra.mxu1 %v11248_v17 }
 0x1d8   :  { %v1683_v49 = vpop.f32.mrf.mxu0  ;;  %v16143_v50 = vld [vmem:[#allocation2 + $0xa0] sm:$0xff]  ;;  %13359 = vmatprep.subr.mxu1 %v11247_v18 }
 0x1d9   :  { %1905 = vst.msk [vmem:[#allocation2 + $0xc0] sm:$0xff] %vm1882_vm3, %v1683_v49  ;;  %13158 = vmatprep.mubr.msk.f32.mxu1 %vm748_vm8, %v16143_v50  ;;  %13278 = vmatprep.mubr.msk.f32.mxu0 %vm748_vm8, %v16143_v50 }
 0x1da   :  { %v13052_v52 = vpop.f32.mrf.mxu0  ;;  %13159 = vmatmul.mubr.msk.f32.gmra.mxu1 %vm748_vm8, %v16150_v21  ;;  %13279 = vmatmul.mubr.msk.f32.gmra.mxu0 %vm748_vm8, %v16150_v21  ;;  %v16167_v24 = vld [vmem:[#allocation2 + $0xb8] sm:$0xff] }
 0x1db   :  { %1908 = vst.msk [vmem:[#allocation2 + $0xd8] sm:$0xff] %vm1882_vm3, %v13052_v52  ;;  %13360 = vmatpush3.msra.mxu1 %v11247_v18 }
 0x1dc   :  { %v1693_v23 = vpop.f32.mrf.mxu0  ;;  %v16160_v54 = vld [vmem:[#allocation2 + $0xb0] sm:$0xff]  ;;  %13361 = vmatprep.subr.mxu1 %v11246_v51 }
 0x1dd   :  { %1907 = vst.msk [vmem:[#allocation2 + $0xd0] sm:$0xff] %vm1882_vm3, %v1693_v23  ;;  %13161 = vmatprep.mubr.msk.f32.mxu1 %vm748_vm8, %v16160_v54  ;;  %13281 = vmatprep.mubr.msk.f32.mxu0 %vm748_vm8, %v16160_v54 }
 0x1de   :  { %v13055_v55 = vpop.f32.mrf.mxu0  ;;  %13162 = vmatmul.mubr.msk.f32.gmra.mxu1 %vm748_vm8, %v16167_v24  ;;  %13282 = vmatmul.mubr.msk.f32.gmra.mxu0 %vm748_vm8, %v16167_v24  ;;  %v16184_v27 = vld [vmem:[#allocation2 + $0xc8] sm:$0xff] }
 0x1df   :  { %1910 = vst.msk [vmem:[#allocation2 + $0xe8] sm:$0xff] %vm1882_vm3, %v13055_v55  ;;  %13362 = vmatpush3.msra.mxu1 %v11246_v51 }
 0x1e0   :  { %v1703_v56 = vpop.f32.mrf.mxu0  ;;  %v16177_v26 = vld [vmem:[#allocation2 + $0xc0] sm:$0xff]  ;;  %13363 = vmatprep.subr.mxu1 %v11245_v38 }
 0x1e1   :  { %1909 = vst.msk [vmem:[#allocation2 + $0xe0] sm:$0xff] %vm1882_vm3, %v1703_v56  ;;  %13164 = vmatprep.mubr.msk.f32.mxu1 %vm748_vm8, %v16177_v26  ;;  %13284 = vmatprep.mubr.msk.f32.mxu0 %vm748_vm8, %v16177_v26 }
 0x1e2   :  { %v13058_v29 = vpop.f32.mrf.mxu0  ;;  %13165 = vmatmul.mubr.msk.f32.gmra.mxu1 %vm748_vm8, %v16184_v27  ;;  %13285 = vmatmul.mubr.msk.f32.gmra.mxu0 %vm748_vm8, %v16184_v27  ;;  %v16198_v34 = vld [vmem:[#allocation2 + $0xd8] sm:$0xff] }
 0x1e3   :  { %1912 = vst.msk [vmem:[#allocation2 + $0xf8] sm:$0xff] %vm1882_vm3, %v13058_v29  ;;  %13364 = vmatpush3.msra.mxu1 %v11245_v38 }
 0x1e4   :  { %v1713_v58 = vpop.f32.mrf.mxu0  ;;  %v16191_v30 = vld [vmem:[#allocation2 + $0xd0] sm:$0xff] }
 0x1e5   :  { %1911 = vst.msk [vmem:[#allocation2 + $0xf0] sm:$0xff] %vm1882_vm3, %v1713_v58  ;;  %13167 = vmatprep.mubr.msk.f32.mxu1 %vm748_vm8, %v16191_v30  ;;  %13287 = vmatprep.mubr.msk.f32.mxu0 %vm748_vm8, %v16191_v30 }
 0x1e6   :  { %v13061_v36 = vpop.f32.mrf.mxu0  ;;  %13168 = vmatmul.mubr.msk.f32.gmra.mxu1 %vm748_vm8, %v16198_v34  ;;  %13288 = vmatmul.mubr.msk.f32.gmra.mxu0 %vm748_vm8, %v16198_v34  ;;  %v16212_v59 = vld [vmem:[#allocation2 + $0xe8] sm:$0xff] }
 0x1e7   :  { %1914 = vst.msk [vmem:[#allocation2 + $0x108] sm:$0xff] %vm1882_vm3, %v13061_v36 }
 0x1e8   :  { %v1723_v47 = vpop.f32.mrf.mxu0  ;;  %v16205_v53 = vld [vmem:[#allocation2 + $0xe0] sm:$0xff] }
 0x1e9   :  { %1913 = vst.msk [vmem:[#allocation2 + $0x100] sm:$0xff] %vm1882_vm3, %v1723_v47  ;;  %13170 = vmatprep.mubr.msk.f32.mxu1 %vm748_vm8, %v16205_v53  ;;  %13290 = vmatprep.mubr.msk.f32.mxu0 %vm748_vm8, %v16205_v53 }
 0x1ea   :  { %v13064_v0 = vpop.f32.mrf.mxu0  ;;  %13171 = vmatmul.mubr.msk.f32.gmra.mxu1 %vm748_vm8, %v16212_v59  ;;  %13291 = vmatmul.mubr.msk.f32.gmra.mxu0 %vm748_vm8, %v16212_v59  ;;  %v16226_v5 = vld [vmem:[#allocation2 + $0xf8] sm:$0xff] }
 0x1eb   :  { %1916 = vst.msk [vmem:[#allocation2 + $0x118] sm:$0xff] %vm1882_vm3, %v13064_v0 }
 0x1ec   :  { %v1733_v1 = vpop.f32.mrf.mxu0  ;;  %v16219_v2 = vld [vmem:[#allocation2 + $0xf0] sm:$0xff] }
 0x1ed   :  { %1915 = vst.msk [vmem:[#allocation2 + $0x110] sm:$0xff] %vm1882_vm3, %v1733_v1  ;;  %13173 = vmatprep.mubr.msk.f32.mxu1 %vm748_vm8, %v16219_v2  ;;  %13293 = vmatprep.mubr.msk.f32.mxu0 %vm748_vm8, %v16219_v2 }
 0x1ee   :  { %v13067_v6 = vpop.f32.mrf.mxu0  ;;  %13174 = vmatmul.mubr.msk.f32.gmra.mxu1 %vm748_vm8, %v16226_v5  ;;  %13294 = vmatmul.mubr.msk.f32.gmra.mxu0 %vm748_vm8, %v16226_v5  ;;  %v16240_v11 = vld [vmem:[#allocation2 + $0x108] sm:$0xff] }
 0x1ef   :  { %1918 = vst.msk [vmem:[#allocation2 + $0x128] sm:$0xff] %vm1882_vm3, %v13067_v6 }
 0x1f0   :  { %v1743_v7 = vpop.f32.mrf.mxu0  ;;  %v16233_v10 = vld [vmem:[#allocation2 + $0x100] sm:$0xff] }
 0x1f1   :  { %1917 = vst.msk [vmem:[#allocation2 + $0x120] sm:$0xff] %vm1882_vm3, %v1743_v7  ;;  %13176 = vmatprep.mubr.msk.f32.mxu1 %vm748_vm8, %v16233_v10  ;;  %13296 = vmatprep.mubr.msk.f32.mxu0 %vm748_vm8, %v16233_v10 }
 0x1f2   :  { %v13070_v12 = vpop.f32.mrf.mxu0  ;;  %13177 = vmatmul.mubr.msk.f32.gmra.mxu1 %vm748_vm8, %v16240_v11  ;;  %13297 = vmatmul.mubr.msk.f32.gmra.mxu0 %vm748_vm8, %v16240_v11  ;;  %v16254_v33 = vld [vmem:[#allocation2 + $0x118] sm:$0xff] }
 0x1f3   :  { %1920 = vst.msk [vmem:[#allocation2 + $0x138] sm:$0xff] %vm1882_vm3, %v13070_v12 }
 0x1f4   :  { %v1753_v15 = vpop.f32.mrf.mxu0  ;;  %v16247_v32 = vld [vmem:[#allocation2 + $0x110] sm:$0xff] }
 0x1f5   :  { %1919 = vst.msk [vmem:[#allocation2 + $0x130] sm:$0xff] %vm1882_vm3, %v1753_v15  ;;  %13179 = vmatprep.mubr.msk.f32.mxu1 %vm748_vm8, %v16247_v32  ;;  %13299 = vmatprep.mubr.msk.f32.mxu0 %vm748_vm8, %v16247_v32 }
 0x1f6   :  { %v13073_v39 = vpop.f32.mrf.mxu0  ;;  %13180 = vmatmul.mubr.msk.f32.gmra.mxu1 %vm748_vm8, %v16254_v33  ;;  %13300 = vmatmul.mubr.msk.f32.gmra.mxu0 %vm748_vm8, %v16254_v33  ;;  %v16268_v17 = vld [vmem:[#allocation2 + $0x128] sm:$0xff] }
 0x1f7   :  { %1922 = vst.msk [vmem:[#allocation2 + $0x148] sm:$0xff] %vm1882_vm3, %v13073_v39 }
 0x1f8   :  { %v1763_v40 = vpop.f32.mrf.mxu0  ;;  %v16261_v16 = vld [vmem:[#allocation2 + $0x120] sm:$0xff] }
 0x1f9   :  { %1921 = vst.msk [vmem:[#allocation2 + $0x140] sm:$0xff] %vm1882_vm3, %v1763_v40  ;;  %13182 = vmatprep.mubr.msk.f32.mxu1 %vm748_vm8, %v16261_v16  ;;  %13302 = vmatprep.mubr.msk.f32.mxu0 %vm748_vm8, %v16261_v16 }
 0x1fa   :  { %v13076_v43 = vpop.f32.mrf.mxu0  ;;  %13183 = vmatmul.mubr.msk.f32.gmra.mxu1 %vm748_vm8, %v16268_v17  ;;  %13303 = vmatmul.mubr.msk.f32.gmra.mxu0 %vm748_vm8, %v16268_v17  ;;  %v16282_v19 = vld [vmem:[#allocation2 + $0x138] sm:$0xff] }
 0x1fb   :  { %1924 = vst.msk [vmem:[#allocation2 + $0x158] sm:$0xff] %vm1882_vm3, %v13076_v43 }
 0x1fc   :  { %v1773_v57 = vpop.f32.mrf.mxu0  ;;  %v16275_v18 = vld [vmem:[#allocation2 + $0x130] sm:$0xff] }
 0x1fd   :  { %1923 = vst.msk [vmem:[#allocation2 + $0x150] sm:$0xff] %vm1882_vm3, %v1773_v57  ;;  %13185 = vmatprep.mubr.msk.f32.mxu1 %vm748_vm8, %v16275_v18  ;;  %13305 = vmatprep.mubr.msk.f32.mxu0 %vm748_vm8, %v16275_v18 }
 0x1fe   :  { %v13079_v49 = vpop.f32.mrf.mxu0  ;;  %13186 = vmatmul.mubr.msk.f32.gmra.mxu1 %vm748_vm8, %v16282_v19  ;;  %13306 = vmatmul.mubr.msk.f32.gmra.mxu0 %vm748_vm8, %v16282_v19  ;;  %v16296_v23 = vld [vmem:[#allocation2 + $0x148] sm:$0xff] }
 0x1ff   :  { %1926 = vst.msk [vmem:[#allocation2 + $0x168] sm:$0xff] %vm1882_vm3, %v13079_v49 }
 0x200   :  { %v1783_v51 = vpop.f32.mrf.mxu0  ;;  %v16289_v52 = vld [vmem:[#allocation2 + $0x140] sm:$0xff] }
 0x201   :  { %1925 = vst.msk [vmem:[#allocation2 + $0x160] sm:$0xff] %vm1882_vm3, %v1783_v51  ;;  %13188 = vmatprep.mubr.msk.f32.mxu1 %vm748_vm8, %v16289_v52  ;;  %13308 = vmatprep.mubr.msk.f32.mxu0 %vm748_vm8, %v16289_v52 }
 0x202   :  { %v13082_v38 = vpop.f32.mrf.mxu0  ;;  %13189 = vmatmul.mubr.msk.f32.gmra.mxu1 %vm748_vm8, %v16296_v23  ;;  %13309 = vmatmul.mubr.msk.f32.gmra.mxu0 %vm748_vm8, %v16296_v23  ;;  %v16310_v29 = vld [vmem:[#allocation2 + $0x158] sm:$0xff] }
 0x203   :  { %1928 = vst.msk [vmem:[#allocation2 + $0x178] sm:$0xff] %vm1882_vm3, %v13082_v38 }
 0x204   :  { %v1793_v55 = vpop.f32.mrf.mxu0  ;;  %v16303_v56 = vld [vmem:[#allocation2 + $0x150] sm:$0xff] }
 0x205   :  { %1927 = vst.msk [vmem:[#allocation2 + $0x170] sm:$0xff] %vm1882_vm3, %v1793_v55  ;;  %13191 = vmatprep.mubr.msk.f32.mxu1 %vm748_vm8, %v16303_v56  ;;  %13311 = vmatprep.mubr.msk.f32.mxu0 %vm748_vm8, %v16303_v56 }
 0x206   :  { %v13085_v58 = vpop.f32.mrf.mxu0  ;;  %13192 = vmatmul.mubr.msk.f32.gmra.mxu1 %vm748_vm8, %v16310_v29  ;;  %13312 = vmatmul.mubr.msk.f32.gmra.mxu0 %vm748_vm8, %v16310_v29  ;;  %v16324_v0 = vld [vmem:[#allocation2 + $0x168] sm:$0xff] }
 0x207   :  { %1930 = vst.msk [vmem:[#allocation2 + $0x188] sm:$0xff] %vm1882_vm3, %v13085_v58 }
 0x208   :  { %v1803_v36 = vpop.f32.mrf.mxu0  ;;  %v16317_v47 = vld [vmem:[#allocation2 + $0x160] sm:$0xff] }
 0x209   :  { %1929 = vst.msk [vmem:[#allocation2 + $0x180] sm:$0xff] %vm1882_vm3, %v1803_v36  ;;  %13194 = vmatprep.mubr.msk.f32.mxu1 %vm748_vm8, %v16317_v47  ;;  %13314 = vmatprep.mubr.msk.f32.mxu0 %vm748_vm8, %v16317_v47 }
 0x20a   :  { %v13088_v1 = vpop.f32.mrf.mxu0  ;;  %13195 = vmatmul.mubr.msk.f32.gmra.mxu1 %vm748_vm8, %v16324_v0  ;;  %13315 = vmatmul.mubr.msk.f32.gmra.mxu0 %vm748_vm8, %v16324_v0  ;;  %v16338_v12 = vld [vmem:[#allocation2 + $0x178] sm:$0xff] }
 0x20b   :  { %1932 = vst.msk [vmem:[#allocation2 + $0x198] sm:$0xff] %vm1882_vm3, %v13088_v1 }
 0x20c   :  { %v1813_v6 = vpop.f32.mrf.mxu0  ;;  %v16331_v7 = vld [vmem:[#allocation2 + $0x170] sm:$0xff] }
 0x20d   :  { %1931 = vst.msk [vmem:[#allocation2 + $0x190] sm:$0xff] %vm1882_vm3, %v1813_v6  ;;  %13197 = vmatprep.mubr.msk.f32.mxu1 %vm748_vm8, %v16331_v7  ;;  %13317 = vmatprep.mubr.msk.f32.mxu0 %vm748_vm8, %v16331_v7 }
 0x20e   :  { %v13091_v15 = vpop.f32.mrf.mxu0  ;;  %13198 = vmatmul.mubr.msk.f32.gmra.mxu1 %vm748_vm8, %v16338_v12  ;;  %13318 = vmatmul.mubr.msk.f32.gmra.mxu0 %vm748_vm8, %v16338_v12  ;;  %v16352_v43 = vld [vmem:[#allocation2 + $0x188] sm:$0xff] }
 0x20f   :  { %1934 = vst.msk [vmem:[#allocation2 + $0x1a8] sm:$0xff] %vm1882_vm3, %v13091_v15 }
 0x210   :  { %v1823_v39 = vpop.f32.mrf.mxu0  ;;  %v16345_v40 = vld [vmem:[#allocation2 + $0x180] sm:$0xff] }
 0x211   :  { %1933 = vst.msk [vmem:[#allocation2 + $0x1a0] sm:$0xff] %vm1882_vm3, %v1823_v39  ;;  %13200 = vmatprep.mubr.msk.f32.mxu1 %vm748_vm8, %v16345_v40  ;;  %13320 = vmatprep.mubr.msk.f32.mxu0 %vm748_vm8, %v16345_v40 }
 0x212   :  { %v13094_v57 = vpop.f32.mrf.mxu0  ;;  %13201 = vmatmul.mubr.msk.f32.gmra.mxu1 %vm748_vm8, %v16352_v43  ;;  %13321 = vmatmul.mubr.msk.f32.gmra.mxu0 %vm748_vm8, %v16352_v43  ;;  %v16366_v38 = vld [vmem:[#allocation2 + $0x198] sm:$0xff] }
 0x213   :  { %1936 = vst.msk [vmem:[#allocation2 + $0x1b8] sm:$0xff] %vm1882_vm3, %v13094_v57 }
 0x214   :  { %v1833_v49 = vpop.f32.mrf.mxu0  ;;  %v16359_v51 = vld [vmem:[#allocation2 + $0x190] sm:$0xff] }
 0x215   :  { %1935 = vst.msk [vmem:[#allocation2 + $0x1b0] sm:$0xff] %vm1882_vm3, %v1833_v49  ;;  %13203 = vmatprep.mubr.msk.f32.mxu1 %vm748_vm8, %v16359_v51  ;;  %13323 = vmatprep.mubr.msk.f32.mxu0 %vm748_vm8, %v16359_v51 }
 0x216   :  { %v13097_v55 = vpop.f32.mrf.mxu0  ;;  %13204 = vmatmul.mubr.msk.f32.gmra.mxu1 %vm748_vm8, %v16366_v38  ;;  %13324 = vmatmul.mubr.msk.f32.gmra.mxu0 %vm748_vm8, %v16366_v38  ;;  %v16380_v1 = vld [vmem:[#allocation2 + $0x1a8] sm:$0xff] }
 0x217   :  { %1938 = vst.msk [vmem:[#allocation2 + $0x1c8] sm:$0xff] %vm1882_vm3, %v13097_v55 }
 0x218   :  { %v1843_v58 = vpop.f32.mrf.mxu0  ;;  %v16373_v36 = vld [vmem:[#allocation2 + $0x1a0] sm:$0xff] }
 0x219   :  { %1937 = vst.msk [vmem:[#allocation2 + $0x1c0] sm:$0xff] %vm1882_vm3, %v1843_v58  ;;  %13206 = vmatprep.mubr.msk.f32.mxu1 %vm748_vm8, %v16373_v36  ;;  %13326 = vmatprep.mubr.msk.f32.mxu0 %vm748_vm8, %v16373_v36 }
 0x21a   :  { %v13100_v6 = vpop.f32.mrf.mxu0  ;;  %13207 = vmatmul.mubr.msk.f32.gmra.mxu1 %vm748_vm8, %v16380_v1  ;;  %13327 = vmatmul.mubr.msk.f32.gmra.mxu0 %vm748_vm8, %v16380_v1  ;;  %v16394_v57 = vld [vmem:[#allocation2 + $0x1b8] sm:$0xff] }
 0x21b   :  { %1940 = vst.msk [vmem:[#allocation2 + $0x1d8] sm:$0xff] %vm1882_vm3, %v13100_v6 }
 0x21c   :  { %v1853_v15 = vpop.f32.mrf.mxu0  ;;  %v16387_v39 = vld [vmem:[#allocation2 + $0x1b0] sm:$0xff] }
 0x21d   :  { %1939 = vst.msk [vmem:[#allocation2 + $0x1d0] sm:$0xff] %vm1882_vm3, %v1853_v15  ;;  %13209 = vmatprep.mubr.msk.f32.mxu1 %vm748_vm8, %v16387_v39  ;;  %13329 = vmatprep.mubr.msk.f32.mxu0 %vm748_vm8, %v16387_v39 }
 0x21e   :  { %v13103_v49 = vpop.f32.mrf.mxu0  ;;  %13210 = vmatmul.mubr.msk.f32.gmra.mxu1 %vm748_vm8, %v16394_v57  ;;  %13330 = vmatmul.mubr.msk.f32.gmra.mxu0 %vm748_vm8, %v16394_v57  ;;  %v16408_v6 = vld [vmem:[#allocation2 + $0x1c8] sm:$0xff] }
 0x21f   :  { %1942 = vst.msk [vmem:[#allocation2 + $0x1e8] sm:$0xff] %vm1882_vm3, %v13103_v49 }
 0x220   :  { %v1863_v55 = vpop.f32.mrf.mxu0  ;;  %v16401_v58 = vld [vmem:[#allocation2 + $0x1c0] sm:$0xff] }
 0x221   :  { %1941 = vst.msk [vmem:[#allocation2 + $0x1e0] sm:$0xff] %vm1882_vm3, %v1863_v55  ;;  %13212 = vmatprep.mubr.msk.f32.mxu1 %vm748_vm8, %v16401_v58  ;;  %13332 = vmatprep.mubr.msk.f32.mxu0 %vm748_vm8, %v16401_v58 }
 0x222   :  { %v13106_v15 = vpop.f32.mrf.mxu0  ;;  %13213 = vmatmul.mubr.msk.f32.gmra.mxu1 %vm748_vm8, %v16408_v6  ;;  %13333 = vmatmul.mubr.msk.f32.gmra.mxu0 %vm748_vm8, %v16408_v6  ;;  %v16422_v55 = vld [vmem:[#allocation2 + $0x1d8] sm:$0xff] }
 0x223   :  { %1944 = vst.msk [vmem:[#allocation2 + $0x1f8] sm:$0xff] %vm1882_vm3, %v13106_v15 }
 0x224   :  { %v1873_v49 = vpop.f32.mrf.mxu0  ;;  %v16415_v35 = vld [vmem:[#allocation2 + $0x1d0] sm:$0xff] }
 0x225   :  { %1943 = vst.msk [vmem:[#allocation2 + $0x1f0] sm:$0xff] %vm1882_vm3, %v1873_v49  ;;  %13215 = vmatprep.mubr.msk.f32.mxu1 %vm748_vm8, %v16415_v35  ;;  %13335 = vmatprep.mubr.msk.f32.mxu0 %vm748_vm8, %v16415_v35 }
 0x226   :  { %13216 = vmatmul.mubr.msk.f32.gmra.mxu1 %vm748_vm8, %v16422_v55  ;;  %13336 = vmatmul.mubr.msk.f32.gmra.mxu0 %vm748_vm8, %v16422_v55  ;;  %v16434_v49 = vld [vmem:[#allocation2 + $0x1e8] sm:$0xff] }
 0x228   :  { %v16428_v15 = vld [vmem:[#allocation2 + $0x1e0] sm:$0xff] }
 0x229   :  { %13218 = vmatprep.mubr.msk.f32.mxu1 %vm748_vm8, %v16428_v15  ;;  %13338 = vmatprep.mubr.msk.f32.mxu0 %vm748_vm8, %v16428_v15 }
 0x22a   :  { %13219 = vmatmul.mubr.msk.f32.gmra.mxu1 %vm748_vm8, %v16434_v49  ;;  %13339 = vmatmul.mubr.msk.f32.gmra.mxu0 %vm748_vm8, %v16434_v49  ;;  %v16444_v25 = vld [vmem:[#allocation2 + $0x1f8] sm:$0xff] }
 0x22c   :  { %v16440_v13 = vld [vmem:[#allocation2 + $0x1f0] sm:$0xff] }
 0x22d   :  { %13221 = vmatprep.mubr.msk.f32.mxu1 %vm748_vm8, %v16440_v13 }
 0x22e   :  { %13222 = vmatmul.mubr.msk.f32.gmra.mxu1 %vm748_vm8, %v16444_v25 }
 0x22f   :  { %13365 = vmatprep.mubr.msk.f32.mxu1 %vm748_vm8, %v16007_v60  ;;  %v16518_v60 = vpop.f32.mrf.mxu1 }
 0x230   :  { %20197 = vst [vmem:[#allocation8_spill] sm:$0xff] %v16518_v60 }
 0x232   :  { %13366 = vmatmul.mubr.msk.f32.vlgmr.msra.gmra.mxu1 %vm748_vm8, %v16014_v61  ;;  %v16520_v61 = vpop.f32.mrf.mxu0 }
 0x233   :  { %13368 = vmatprep.mubr.msk.f32.mxu1 %vm748_vm8, %v16024_v62 }
 0x236   :  { %13369 = vmatmul.mubr.msk.f32.gmra.mxu1 %vm748_vm8, %v16031_v63 }
 0x237   :  { %13371 = vmatprep.mubr.msk.f32.mxu1 %vm748_vm8, %v16041_v3  ;;  %v16530_v3 = vpop.f32.mrf.mxu0 }
 0x23a   :  { %13372 = vmatmul.mubr.msk.f32.gmra.mxu1 %vm748_vm8, %v16048_v4 }
 0x23b   :  { %13374 = vmatprep.mubr.msk.f32.mxu1 %vm748_vm8, %v16058_v8 }
 0x23e   :  { %13375 = vmatmul.mubr.msk.f32.gmra.mxu1 %vm748_vm8, %v16065_v9 }
 0x23f   :  { %13377 = vmatprep.mubr.msk.f32.mxu1 %vm748_vm8, %v16075_v14 }
 0x242   :  { %13378 = vmatmul.mubr.msk.f32.gmra.mxu1 %vm748_vm8, %v16082_v28  ;;  %v11343_v28 = vld [vmem:[%s20179_s3 + $0x1d8] sm:$0xff] }
 0x243   :  { %13380 = vmatprep.mubr.msk.f32.mxu1 %vm748_vm8, %v16092_v37  ;;  %13458 = vmatprep.subr.mxu0 %v11343_v28 }
 0x244   :  { %13459 = vmatpush3.msra.mxu0 %v11343_v28 }
 0x246   :  { %13381 = vmatmul.mubr.msk.f32.gmra.mxu1 %vm748_vm8, %v16099_v48 }
 0x247   :  { %13383 = vmatprep.mubr.msk.f32.mxu1 %vm748_vm8, %v16109_v41 }
 0x24a   :  { %13384 = vmatmul.mubr.msk.f32.gmra.mxu1 %vm748_vm8, %v16116_v42 }
 0x24b   :  { %13386 = vmatprep.mubr.msk.f32.mxu1 %vm748_vm8, %v16126_v44 }
 0x24e   :  { %13387 = vmatmul.mubr.msk.f32.gmra.mxu1 %vm748_vm8, %v16133_v45 }
 0x24f   :  { %13389 = vmatprep.mubr.msk.f32.mxu1 %vm748_vm8, %v16143_v50  ;;  %v11342_v50 = vld [vmem:[%s20179_s3 + $0x1d0] sm:$0xff] }
 0x250   :  { %13460 = vmatprep.subr.mxu0 %v11342_v50 }
 0x251   :  { %13461 = vmatpush3.msra.mxu0 %v11342_v50 }
 0x252   :  { %13390 = vmatmul.mubr.msk.f32.gmra.mxu1 %vm748_vm8, %v16150_v21 }
 0x253   :  { %13392 = vmatprep.mubr.msk.f32.mxu1 %vm748_vm8, %v16160_v54 }
 0x256   :  { %13393 = vmatmul.mubr.msk.f32.gmra.mxu1 %vm748_vm8, %v16167_v24 }
 0x257   :  { %13395 = vmatprep.mubr.msk.f32.mxu1 %vm748_vm8, %v16177_v26 }
 0x25a   :  { %13396 = vmatmul.mubr.msk.f32.gmra.mxu1 %vm748_vm8, %v16184_v27 }
 0x25b   :  { %13398 = vmatprep.mubr.msk.f32.mxu1 %vm748_vm8, %v16191_v30 }
 0x25e   :  { %13399 = vmatmul.mubr.msk.f32.gmra.mxu1 %vm748_vm8, %v16198_v34 }
 0x25f   :  { %13401 = vmatprep.mubr.msk.f32.mxu1 %vm748_vm8, %v16205_v53 }
 0x262   :  { %13402 = vmatmul.mubr.msk.f32.gmra.mxu1 %vm748_vm8, %v16212_v59 }
 0x263   :  { %13404 = vmatprep.mubr.msk.f32.mxu1 %vm748_vm8, %v16219_v2  ;;  %v11341_v2 = vld [vmem:[%s20179_s3 + $0x1c8] sm:$0xff] }
 0x264   :  { %13462 = vmatprep.subr.mxu0 %v11341_v2 }
 0x265   :  { %13463 = vmatpush3.msra.mxu0 %v11341_v2  ;;  %v11337_v2 = vld [vmem:[%s20179_s3 + $0x1a8] sm:$0xff] }
 0x266   :  { %13405 = vmatmul.mubr.msk.f32.gmra.mxu1 %vm748_vm8, %v16226_v5 }
 0x267   :  { %13407 = vmatprep.mubr.msk.f32.mxu1 %vm748_vm8, %v16233_v10 }
 0x26a   :  { %13408 = vmatmul.mubr.msk.f32.gmra.mxu1 %vm748_vm8, %v16240_v11 }
 0x26b   :  { %13410 = vmatprep.mubr.msk.f32.mxu1 %vm748_vm8, %v16247_v32 }
 0x26e   :  { %13411 = vmatmul.mubr.msk.f32.gmra.mxu1 %vm748_vm8, %v16254_v33 }
 0x26f   :  { %13413 = vmatprep.mubr.msk.f32.mxu1 %vm748_vm8, %v16261_v16 }
 0x272   :  { %13414 = vmatmul.mubr.msk.f32.gmra.mxu1 %vm748_vm8, %v16268_v17  ;;  %v11340_v17 = vld [vmem:[%s20179_s3 + $0x1c0] sm:$0xff] }
 0x273   :  { %13416 = vmatprep.mubr.msk.f32.mxu1 %vm748_vm8, %v16275_v18  ;;  %13464 = vmatprep.subr.mxu0 %v11340_v17 }
 0x274   :  { %13465 = vmatpush3.msra.mxu0 %v11340_v17 }
 0x276   :  { %v16522_v62 = vpop.f32.mrf.mxu1  ;;  %13417 = vmatmul.mubr.msk.f32.gmra.mxu1 %vm748_vm8, %v16282_v19  ;;  %v16540_v9 = vpop.f32.mrf.mxu0 }
 0x277   :  { %13419 = vmatprep.mubr.msk.f32.mxu1 %vm748_vm8, %v16289_v52 }
 0x278   :  { %v16528_v63 = vpop.f32.mrf.mxu1  ;;  %v16553_v48 = vpop.f32.mrf.mxu0 }
 0x27a   :  { %v16532_v4 = vpop.f32.mrf.mxu1  ;;  %13420 = vmatmul.mubr.msk.f32.gmra.mxu1 %vm748_vm8, %v16296_v23  ;;  %v16563_v44 = vpop.f32.mrf.mxu0 }
 0x27b   :  { %13422 = vmatprep.mubr.msk.f32.mxu1 %vm748_vm8, %v16303_v56 }
 0x27c   :  { %v16538_v8 = vpop.f32.mrf.mxu1  ;;  %v16576_v54 = vpop.f32.mrf.mxu0 }
 0x27e   :  { %v16542_v14 = vpop.f32.mrf.mxu1  ;;  %13423 = vmatmul.mubr.msk.f32.gmra.mxu1 %vm748_vm8, %v16310_v29  ;;  %v16586_v27 = vpop.f32.mrf.mxu0 }
 0x27f   :  { %13425 = vmatprep.mubr.msk.f32.mxu1 %vm748_vm8, %v16317_v47  ;;  %v3037_v47 = vld [vmem:[#allocation2 + $0x200] sm:$0xff] }
 0x280   :  { %v16551_v37 = vpop.f32.mrf.mxu1  ;;  %v16596_v53 = vpop.f32.mrf.mxu0 }
 0x282   :  { %v16555_v41 = vpop.f32.mrf.mxu1  ;;  %13426 = vmatmul.mubr.msk.f32.gmra.mxu1 %vm748_vm8, %v16324_v0  ;;  %v16609_v10 = vpop.f32.mrf.mxu0 }
 0x283   :  { %13428 = vmatprep.mubr.msk.f32.mxu1 %vm748_vm8, %v16331_v7 }
 0x284   :  { %v16561_v42 = vpop.f32.mrf.mxu1  ;;  %v16619_v33 = vpop.f32.mrf.mxu0 }
 0x286   :  { %v16565_v45 = vpop.f32.mrf.mxu1  ;;  %13429 = vmatmul.mubr.msk.f32.gmra.mxu1 %vm748_vm8, %v16338_v12  ;;  %v16632_v19 = vpop.f32.mrf.mxu0  ;;  %v3038_v12 = vld [vmem:[#allocation2 + $0x208] sm:$0xff] }
 0x287   :  { %13431 = vmatprep.mubr.msk.f32.mxu1 %vm748_vm8, %v16345_v40  ;;  %v11339_v40 = vld [vmem:[%s20179_s3 + $0x1b8] sm:$0xff] }
 0x288   :  { %v16574_v21 = vpop.f32.mrf.mxu1  ;;  %13466 = vmatprep.subr.mxu0 %v11339_v40 }
 0x289   :  { %13467 = vmatpush3.msra.mxu0 %v11339_v40 }
 0x28a   :  { %v16578_v24 = vpop.f32.mrf.mxu1  ;;  %13432 = vmatmul.mubr.msk.f32.gmra.mxu1 %vm748_vm8, %v16352_v43 }
 0x28b   :  { %13434 = vmatprep.mubr.msk.f32.mxu1 %vm748_vm8, %v16359_v51 }
 0x28c   :  { %v16584_v26 = vpop.f32.mrf.mxu1 }
 0x28e   :  { %v16588_v30 = vpop.f32.mrf.mxu1  ;;  %13435 = vmatmul.mubr.msk.f32.gmra.mxu1 %vm748_vm8, %v16366_v38 }
 0x28f   :  { %13437 = vmatprep.mubr.msk.f32.mxu1 %vm748_vm8, %v16373_v36 }
 0x290   :  { %v16594_v34 = vpop.f32.mrf.mxu1 }
 0x292   :  { %v16598_v59 = vpop.f32.mrf.mxu1  ;;  %13438 = vmatmul.mubr.msk.f32.gmra.mxu1 %vm748_vm8, %v16380_v1 }
 0x293   :  { %13440 = vmatprep.mubr.msk.f32.mxu1 %vm748_vm8, %v16387_v39 }
 0x294   :  { %v16607_v5 = vpop.f32.mrf.mxu1 }
 0x296   :  { %v16611_v11 = vpop.f32.mrf.mxu1  ;;  %13441 = vmatmul.mubr.msk.f32.gmra.mxu1 %vm748_vm8, %v16394_v57 }
 0x297   :  { %13443 = vmatprep.mubr.msk.f32.mxu1 %vm748_vm8, %v16401_v58  ;;  %v11338_v58 = vld [vmem:[%s20179_s3 + $0x1b0] sm:$0xff] }
 0x298   :  { %v16617_v32 = vpop.f32.mrf.mxu1  ;;  %13468 = vmatprep.subr.mxu0 %v11338_v58 }
 0x299   :  { %13469 = vmatpush3.msra.mxu0 %v11338_v58 }
 0x29a   :  { %v16621_v16 = vpop.f32.mrf.mxu1  ;;  %13444 = vmatmul.mubr.msk.f32.gmra.mxu1 %vm748_vm8, %v16408_v6  ;;  %13470 = vmatprep.subr.mxu0 %v11337_v2 }
 0x29b   :  { %13446 = vmatprep.mubr.msk.f32.mxu1 %vm748_vm8, %v16415_v35  ;;  %v16642_v35 = vpop.f32.mrf.mxu0  ;;  %13471 = vmatpush3.msra.mxu0 %v11337_v2  ;;  %v11336_v2 = vld [vmem:[%s20179_s3 + $0x1a0] sm:$0xff] }
 0x29c   :  { %v16630_v18 = vpop.f32.mrf.mxu1  ;;  %13472 = vmatprep.subr.mxu0 %v11336_v2 }
 0x29d   :  { %v16652_v0 = vpop.f32.mrf.mxu0  ;;  %13473 = vmatpush3.msra.mxu0 %v11336_v2 }
 0x29e   :  { %v16634_v52 = vpop.f32.mrf.mxu1  ;;  %13447 = vmatmul.mubr.msk.f32.gmra.mxu1 %vm748_vm8, %v16422_v55 }
 0x29f   :  { %13449 = vmatprep.mubr.msk.f32.mxu1 %vm748_vm8, %v16428_v15 }
 0x2a0   :  { %v16640_v23 = vpop.f32.mrf.mxu1 }
 0x2a2   :  { %v16644_v56 = vpop.f32.mrf.mxu1  ;;  %13450 = vmatmul.mubr.msk.f32.gmra.mxu1 %vm748_vm8, %v16434_v49 }
 0x2a3   :  { %13452 = vmatprep.mubr.msk.f32.mxu1 %vm748_vm8, %v16440_v13  ;;  %v16664_v13 = vpop.f32.mrf.mxu0 }
 0x2a4   :  { %v16650_v29 = vpop.f32.mrf.mxu1 }
 0x2a6   :  { %v16654_v7 = vpop.f32.mrf.mxu1  ;;  %13453 = vmatmul.mubr.msk.f32.gmra.mxu1 %vm748_vm8, %v16444_v25  ;;  %v16671_v25 = vpop.f32.mrf.mxu0 }
 0x2a7   :  { %13455 = vmatprep.mubr.msk.f32.mxu1 %vm748_vm8, %v3037_v47 }
 0x2a8   :  { %v16662_v43 = vpop.f32.mrf.mxu1  ;;  %v16677_v39 = vpop.f32.mrf.mxu0 }
 0x2aa   :  { %v16666_v51 = vpop.f32.mrf.mxu1  ;;  %13456 = vmatmul.mubr.msk.f32.gmra.mxu1 %vm748_vm8, %v3038_v12  ;;  %v16686_v55 = vpop.f32.mrf.mxu0 }
 0x2ab   :  { %20198 = vst [vmem:[#allocation9_spill] sm:$0xff] %v16666_v51 }
 0x2ac   :  { %v16669_v38 = vpop.f32.mrf.mxu1  ;;  %v16692_v28 = vpop.f32.mrf.mxu0 }
 0x2ad   :  { %20199 = vst [vmem:[#allocation10_spill] sm:$0xff] %v16669_v38 }
 0x2ae   :  { %v16673_v36 = vpop.f32.mrf.mxu1  ;;  %v16701_v47 = vpop.f32.mrf.mxu0 }
 0x2af   :  { %20200 = vst [vmem:[#allocation11_spill] sm:$0xff] %v16673_v36 }
 0x2b0   :  { %v16675_v1 = vpop.f32.mrf.mxu1  ;;  %v16707_v58 = vpop.f32.mrf.mxu0 }
 0x2b1   :  { %20201 = vst [vmem:[#allocation12_spill] sm:$0xff] %v16675_v1 }
 0x2b2   :  { %v16679_v57 = vpop.f32.mrf.mxu1  ;;  %v16713_v46 = vpop.f32.mrf.mxu0 }
 0x2b3   :  { %20202 = vst [vmem:[#allocation13_spill] sm:$0xff] %v16679_v57 }
 0x2b4   :  { %v16684_v6 = vpop.f32.mrf.mxu1 }
 0x2b5   :  { %20203 = vst [vmem:[#allocation14_spill] sm:$0xff] %v16684_v6  ;;  %v11331_v6 = vld [vmem:[%s20179_s3 + $0x178] sm:$0xff] }
 0x2b6   :  { %v16688_v15 = vpop.f32.mrf.mxu1  ;;  %13575 = vmatprep.subr.mxu1 %v11331_v6 }
 0x2b7   :  { %20204 = vst [vmem:[#allocation15_spill] sm:$0xff] %v16688_v15  ;;  %13576 = vmatpush3.msra.mxu1 %v11331_v6  ;;  %v11328_v6 = vld [vmem:[%s20179_s3 + $0x160] sm:$0xff] }
 0x2b8   :  { %v16690_v49 = vpop.f32.mrf.mxu1 }
 0x2b9   :  { %20205 = vst [vmem:[#allocation16_spill] sm:$0xff] %v16690_v49 }
 0x2ba   :  { %v16694_v50 = vpop.f32.mrf.mxu1 }
 0x2bb   :  { %20206 = vst [vmem:[#allocation17_spill] sm:$0xff] %v16694_v50 }
 0x2bc   :  { %v16699_v17 = vpop.f32.mrf.mxu1 }
 0x2bd   :  { %20207 = vst [vmem:[#allocation18_spill] sm:$0xff] %v16699_v17 }
 0x2be   :  { %v16703_v12 = vpop.f32.mrf.mxu1 }
 0x2bf   :  { %20208 = vst [vmem:[#allocation19_spill] sm:$0xff] %v16703_v12  ;;  %v16722_v12 = vpop.f32.mrf.mxu0 }
 0x2c0   :  { %v16705_v40 = vpop.f32.mrf.mxu1 }
 0x2c1   :  { %20209 = vst [vmem:[#allocation20_spill] sm:$0xff] %v16705_v40 }
 0x2c2   :  { %v16709_v20 = vpop.f32.mrf.mxu1 }
 0x2c3   :  { %20210 = vst [vmem:[#allocation21_spill] sm:$0xff] %v16709_v20  ;;  %v16728_v20 = vpop.f32.mrf.mxu0 }
 0x2c4   :  { %v16711_v60 = vpop.f32.mrf.mxu1 }
 0x2c5   :  { %20211 = vst [vmem:[#allocation22_spill] sm:$0xff] %v16711_v60  ;;  %v16737_v49 = vpop.f32.mrf.mxu0 }
 0x2c6   :  { %v16715_v22 = vpop.f32.mrf.mxu1 }
 0x2c7   :  { %20212 = vst [vmem:[#allocation23_spill] sm:$0xff] %v16715_v22  ;;  %v11335_v22 = vld [vmem:[%s20179_s3 + $0x198] sm:$0xff] }
 0x2c8   :  { %v16720_v31 = vpop.f32.mrf.mxu1  ;;  %13474 = vmatprep.subr.mxu0 %v11335_v22 }
 0x2c9   :  { %20213 = vst [vmem:[#allocation24_spill] sm:$0xff] %v16720_v31  ;;  %13475 = vmatpush3.msra.mxu0 %v11335_v22  ;;  %v11334_v22 = vld [vmem:[%s20179_s3 + $0x190] sm:$0xff] }
 0x2ca   :  { %v16724_v40 = vpop.f32.mrf.mxu1  ;;  %13476 = vmatprep.subr.mxu0 %v11334_v22 }
 0x2cb   :  { %20214 = vst [vmem:[#allocation25_spill] sm:$0xff] %v16724_v40  ;;  %v16743_v40 = vpop.f32.mrf.mxu0  ;;  %13477 = vmatpush3.msra.mxu0 %v11334_v22 }
 0x2cc   :  { %v16726_v17 = vpop.f32.mrf.mxu1 }
 0x2cd   :  { %20215 = vst [vmem:[#allocation26_spill] sm:$0xff] %v16726_v17 }
 0x2ce   :  { %v16730_v60 = vpop.f32.mrf.mxu1 }
 0x2cf   :  { %20216 = vst [vmem:[#allocation27_spill] sm:$0xff] %v16730_v60  ;;  %v16749_v60 = vpop.f32.mrf.mxu0 }
 0x2d0   :  { %v16732_v50 = vpop.f32.mrf.mxu1 }
 0x2d1   :  { %20217 = vst [vmem:[#allocation28_spill] sm:$0xff] %v16732_v50 }
 0x2d2   :  { %v16739_v31 = vpop.f32.mrf.mxu1 }
 0x2d3   :  { %20218 = vst [vmem:[#allocation29_spill] sm:$0xff] %v16739_v31  ;;  %v11329_v31 = vld [vmem:[%s20179_s3 + $0x168] sm:$0xff] }
 0x2d4   :  { %v16741_v2 = vpop.f32.mrf.mxu1 }
 0x2d5   :  { %20219 = vst [vmem:[#allocation30_spill] sm:$0xff] %v16741_v2 }
 0x2d6   :  { %v16745_v17 = vpop.f32.mrf.mxu1 }
 0x2d7   :  { %20220 = vst [vmem:[#allocation31_spill] sm:$0xff] %v16745_v17 }
 0x2d8   :  { %v16747_v15 = vpop.f32.mrf.mxu1 }
 0x2d9   :  { %20221 = vst [vmem:[#allocation32_spill] sm:$0xff] %v16747_v15  ;;  %v11330_v15 = vld [vmem:[%s20179_s3 + $0x170] sm:$0xff] }
 0x2da   :  { %v16751_v50 = vpop.f32.mrf.mxu1  ;;  %13577 = vmatprep.subr.mxu1 %v11330_v15 }
 0x2db   :  { %20222 = vst [vmem:[#allocation33_spill] sm:$0xff] %v16751_v50  ;;  %v16764_v50 = vpop.f32.mrf.mxu0  ;;  %13578 = vmatpush3.msra.mxu1 %v11330_v15  ;;  %v11327_v15 = vld [vmem:[%s20179_s3 + $0x158] sm:$0xff] }
 0x2dc   :  { %v16759_v2 = vpop.f32.mrf.mxu1  ;;  %20224 = vst [vmem:[#allocation35_spill] sm:$0xff] %v16764_v50  ;;  %13579 = vmatprep.subr.mxu1 %v11329_v31 }
 0x2dd   :  { %20223 = vst [vmem:[#allocation34_spill] sm:$0xff] %v16759_v2  ;;  %13580 = vmatpush3.msra.mxu1 %v11329_v31  ;;  %v16776_v22 = vpop.f32.mrf.mxu0  ;;  %v11326_v31 = vld [vmem:[%s20179_s3 + $0x150] sm:$0xff] }
 0x2de   :  { %v16766_v17 = vpop.f32.mrf.mxu1  ;;  %13581 = vmatprep.subr.mxu1 %v11328_v6  ;;  %20227 = vst [vmem:[#allocation38_spill] sm:$0xff] %v16776_v22 }
 0x2df   :  { %20225 = vst [vmem:[#allocation36_spill] sm:$0xff] %v16766_v17  ;;  %13582 = vmatpush3.msra.mxu1 %v11328_v6  ;;  %v11325_v6 = vld [vmem:[%s20179_s3 + $0x148] sm:$0xff] }
 0x2e0   :  { %v16771_v57 = vpop.f32.mrf.mxu1  ;;  %13583 = vmatprep.subr.mxu1 %v11327_v15 }
 0x2e1   :  { %20226 = vst [vmem:[#allocation37_spill] sm:$0xff] %v16771_v57  ;;  %13584 = vmatpush3.msra.mxu1 %v11327_v15  ;;  %v16788_v57 = vpop.f32.mrf.mxu0 }
 0x2e2   :  { %v16778_v2 = vpop.f32.mrf.mxu1  ;;  %13585 = vmatprep.subr.mxu1 %v11326_v31  ;;  %20230 = vst [vmem:[#allocation41_spill] sm:$0xff] %v16788_v57  ;;  %v11323_v57 = vld [vmem:[%s20179_s3 + $0x138] sm:$0xff] }
 0x2e3   :  { %20228 = vst [vmem:[#allocation39_spill] sm:$0xff] %v16778_v2  ;;  %13586 = vmatpush3.msra.mxu1 %v11326_v31  ;;  %v11333_v2 = vld [vmem:[%s20179_s3 + $0x188] sm:$0xff]  ;;  %v16803_v31 = vpop.f32.mrf.mxu0 }
 0x2e4   :  { %v16783_v17 = vpop.f32.mrf.mxu1  ;;  %13587 = vmatprep.subr.mxu1 %v11325_v6  ;;  %13478 = vmatprep.subr.mxu0 %v11333_v2  ;;  %20233 = vst [vmem:[#allocation44_spill] sm:$0xff] %v16803_v31  ;;  %v4116_v31 = vld [vmem:[#allocation2 + $0x8] sm:$0xff] }
 0x2e5   :  { %20229 = vst [vmem:[#allocation40_spill] sm:$0xff] %v16783_v17  ;;  %13588 = vmatpush3.msra.mxu1 %v11325_v6  ;;  %v11324_v17 = vld [vmem:[%s20179_s3 + $0x140] sm:$0xff]  ;;  %13479 = vmatpush3.msra.mxu0 %v11333_v2  ;;  %v11322_v6 = vld [vmem:[%s20179_s3 + $0x130] sm:$0xff]  ;;  %v16815_v2 = vpop.f32.mrf.mxu0 }
 0x2e6   :  { %v16790_v1 = vpop.f32.mrf.mxu1  ;;  %13589 = vmatprep.subr.mxu1 %v11324_v17  ;;  %20236 = vst [vmem:[#allocation47_spill] sm:$0xff] %v16815_v2 }
 0x2e7   :  { %20231 = vst [vmem:[#allocation42_spill] sm:$0xff] %v16790_v1  ;;  %13590 = vmatpush3.msra.mxu1 %v11324_v17  ;;  %v11321_v17 = vld [vmem:[%s20179_s3 + $0x128] sm:$0xff]  ;;  %v16832_v2 = vpop.f32.mrf.mxu0 }
 0x2e8   :  { %v16798_v15 = vpop.f32.mrf.mxu1  ;;  %13591 = vmatprep.subr.mxu1 %v11323_v57  ;;  %20239 = vst [vmem:[#allocation50_spill] sm:$0xff] %v16832_v2  ;;  %v2684_v2 = vadd.f32 %v16540_v9, %v16532_v4  ;;  %v2694_v9 = vadd.f32 %v16563_v44, %v16542_v14  ;;  %v2704_v44 = vadd.f32 %v16586_v27, %v16555_v41 }
 0x2e9   :  { %20232 = vst [vmem:[#allocation43_spill] sm:$0xff] %v16798_v15  ;;  %13592 = vmatpush3.msra.mxu1 %v11323_v57  ;;  %v11320_v57 = vld [vmem:[%s20179_s3 + $0x120] sm:$0xff]  ;;  %v16846_v51 = vpop.f32.mrf.mxu0  ;;  %v2714_v41 = vadd.f32 %v16609_v10, %v16565_v45  ;;  %v2724_v45 = vadd.f32 %v16632_v19, %v16578_v24  ;;  %v2734_v24 = vadd.f32 %v16652_v0, %v16588_v30 }
 0x2ea   :  { %v16805_v1 = vpop.f32.mrf.mxu1  ;;  %13593 = vmatprep.subr.mxu1 %v11322_v6  ;;  %v2744_v30 = vadd.f32 %v16671_v25, %v16598_v59  ;;  %v2754_v59 = vadd.f32 %v16686_v55, %v16611_v11  ;;  %v2764_v11 = vadd.f32 %v16701_v47, %v16621_v16  ;;  %v2774_v16 = vadd.f32 %v16713_v46, %v16634_v52 }
 0x2eb   :  { %20234 = vst [vmem:[#allocation45_spill] sm:$0xff] %v16805_v1  ;;  %13594 = vmatpush3.msra.mxu1 %v11322_v6  ;;  %v4115_v6 = vld [vmem:[#allocation2] sm:$0xff]  ;;  %v2784_v46 = vadd.f32 %v16728_v20, %v16644_v56  ;;  %v2794_v20 = vadd.f32 %v16743_v40, %v16654_v7  ;;  %v20241_v40 = vld [vmem:[#allocation35_spill] sm:$0xff] }
 0x2ec   :  { %v16810_v36 = vpop.f32.mrf.mxu1  ;;  %13595 = vmatprep.subr.mxu1 %v11321_v17  ;;  %13599 = vmatprep.mubr.msk.f32.mxu1 %vm748_vm8, %v4115_v6  ;;  %v20240_v7 = vld [vmem:[#allocation9_spill] sm:$0xff] }
 0x2ed   :  { %20235 = vst [vmem:[#allocation46_spill] sm:$0xff] %v16810_v36  ;;  %13596 = vmatpush3.msra.mxu1 %v11321_v17  ;;  %v2674_v36 = vadd.f32 %v16520_v61, %v16522_v62  ;;  %v2669_v61 = vadd.f32 %v16530_v3, %v16528_v63  ;;  %v16851_v63 = vld [vmem:[%s20179_s3 + $0x238] sm:$0xff]  ;;  %v2679_v3 = vadd.f32 %v16553_v48, %v16538_v8 }
 0x2ee   :  { %v16817_v15 = vpop.f32.mrf.mxu1  ;;  %13597 = vmatprep.subr.mxu1 %v11320_v57  ;;  %v2689_v48 = vadd.f32 %v16576_v54, %v16551_v37  ;;  %v2699_v37 = vadd.f32 %v16596_v53, %v16561_v42  ;;  %v2709_v42 = vadd.f32 %v16619_v33, %v16574_v21  ;;  %v2719_v21 = vadd.f32 %v16642_v35, %v16584_v26 }
 0x2ef   :  { %20237 = vst [vmem:[#allocation48_spill] sm:$0xff] %v16817_v15  ;;  %v11332_v15 = vld [vmem:[%s20179_s3 + $0x180] sm:$0xff]  ;;  %13598 = vmatpush3.msra.mxu1 %v11320_v57  ;;  %v2729_v26 = vadd.f32 %v16664_v13, %v16594_v34  ;;  %v2739_v34 = vadd.f32 %v16677_v39, %v16607_v5  ;;  %v2749_v5 = vadd.f32 %v16692_v28, %v16617_v32 }
 0x2f0   :  { %v16822_v1 = vpop.f32.mrf.mxu1  ;;  %13480 = vmatprep.subr.mxu0 %v11332_v15  ;;  %13600 = vmatmul.mubr.msk.f32.vlgmr.msra.gmra.mxu1 %vm748_vm8, %v4116_v31  ;;  %v2759_v32 = vadd.f32 %v16707_v58, %v16630_v18  ;;  %v2769_v18 = vadd.f32 %v16722_v12, %v16640_v23  ;;  %v2779_v23 = vadd.f32 %v16737_v49, %v16650_v29 }
 0x2f1   :  { %20238 = vst [vmem:[#allocation49_spill] sm:$0xff] %v16822_v1  ;;  %v16837_v1 = vld [vmem:[%s20180_s4] ss:$0 sm:$0xff]  ;;  %13481 = vmatpush3.msra.mxu0 %v11332_v15  ;;  %v2789_v29 = vadd.f32 %v16749_v60, %v16662_v43  ;;  %v20242_v60 = vld [vmem:[#allocation10_spill] sm:$0xff] }
 0x2f2   :  { %v13367_v17 = vpop.f32.mrf.mxu1  ;;  %13692 = vmatprep.subr.mxu0 %v16851_v63  ;;  %v20243_v43 = vld [vmem:[#allocation38_spill] sm:$0xff] }
 0x2f3   :  { %v3614_v62 = vadd.f32 %v13367_v17, %v2674_v36 }
 0x2f4   :  { %v3304_v22 = vpop.f32.mrf.mxu1 }
 0x2f5   :  { %v3680_v38 = vadd.f32 %v16837_v1, %v3614_v62  ;;  %v3613_v50 = vadd.f32 %v3304_v22, %v2669_v61  ;;  %v16861_v61 = vpop.f32.mrf.mxu0 }
 0x2f6   :  { %v13370_v57 = vpop.f32.mrf.mxu1 }
 0x2f7   :  { %v3742_v36 = vmax.f32 %v3680_v38, 0.0  ;;  %v3679_v15 = vadd.f32 %v16837_v1, %v3613_v50  ;;  %v3616_v31 = vadd.f32 %v13370_v57, %v2684_v2 }
 0x2f8   :  { %v3314_v4 = vpop.f32.mrf.mxu1 }
 0x2f9   :  { %v3682_v22 = vadd.f32 %v16837_v1, %v3616_v31  ;;  %v3615_v6 = vadd.f32 %v3314_v4, %v2679_v3  ;;  %3867 = vrot.lane.b32.xlu1 %v3742_v36, %s14897_s2  ;;  %v3741_v17 = vmax.f32 %v3679_v15, 0.0  ;;  %v16871_v36 = vpop.f32.mrf.mxu0 }
 0x2fa   :  { %v13373_v8 = vpop.f32.mrf.mxu1 }
 0x2fb   :  { %v3744_v38 = vmax.f32 %v3682_v22, 0.0  ;;  %v3681_v50 = vadd.f32 %v16837_v1, %v3615_v6  ;;  %v3618_v2 = vadd.f32 %v13373_v8, %v2694_v9  ;;  %3865 = vrot.lane.b32.xlu0 %v3741_v17, %s14897_s2  ;;  %v16881_v17 = vpop.f32.mrf.mxu0 }
 0x2fc   :  { %v3324_v14 = vpop.f32.mrf.mxu1 }
 0x2fd   :  { %v3684_v62 = vadd.f32 %v16837_v1, %v3618_v2  ;;  %v3617_v57 = vadd.f32 %v3324_v14, %v2689_v48  ;;  %3871 = vrot.lane.b32.xlu1 %v3744_v38, %s14897_s2  ;;  %v3743_v3 = vmax.f32 %v3681_v50, 0.0 }
 0x2fe   :  { %v13376_v15 = vpop.f32.mrf.mxu1 }
 0x2ff   :  { %v3746_v54 = vmax.f32 %v3684_v62, 0.0  ;;  %v3683_v31 = vadd.f32 %v16837_v1, %v3617_v57  ;;  %v3620_v4 = vadd.f32 %v13376_v15, %v2704_v44  ;;  %3869 = vrot.lane.b32.xlu0 %v3743_v3, %s14897_s2  ;;  %v16891_v44 = vpop.f32.mrf.mxu0 }
 0x300   :  { %v3334_v9 = vpop.f32.mrf.mxu1 }
 0x301   :  { %v3686_v27 = vadd.f32 %v16837_v1, %v3620_v4  ;;  %v3619_v22 = vadd.f32 %v3334_v9, %v2699_v37  ;;  %3875 = vrot.lane.b32.xlu1 %v3746_v54, %s14897_s2  ;;  %v3745_v6 = vmax.f32 %v3683_v31, 0.0  ;;  %v16901_v31 = vpop.f32.mrf.mxu0 }
 0x302   :  { %v13379_v8 = vpop.f32.mrf.mxu1 }
 0x303   :  { %v3748_v53 = vmax.f32 %v3686_v27, 0.0  ;;  %v3685_v48 = vadd.f32 %v16837_v1, %v3619_v22  ;;  %v3622_v38 = vadd.f32 %v13379_v8, %v2714_v41  ;;  %3873 = vrot.lane.b32.xlu0 %v3745_v6, %s14897_s2  ;;  %v16911_v8 = vpop.f32.mrf.mxu0 }
 0x304   :  { %v3344_v50 = vpop.f32.mrf.mxu1 }
 0x305   :  { %v3688_v10 = vadd.f32 %v16837_v1, %v3622_v38  ;;  %v3621_v2 = vadd.f32 %v3344_v50, %v2709_v42  ;;  %3879 = vrot.lane.b32.xlu1 %v3748_v53, %s14897_s2  ;;  %v3747_v14 = vmax.f32 %v3685_v48, 0.0 }
 0x306   :  { %v13382_v62 = vpop.f32.mrf.mxu1 }
 0x307   :  { %v3750_v33 = vmax.f32 %v3688_v10, 0.0  ;;  %v3687_v57 = vadd.f32 %v16837_v1, %v3621_v2  ;;  %v3624_v3 = vadd.f32 %v13382_v62, %v2724_v45  ;;  %3877 = vrot.lane.b32.xlu0 %v3747_v14, %s14897_s2  ;;  %v16921_v10 = vpop.f32.mrf.mxu0 }
 0x308   :  { %v3354_v15 = vpop.f32.mrf.mxu1 }
 0x309   :  { %v3690_v19 = vadd.f32 %v16837_v1, %v3624_v3  ;;  %v3623_v37 = vadd.f32 %v3354_v15, %v2719_v21  ;;  %3883 = vrot.lane.b32.xlu1 %v3750_v33, %s14897_s2  ;;  %v3749_v54 = vmax.f32 %v3687_v57, 0.0  ;;  %v16931_v3 = vpop.f32.mrf.mxu0 }
 0x30a   :  { %v13385_v4 = vpop.f32.mrf.mxu1 }
 0x30b   :  { %v3752_v35 = vmax.f32 %v3690_v19, 0.0  ;;  %v3689_v9 = vadd.f32 %v16837_v1, %v3623_v37  ;;  %v3626_v41 = vadd.f32 %v13385_v4, %v2734_v24  ;;  %3881 = vrot.lane.b32.xlu0 %v3749_v54, %s14897_s2 }
 0x30c   :  { %v3364_v27 = vpop.f32.mrf.mxu1 }
 0x30d   :  { %v3692_v0 = vadd.f32 %v16837_v1, %v3626_v41  ;;  %v3625_v22 = vadd.f32 %v3364_v27, %v2729_v26  ;;  %3887 = vrot.lane.b32.xlu1 %v3752_v35, %s14897_s2  ;;  %v3751_v6 = vmax.f32 %v3689_v9, 0.0  ;;  %v16941_v26 = vpop.f32.mrf.mxu0 }
 0x30e   :  { %v13388_v42 = vpop.f32.mrf.mxu1 }
 0x30f   :  { %v3754_v13 = vmax.f32 %v3692_v0, 0.0  ;;  %v3691_v53 = vadd.f32 %v16837_v1, %v3625_v22  ;;  %v3628_v48 = vadd.f32 %v13388_v42, %v2744_v30  ;;  %3885 = vrot.lane.b32.xlu0 %v3751_v6, %s14897_s2  ;;  %v16951_v22 = vpop.f32.mrf.mxu0 }
 0x310   :  { %v3374_v38 = vpop.f32.mrf.mxu1 }
 0x311   :  { %v3694_v25 = vadd.f32 %v16837_v1, %v3628_v48  ;;  %v3627_v50 = vadd.f32 %v3374_v38, %v2739_v34  ;;  %3891 = vrot.lane.b32.xlu1 %v3754_v13, %s14897_s2  ;;  %v3753_v45 = vmax.f32 %v3691_v53, 0.0  ;;  %v16961_v38 = vpop.f32.mrf.mxu0 }
 0x312   :  { %v13391_v2 = vpop.f32.mrf.mxu1 }
 0x313   :  { %v3756_v39 = vmax.f32 %v3694_v25, 0.0  ;;  %v3693_v14 = vadd.f32 %v16837_v1, %v3627_v50  ;;  %v3630_v62 = vadd.f32 %v13391_v2, %v2754_v59  ;;  %3889 = vrot.lane.b32.xlu0 %v3753_v45, %s14897_s2  ;;  %v2804_v2 = vadd.f32 %v20241_v40, %v20240_v7 }
 0x314   :  { %v3384_v21 = vpop.f32.mrf.mxu1 }
 0x315   :  { %v3696_v55 = vadd.f32 %v16837_v1, %v3630_v62  ;;  %v3629_v33 = vadd.f32 %v3384_v21, %v2749_v5  ;;  %3895 = vrot.lane.b32.xlu1 %v3756_v39, %s14897_s2  ;;  %v3755_v57 = vmax.f32 %v3693_v14, 0.0  ;;  %v16971_v62 = vpop.f32.mrf.mxu0 }
 0x316   :  { %v13394_v15 = vpop.f32.mrf.mxu1 }
 0x317   :  { %v3758_v28 = vmax.f32 %v3696_v55, 0.0  ;;  %v3695_v24 = vadd.f32 %v16837_v1, %v3629_v33  ;;  %v3632_v19 = vadd.f32 %v13394_v15, %v2764_v11  ;;  %3893 = vrot.lane.b32.xlu0 %v3755_v57, %s14897_s2  ;;  %v2799_v11 = vadd.f32 %v20243_v43, %v20242_v60 }
 0x318   :  { %v3394_v37 = vpop.f32.mrf.mxu1 }
 0x319   :  { %v3698_v47 = vadd.f32 %v16837_v1, %v3632_v19  ;;  %v3631_v54 = vadd.f32 %v3394_v37, %v2759_v32  ;;  %3899 = vrot.lane.b32.xlu1 %v3758_v28, %s14897_s2  ;;  %v3757_v4 = vmax.f32 %v3695_v24, 0.0  ;;  %v20244_v32 = vld [vmem:[#allocation11_spill] sm:$0xff]  ;;  %v20245_v28 = vld [vmem:[#allocation41_spill] sm:$0xff] }
 0x31a   :  { %v13397_v35 = vpop.f32.mrf.mxu1  ;;  %v2814_v24 = vadd.f32 %v20245_v28, %v20244_v32 }
 0x31b   :  { %v3760_v58 = vmax.f32 %v3698_v47, 0.0  ;;  %v3697_v9 = vadd.f32 %v16837_v1, %v3631_v54  ;;  %v3634_v41 = vadd.f32 %v13397_v35, %v2774_v16  ;;  %3897 = vrot.lane.b32.xlu0 %v3757_v4, %s14897_s2  ;;  %v16981_v47 = vpop.f32.mrf.mxu0  ;;  %v20246_v4 = vld [vmem:[#allocation12_spill] sm:$0xff] }
 0x31c   :  { %v3404_v27 = vpop.f32.mrf.mxu1  ;;  %v20247_v35 = vld [vmem:[#allocation44_spill] sm:$0xff] }
 0x31d   :  { %v3700_v52 = vadd.f32 %v16837_v1, %v3634_v41  ;;  %v3633_v30 = vadd.f32 %v3404_v27, %v2769_v18  ;;  %3903 = vrot.lane.b32.xlu1 %v3760_v58, %s14897_s2  ;;  %v3759_v0 = vmax.f32 %v3697_v9, 0.0  ;;  %v2809_v18 = vadd.f32 %v20247_v35, %v20246_v4 }
 0x31e   :  { %v13400_v6 = vpop.f32.mrf.mxu1 }
 0x31f   :  { %v3762_v12 = vmax.f32 %v3700_v52, 0.0  ;;  %v3699_v42 = vadd.f32 %v16837_v1, %v3633_v30  ;;  %v3636_v34 = vadd.f32 %v13400_v6, %v2784_v46  ;;  %3901 = vrot.lane.b32.xlu0 %v3759_v0, %s14897_s2  ;;  %v20248_v46 = vld [vmem:[#allocation13_spill] sm:$0xff]  ;;  %v20249_v52 = vld [vmem:[#allocation47_spill] sm:$0xff] }
 0x320   :  { %v3414_v13 = vpop.f32.mrf.mxu1  ;;  %v2824_v30 = vadd.f32 %v20249_v52, %v20248_v46 }
 0x321   :  { %v3702_v56 = vadd.f32 %v16837_v1, %v3636_v34  ;;  %v3635_v53 = vadd.f32 %v3414_v13, %v2779_v23  ;;  %3907 = vrot.lane.b32.xlu1 %v3762_v12, %s14897_s2  ;;  %v3761_v48 = vmax.f32 %v3699_v42, 0.0  ;;  %v16991_v12 = vpop.f32.mrf.mxu0  ;;  %v20250_v34 = vld [vmem:[#allocation14_spill] sm:$0xff] }
 0x322   :  { %v13403_v59 = vpop.f32.mrf.mxu1  ;;  %v20251_v13 = vld [vmem:[#allocation50_spill] sm:$0xff] }
 0x323   :  { %v3764_v49 = vmax.f32 %v3702_v56, 0.0  ;;  %v3701_v25 = vadd.f32 %v16837_v1, %v3635_v53  ;;  %v3638_v50 = vadd.f32 %v13403_v59, %v2794_v20  ;;  %3905 = vrot.lane.b32.xlu0 %v3761_v48, %s14897_s2  ;;  %v2819_v20 = vadd.f32 %v20251_v13, %v20250_v34  ;;  %v17001_v7 = vpop.f32.mrf.mxu0 }
 0x324   :  { %v3424_v45 = vpop.f32.mrf.mxu1 }
 0x325   :  { %v3704_v5 = vadd.f32 %v16837_v1, %v3638_v50  ;;  %v3637_v39 = vadd.f32 %v3424_v45, %v2789_v29  ;;  %3911 = vrot.lane.b32.xlu1 %v3764_v49, %s14897_s2  ;;  %v3763_v14 = vmax.f32 %v3701_v25, 0.0  ;;  %v20252_v29 = vld [vmem:[#allocation15_spill] sm:$0xff] }
 0x326   :  { %v13406_v21 = vpop.f32.mrf.mxu1  ;;  %v2834_v49 = vadd.f32 %v16846_v51, %v20252_v29  ;;  %v20254_v51 = vld [vmem:[#allocation17_spill] sm:$0xff] }
 0x327   :  { %v3766_v55 = vmax.f32 %v3704_v5, 0.0  ;;  %v3703_v33 = vadd.f32 %v16837_v1, %v3637_v39  ;;  %v3640_v57 = vadd.f32 %v13406_v21, %v2804_v2  ;;  %3909 = vrot.lane.b32.xlu0 %v3763_v14, %s14897_s2  ;;  %v20253_v2 = vld [vmem:[#allocation16_spill] sm:$0xff]  ;;  %v2844_v43 = vadd.f32 %v16871_v36, %v20254_v51  ;;  %v20256_v36 = vld [vmem:[#allocation19_spill] sm:$0xff] }
 0x328   :  { %v3434_v15 = vpop.f32.mrf.mxu1  ;;  %v2829_v5 = vadd.f32 %v16861_v61, %v20253_v2  ;;  %v20255_v61 = vld [vmem:[#allocation18_spill] sm:$0xff] }
 0x329   :  { %v3706_v19 = vadd.f32 %v16837_v1, %v3640_v57  ;;  %v3639_v37 = vadd.f32 %v3434_v15, %v2799_v11  ;;  %3915 = vrot.lane.b32.xlu1 %v3766_v55, %s14897_s2  ;;  %v3765_v16 = vmax.f32 %v3703_v33, 0.0  ;;  %v17011_v57 = vpop.f32.mrf.mxu0  ;;  %v2839_v32 = vadd.f32 %v16881_v17, %v20255_v61  ;;  %v20257_v17 = vld [vmem:[#allocation20_spill] sm:$0xff] }
 0x32a   :  { %v13409_v54 = vpop.f32.mrf.mxu1 }
 0x32b   :  { %v3768_v58 = vmax.f32 %v3706_v19, 0.0  ;;  %v3705_v9 = vadd.f32 %v16837_v1, %v3639_v37  ;;  %v3642_v41 = vadd.f32 %v13409_v54, %v2814_v24  ;;  %3913 = vrot.lane.b32.xlu0 %v3765_v16, %s14897_s2  ;;  %v2854_v16 = vadd.f32 %v16891_v44, %v20256_v36  ;;  %v20258_v44 = vld [vmem:[#allocation21_spill] sm:$0xff] }
 0x32c   :  { %v3444_v27 = vpop.f32.mrf.mxu1 }
 0x32d   :  { %v3708_v0 = vadd.f32 %v16837_v1, %v3642_v41  ;;  %v3641_v6 = vadd.f32 %v3444_v27, %v2809_v18  ;;  %3919 = vrot.lane.b32.xlu1 %v3768_v58, %s14897_s2  ;;  %v3767_v23 = vmax.f32 %v3705_v9, 0.0  ;;  %v17021_v18 = vpop.f32.mrf.mxu0  ;;  %v2849_v9 = vadd.f32 %v16901_v31, %v20257_v17  ;;  %v20259_v31 = vld [vmem:[#allocation22_spill] sm:$0xff] }
 0x32e   :  { %v13412_v42 = vpop.f32.mrf.mxu1  ;;  %v2859_v13 = vadd.f32 %v16921_v10, %v20259_v31  ;;  %v20261_v10 = vld [vmem:[#allocation24_spill] sm:$0xff] }
 0x32f   :  { %v3770_v56 = vmax.f32 %v3708_v0, 0.0  ;;  %v3707_v53 = vadd.f32 %v16837_v1, %v3641_v6  ;;  %v3644_v48 = vadd.f32 %v13412_v42, %v2824_v30  ;;  %3917 = vrot.lane.b32.xlu0 %v3767_v23, %s14897_s2  ;;  %v2864_v30 = vadd.f32 %v16911_v8, %v20258_v44  ;;  %v17031_v42 = vpop.f32.mrf.mxu0  ;;  %v20260_v8 = vld [vmem:[#allocation23_spill] sm:$0xff] }
 0x330   :  { %v3454_v59 = vpop.f32.mrf.mxu1 }
 0x331   :  { %v3710_v25 = vadd.f32 %v16837_v1, %v3644_v48  ;;  %v3643_v50 = vadd.f32 %v3454_v59, %v2819_v20  ;;  %3923 = vrot.lane.b32.xlu1 %v3770_v56, %s14897_s2  ;;  %v3769_v45 = vmax.f32 %v3707_v53, 0.0  ;;  %v2874_v59 = vadd.f32 %v16931_v3, %v20260_v8  ;;  %v20262_v3 = vld [vmem:[#allocation25_spill] sm:$0xff] }
 0x332   :  { %v13415_v40 = vpop.f32.mrf.mxu1 }
 0x333   :  { %v3772_v39 = vmax.f32 %v3710_v25, 0.0  ;;  %v3709_v14 = vadd.f32 %v16837_v1, %v3643_v50  ;;  %v3646_v21 = vadd.f32 %v13415_v40, %v2834_v49  ;;  %3921 = vrot.lane.b32.xlu0 %v3769_v45, %s14897_s2  ;;  %v17041_v50 = vpop.f32.mrf.mxu0  ;;  %v2869_v40 = vadd.f32 %v16941_v26, %v20261_v10  ;;  %v20270_v10 = vld [vmem:[#allocation33_spill] sm:$0xff] }
 0x334   :  { %v3464_v60 = vpop.f32.mrf.mxu1 }
 0x335   :  { %v3712_v11 = vadd.f32 %v16837_v1, %v3646_v21  ;;  %v3645_v55 = vadd.f32 %v3464_v60, %v2829_v5  ;;  %3927 = vrot.lane.b32.xlu1 %v3772_v39, %s14897_s2  ;;  %v3771_v33 = vmax.f32 %v3709_v14, 0.0  ;;  %v2884_v21 = vadd.f32 %v16951_v22, %v20262_v3  ;;  %v20271_v3 = vld [vmem:[#allocation34_spill] sm:$0xff] }
 0x336   :  { %v13418_v15 = vpop.f32.mrf.mxu1 }
 0x337   :  { %v3774_v28 = vmax.f32 %v3712_v11, 0.0  ;;  %v3711_v24 = vadd.f32 %v16837_v1, %v3645_v55  ;;  %v3648_v19 = vadd.f32 %v13418_v15, %v2844_v43  ;;  %3925 = vrot.lane.b32.xlu0 %v3771_v33, %s14897_s2  ;;  %v13328_v11 = vpop.f32.mrf.mxu0  ;;  %v20263_v33 = vld [vmem:[#allocation26_spill] sm:$0xff] }
 0x338   :  { %v3474_v37 = vpop.f32.mrf.mxu1  ;;  %v2879_v26 = vadd.f32 %v16961_v38, %v20263_v33 }
 0x339   :  { %v3714_v54 = vadd.f32 %v16837_v1, %v3648_v19  ;;  %v3647_v4 = vadd.f32 %v3474_v37, %v2839_v32  ;;  %3931 = vrot.lane.b32.xlu1 %v3774_v28, %s14897_s2  ;;  %v3773_v35 = vmax.f32 %v3711_v24, 0.0  ;;  %v20264_v24 = vld [vmem:[#allocation27_spill] sm:$0xff] }
 0x33a   :  { %v13421_v58 = vpop.f32.mrf.mxu1  ;;  %v2894_v22 = vadd.f32 %v16971_v62, %v20264_v24 }
 0x33b   :  { %v3776_v41 = vmax.f32 %v3714_v54, 0.0  ;;  %v3713_v27 = vadd.f32 %v16837_v1, %v3647_v4  ;;  %v3650_v46 = vadd.f32 %v13421_v58, %v2854_v16  ;;  %3929 = vrot.lane.b32.xlu0 %v3773_v35, %s14897_s2  ;;  %v2928_v16 = vpop.f32.mrf.mxu0  ;;  %v20265_v4 = vld [vmem:[#allocation28_spill] sm:$0xff] }
 0x33c   :  { %v3484_v52 = vpop.f32.mrf.mxu1  ;;  %v2889_v38 = vadd.f32 %v16981_v47, %v20265_v4 }
 0x33d   :  { %v3716_v0 = vadd.f32 %v16837_v1, %v3650_v46  ;;  %v3649_v6 = vadd.f32 %v3484_v52, %v2849_v9  ;;  %3935 = vrot.lane.b32.xlu1 %v3776_v41, %s14897_s2  ;;  %v3775_v23 = vmax.f32 %v3713_v27, 0.0  ;;  %v20266_v41 = vld [vmem:[#allocation29_spill] sm:$0xff]  ;;  %v13331_v44 = vpop.f32.mrf.mxu0 }
 0x33e   :  { %v13424_v34 = vpop.f32.mrf.mxu1  ;;  %v2904_v62 = vadd.f32 %v16991_v12, %v20266_v41 }
 0x33f   :  { %v3778_v20 = vmax.f32 %v3716_v0, 0.0  ;;  %v3715_v56 = vadd.f32 %v16837_v1, %v3649_v6  ;;  %v3652_v53 = vadd.f32 %v13424_v34, %v2864_v30  ;;  %3933 = vrot.lane.b32.xlu0 %v3775_v23, %s14897_s2  ;;  %v20267_v0 = vld [vmem:[#allocation30_spill] sm:$0xff] }
 0x340   :  { %v3494_v48 = vpop.f32.mrf.mxu1  ;;  %v2899_v47 = vadd.f32 %v17001_v7, %v20267_v0 }
 0x341   :  { %v3777_v29 = vmax.f32 %v3715_v56, 0.0  ;;  %v3718_v49 = vadd.f32 %v16837_v1, %v3652_v53  ;;  %v3651_v25 = vadd.f32 %v3494_v48, %v2859_v13  ;;  %3939 = vrot.lane.b32.xlu1 %v3778_v20, %s14897_s2  ;;  %v20268_v13 = vld [vmem:[#allocation31_spill] sm:$0xff]  ;;  %v2938_v48 = vpop.f32.mrf.mxu0 }
 0x342   :  { %v13427_v45 = vpop.f32.mrf.mxu1  ;;  %v2914_v12 = vadd.f32 %v17011_v57, %v20268_v13  ;;  %v2924_v57 = vadd.f32 %v17031_v42, %v20270_v10 }
 0x343   :  { %v3780_v2 = vmax.f32 %v3718_v49, 0.0  ;;  %v3717_v5 = vadd.f32 %v16837_v1, %v3651_v25  ;;  %v3654_v39 = vadd.f32 %v13427_v45, %v2874_v59  ;;  %3937 = vrot.lane.b32.xlu0 %v3777_v29, %s14897_s2  ;;  %v20269_v59 = vld [vmem:[#allocation32_spill] sm:$0xff] }
 0x344   :  { %v3504_v14 = vpop.f32.mrf.mxu1  ;;  %v2909_v7 = vadd.f32 %v17021_v18, %v20269_v59  ;;  %v2919_v18 = vadd.f32 %v17041_v50, %v20271_v3 }
 0x345   :  { %v3779_v60 = vmax.f32 %v3717_v5, 0.0  ;;  %v3720_v51 = vadd.f32 %v16837_v1, %v3654_v39  ;;  %v3653_v43 = vadd.f32 %v3504_v14, %v2869_v40  ;;  %3943 = vrot.lane.b32.xlu1 %v3780_v2, %s14897_s2  ;;  %v13334_v39 = vpop.f32.mrf.mxu0 }
 0x346   :  { %v13430_v55 = vpop.f32.mrf.mxu1 }
 0x347   :  { %v3782_v15 = vmax.f32 %v3720_v51, 0.0  ;;  %v3719_v61 = vadd.f32 %v16837_v1, %v3653_v43  ;;  %v3656_v32 = vadd.f32 %v13430_v55, %v2884_v21  ;;  %3941 = vrot.lane.b32.xlu0 %v3779_v60, %s14897_s2  ;;  %v20272_v55 = vld [vmem:[#allocation36_spill] sm:$0xff] }
 0x348   :  { %v3514_v28 = vpop.f32.mrf.mxu1  ;;  %v2934_v42 = vadd.f32 %v13328_v11, %v20272_v55 }
 0x349   :  { %v3781_v19 = vmax.f32 %v3719_v61, 0.0  ;;  %v3722_v37 = vadd.f32 %v16837_v1, %v3656_v32  ;;  %v3655_v36 = vadd.f32 %v3514_v28, %v2879_v26  ;;  %3947 = vrot.lane.b32.xlu1 %v3782_v15, %s14897_s2  ;;  %v2948_v61 = vpop.f32.mrf.mxu0  ;;  %v20273_v28 = vld [vmem:[#allocation37_spill] sm:$0xff] }
 0x34a   :  { %v13433_v54 = vpop.f32.mrf.mxu1  ;;  %v2929_v24 = vadd.f32 %v2928_v16, %v20273_v28 }
 0x34b   :  { %v3784_v35 = vmax.f32 %v3722_v37, 0.0  ;;  %v3721_v58 = vadd.f32 %v16837_v1, %v3655_v36  ;;  %v3658_v17 = vadd.f32 %v13433_v54, %v2894_v22  ;;  %3945 = vrot.lane.b32.xlu0 %v3781_v19, %s14897_s2  ;;  %v20274_v36 = vld [vmem:[#allocation39_spill] sm:$0xff] }
 0x34c   :  { %v3524_v9 = vpop.f32.mrf.mxu1  ;;  %v2944_v54 = vadd.f32 %v13331_v44, %v20274_v36 }
 0x34d   :  { %v3783_v27 = vmax.f32 %v3721_v58, 0.0  ;;  %v3724_v46 = vadd.f32 %v16837_v1, %v3658_v17  ;;  %v3657_v52 = vadd.f32 %v3524_v9, %v2889_v38  ;;  %3951 = vrot.lane.b32.xlu1 %v3784_v35, %s14897_s2  ;;  %v13337_v35 = vpop.f32.mrf.mxu0  ;;  %v20275_v17 = vld [vmem:[#allocation40_spill] sm:$0xff] }
 0x34e   :  { %v13436_v30 = vpop.f32.mrf.mxu1  ;;  %v2939_v9 = vadd.f32 %v2938_v48, %v20275_v17 }
 0x34f   :  { %v3786_v6 = vmax.f32 %v3724_v46, 0.0  ;;  %v3723_v23 = vadd.f32 %v16837_v1, %v3657_v52  ;;  %v3660_v34 = vadd.f32 %v13436_v30, %v2904_v62  ;;  %3949 = vrot.lane.b32.xlu0 %v3783_v27, %s14897_s2  ;;  %v20276_v46 = vld [vmem:[#allocation42_spill] sm:$0xff] }
 0x350   :  { %v3534_v31 = vpop.f32.mrf.mxu1  ;;  %v2954_v52 = vadd.f32 %v13334_v39, %v20276_v46 }
 0x351   :  { %v3785_v20 = vmax.f32 %v3723_v23, 0.0  ;;  %v3726_v56 = vadd.f32 %v16837_v1, %v3660_v34  ;;  %v3659_v53 = vadd.f32 %v3534_v31, %v2899_v47  ;;  %3955 = vrot.lane.b32.xlu1 %v3786_v6, %s14897_s2  ;;  %v2958_v47 = vpop.f32.mrf.mxu0  ;;  %v20277_v23 = vld [vmem:[#allocation43_spill] sm:$0xff] }
 0x352   :  { %v13439_v8 = vpop.f32.mrf.mxu1  ;;  %v2949_v34 = vadd.f32 %v2948_v61, %v20277_v23 }
 0x353   :  { %v3788_v29 = vmax.f32 %v3726_v56, 0.0  ;;  %v3725_v49 = vadd.f32 %v16837_v1, %v3659_v53  ;;  %v3662_v25 = vadd.f32 %v13439_v8, %v2914_v12  ;;  %3953 = vrot.lane.b32.xlu0 %v3785_v20, %s14897_s2  ;;  %v20278_v56 = vld [vmem:[#allocation45_spill] sm:$0xff] }
 0x354   :  { %v3544_v45 = vpop.f32.mrf.mxu1  ;;  %v2964_v53 = vadd.f32 %v13337_v35, %v20278_v56 }
 0x355   :  { %v3787_v40 = vmax.f32 %v3725_v49, 0.0  ;;  %v3728_v2 = vadd.f32 %v16837_v1, %v3662_v25  ;;  %v3661_v5 = vadd.f32 %v3544_v45, %v2909_v7  ;;  %3959 = vrot.lane.b32.xlu1 %v3788_v29, %s14897_s2  ;;  %v13340_v7 = vpop.f32.mrf.mxu0  ;;  %v20279_v49 = vld [vmem:[#allocation46_spill] sm:$0xff] }
 0x356   :  { %v13442_v14 = vpop.f32.mrf.mxu1  ;;  %v2959_v25 = vadd.f32 %v2958_v47, %v20279_v49 }
 0x357   :  { %v3790_v21 = vmax.f32 %v3728_v2, 0.0  ;;  %v3727_v60 = vadd.f32 %v16837_v1, %v3661_v5  ;;  %v3664_v51 = vadd.f32 %v13442_v14, %v2924_v57  ;;  %3957 = vrot.lane.b32.xlu0 %v3787_v40, %s14897_s2  ;;  %v20280_v2 = vld [vmem:[#allocation48_spill] sm:$0xff] }
 0x358   :  { %v3554_v43 = vpop.f32.mrf.mxu1  ;;  %v2974_v5 = vadd.f32 %v13340_v7, %v20280_v2 }
 0x359   :  { %v3789_v33 = vmax.f32 %v3727_v60, 0.0  ;;  %v3730_v26 = vadd.f32 %v16837_v1, %v3664_v51  ;;  %v3663_v15 = vadd.f32 %v3554_v43, %v2919_v18  ;;  %3963 = vrot.lane.b32.xlu1 %v3790_v21, %s14897_s2  ;;  %v2968_v18 = vpop.f32.mrf.mxu0  ;;  %v20281_v60 = vld [vmem:[#allocation49_spill] sm:$0xff] }
 0x35a   :  { %v13445_v32 = vpop.f32.mrf.mxu1  ;;  %v2969_v51 = vadd.f32 %v2968_v18, %v20281_v60 }
 0x35b   :  { %v3792_v50 = vmax.f32 %v3730_v26, 0.0  ;;  %v3729_v22 = vadd.f32 %v16837_v1, %v3663_v15  ;;  %v3666_v19 = vadd.f32 %v13445_v32, %v2934_v42  ;;  %3961 = vrot.lane.b32.xlu0 %v3789_v33, %s14897_s2 }
 0x35c   :  { %v3564_v37 = vpop.f32.mrf.mxu1 }
 0x35d   :  { %v3791_v11 = vmax.f32 %v3729_v22, 0.0  ;;  %v3732_v4 = vadd.f32 %v16837_v1, %v3666_v19  ;;  %v3665_v38 = vadd.f32 %v3564_v37, %v2929_v24  ;;  %3967 = vrot.lane.b32.xlu1 %v3792_v50, %s14897_s2 }
 0x35e   :  { %v13448_v58 = vpop.f32.mrf.mxu1 }
 0x35f   :  { %v3794_v16 = vmax.f32 %v3732_v4, 0.0  ;;  %v3731_v41 = vadd.f32 %v16837_v1, %v3665_v38  ;;  %v3668_v62 = vadd.f32 %v13448_v58, %v2944_v54  ;;  %3965 = vrot.lane.b32.xlu0 %v3791_v11, %s14897_s2  ;;  %v11478_v4 = vld [vmem:[%s20179_s3 + $0x230] sm:$0xff] }
 0x360   :  { %v3574_v27 = vpop.f32.mrf.mxu1 }
 0x361   :  { %v3793_v44 = vmax.f32 %v3731_v41, 0.0  ;;  %v3734_v30 = vadd.f32 %v16837_v1, %v3668_v62  ;;  %v3667_v0 = vadd.f32 %v3574_v27, %v2939_v9  ;;  %3971 = vrot.lane.b32.xlu1 %v3794_v16, %s14897_s2  ;;  %v11476_v27 = vld [vmem:[%s20179_s3 + $0x220] sm:$0xff] }
 0x362   :  { %v13451_v6 = vpop.f32.mrf.mxu1 }
 0x363   :  { %v3796_v31 = vmax.f32 %v3734_v30, 0.0  ;;  %v3733_v13 = vadd.f32 %v16837_v1, %v3667_v0  ;;  %v3670_v12 = vadd.f32 %v13451_v6, %v2954_v52  ;;  %3969 = vrot.lane.b32.xlu0 %v3793_v44, %s14897_s2  ;;  %v11475_v0 = vld [vmem:[%s20179_s3 + $0x218] sm:$0xff] }
 0x364   :  { %v3584_v20 = vpop.f32.mrf.mxu1 }
 0x365   :  { %v3795_v48 = vmax.f32 %v3733_v13, 0.0  ;;  %v3736_v8 = vadd.f32 %v16837_v1, %v3670_v12  ;;  %v3669_v59 = vadd.f32 %v3584_v20, %v2949_v34  ;;  %3975 = vrot.lane.b32.xlu1 %v3796_v31, %s14897_s2  ;;  %v11474_v31 = vld [vmem:[%s20179_s3 + $0x210] sm:$0xff] }
 0x366   :  { %v13454_v29 = vpop.f32.mrf.mxu1 }
 0x367   :  { %v3798_v45 = vmax.f32 %v3736_v8, 0.0  ;;  %v3735_v10 = vadd.f32 %v16837_v1, %v3669_v59  ;;  %v3672_v57 = vadd.f32 %v13454_v29, %v2964_v53  ;;  %3973 = vrot.lane.b32.xlu0 %v3795_v48, %s14897_s2  ;;  %v11473_v53 = vld [vmem:[%s20179_s3 + $0x208] sm:$0xff]  ;;  %v11472_v29 = vld [vmem:[%s20179_s3 + $0x200] sm:$0xff] }
 0x368   :  { %v3594_v40 = vpop.f32.mrf.mxu1 }
 0x369   :  { %v3797_v39 = vmax.f32 %v3735_v10, 0.0  ;;  %v3738_v14 = vadd.f32 %v16837_v1, %v3672_v57  ;;  %v3671_v3 = vadd.f32 %v3594_v40, %v2959_v25  ;;  %3979 = vrot.lane.b32.xlu1 %v3798_v45, %s14897_s2  ;;  %v11471_v57 = vld [vmem:[%s20179_s3 + $0x1f8] sm:$0xff] }
 0x36a   :  { %v13457_v21 = vpop.f32.mrf.mxu1 }
 0x36b   :  { %v3800_v43 = vmax.f32 %v3738_v14, 0.0  ;;  %v3737_v55 = vadd.f32 %v16837_v1, %v3671_v3  ;;  %v3674_v42 = vadd.f32 %v13457_v21, %v2974_v5  ;;  %v3868_v33 = vpop.permute.xlu1 %3867  ;;  %3977 = vrot.lane.b32.xlu0 %v3797_v39, %s14897_s2  ;;  %v11470_v14 = vld [vmem:[%s20179_s3 + $0x1f0] sm:$0xff] }
 0x36c   :  { %4053 = vst.msk [vmem:[#allocation2 + $0x18] sm:$0xff] %vm4051_vm7, %v3868_v33  ;;  %v3604_v26 = vpop.f32.mrf.mxu1 }
 0x36d   :  { %v3799_v15 = vmax.f32 %v3737_v55, 0.0  ;;  %v3740_v61 = vadd.f32 %v16837_v1, %v3674_v42  ;;  %v3673_v32 = vadd.f32 %v3604_v26, %v2969_v51  ;;  %v3866_v28 = vpop.permute.xlu0 %3865  ;;  %3983 = vrot.lane.b32.xlu1 %v3800_v43, %s14897_s2  ;;  %v11469_v51 = vld [vmem:[%s20179_s3 + $0x1e8] sm:$0xff]  ;;  %v11468_v26 = vld [vmem:[%s20179_s3 + $0x1e0] sm:$0xff] }
 0x36e   :  { %4052 = vst.msk [vmem:[#allocation2 + $0x10] sm:$0xff] %vm4051_vm7, %v3866_v28 }
 0x36f   :  { %v3802_v24 = vmax.f32 %v3740_v61, 0.0  ;;  %v3739_v50 = vadd.f32 %v16837_v1, %v3673_v32  ;;  %v3872_v22 = vpop.permute.xlu1 %3871  ;;  %3981 = vrot.lane.b32.xlu0 %v3799_v15, %s14897_s2 }
 0x370   :  { %4055 = vst.msk [vmem:[#allocation2 + $0x28] sm:$0xff] %vm4051_vm7, %v3872_v22 }
 0x371   :  { %v3801_v19 = vmax.f32 %v3739_v50, 0.0  ;;  %v3870_v37 = vpop.permute.xlu0 %3869  ;;  %3987 = vrot.lane.b32.xlu1 %v3802_v24, %s14897_s2 }
 0x372   :  { %4054 = vst.msk [vmem:[#allocation2 + $0x20] sm:$0xff] %vm4051_vm7, %v3870_v37 }
 0x373   :  { %v3876_v36 = vpop.permute.xlu1 %3875  ;;  %3985 = vrot.lane.b32.xlu0 %v3801_v19, %s14897_s2  ;;  %v4118_v1 = vld [vmem:[#allocation2 + $0x18] sm:$0xff] }
 0x374   :  { %4057 = vst.msk [vmem:[#allocation2 + $0x38] sm:$0xff] %vm4051_vm7, %v3876_v36 }
 0x375   :  { %v3874_v54 = vpop.permute.xlu0 %3873  ;;  %v4117_v11 = vld [vmem:[#allocation2 + $0x10] sm:$0xff] }
 0x376   :  { %4056 = vst.msk [vmem:[#allocation2 + $0x30] sm:$0xff] %vm4051_vm7, %v3874_v54  ;;  %13482 = vmatprep.mubr.msk.f32.mxu0 %vm748_vm8, %v4117_v11  ;;  %13602 = vmatprep.mubr.msk.f32.mxu1 %vm748_vm8, %v4117_v11 }
 0x377   :  { %13483 = vmatmul.mubr.msk.f32.vlgmr.msra.gmra.mxu0 %vm748_vm8, %v4118_v1  ;;  %13603 = vmatmul.mubr.msk.f32.gmra.mxu1 %vm748_vm8, %v4118_v1  ;;  %v3880_v38 = vpop.permute.xlu1 %3879  ;;  %v17145_v17 = vld [vmem:[#allocation2 + $0x28] sm:$0xff] }
 0x378   :  { %13693 = vmatpush3.msra.mxu0 %v16851_v63  ;;  %4059 = vst.msk [vmem:[#allocation2 + $0x48] sm:$0xff] %vm4051_vm7, %v3880_v38  ;;  %v11477_v63 = vld [vmem:[%s20179_s3 + $0x228] sm:$0xff] }
 0x379   :  { %v3878_v35 = vpop.permute.xlu0 %3877  ;;  %v17138_v58 = vld [vmem:[#allocation2 + $0x20] sm:$0xff]  ;;  %13694 = vmatprep.subr.mxu0 %v11478_v4 }
 0x37a   :  { %4058 = vst.msk [vmem:[#allocation2 + $0x40] sm:$0xff] %vm4051_vm7, %v3878_v35  ;;  %13485 = vmatprep.mubr.msk.f32.mxu0 %vm748_vm8, %v17138_v58  ;;  %13605 = vmatprep.mubr.msk.f32.mxu1 %vm748_vm8, %v17138_v58 }
 0x37b   :  { %13486 = vmatmul.mubr.msk.f32.gmra.mxu0 %vm748_vm8, %v17145_v17  ;;  %13606 = vmatmul.mubr.msk.f32.gmra.mxu1 %vm748_vm8, %v17145_v17  ;;  %v3884_v9 = vpop.permute.xlu1 %3883  ;;  %v17162_v62 = vld [vmem:[#allocation2 + $0x38] sm:$0xff] }
 0x37c   :  { %4061 = vst.msk [vmem:[#allocation2 + $0x58] sm:$0xff] %vm4051_vm7, %v3884_v9  ;;  %13695 = vmatpush3.msra.mxu0 %v11478_v4 }
 0x37d   :  { %v3882_v16 = vpop.permute.xlu0 %3881  ;;  %v17155_v41 = vld [vmem:[#allocation2 + $0x30] sm:$0xff]  ;;  %13696 = vmatprep.subr.mxu0 %v11477_v63 }
 0x37e   :  { %4060 = vst.msk [vmem:[#allocation2 + $0x50] sm:$0xff] %vm4051_vm7, %v3882_v16  ;;  %13488 = vmatprep.mubr.msk.f32.mxu0 %vm748_vm8, %v17155_v41  ;;  %13608 = vmatprep.mubr.msk.f32.mxu1 %vm748_vm8, %v17155_v41 }
 0x37f   :  { %13489 = vmatmul.mubr.msk.f32.gmra.mxu0 %vm748_vm8, %v17162_v62  ;;  %13609 = vmatmul.mubr.msk.f32.gmra.mxu1 %vm748_vm8, %v17162_v62  ;;  %v3888_v46 = vpop.permute.xlu1 %3887  ;;  %v17179_v30 = vld [vmem:[#allocation2 + $0x48] sm:$0xff] }
 0x380   :  { %4063 = vst.msk [vmem:[#allocation2 + $0x68] sm:$0xff] %vm4051_vm7, %v3888_v46  ;;  %13697 = vmatpush3.msra.mxu0 %v11477_v63 }
 0x381   :  { %v3886_v52 = vpop.permute.xlu0 %3885  ;;  %v17172_v44 = vld [vmem:[#allocation2 + $0x40] sm:$0xff]  ;;  %13698 = vmatprep.subr.mxu0 %v11476_v27 }
 0x382   :  { %4062 = vst.msk [vmem:[#allocation2 + $0x60] sm:$0xff] %vm4051_vm7, %v3886_v52  ;;  %13491 = vmatprep.mubr.msk.f32.mxu0 %vm748_vm8, %v17172_v44  ;;  %13611 = vmatprep.mubr.msk.f32.mxu1 %vm748_vm8, %v17172_v44 }
 0x383   :  { %13492 = vmatmul.mubr.msk.f32.gmra.mxu0 %vm748_vm8, %v17179_v30  ;;  %13612 = vmatmul.mubr.msk.f32.gmra.mxu1 %vm748_vm8, %v17179_v30  ;;  %v3892_v47 = vpop.permute.xlu1 %3891  ;;  %v17196_v34 = vld [vmem:[#allocation2 + $0x58] sm:$0xff] }
 0x384   :  { %4065 = vst.msk [vmem:[#allocation2 + $0x78] sm:$0xff] %vm4051_vm7, %v3892_v47  ;;  %13699 = vmatpush3.msra.mxu0 %v11476_v27 }
 0x385   :  { %v3890_v6 = vpop.permute.xlu0 %3889  ;;  %v17189_v23 = vld [vmem:[#allocation2 + $0x50] sm:$0xff]  ;;  %13700 = vmatprep.subr.mxu0 %v11475_v0 }
 0x386   :  { %4064 = vst.msk [vmem:[#allocation2 + $0x70] sm:$0xff] %vm4051_vm7, %v3890_v6  ;;  %13494 = vmatprep.mubr.msk.f32.mxu0 %vm748_vm8, %v17189_v23  ;;  %13614 = vmatprep.mubr.msk.f32.mxu1 %vm748_vm8, %v17189_v23 }
 0x387   :  { %13495 = vmatmul.mubr.msk.f32.gmra.mxu0 %vm748_vm8, %v17196_v34  ;;  %13615 = vmatmul.mubr.msk.f32.gmra.mxu1 %vm748_vm8, %v17196_v34  ;;  %v3896_v13 = vpop.permute.xlu1 %3895  ;;  %v17213_v56 = vld [vmem:[#allocation2 + $0x68] sm:$0xff] }
 0x388   :  { %4067 = vst.msk [vmem:[#allocation2 + $0x88] sm:$0xff] %vm4051_vm7, %v3896_v13  ;;  %13701 = vmatpush3.msra.mxu0 %v11475_v0 }
 0x389   :  { %v3894_v12 = vpop.permute.xlu0 %3893  ;;  %v17206_v20 = vld [vmem:[#allocation2 + $0x60] sm:$0xff]  ;;  %13702 = vmatprep.subr.mxu0 %v11474_v31 }
 0x38a   :  { %4066 = vst.msk [vmem:[#allocation2 + $0x80] sm:$0xff] %vm4051_vm7, %v3894_v12  ;;  %13497 = vmatprep.mubr.msk.f32.mxu0 %vm748_vm8, %v17206_v20  ;;  %13617 = vmatprep.mubr.msk.f32.mxu1 %vm748_vm8, %v17206_v20 }
 0x38b   :  { %13498 = vmatmul.mubr.msk.f32.gmra.mxu0 %vm748_vm8, %v17213_v56  ;;  %13618 = vmatmul.mubr.msk.f32.gmra.mxu1 %vm748_vm8, %v17213_v56  ;;  %v3900_v48 = vpop.permute.xlu1 %3899  ;;  %v17230_v7 = vld [vmem:[#allocation2 + $0x78] sm:$0xff] }
 0x38c   :  { %4069 = vst.msk [vmem:[#allocation2 + $0x98] sm:$0xff] %vm4051_vm7, %v3900_v48  ;;  %13703 = vmatpush3.msra.mxu0 %v11474_v31 }
 0x38d   :  { %v3898_v8 = vpop.permute.xlu0 %3897  ;;  %v17223_v59 = vld [vmem:[#allocation2 + $0x70] sm:$0xff]  ;;  %13704 = vmatprep.subr.mxu0 %v11473_v53 }
 0x38e   :  { %4068 = vst.msk [vmem:[#allocation2 + $0x90] sm:$0xff] %vm4051_vm7, %v3898_v8  ;;  %13500 = vmatprep.mubr.msk.f32.mxu0 %vm748_vm8, %v17223_v59  ;;  %13620 = vmatprep.mubr.msk.f32.mxu1 %vm748_vm8, %v17223_v59 }
 0x38f   :  { %13501 = vmatmul.mubr.msk.f32.gmra.mxu0 %vm748_vm8, %v17230_v7  ;;  %13621 = vmatmul.mubr.msk.f32.gmra.mxu1 %vm748_vm8, %v17230_v7  ;;  %v3904_v49 = vpop.permute.xlu1 %3903  ;;  %v17247_v10 = vld [vmem:[#allocation2 + $0x88] sm:$0xff] }
 0x390   :  { %4071 = vst.msk [vmem:[#allocation2 + $0xa8] sm:$0xff] %vm4051_vm7, %v3904_v49  ;;  %13705 = vmatpush3.msra.mxu0 %v11473_v53 }
 0x391   :  { %v3902_v25 = vpop.permute.xlu0 %3901  ;;  %v17240_v45 = vld [vmem:[#allocation2 + $0x80] sm:$0xff]  ;;  %13706 = vmatprep.subr.mxu0 %v11472_v29 }
 0x392   :  { %4070 = vst.msk [vmem:[#allocation2 + $0xa0] sm:$0xff] %vm4051_vm7, %v3902_v25  ;;  %13503 = vmatprep.mubr.msk.f32.mxu0 %vm748_vm8, %v17240_v45  ;;  %13623 = vmatprep.mubr.msk.f32.mxu1 %vm748_vm8, %v17240_v45 }
 0x393   :  { %13504 = vmatmul.mubr.msk.f32.gmra.mxu0 %vm748_vm8, %v17247_v10  ;;  %13624 = vmatmul.mubr.msk.f32.gmra.mxu1 %vm748_vm8, %v17247_v10  ;;  %v3908_v40 = vpop.permute.xlu1 %3907  ;;  %v17264_v39 = vld [vmem:[#allocation2 + $0x98] sm:$0xff] }
 0x394   :  { %4073 = vst.msk [vmem:[#allocation2 + $0xb8] sm:$0xff] %vm4051_vm7, %v3908_v40  ;;  %13707 = vmatpush3.msra.mxu0 %v11472_v29 }
 0x395   :  { %v3906_v2 = vpop.permute.xlu0 %3905  ;;  %v17257_v5 = vld [vmem:[#allocation2 + $0x90] sm:$0xff]  ;;  %13708 = vmatprep.subr.mxu0 %v11471_v57 }
 0x396   :  { %4072 = vst.msk [vmem:[#allocation2 + $0xb0] sm:$0xff] %vm4051_vm7, %v3906_v2  ;;  %13506 = vmatprep.mubr.msk.f32.mxu0 %vm748_vm8, %v17257_v5  ;;  %13626 = vmatprep.mubr.msk.f32.mxu1 %vm748_vm8, %v17257_v5  ;;  %v11542_v2 = vld [vmem:[%s20180_s4] ss:$0 sm:$0xff] }
 0x397   :  { %13507 = vmatmul.mubr.msk.f32.gmra.mxu0 %vm748_vm8, %v17264_v39  ;;  %13627 = vmatmul.mubr.msk.f32.gmra.mxu1 %vm748_vm8, %v17264_v39  ;;  %v3912_v3 = vpop.permute.xlu1 %3911  ;;  %v17281_v60 = vld [vmem:[#allocation2 + $0xa8] sm:$0xff] }
 0x398   :  { %4075 = vst.msk [vmem:[#allocation2 + $0xc8] sm:$0xff] %vm4051_vm7, %v3912_v3  ;;  %13709 = vmatpush3.msra.mxu0 %v11471_v57  ;;  %5850 = vrot.lane.b32.xlu0 %v11542_v2, %s14898_s27 }
 0x399   :  { %v3910_v18 = vpop.permute.xlu0 %3909  ;;  %v17274_v21 = vld [vmem:[#allocation2 + $0xa0] sm:$0xff]  ;;  %13710 = vmatprep.subr.mxu0 %v11470_v14 }
 0x39a   :  { %4074 = vst.msk [vmem:[#allocation2 + $0xc0] sm:$0xff] %vm4051_vm7, %v3910_v18  ;;  %13509 = vmatprep.mubr.msk.f32.mxu0 %vm748_vm8, %v17274_v21  ;;  %13629 = vmatprep.mubr.msk.f32.mxu1 %vm748_vm8, %v17274_v21 }
 0x39b   :  { %13510 = vmatmul.mubr.msk.f32.gmra.mxu0 %vm748_vm8, %v17281_v60  ;;  %13630 = vmatmul.mubr.msk.f32.gmra.mxu1 %vm748_vm8, %v17281_v60  ;;  %v3916_v43 = vpop.permute.xlu1 %3915  ;;  %v17298_v33 = vld [vmem:[#allocation2 + $0xb8] sm:$0xff] }
 0x39c   :  { %4077 = vst.msk [vmem:[#allocation2 + $0xd8] sm:$0xff] %vm4051_vm7, %v3916_v43  ;;  %13711 = vmatpush3.msra.mxu0 %v11470_v14 }
 0x39d   :  { %v3914_v55 = vpop.permute.xlu0 %3913  ;;  %v17291_v42 = vld [vmem:[#allocation2 + $0xb0] sm:$0xff]  ;;  %13712 = vmatprep.subr.mxu0 %v11469_v51 }
 0x39e   :  { %4076 = vst.msk [vmem:[#allocation2 + $0xd0] sm:$0xff] %vm4051_vm7, %v3914_v55  ;;  %13512 = vmatprep.mubr.msk.f32.mxu0 %vm748_vm8, %v17291_v42  ;;  %13632 = vmatprep.mubr.msk.f32.mxu1 %vm748_vm8, %v17291_v42 }
 0x39f   :  { %13513 = vmatmul.mubr.msk.f32.gmra.mxu0 %vm748_vm8, %v17298_v33  ;;  %13633 = vmatmul.mubr.msk.f32.gmra.mxu1 %vm748_vm8, %v17298_v33  ;;  %v3920_v15 = vpop.permute.xlu1 %3919  ;;  %v17315_v28 = vld [vmem:[#allocation2 + $0xc8] sm:$0xff] }
 0x3a0   :  { %4079 = vst.msk [vmem:[#allocation2 + $0xe8] sm:$0xff] %vm4051_vm7, %v3920_v15  ;;  %13713 = vmatpush3.msra.mxu0 %v11469_v51 }
 0x3a1   :  { %v3918_v61 = vpop.permute.xlu0 %3917  ;;  %v17308_v32 = vld [vmem:[#allocation2 + $0xc0] sm:$0xff]  ;;  %13714 = vmatprep.subr.mxu0 %v11468_v26 }
 0x3a2   :  { %4078 = vst.msk [vmem:[#allocation2 + $0xe0] sm:$0xff] %vm4051_vm7, %v3918_v61  ;;  %13515 = vmatprep.mubr.msk.f32.mxu0 %vm748_vm8, %v17308_v32  ;;  %13635 = vmatprep.mubr.msk.f32.mxu1 %vm748_vm8, %v17308_v32 }
 0x3a3   :  { %13516 = vmatmul.mubr.msk.f32.gmra.mxu0 %vm748_vm8, %v17315_v28  ;;  %13636 = vmatmul.mubr.msk.f32.gmra.mxu1 %vm748_vm8, %v17315_v28  ;;  %v3924_v24 = vpop.permute.xlu1 %3923  ;;  %v17329_v19 = vld [vmem:[#allocation2 + $0xd8] sm:$0xff] }
 0x3a4   :  { %4081 = vst.msk [vmem:[#allocation2 + $0xf8] sm:$0xff] %vm4051_vm7, %v3924_v24  ;;  %13715 = vmatpush3.msra.mxu0 %v11468_v26 }
 0x3a5   :  { %v3922_v50 = vpop.permute.xlu0 %3921  ;;  %v17322_v22 = vld [vmem:[#allocation2 + $0xd0] sm:$0xff] }
 0x3a6   :  { %4080 = vst.msk [vmem:[#allocation2 + $0xf0] sm:$0xff] %vm4051_vm7, %v3922_v50  ;;  %13518 = vmatprep.mubr.msk.f32.mxu0 %vm748_vm8, %v17322_v22  ;;  %13638 = vmatprep.mubr.msk.f32.mxu1 %vm748_vm8, %v17322_v22 }
 0x3a7   :  { %13519 = vmatmul.mubr.msk.f32.gmra.mxu0 %vm748_vm8, %v17329_v19  ;;  %13639 = vmatmul.mubr.msk.f32.gmra.mxu1 %vm748_vm8, %v17329_v19  ;;  %v3928_v37 = vpop.permute.xlu1 %3927  ;;  %v17343_v11 = vld [vmem:[#allocation2 + $0xe8] sm:$0xff] }
 0x3a8   :  { %4083 = vst.msk [vmem:[#allocation2 + $0x108] sm:$0xff] %vm4051_vm7, %v3928_v37 }
 0x3a9   :  { %v3926_v36 = vpop.permute.xlu0 %3925  ;;  %v17336_v54 = vld [vmem:[#allocation2 + $0xe0] sm:$0xff] }
 0x3aa   :  { %4082 = vst.msk [vmem:[#allocation2 + $0x100] sm:$0xff] %vm4051_vm7, %v3926_v36  ;;  %13521 = vmatprep.mubr.msk.f32.mxu0 %vm748_vm8, %v17336_v54  ;;  %13641 = vmatprep.mubr.msk.f32.mxu1 %vm748_vm8, %v17336_v54 }
 0x3ab   :  { %13522 = vmatmul.mubr.msk.f32.gmra.mxu0 %vm748_vm8, %v17343_v11  ;;  %13642 = vmatmul.mubr.msk.f32.gmra.mxu1 %vm748_vm8, %v17343_v11  ;;  %v3932_v1 = vpop.permute.xlu1 %3931  ;;  %v17357_v35 = vld [vmem:[#allocation2 + $0xf8] sm:$0xff] }
 0x3ac   :  { %4085 = vst.msk [vmem:[#allocation2 + $0x118] sm:$0xff] %vm4051_vm7, %v3932_v1 }
 0x3ad   :  { %v3930_v4 = vpop.permute.xlu0 %3929  ;;  %v17350_v38 = vld [vmem:[#allocation2 + $0xf0] sm:$0xff] }
 0x3ae   :  { %4084 = vst.msk [vmem:[#allocation2 + $0x110] sm:$0xff] %vm4051_vm7, %v3930_v4  ;;  %13524 = vmatprep.mubr.msk.f32.mxu0 %vm748_vm8, %v17350_v38  ;;  %13644 = vmatprep.mubr.msk.f32.mxu1 %vm748_vm8, %v17350_v38 }
 0x3af   :  { %13525 = vmatmul.mubr.msk.f32.gmra.mxu0 %vm748_vm8, %v17357_v35  ;;  %13645 = vmatmul.mubr.msk.f32.gmra.mxu1 %vm748_vm8, %v17357_v35  ;;  %v3936_v63 = vpop.permute.xlu1 %3935  ;;  %v17371_v27 = vld [vmem:[#allocation2 + $0x108] sm:$0xff] }
 0x3b0   :  { %4087 = vst.msk [vmem:[#allocation2 + $0x128] sm:$0xff] %vm4051_vm7, %v3936_v63 }
 0x3b1   :  { %v3934_v9 = vpop.permute.xlu0 %3933  ;;  %v17364_v16 = vld [vmem:[#allocation2 + $0x100] sm:$0xff] }
 0x3b2   :  { %4086 = vst.msk [vmem:[#allocation2 + $0x120] sm:$0xff] %vm4051_vm7, %v3934_v9  ;;  %13527 = vmatprep.mubr.msk.f32.mxu0 %vm748_vm8, %v17364_v16  ;;  %13647 = vmatprep.mubr.msk.f32.mxu1 %vm748_vm8, %v17364_v16 }
 0x3b3   :  { %13528 = vmatmul.mubr.msk.f32.gmra.mxu0 %vm748_vm8, %v17371_v27  ;;  %13648 = vmatmul.mubr.msk.f32.gmra.mxu1 %vm748_vm8, %v17371_v27  ;;  %v3940_v46 = vpop.permute.xlu1 %3939  ;;  %v17385_v47 = vld [vmem:[#allocation2 + $0x118] sm:$0xff] }
 0x3b4   :  { %4089 = vst.msk [vmem:[#allocation2 + $0x138] sm:$0xff] %vm4051_vm7, %v3940_v46 }
 0x3b5   :  { %v3938_v52 = vpop.permute.xlu0 %3937  ;;  %v17378_v0 = vld [vmem:[#allocation2 + $0x110] sm:$0xff] }
 0x3b6   :  { %4088 = vst.msk [vmem:[#allocation2 + $0x130] sm:$0xff] %vm4051_vm7, %v3938_v52  ;;  %13530 = vmatprep.mubr.msk.f32.mxu0 %vm748_vm8, %v17378_v0  ;;  %13650 = vmatprep.mubr.msk.f32.mxu1 %vm748_vm8, %v17378_v0 }
 0x3b7   :  { %13531 = vmatmul.mubr.msk.f32.gmra.mxu0 %vm748_vm8, %v17385_v47  ;;  %13651 = vmatmul.mubr.msk.f32.gmra.mxu1 %vm748_vm8, %v17385_v47  ;;  %v3944_v6 = vpop.permute.xlu1 %3943  ;;  %v17399_v12 = vld [vmem:[#allocation2 + $0x128] sm:$0xff] }
 0x3b8   :  { %4091 = vst.msk [vmem:[#allocation2 + $0x148] sm:$0xff] %vm4051_vm7, %v3944_v6 }
 0x3b9   :  { %v3942_v31 = vpop.permute.xlu0 %3941  ;;  %v17392_v13 = vld [vmem:[#allocation2 + $0x120] sm:$0xff] }
 0x3ba   :  { %4090 = vst.msk [vmem:[#allocation2 + $0x140] sm:$0xff] %vm4051_vm7, %v3942_v31  ;;  %13533 = vmatprep.mubr.msk.f32.mxu0 %vm748_vm8, %v17392_v13  ;;  %13653 = vmatprep.mubr.msk.f32.mxu1 %vm748_vm8, %v17392_v13 }
 0x3bb   :  { %13534 = vmatmul.mubr.msk.f32.gmra.mxu0 %vm748_vm8, %v17399_v12  ;;  %13654 = vmatmul.mubr.msk.f32.gmra.mxu1 %vm748_vm8, %v17399_v12  ;;  %v3948_v53 = vpop.permute.xlu1 %3947  ;;  %v17413_v29 = vld [vmem:[#allocation2 + $0x138] sm:$0xff] }
 0x3bc   :  { %4093 = vst.msk [vmem:[#allocation2 + $0x158] sm:$0xff] %vm4051_vm7, %v3948_v53 }
 0x3bd   :  { %v3946_v48 = vpop.permute.xlu0 %3945  ;;  %v17406_v8 = vld [vmem:[#allocation2 + $0x130] sm:$0xff] }
 0x3be   :  { %4092 = vst.msk [vmem:[#allocation2 + $0x150] sm:$0xff] %vm4051_vm7, %v3946_v48  ;;  %13536 = vmatprep.mubr.msk.f32.mxu0 %vm748_vm8, %v17406_v8  ;;  %13656 = vmatprep.mubr.msk.f32.mxu1 %vm748_vm8, %v17406_v8 }
 0x3bf   :  { %13537 = vmatmul.mubr.msk.f32.gmra.mxu0 %vm748_vm8, %v17413_v29  ;;  %13657 = vmatmul.mubr.msk.f32.gmra.mxu1 %vm748_vm8, %v17413_v29  ;;  %v3952_v49 = vpop.permute.xlu1 %3951  ;;  %v17427_v40 = vld [vmem:[#allocation2 + $0x148] sm:$0xff] }
 0x3c0   :  { %4095 = vst.msk [vmem:[#allocation2 + $0x168] sm:$0xff] %vm4051_vm7, %v3952_v49 }
 0x3c1   :  { %v3950_v25 = vpop.permute.xlu0 %3949  ;;  %v17420_v57 = vld [vmem:[#allocation2 + $0x140] sm:$0xff] }
 0x3c2   :  { %4094 = vst.msk [vmem:[#allocation2 + $0x160] sm:$0xff] %vm4051_vm7, %v3950_v25  ;;  %13539 = vmatprep.mubr.msk.f32.mxu0 %vm748_vm8, %v17420_v57  ;;  %13659 = vmatprep.mubr.msk.f32.mxu1 %vm748_vm8, %v17420_v57 }
 0x3c3   :  { %13540 = vmatmul.mubr.msk.f32.gmra.mxu0 %vm748_vm8, %v17427_v40  ;;  %13660 = vmatmul.mubr.msk.f32.gmra.mxu1 %vm748_vm8, %v17427_v40  ;;  %v3956_v14 = vpop.permute.xlu1 %3955  ;;  %v17444_v51 = vld [vmem:[#allocation2 + $0x158] sm:$0xff] }
 0x3c4   :  { %4097 = vst.msk [vmem:[#allocation2 + $0x178] sm:$0xff] %vm4051_vm7, %v3956_v14 }
 0x3c5   :  { %v3954_v3 = vpop.permute.xlu0 %3953  ;;  %v17437_v18 = vld [vmem:[#allocation2 + $0x150] sm:$0xff] }
 0x3c6   :  { %4096 = vst.msk [vmem:[#allocation2 + $0x170] sm:$0xff] %vm4051_vm7, %v3954_v3  ;;  %13542 = vmatprep.mubr.msk.f32.mxu0 %vm748_vm8, %v17437_v18  ;;  %13662 = vmatprep.mubr.msk.f32.mxu1 %vm748_vm8, %v17437_v18 }
 0x3c7   :  { %13543 = vmatmul.mubr.msk.f32.gmra.mxu0 %vm748_vm8, %v17444_v51  ;;  %13663 = vmatmul.mubr.msk.f32.gmra.mxu1 %vm748_vm8, %v17444_v51  ;;  %v3960_v43 = vpop.permute.xlu1 %3959  ;;  %v17458_v15 = vld [vmem:[#allocation2 + $0x168] sm:$0xff] }
 0x3c8   :  { %4099 = vst.msk [vmem:[#allocation2 + $0x188] sm:$0xff] %vm4051_vm7, %v3960_v43 }
 0x3c9   :  { %v3958_v55 = vpop.permute.xlu0 %3957  ;;  %v17451_v26 = vld [vmem:[#allocation2 + $0x160] sm:$0xff] }
 0x3ca   :  { %4098 = vst.msk [vmem:[#allocation2 + $0x180] sm:$0xff] %vm4051_vm7, %v3958_v55  ;;  %13545 = vmatprep.mubr.msk.f32.mxu0 %vm748_vm8, %v17451_v26  ;;  %13665 = vmatprep.mubr.msk.f32.mxu1 %vm748_vm8, %v17451_v26 }
 0x3cb   :  { %13546 = vmatmul.mubr.msk.f32.gmra.mxu0 %vm748_vm8, %v17458_v15  ;;  %13666 = vmatmul.mubr.msk.f32.gmra.mxu1 %vm748_vm8, %v17458_v15  ;;  %v3964_v61 = vpop.permute.xlu1 %3963  ;;  %v17472_v37 = vld [vmem:[#allocation2 + $0x178] sm:$0xff] }
 0x3cc   :  { %4101 = vst.msk [vmem:[#allocation2 + $0x198] sm:$0xff] %vm4051_vm7, %v3964_v61 }
 0x3cd   :  { %v3962_v24 = vpop.permute.xlu0 %3961  ;;  %v17465_v50 = vld [vmem:[#allocation2 + $0x170] sm:$0xff] }
 0x3ce   :  { %4100 = vst.msk [vmem:[#allocation2 + $0x190] sm:$0xff] %vm4051_vm7, %v3962_v24  ;;  %13548 = vmatprep.mubr.msk.f32.mxu0 %vm748_vm8, %v17465_v50  ;;  %13668 = vmatprep.mubr.msk.f32.mxu1 %vm748_vm8, %v17465_v50 }
 0x3cf   :  { %13549 = vmatmul.mubr.msk.f32.gmra.mxu0 %vm748_vm8, %v17472_v37  ;;  %13669 = vmatmul.mubr.msk.f32.gmra.mxu1 %vm748_vm8, %v17472_v37  ;;  %v3968_v36 = vpop.permute.xlu1 %3967  ;;  %v17486_v63 = vld [vmem:[#allocation2 + $0x188] sm:$0xff] }
 0x3d0   :  { %4103 = vst.msk [vmem:[#allocation2 + $0x1a8] sm:$0xff] %vm4051_vm7, %v3968_v36 }
 0x3d1   :  { %v3966_v1 = vpop.permute.xlu0 %3965  ;;  %v17479_v4 = vld [vmem:[#allocation2 + $0x180] sm:$0xff] }
 0x3d2   :  { %4102 = vst.msk [vmem:[#allocation2 + $0x1a0] sm:$0xff] %vm4051_vm7, %v3966_v1  ;;  %13551 = vmatprep.mubr.msk.f32.mxu0 %vm748_vm8, %v17479_v4  ;;  %13671 = vmatprep.mubr.msk.f32.mxu1 %vm748_vm8, %v17479_v4 }
 0x3d3   :  { %13552 = vmatmul.mubr.msk.f32.gmra.mxu0 %vm748_vm8, %v17486_v63  ;;  %13672 = vmatmul.mubr.msk.f32.gmra.mxu1 %vm748_vm8, %v17486_v63  ;;  %v3972_v9 = vpop.permute.xlu1 %3971  ;;  %v17500_v6 = vld [vmem:[#allocation2 + $0x198] sm:$0xff] }
 0x3d4   :  { %4105 = vst.msk [vmem:[#allocation2 + $0x1b8] sm:$0xff] %vm4051_vm7, %v3972_v9 }
 0x3d5   :  { %v3970_v46 = vpop.permute.xlu0 %3969  ;;  %v17493_v52 = vld [vmem:[#allocation2 + $0x190] sm:$0xff] }
 0x3d6   :  { %4104 = vst.msk [vmem:[#allocation2 + $0x1b0] sm:$0xff] %vm4051_vm7, %v3970_v46  ;;  %13554 = vmatprep.mubr.msk.f32.mxu0 %vm748_vm8, %v17493_v52  ;;  %13674 = vmatprep.mubr.msk.f32.mxu1 %vm748_vm8, %v17493_v52 }
 0x3d7   :  { %13555 = vmatmul.mubr.msk.f32.gmra.mxu0 %vm748_vm8, %v17500_v6  ;;  %13675 = vmatmul.mubr.msk.f32.gmra.mxu1 %vm748_vm8, %v17500_v6  ;;  %v3976_v31 = vpop.permute.xlu1 %3975  ;;  %v17514_v49 = vld [vmem:[#allocation2 + $0x1a8] sm:$0xff] }
 0x3d8   :  { %4107 = vst.msk [vmem:[#allocation2 + $0x1c8] sm:$0xff] %vm4051_vm7, %v3976_v31 }
 0x3d9   :  { %v3974_v53 = vpop.permute.xlu0 %3973  ;;  %v17507_v48 = vld [vmem:[#allocation2 + $0x1a0] sm:$0xff] }
 0x3da   :  { %4106 = vst.msk [vmem:[#allocation2 + $0x1c0] sm:$0xff] %vm4051_vm7, %v3974_v53  ;;  %13557 = vmatprep.mubr.msk.f32.mxu0 %vm748_vm8, %v17507_v48  ;;  %13677 = vmatprep.mubr.msk.f32.mxu1 %vm748_vm8, %v17507_v48 }
 0x3db   :  { %13558 = vmatmul.mubr.msk.f32.gmra.mxu0 %vm748_vm8, %v17514_v49  ;;  %13678 = vmatmul.mubr.msk.f32.gmra.mxu1 %vm748_vm8, %v17514_v49  ;;  %v3980_v25 = vpop.permute.xlu1 %3979  ;;  %v17528_v3 = vld [vmem:[#allocation2 + $0x1b8] sm:$0xff] }
 0x3dc   :  { %4109 = vst.msk [vmem:[#allocation2 + $0x1d8] sm:$0xff] %vm4051_vm7, %v3980_v25 }
 0x3dd   :  { %v3978_v2 = vpop.permute.xlu0 %3977  ;;  %v17521_v14 = vld [vmem:[#allocation2 + $0x1b0] sm:$0xff] }
 0x3de   :  { %4108 = vst.msk [vmem:[#allocation2 + $0x1d0] sm:$0xff] %vm4051_vm7, %v3978_v2  ;;  %13560 = vmatprep.mubr.msk.f32.mxu0 %vm748_vm8, %v17521_v14  ;;  %13680 = vmatprep.mubr.msk.f32.mxu1 %vm748_vm8, %v17521_v14 }
 0x3df   :  { %13561 = vmatmul.mubr.msk.f32.gmra.mxu0 %vm748_vm8, %v17528_v3  ;;  %13681 = vmatmul.mubr.msk.f32.gmra.mxu1 %vm748_vm8, %v17528_v3  ;;  %v3984_v43 = vpop.permute.xlu1 %3983  ;;  %v17542_v24 = vld [vmem:[#allocation2 + $0x1c8] sm:$0xff] }
 0x3e0   :  { %4111 = vst.msk [vmem:[#allocation2 + $0x1e8] sm:$0xff] %vm4051_vm7, %v3984_v43 }
 0x3e1   :  { %v3982_v55 = vpop.permute.xlu0 %3981  ;;  %v17535_v61 = vld [vmem:[#allocation2 + $0x1c0] sm:$0xff] }
 0x3e2   :  { %4110 = vst.msk [vmem:[#allocation2 + $0x1e0] sm:$0xff] %vm4051_vm7, %v3982_v55  ;;  %13563 = vmatprep.mubr.msk.f32.mxu0 %vm748_vm8, %v17535_v61  ;;  %13683 = vmatprep.mubr.msk.f32.mxu1 %vm748_vm8, %v17535_v61  ;;  %v5208_v55 = vld [vmem:[#allocation2 + $0x208] sm:$0xff] }
 0x3e3   :  { %13564 = vmatmul.mubr.msk.f32.gmra.mxu0 %vm748_vm8, %v17542_v24  ;;  %13684 = vmatmul.mubr.msk.f32.gmra.mxu1 %vm748_vm8, %v17542_v24  ;;  %v3988_v36 = vpop.permute.xlu1 %3987  ;;  %v17556_v46 = vld [vmem:[#allocation2 + $0x1d8] sm:$0xff] }
 0x3e4   :  { %4113 = vst.msk [vmem:[#allocation2 + $0x1f8] sm:$0xff] %vm4051_vm7, %v3988_v36 }
 0x3e5   :  { %v3986_v1 = vpop.permute.xlu0 %3985  ;;  %v17549_v9 = vld [vmem:[#allocation2 + $0x1d0] sm:$0xff] }
 0x3e6   :  { %4112 = vst.msk [vmem:[#allocation2 + $0x1f0] sm:$0xff] %vm4051_vm7, %v3986_v1  ;;  %13566 = vmatprep.mubr.msk.f32.mxu0 %vm748_vm8, %v17549_v9  ;;  %13686 = vmatprep.mubr.msk.f32.mxu1 %vm748_vm8, %v17549_v9 }
 0x3e7   :  { %13567 = vmatmul.mubr.msk.f32.gmra.mxu0 %vm748_vm8, %v17556_v46  ;;  %13687 = vmatmul.mubr.msk.f32.gmra.mxu1 %vm748_vm8, %v17556_v46  ;;  %v17568_v53 = vld [vmem:[#allocation2 + $0x1e8] sm:$0xff] }
 0x3e9   :  { %v17562_v31 = vld [vmem:[#allocation2 + $0x1e0] sm:$0xff] }
 0x3ea   :  { %13569 = vmatprep.mubr.msk.f32.mxu0 %vm748_vm8, %v17562_v31  ;;  %13689 = vmatprep.mubr.msk.f32.mxu1 %vm748_vm8, %v17562_v31 }
 0x3eb   :  { %13570 = vmatmul.mubr.msk.f32.gmra.mxu0 %vm748_vm8, %v17568_v53  ;;  %13690 = vmatmul.mubr.msk.f32.gmra.mxu1 %vm748_vm8, %v17568_v53  ;;  %v17578_v2 = vld [vmem:[#allocation2 + $0x1f8] sm:$0xff] }
 0x3ed   :  { %v17574_v25 = vld [vmem:[#allocation2 + $0x1f0] sm:$0xff] }
 0x3ee   :  { %13572 = vmatprep.mubr.msk.f32.mxu0 %vm748_vm8, %v17574_v25 }
 0x3ef   :  { %13573 = vmatmul.mubr.msk.f32.gmra.mxu0 %vm748_vm8, %v17578_v2 }
 0x3f0   :  { %13716 = vmatprep.mubr.msk.f32.mxu0 %vm748_vm8, %v17138_v58  ;;  %v17646_v58 = vpop.f32.mrf.mxu1 }
 0x3f3   :  { %13717 = vmatmul.mubr.msk.f32.vlgmr.msra.gmra.mxu0 %vm748_vm8, %v17145_v17  ;;  %v17652_v17 = vpop.f32.mrf.mxu1 }
 0x3f4   :  { %13719 = vmatprep.mubr.msk.f32.mxu0 %vm748_vm8, %v17155_v41 }
 0x3f7   :  { %13720 = vmatmul.mubr.msk.f32.gmra.mxu0 %vm748_vm8, %v17162_v62 }
 0x3f8   :  { %13722 = vmatprep.mubr.msk.f32.mxu0 %vm748_vm8, %v17172_v44 }
 0x3fb   :  { %13723 = vmatmul.mubr.msk.f32.gmra.mxu0 %vm748_vm8, %v17179_v30 }
 0x3fc   :  { %13725 = vmatprep.mubr.msk.f32.mxu0 %vm748_vm8, %v17189_v23 }
 0x3ff   :  { %13726 = vmatmul.mubr.msk.f32.gmra.mxu0 %vm748_vm8, %v17196_v34 }
 0x400   :  { %13728 = vmatprep.mubr.msk.f32.mxu0 %vm748_vm8, %v17206_v20 }
 0x403   :  { %13729 = vmatmul.mubr.msk.f32.gmra.mxu0 %vm748_vm8, %v17213_v56 }
 0x404   :  { %13731 = vmatprep.mubr.msk.f32.mxu0 %vm748_vm8, %v17223_v59 }
 0x407   :  { %13732 = vmatmul.mubr.msk.f32.gmra.mxu0 %vm748_vm8, %v17230_v7 }
 0x408   :  { %13734 = vmatprep.mubr.msk.f32.mxu0 %vm748_vm8, %v17240_v45 }
 0x40b   :  { %13735 = vmatmul.mubr.msk.f32.gmra.mxu0 %vm748_vm8, %v17247_v10 }
 0x40c   :  { %13737 = vmatprep.mubr.msk.f32.mxu0 %vm748_vm8, %v17257_v5 }
 0x40f   :  { %13738 = vmatmul.mubr.msk.f32.gmra.mxu0 %vm748_vm8, %v17264_v39 }
 0x410   :  { %13740 = vmatprep.mubr.msk.f32.mxu0 %vm748_vm8, %v17274_v21 }
 0x413   :  { %13741 = vmatmul.mubr.msk.f32.gmra.mxu0 %vm748_vm8, %v17281_v60 }
 0x414   :  { %13743 = vmatprep.mubr.msk.f32.mxu0 %vm748_vm8, %v17291_v42 }
 0x417   :  { %13744 = vmatmul.mubr.msk.f32.gmra.mxu0 %vm748_vm8, %v17298_v33 }
 0x418   :  { %13746 = vmatprep.mubr.msk.f32.mxu0 %vm748_vm8, %v17308_v32 }
 0x41b   :  { %13747 = vmatmul.mubr.msk.f32.gmra.mxu0 %vm748_vm8, %v17315_v28 }
 0x41c   :  { %13749 = vmatprep.mubr.msk.f32.mxu0 %vm748_vm8, %v17322_v22 }
 0x41f   :  { %13750 = vmatmul.mubr.msk.f32.gmra.mxu0 %vm748_vm8, %v17329_v19 }
 0x420   :  { %13752 = vmatprep.mubr.msk.f32.mxu0 %vm748_vm8, %v17336_v54 }
 0x423   :  { %13753 = vmatmul.mubr.msk.f32.gmra.mxu0 %vm748_vm8, %v17343_v11 }
 0x424   :  { %13755 = vmatprep.mubr.msk.f32.mxu0 %vm748_vm8, %v17350_v38 }
 0x427   :  { %13756 = vmatmul.mubr.msk.f32.gmra.mxu0 %vm748_vm8, %v17357_v35 }
 0x428   :  { %13758 = vmatprep.mubr.msk.f32.mxu0 %vm748_vm8, %v17364_v16 }
 0x42b   :  { %13759 = vmatmul.mubr.msk.f32.gmra.mxu0 %vm748_vm8, %v17371_v27 }
 0x42c   :  { %13761 = vmatprep.mubr.msk.f32.mxu0 %vm748_vm8, %v17378_v0 }
 0x42f   :  { %13762 = vmatmul.mubr.msk.f32.gmra.mxu0 %vm748_vm8, %v17385_v47 }
 0x430   :  { %13764 = vmatprep.mubr.msk.f32.mxu0 %vm748_vm8, %v17392_v13 }
 0x433   :  { %13765 = vmatmul.mubr.msk.f32.gmra.mxu0 %vm748_vm8, %v17399_v12 }
 0x434   :  { %13767 = vmatprep.mubr.msk.f32.mxu0 %vm748_vm8, %v17406_v8 }
 0x437   :  { %v17656_v41 = vpop.f32.mrf.mxu0  ;;  %v17658_v62 = vpop.f32.mrf.mxu1  ;;  %13768 = vmatmul.mubr.msk.f32.gmra.mxu0 %vm748_vm8, %v17413_v29 }
 0x438   :  { %13770 = vmatprep.mubr.msk.f32.mxu0 %vm748_vm8, %v17420_v57 }
 0x439   :  { %v17664_v44 = vpop.f32.mrf.mxu0  ;;  %v17666_v30 = vpop.f32.mrf.mxu1 }
 0x43b   :  { %v17668_v23 = vpop.f32.mrf.mxu0  ;;  %v17670_v34 = vpop.f32.mrf.mxu1  ;;  %13771 = vmatmul.mubr.msk.f32.gmra.mxu0 %vm748_vm8, %v17427_v40 }
 0x43c   :  { %13773 = vmatprep.mubr.msk.f32.mxu0 %vm748_vm8, %v17437_v18 }
 0x43d   :  { %v17676_v20 = vpop.f32.mrf.mxu0  ;;  %v17678_v56 = vpop.f32.mrf.mxu1 }
 0x43f   :  { %v17680_v59 = vpop.f32.mrf.mxu0  ;;  %v17682_v7 = vpop.f32.mrf.mxu1  ;;  %13774 = vmatmul.mubr.msk.f32.gmra.mxu0 %vm748_vm8, %v17444_v51 }
 0x440   :  { %13776 = vmatprep.mubr.msk.f32.mxu0 %vm748_vm8, %v17451_v26 }
 0x441   :  { %v17688_v45 = vpop.f32.mrf.mxu0  ;;  %v17690_v10 = vpop.f32.mrf.mxu1 }
 0x443   :  { %v17692_v5 = vpop.f32.mrf.mxu0  ;;  %v17694_v39 = vpop.f32.mrf.mxu1  ;;  %13777 = vmatmul.mubr.msk.f32.gmra.mxu0 %vm748_vm8, %v17458_v15 }
 0x444   :  { %13779 = vmatprep.mubr.msk.f32.mxu0 %vm748_vm8, %v17465_v50 }
 0x445   :  { %v17700_v21 = vpop.f32.mrf.mxu0  ;;  %v17702_v60 = vpop.f32.mrf.mxu1 }
 0x447   :  { %v17704_v42 = vpop.f32.mrf.mxu0  ;;  %v17706_v33 = vpop.f32.mrf.mxu1  ;;  %13780 = vmatmul.mubr.msk.f32.gmra.mxu0 %vm748_vm8, %v17472_v37 }
 0x448   :  { %13782 = vmatprep.mubr.msk.f32.mxu0 %vm748_vm8, %v17479_v4 }
 0x449   :  { %v17712_v32 = vpop.f32.mrf.mxu0  ;;  %v17714_v28 = vpop.f32.mrf.mxu1 }
 0x44b   :  { %v17716_v22 = vpop.f32.mrf.mxu0  ;;  %v17718_v19 = vpop.f32.mrf.mxu1  ;;  %13783 = vmatmul.mubr.msk.f32.gmra.mxu0 %vm748_vm8, %v17486_v63 }
 0x44c   :  { %13785 = vmatprep.mubr.msk.f32.mxu0 %vm748_vm8, %v17493_v52 }
 0x44d   :  { %v17724_v54 = vpop.f32.mrf.mxu0  ;;  %v17726_v11 = vpop.f32.mrf.mxu1 }
 0x44f   :  { %v17728_v38 = vpop.f32.mrf.mxu0  ;;  %v17730_v35 = vpop.f32.mrf.mxu1  ;;  %13786 = vmatmul.mubr.msk.f32.gmra.mxu0 %vm748_vm8, %v17500_v6 }
 0x450   :  { %13788 = vmatprep.mubr.msk.f32.mxu0 %vm748_vm8, %v17507_v48 }
 0x451   :  { %v17736_v16 = vpop.f32.mrf.mxu0  ;;  %v17738_v27 = vpop.f32.mrf.mxu1 }
 0x453   :  { %v17740_v0 = vpop.f32.mrf.mxu0  ;;  %v17742_v47 = vpop.f32.mrf.mxu1  ;;  %13789 = vmatmul.mubr.msk.f32.gmra.mxu0 %vm748_vm8, %v17514_v49 }
 0x454   :  { %13791 = vmatprep.mubr.msk.f32.mxu0 %vm748_vm8, %v17521_v14  ;;  %v5207_v14 = vld [vmem:[#allocation2 + $0x200] sm:$0xff] }
 0x455   :  { %v17748_v13 = vpop.f32.mrf.mxu0  ;;  %v17750_v12 = vpop.f32.mrf.mxu1 }
 0x457   :  { %v17752_v8 = vpop.f32.mrf.mxu0  ;;  %v17754_v29 = vpop.f32.mrf.mxu1  ;;  %13792 = vmatmul.mubr.msk.f32.gmra.mxu0 %vm748_vm8, %v17528_v3 }
 0x458   :  { %13794 = vmatprep.mubr.msk.f32.mxu0 %vm748_vm8, %v17535_v61 }
 0x459   :  { %v17760_v57 = vpop.f32.mrf.mxu0  ;;  %v17762_v40 = vpop.f32.mrf.mxu1 }
 0x45b   :  { %v17764_v18 = vpop.f32.mrf.mxu0  ;;  %v17766_v51 = vpop.f32.mrf.mxu1  ;;  %13795 = vmatmul.mubr.msk.f32.gmra.mxu0 %vm748_vm8, %v17542_v24 }
 0x45c   :  { %13797 = vmatprep.mubr.msk.f32.mxu0 %vm748_vm8, %v17549_v9 }
 0x45d   :  { %v17772_v26 = vpop.f32.mrf.mxu0  ;;  %v17774_v15 = vpop.f32.mrf.mxu1 }
 0x45f   :  { %v17776_v50 = vpop.f32.mrf.mxu0  ;;  %v17778_v37 = vpop.f32.mrf.mxu1  ;;  %13798 = vmatmul.mubr.msk.f32.gmra.mxu0 %vm748_vm8, %v17556_v46 }
 0x460   :  { %13800 = vmatprep.mubr.msk.f32.mxu0 %vm748_vm8, %v17562_v31 }
 0x461   :  { %v17784_v4 = vpop.f32.mrf.mxu0  ;;  %v17786_v63 = vpop.f32.mrf.mxu1 }
 0x463   :  { %v17788_v52 = vpop.f32.mrf.mxu0  ;;  %v17790_v6 = vpop.f32.mrf.mxu1  ;;  %13801 = vmatmul.mubr.msk.f32.gmra.mxu0 %vm748_vm8, %v17568_v53 }
 0x464   :  { %13803 = vmatprep.mubr.msk.f32.mxu0 %vm748_vm8, %v17574_v25 }
 0x465   :  { %v17796_v48 = vpop.f32.mrf.mxu0  ;;  %v17798_v49 = vpop.f32.mrf.mxu1 }
 0x467   :  { %v17800_v3 = vpop.f32.mrf.mxu0  ;;  %v17802_v43 = vpop.f32.mrf.mxu1  ;;  %13804 = vmatmul.mubr.msk.f32.gmra.mxu0 %vm748_vm8, %v17578_v2 }
 0x468   :  { %20282 = vst [vmem:[#allocation9_spill] sm:$0xff] %v17802_v43  ;;  %13806 = vmatprep.mubr.msk.f32.mxu0 %vm748_vm8, %v5207_v14 }
 0x469   :  { %v17807_v61 = vpop.f32.mrf.mxu0  ;;  %v17809_v24 = vpop.f32.mrf.mxu1 }
 0x46a   :  { %20283 = vst [vmem:[#allocation35_spill] sm:$0xff] %v17809_v24 }
 0x46b   :  { %v17811_v36 = vpop.f32.mrf.mxu0  ;;  %v17813_v1 = vpop.f32.mrf.mxu1  ;;  %13807 = vmatmul.mubr.msk.f32.gmra.mxu0 %vm748_vm8, %v5208_v55 }
 0x46c   :  { %20284 = vst [vmem:[#allocation10_spill] sm:$0xff] %v17811_v36  ;;  %20285 = vst [vmem:[#allocation38_spill] sm:$0xff] %v17813_v1  ;;  %v17962_v36 = vpop.permute.xlu0 %5850 }
 0x46d   :  { %v17816_v9 = vpop.f32.mrf.mxu0  ;;  %v17818_v46 = vpop.f32.mrf.mxu1  ;;  %20351 = vst [vmem:[#allocation78_spill] sm:$0xff] %v17962_v36 }
 0x46e   :  { %20286 = vst [vmem:[#allocation11_spill] sm:$0xff] %v17816_v9  ;;  %20287 = vst [vmem:[#allocation41_spill] sm:$0xff] %v17818_v46 }
 0x46f   :  { %v17820_v31 = vpop.f32.mrf.mxu0  ;;  %v17822_v53 = vpop.f32.mrf.mxu1 }
 0x470   :  { %20288 = vst [vmem:[#allocation12_spill] sm:$0xff] %v17820_v31  ;;  %20289 = vst [vmem:[#allocation44_spill] sm:$0xff] %v17822_v53 }
 0x471   :  { %v17824_v25 = vpop.f32.mrf.mxu0  ;;  %v17826_v2 = vpop.f32.mrf.mxu1 }
 0x472   :  { %20290 = vst [vmem:[#allocation13_spill] sm:$0xff] %v17824_v25  ;;  %20291 = vst [vmem:[#allocation47_spill] sm:$0xff] %v17826_v2 }
 0x473   :  { %v17828_v14 = vpop.f32.mrf.mxu0  ;;  %v17830_v24 = vpop.f32.mrf.mxu1 }
 0x474   :  { %20292 = vst [vmem:[#allocation14_spill] sm:$0xff] %v17828_v14  ;;  %20293 = vst [vmem:[#allocation50_spill] sm:$0xff] %v17830_v24 }
 0x475   :  { %v17832_v43 = vpop.f32.mrf.mxu0  ;;  %v17834_v1 = vpop.f32.mrf.mxu1 }
 0x476   :  { %20294 = vst [vmem:[#allocation15_spill] sm:$0xff] %v17832_v43  ;;  %20295 = vst [vmem:[#allocation16_spill] sm:$0xff] %v17834_v1 }
 0x477   :  { %v17836_v55 = vpop.f32.mrf.mxu0  ;;  %v17838_v9 = vpop.f32.mrf.mxu1 }
 0x478   :  { %20296 = vst [vmem:[#allocation17_spill] sm:$0xff] %v17836_v55  ;;  %20297 = vst [vmem:[#allocation18_spill] sm:$0xff] %v17838_v9 }
 0x479   :  { %v17840_v46 = vpop.f32.mrf.mxu0  ;;  %v17842_v31 = vpop.f32.mrf.mxu1 }
 0x47a   :  { %20298 = vst [vmem:[#allocation19_spill] sm:$0xff] %v17840_v46  ;;  %20299 = vst [vmem:[#allocation20_spill] sm:$0xff] %v17842_v31 }
 0x47b   :  { %v17844_v53 = vpop.f32.mrf.mxu0  ;;  %v17846_v25 = vpop.f32.mrf.mxu1 }
 0x47c   :  { %20300 = vst [vmem:[#allocation21_spill] sm:$0xff] %v17844_v53  ;;  %20301 = vst [vmem:[#allocation22_spill] sm:$0xff] %v17846_v25 }
 0x47d   :  { %v17848_v2 = vpop.f32.mrf.mxu0  ;;  %v17850_v14 = vpop.f32.mrf.mxu1 }
 0x47e   :  { %20302 = vst [vmem:[#allocation23_spill] sm:$0xff] %v17848_v2  ;;  %20303 = vst [vmem:[#allocation24_spill] sm:$0xff] %v17850_v14 }
 0x47f   :  { %v17852_v24 = vpop.f32.mrf.mxu0  ;;  %v17854_v43 = vpop.f32.mrf.mxu1 }
 0x480   :  { %20304 = vst [vmem:[#allocation25_spill] sm:$0xff] %v17852_v24  ;;  %20305 = vst [vmem:[#allocation26_spill] sm:$0xff] %v17854_v43  ;;  %v11566_v43 = vld [vmem:[%s20179_s3 + $0x2f8] sm:$0xff] }
 0x481   :  { %v17856_v1 = vpop.f32.mrf.mxu0  ;;  %v17858_v55 = vpop.f32.mrf.mxu1  ;;  %13809 = vmatprep.subr.mxu1 %v11566_v43 }
 0x482   :  { %20306 = vst [vmem:[#allocation27_spill] sm:$0xff] %v17856_v1  ;;  %20307 = vst [vmem:[#allocation28_spill] sm:$0xff] %v17858_v55  ;;  %13810 = vmatpush3.msra.mxu1 %v11566_v43  ;;  %v11565_v43 = vld [vmem:[%s20179_s3 + $0x2f0] sm:$0xff] }
 0x483   :  { %v17860_v9 = vpop.f32.mrf.mxu0  ;;  %v17862_v46 = vpop.f32.mrf.mxu1  ;;  %13811 = vmatprep.subr.mxu1 %v11565_v43 }
 0x484   :  { %20308 = vst [vmem:[#allocation29_spill] sm:$0xff] %v17860_v9  ;;  %20309 = vst [vmem:[#allocation30_spill] sm:$0xff] %v17862_v46  ;;  %13812 = vmatpush3.msra.mxu1 %v11565_v43  ;;  %v11564_v43 = vld [vmem:[%s20179_s3 + $0x2e8] sm:$0xff] }
 0x485   :  { %v17864_v31 = vpop.f32.mrf.mxu0  ;;  %v17866_v53 = vpop.f32.mrf.mxu1  ;;  %13813 = vmatprep.subr.mxu1 %v11564_v43 }
 0x486   :  { %20310 = vst [vmem:[#allocation31_spill] sm:$0xff] %v17864_v31  ;;  %20311 = vst [vmem:[#allocation32_spill] sm:$0xff] %v17866_v53  ;;  %13814 = vmatpush3.msra.mxu1 %v11564_v43  ;;  %v11563_v43 = vld [vmem:[%s20179_s3 + $0x2e0] sm:$0xff] }
 0x487   :  { %v17868_v25 = vpop.f32.mrf.mxu0  ;;  %v17870_v2 = vpop.f32.mrf.mxu1  ;;  %13815 = vmatprep.subr.mxu1 %v11563_v43 }
 0x488   :  { %20312 = vst [vmem:[#allocation33_spill] sm:$0xff] %v17868_v25  ;;  %20313 = vst [vmem:[#allocation34_spill] sm:$0xff] %v17870_v2  ;;  %13816 = vmatpush3.msra.mxu1 %v11563_v43  ;;  %v4839_v43 = vadd.f32 %v17652_v17, %v17664_v44  ;;  %v4849_v17 = vadd.f32 %v17666_v30, %v17676_v20 }
 0x489   :  { %v17875_v14 = vpop.f32.mrf.mxu0  ;;  %v17877_v1 = vpop.f32.mrf.mxu1 }
 0x48a   :  { %20314 = vst [vmem:[#allocation36_spill] sm:$0xff] %v17875_v14  ;;  %20315 = vst [vmem:[#allocation37_spill] sm:$0xff] %v17877_v1 }
 0x48b   :  { %v17879_v55 = vpop.f32.mrf.mxu0  ;;  %v17881_v46 = vpop.f32.mrf.mxu1 }
 0x48c   :  { %20316 = vst [vmem:[#allocation39_spill] sm:$0xff] %v17879_v55  ;;  %20317 = vst [vmem:[#allocation40_spill] sm:$0xff] %v17881_v46 }
 0x48d   :  { %v17883_v31 = vpop.f32.mrf.mxu0  ;;  %v17885_v53 = vpop.f32.mrf.mxu1 }
 0x48e   :  { %20318 = vst [vmem:[#allocation42_spill] sm:$0xff] %v17883_v31  ;;  %20319 = vst [vmem:[#allocation43_spill] sm:$0xff] %v17885_v53 }
 0x48f   :  { %v17887_v25 = vpop.f32.mrf.mxu0  ;;  %v17889_v2 = vpop.f32.mrf.mxu1 }
 0x490   :  { %20320 = vst [vmem:[#allocation45_spill] sm:$0xff] %v17887_v25  ;;  %20321 = vst [vmem:[#allocation46_spill] sm:$0xff] %v17889_v2 }
 0x491   :  { %v17891_v9 = vpop.f32.mrf.mxu0  ;;  %v17893_v24 = vpop.f32.mrf.mxu1 }
 0x492   :  { %20322 = vst [vmem:[#allocation48_spill] sm:$0xff] %v17891_v9  ;;  %20323 = vst [vmem:[#allocation49_spill] sm:$0xff] %v17893_v24 }
 0x493   :  { %v17895_v14 = vpop.f32.mrf.mxu0  ;;  %v17897_v1 = vpop.f32.mrf.mxu1 }
 0x494   :  { %20324 = vst [vmem:[#allocation51_spill] sm:$0xff] %v17895_v14  ;;  %20325 = vst [vmem:[#allocation52_spill] sm:$0xff] %v17897_v1 }
 0x495   :  { %v17902_v46 = vpop.f32.mrf.mxu0  ;;  %v17904_v31 = vpop.f32.mrf.mxu1 }
 0x496   :  { %20326 = vst [vmem:[#allocation53_spill] sm:$0xff] %v17902_v46  ;;  %20327 = vst [vmem:[#allocation54_spill] sm:$0xff] %v17904_v31 }
 0x497   :  { %v17906_v53 = vpop.f32.mrf.mxu0  ;;  %v17908_v2 = vpop.f32.mrf.mxu1 }
 0x498   :  { %20328 = vst [vmem:[#allocation55_spill] sm:$0xff] %v17906_v53  ;;  %20329 = vst [vmem:[#allocation56_spill] sm:$0xff] %v17908_v2 }
 0x499   :  { %v17910_v9 = vpop.f32.mrf.mxu0  ;;  %v17912_v24 = vpop.f32.mrf.mxu1 }
 0x49a   :  { %20330 = vst [vmem:[#allocation57_spill] sm:$0xff] %v17910_v9  ;;  %20331 = vst [vmem:[#allocation58_spill] sm:$0xff] %v17912_v24 }
 0x49b   :  { %v17914_v14 = vpop.f32.mrf.mxu0  ;;  %v17916_v1 = vpop.f32.mrf.mxu1 }
 0x49c   :  { %20332 = vst [vmem:[#allocation59_spill] sm:$0xff] %v17914_v14  ;;  %20333 = vst [vmem:[#allocation60_spill] sm:$0xff] %v17916_v1 }
 0x49d   :  { %v17918_v25 = vpop.f32.mrf.mxu0  ;;  %v17920_v55 = vpop.f32.mrf.mxu1 }
 0x49e   :  { %20334 = vst [vmem:[#allocation61_spill] sm:$0xff] %v17918_v25  ;;  %20335 = vst [vmem:[#allocation62_spill] sm:$0xff] %v17920_v55 }
 0x49f   :  { %v17925_v31 = vpop.f32.mrf.mxu0  ;;  %v17927_v53 = vpop.f32.mrf.mxu1 }
 0x4a0   :  { %20336 = vst [vmem:[#allocation63_spill] sm:$0xff] %v17925_v31  ;;  %20337 = vst [vmem:[#allocation64_spill] sm:$0xff] %v17927_v53 }
 0x4a1   :  { %v17929_v2 = vpop.f32.mrf.mxu0  ;;  %v17931_v24 = vpop.f32.mrf.mxu1 }
 0x4a2   :  { %20338 = vst [vmem:[#allocation65_spill] sm:$0xff] %v17929_v2  ;;  %20339 = vst [vmem:[#allocation66_spill] sm:$0xff] %v17931_v24 }
 0x4a3   :  { %v17933_v14 = vpop.f32.mrf.mxu0  ;;  %v17935_v1 = vpop.f32.mrf.mxu1 }
 0x4a4   :  { %20340 = vst [vmem:[#allocation67_spill] sm:$0xff] %v17933_v14  ;;  %20341 = vst [vmem:[#allocation68_spill] sm:$0xff] %v17935_v1 }
 0x4a5   :  { %v17937_v25 = vpop.f32.mrf.mxu0  ;;  %v17939_v55 = vpop.f32.mrf.mxu1 }
 0x4a6   :  { %20342 = vst [vmem:[#allocation69_spill] sm:$0xff] %v17937_v25  ;;  %20343 = vst [vmem:[#allocation70_spill] sm:$0xff] %v17939_v55 }
 0x4a7   :  { %v17941_v9 = vpop.f32.mrf.mxu0  ;;  %v17943_v46 = vpop.f32.mrf.mxu1 }
 0x4a8   :  { %20344 = vst [vmem:[#allocation71_spill] sm:$0xff] %v17941_v9  ;;  %20345 = vst [vmem:[#allocation72_spill] sm:$0xff] %v17943_v46  ;;  %v4844_v46 = vadd.f32 %v17646_v58, %v17656_v41  ;;  %v11638_v41 = vld [vmem:[%s20179_s3 + $0x358] sm:$0xff] }
 0x4a9   :  { %v17948_v53 = vpop.f32.mrf.mxu0  ;;  %v17950_v24 = vpop.f32.mrf.mxu1  ;;  %13947 = vmatprep.subr.mxu0 %v11638_v41 }
 0x4aa   :  { %20346 = vst [vmem:[#allocation73_spill] sm:$0xff] %v17950_v24  ;;  %13948 = vmatpush3.msra.mxu0 %v11638_v41 }
 0x4ab   :  { %v17952_v14 = vpop.f32.mrf.mxu0  ;;  %v13691_v25 = vpop.f32.mrf.mxu1 }
 0x4ac   :  { %20347 = vst [vmem:[#allocation74_spill] sm:$0xff] %v17952_v14 }
 0x4ad   :  { %v17954_v1 = vpop.f32.mrf.mxu0 }
 0x4ae   :  { %20348 = vst [vmem:[#allocation75_spill] sm:$0xff] %v17954_v1  ;;  %v11562_v1 = vld [vmem:[%s20179_s3 + $0x2d8] sm:$0xff] }
 0x4af   :  { %v13574_v55 = vpop.f32.mrf.mxu0  ;;  %13817 = vmatprep.subr.mxu1 %v11562_v1 }
 0x4b0   :  { %v17956_v2 = vadd.f32 %v13691_v25, %v13574_v55  ;;  %v4854_v25 = vadd.f32 %v17658_v62, %v17668_v23  ;;  %13818 = vmatpush3.msra.mxu1 %v11562_v1  ;;  %v11561_v62 = vld [vmem:[%s20179_s3 + $0x2d0] sm:$0xff]  ;;  %v4859_v1 = vadd.f32 %v17678_v56, %v17688_v45  ;;  %v11559_v56 = vld [vmem:[%s20179_s3 + $0x2c0] sm:$0xff] }
 0x4b1   :  { %v17958_v9 = vpop.f32.mrf.mxu0  ;;  %v11637_v23 = vld [vmem:[%s20179_s3 + $0x350] sm:$0xff]  ;;  %13819 = vmatprep.subr.mxu1 %v11561_v62  ;;  %v11635_v45 = vld [vmem:[%s20179_s3 + $0x340] sm:$0xff] }
 0x4b2   :  { %20349 = vst [vmem:[#allocation76_spill] sm:$0xff] %v17956_v2  ;;  %20350 = vst [vmem:[#allocation77_spill] sm:$0xff] %v17958_v9  ;;  %13820 = vmatpush3.msra.mxu1 %v11561_v62  ;;  %13949 = vmatprep.subr.mxu0 %v11637_v23 }
 0x4b3   :  { %v13718_v31 = vpop.f32.mrf.mxu0  ;;  %13950 = vmatpush3.msra.mxu0 %v11637_v23 }
 0x4b4   :  { %v5784_v24 = vadd.f32 %v13718_v31, %v4844_v46 }
 0x4b5   :  { %v5474_v14 = vpop.f32.mrf.mxu0 }
 0x4b6   :  { %v5783_v55 = vadd.f32 %v5474_v14, %v4839_v43  ;;  %v5854_v9 = vadd.f32 %v17962_v36, %v5784_v24  ;;  %v4864_v24 = vadd.f32 %v17670_v34, %v17680_v59  ;;  %v11560_v14 = vld [vmem:[%s20179_s3 + $0x2c8] sm:$0xff] }
 0x4b7   :  { %v13721_v58 = vpop.f32.mrf.mxu0  ;;  %v11636_v34 = vld [vmem:[%s20179_s3 + $0x348] sm:$0xff]  ;;  %13821 = vmatprep.subr.mxu1 %v11560_v14 }
 0x4b8   :  { %v5786_v44 = vadd.f32 %v13721_v58, %v4854_v25  ;;  %v5916_v46 = vmax.f32 %v5854_v9, 0.0  ;;  %v5853_v31 = vadd.f32 %v17962_v36, %v5783_v55  ;;  %13951 = vmatprep.subr.mxu0 %v11636_v34  ;;  %13822 = vmatpush3.msra.mxu1 %v11560_v14  ;;  %v4874_v58 = vadd.f32 %v17682_v7, %v17692_v5 }
 0x4b9   :  { %v5484_v2 = vpop.f32.mrf.mxu0  ;;  %13952 = vmatpush3.msra.mxu0 %v11636_v34  ;;  %13823 = vmatprep.subr.mxu1 %v11559_v56  ;;  %v4879_v14 = vadd.f32 %v17702_v60, %v17712_v32  ;;  %v11632_v60 = vld [vmem:[%s20179_s3 + $0x328] sm:$0xff]  ;;  %v4894_v32 = vadd.f32 %v17706_v33, %v17716_v22 }
 0x4ba   :  { %v5856_v30 = vadd.f32 %v17962_v36, %v5786_v44  ;;  %v5785_v20 = vadd.f32 %v5484_v2, %v4849_v17  ;;  %6041 = vrot.lane.b32.xlu1 %v5916_v46, %s14899_s7  ;;  %v5915_v25 = vmax.f32 %v5853_v31, 0.0  ;;  %v4869_v44 = vadd.f32 %v17690_v10, %v17700_v21  ;;  %v11558_v31 = vld [vmem:[%s20179_s3 + $0x2b8] sm:$0xff]  ;;  %13953 = vmatprep.subr.mxu0 %v11635_v45  ;;  %v11557_v10 = vld [vmem:[%s20179_s3 + $0x2b0] sm:$0xff] }
 0x4bb   :  { %v13724_v9 = vpop.f32.mrf.mxu0  ;;  %13824 = vmatpush3.msra.mxu1 %v11559_v56  ;;  %13954 = vmatpush3.msra.mxu0 %v11635_v45  ;;  %v4884_v21 = vadd.f32 %v17694_v39, %v17704_v42  ;;  %v11555_v45 = vld [vmem:[%s20179_s3 + $0x2a0] sm:$0xff] }
 0x4bc   :  { %v5918_v59 = vmax.f32 %v5856_v30, 0.0  ;;  %v5855_v2 = vadd.f32 %v17962_v36, %v5785_v20  ;;  %v5788_v43 = vadd.f32 %v13724_v9, %v4864_v24  ;;  %v11634_v24 = vld [vmem:[%s20179_s3 + $0x338] sm:$0xff]  ;;  %13825 = vmatprep.subr.mxu1 %v11558_v31  ;;  %v11633_v9 = vld [vmem:[%s20179_s3 + $0x330] sm:$0xff] }
 0x4bd   :  { %v5494_v55 = vpop.f32.mrf.mxu0  ;;  %13955 = vmatprep.subr.mxu0 %v11634_v24  ;;  %13826 = vmatpush3.msra.mxu1 %v11558_v31 }
 0x4be   :  { %v5858_v41 = vadd.f32 %v17962_v36, %v5788_v43  ;;  %v5787_v17 = vadd.f32 %v5494_v55, %v4859_v1  ;;  %6045 = vrot.lane.b32.xlu0 %v5918_v59, %s14899_s7  ;;  %6039 = vrot.lane.b32.xlu1 %v5915_v25, %s14899_s7  ;;  %v5917_v62 = vmax.f32 %v5855_v2, 0.0  ;;  %v11556_v43 = vld [vmem:[%s20179_s3 + $0x2a8] sm:$0xff] }
 0x4bf   :  { %v13727_v46 = vpop.f32.mrf.mxu0  ;;  %13956 = vmatpush3.msra.mxu0 %v11634_v24  ;;  %13827 = vmatprep.subr.mxu1 %v11557_v10 }
 0x4c0   :  { %v5920_v23 = vmax.f32 %v5858_v41, 0.0  ;;  %v5857_v7 = vadd.f32 %v17962_v36, %v5787_v17  ;;  %v5790_v5 = vadd.f32 %v13727_v46, %v4874_v58  ;;  %13957 = vmatprep.subr.mxu0 %v11633_v9  ;;  %13828 = vmatpush3.msra.mxu1 %v11557_v10  ;;  %v4889_v58 = vadd.f32 %v17714_v28, %v17724_v54  ;;  %v11631_v46 = vld [vmem:[%s20179_s3 + $0x320] sm:$0xff] }
 0x4c1   :  { %v5504_v30 = vpop.f32.mrf.mxu0  ;;  %13958 = vmatpush3.msra.mxu0 %v11633_v9  ;;  %13829 = vmatprep.subr.mxu1 %v11556_v43  ;;  %v4904_v28 = vadd.f32 %v17718_v19, %v17728_v38 }
 0x4c2   :  { %v5860_v20 = vadd.f32 %v17962_v36, %v5790_v5  ;;  %v5789_v1 = vadd.f32 %v5504_v30, %v4869_v44  ;;  %6043 = vrot.lane.b32.xlu0 %v5917_v62, %s14899_s7  ;;  %6049 = vrot.lane.b32.xlu1 %v5920_v23, %s14899_s7  ;;  %v5919_v59 = vmax.f32 %v5857_v7, 0.0  ;;  %v11630_v23 = vld [vmem:[%s20179_s3 + $0x318] sm:$0xff]  ;;  %v4899_v7 = vadd.f32 %v17726_v11, %v17736_v16 }
 0x4c3   :  { %v13730_v34 = vpop.f32.mrf.mxu0  ;;  %13959 = vmatprep.subr.mxu0 %v11632_v60  ;;  %13830 = vmatpush3.msra.mxu1 %v11556_v43  ;;  %v4919_v43 = vadd.f32 %v17750_v12, %v17760_v57  ;;  %v4929_v12 = vadd.f32 %v17762_v40, %v17772_v26  ;;  %v4939_v40 = vadd.f32 %v17774_v15, %v17784_v4 }
 0x4c4   :  { %v5922_v2 = vmax.f32 %v5860_v20, 0.0  ;;  %v5859_v39 = vadd.f32 %v17962_v36, %v5789_v1  ;;  %v5792_v42 = vadd.f32 %v13730_v34, %v4884_v21  ;;  %13960 = vmatpush3.msra.mxu0 %v11632_v60  ;;  %13831 = vmatprep.subr.mxu1 %v11555_v45  ;;  %v11629_v21 = vld [vmem:[%s20179_s3 + $0x310] sm:$0xff]  ;;  %v4914_v20 = vadd.f32 %v17730_v35, %v17740_v0  ;;  %v11628_v35 = vld [vmem:[%s20179_s3 + $0x308] sm:$0xff] }
 0x4c5   :  { %v5514_v25 = vpop.f32.mrf.mxu0  ;;  %13961 = vmatprep.subr.mxu0 %v11631_v46  ;;  %13832 = vmatpush3.msra.mxu1 %v11555_v45  ;;  %v4909_v1 = vadd.f32 %v17738_v27, %v17748_v13  ;;  %v11627_v13 = vld [vmem:[%s20179_s3 + $0x300] sm:$0xff]  ;;  %v4949_v15 = vadd.f32 %v17786_v63, %v17796_v48  ;;  %v4959_v63 = vadd.f32 %v17798_v49, %v17807_v61 }
 0x4c6   :  { %v5862_v55 = vadd.f32 %v17962_v36, %v5792_v42  ;;  %v5791_v56 = vadd.f32 %v5514_v25, %v4879_v14  ;;  %6053 = vrot.lane.b32.xlu0 %v5922_v2, %s14899_s7  ;;  %6047 = vrot.lane.b32.xlu1 %v5919_v59, %s14899_s7  ;;  %v5921_v17 = vmax.f32 %v5859_v39, 0.0  ;;  %v4924_v39 = vadd.f32 %v17742_v47, %v17752_v8 }
 0x4c7   :  { %v13733_v41 = vpop.f32.mrf.mxu0  ;;  %13962 = vmatpush3.msra.mxu0 %v11631_v46 }
 0x4c8   :  { %v5924_v44 = vmax.f32 %v5862_v55, 0.0  ;;  %v5861_v33 = vadd.f32 %v17962_v36, %v5791_v56  ;;  %v5794_v22 = vadd.f32 %v13733_v41, %v4894_v32  ;;  %13963 = vmatprep.subr.mxu0 %v11630_v23  ;;  %v4934_v56 = vadd.f32 %v17754_v29, %v17764_v18 }
 0x4c9   :  { %v5524_v31 = vpop.f32.mrf.mxu0  ;;  %13964 = vmatpush3.msra.mxu0 %v11630_v23  ;;  %v4944_v29 = vadd.f32 %v17766_v51, %v17776_v50  ;;  %v4954_v51 = vadd.f32 %v17778_v37, %v17788_v52  ;;  %v4964_v37 = vadd.f32 %v17790_v6, %v17800_v3 }
 0x4ca   :  { %v5864_v54 = vadd.f32 %v17962_v36, %v5794_v22  ;;  %v5793_v62 = vadd.f32 %v5524_v31, %v4889_v58  ;;  %6051 = vrot.lane.b32.xlu0 %v5921_v17, %s14899_s7  ;;  %6057 = vrot.lane.b32.xlu1 %v5924_v44, %s14899_s7  ;;  %v5923_v24 = vmax.f32 %v5861_v33, 0.0 }
 0x4cb   :  { %v13736_v5 = vpop.f32.mrf.mxu0  ;;  %13965 = vmatprep.subr.mxu0 %v11629_v21 }
 0x4cc   :  { %v5926_v30 = vmax.f32 %v5864_v54, 0.0  ;;  %v5863_v19 = vadd.f32 %v17962_v36, %v5793_v62  ;;  %v5796_v38 = vadd.f32 %v13736_v5, %v4904_v28  ;;  %13966 = vmatpush3.msra.mxu0 %v11629_v21 }
 0x4cd   :  { %v5534_v10 = vpop.f32.mrf.mxu0  ;;  %13967 = vmatprep.subr.mxu0 %v11628_v35 }
 0x4ce   :  { %v5866_v11 = vadd.f32 %v17962_v36, %v5796_v38  ;;  %v5795_v16 = vadd.f32 %v5534_v10, %v4899_v7  ;;  %6061 = vrot.lane.b32.xlu0 %v5926_v30, %s14899_s7  ;;  %6055 = vrot.lane.b32.xlu1 %v5923_v24, %s14899_s7  ;;  %v5925_v14 = vmax.f32 %v5863_v19, 0.0 }
 0x4cf   :  { %v13739_v9 = vpop.f32.mrf.mxu0  ;;  %13968 = vmatpush3.msra.mxu0 %v11628_v35 }
 0x4d0   :  { %v5928_v34 = vmax.f32 %v5866_v11, 0.0  ;;  %v5865_v59 = vadd.f32 %v17962_v36, %v5795_v16  ;;  %v5798_v2 = vadd.f32 %v13739_v9, %v4914_v20  ;;  %13969 = vmatprep.subr.mxu0 %v11627_v13  ;;  %v20352_v9 = vld [vmem:[#allocation10_spill] sm:$0xff] }
 0x4d1   :  { %v5544_v0 = vpop.f32.mrf.mxu0  ;;  %13970 = vmatpush3.msra.mxu0 %v11627_v13  ;;  %v20356_v13 = vld [vmem:[#allocation12_spill] sm:$0xff] }
 0x4d2   :  { %v5868_v42 = vadd.f32 %v17962_v36, %v5798_v2  ;;  %v5797_v27 = vadd.f32 %v5544_v0, %v4909_v1  ;;  %6059 = vrot.lane.b32.xlu0 %v5925_v14, %s14899_s7  ;;  %6065 = vrot.lane.b32.xlu1 %v5928_v34, %s14899_s7  ;;  %v5927_v60 = vmax.f32 %v5865_v59, 0.0  ;;  %v20353_v14 = vld [vmem:[#allocation9_spill] sm:$0xff]  ;;  %v20354_v59 = vld [vmem:[#allocation11_spill] sm:$0xff] }
 0x4d3   :  { %v13742_v25 = vpop.f32.mrf.mxu0  ;;  %v4974_v6 = vadd.f32 %v20353_v14, %v20352_v9  ;;  %v20355_v2 = vld [vmem:[#allocation35_spill] sm:$0xff]  ;;  %v20371_v9 = vld [vmem:[#allocation20_spill] sm:$0xff] }
 0x4d4   :  { %v5930_v32 = vmax.f32 %v5868_v42, 0.0  ;;  %v5867_v47 = vadd.f32 %v17962_v36, %v5797_v27  ;;  %v5800_v8 = vadd.f32 %v13742_v25, %v4924_v39  ;;  %v4969_v49 = vadd.f32 %v20355_v2, %v20354_v59 }
 0x4d5   :  { %v5554_v55 = vpop.f32.mrf.mxu0 }
 0x4d6   :  { %v5870_v45 = vadd.f32 %v17962_v36, %v5800_v8  ;;  %v5799_v58 = vadd.f32 %v5554_v55, %v4919_v43  ;;  %6069 = vrot.lane.b32.xlu0 %v5930_v32, %s14899_s7  ;;  %6063 = vrot.lane.b32.xlu1 %v5927_v60, %s14899_s7  ;;  %v5929_v41 = vmax.f32 %v5867_v47, 0.0  ;;  %v20357_v43 = vld [vmem:[#allocation38_spill] sm:$0xff]  ;;  %v20358_v47 = vld [vmem:[#allocation13_spill] sm:$0xff] }
 0x4d7   :  { %v13745_v57 = vpop.f32.mrf.mxu0  ;;  %v4984_v25 = vadd.f32 %v20357_v43, %v20356_v13  ;;  %v20359_v8 = vld [vmem:[#allocation41_spill] sm:$0xff]  ;;  %v20375_v13 = vld [vmem:[#allocation24_spill] sm:$0xff] }
 0x4d8   :  { %v5932_v17 = vmax.f32 %v5870_v45, 0.0  ;;  %v5869_v44 = vadd.f32 %v17962_v36, %v5799_v58  ;;  %v5802_v33 = vadd.f32 %v13745_v57, %v4934_v56  ;;  %v4979_v55 = vadd.f32 %v20359_v8, %v20358_v47 }
 0x4d9   :  { %v5564_v22 = vpop.f32.mrf.mxu0 }
 0x4da   :  { %v5872_v18 = vadd.f32 %v17962_v36, %v5802_v33  ;;  %v5801_v46 = vadd.f32 %v5564_v22, %v4929_v12  ;;  %6067 = vrot.lane.b32.xlu0 %v5929_v41, %s14899_s7  ;;  %6073 = vrot.lane.b32.xlu1 %v5932_v17, %s14899_s7  ;;  %v5931_v31 = vmax.f32 %v5869_v44, 0.0  ;;  %v20360_v17 = vld [vmem:[#allocation14_spill] sm:$0xff]  ;;  %v20361_v44 = vld [vmem:[#allocation44_spill] sm:$0xff] }
 0x4db   :  { %v13748_v26 = vpop.f32.mrf.mxu0  ;;  %v4994_v33 = vadd.f32 %v20361_v44, %v20360_v17  ;;  %v20379_v17 = vld [vmem:[#allocation28_spill] sm:$0xff] }
 0x4dc   :  { %v5934_v28 = vmax.f32 %v5872_v18, 0.0  ;;  %v5871_v54 = vadd.f32 %v17962_v36, %v5801_v46  ;;  %v5804_v62 = vadd.f32 %v13748_v26, %v4944_v29  ;;  %v20362_v18 = vld [vmem:[#allocation15_spill] sm:$0xff] }
 0x4dd   :  { %v5574_v23 = vpop.f32.mrf.mxu0  ;;  %v20363_v46 = vld [vmem:[#allocation47_spill] sm:$0xff] }
 0x4de   :  { %v5874_v50 = vadd.f32 %v17962_v36, %v5804_v62  ;;  %v5803_v7 = vadd.f32 %v5574_v23, %v4939_v40  ;;  %6077 = vrot.lane.b32.xlu0 %v5934_v28, %s14899_s7  ;;  %6071 = vrot.lane.b32.xlu1 %v5931_v31, %s14899_s7  ;;  %v5933_v5 = vmax.f32 %v5871_v54, 0.0  ;;  %v4989_v40 = vadd.f32 %v20363_v46, %v20362_v18 }
 0x4df   :  { %v13751_v4 = vpop.f32.mrf.mxu0 }
 0x4e0   :  { %v5936_v24 = vmax.f32 %v5874_v50, 0.0  ;;  %v5873_v30 = vadd.f32 %v17962_v36, %v5803_v7  ;;  %v5806_v19 = vadd.f32 %v13751_v4, %v4954_v51  ;;  %v20364_v51 = vld [vmem:[#allocation17_spill] sm:$0xff]  ;;  %v20365_v50 = vld [vmem:[#allocation50_spill] sm:$0xff] }
 0x4e1   :  { %v5584_v38 = vpop.f32.mrf.mxu0  ;;  %v5004_v7 = vadd.f32 %v20365_v50, %v20364_v51  ;;  %v20383_v51 = vld [vmem:[#allocation32_spill] sm:$0xff] }
 0x4e2   :  { %v5876_v52 = vadd.f32 %v17962_v36, %v5806_v19  ;;  %v5805_v10 = vadd.f32 %v5584_v38, %v4949_v15  ;;  %6075 = vrot.lane.b32.xlu0 %v5933_v5, %s14899_s7  ;;  %6081 = vrot.lane.b32.xlu1 %v5936_v24, %s14899_s7  ;;  %v5935_v21 = vmax.f32 %v5873_v30, 0.0  ;;  %v20366_v5 = vld [vmem:[#allocation19_spill] sm:$0xff]  ;;  %v20367_v24 = vld [vmem:[#allocation16_spill] sm:$0xff] }
 0x4e3   :  { %v13754_v48 = vpop.f32.mrf.mxu0  ;;  %v4999_v30 = vadd.f32 %v20367_v24, %v20366_v5 }
 0x4e4   :  { %v5938_v20 = vmax.f32 %v5876_v52, 0.0  ;;  %v5875_v11 = vadd.f32 %v17962_v36, %v5805_v10  ;;  %v5808_v16 = vadd.f32 %v13754_v48, %v4964_v37  ;;  %v20368_v48 = vld [vmem:[#allocation21_spill] sm:$0xff] }
 0x4e5   :  { %v5594_v1 = vpop.f32.mrf.mxu0 }
 0x4e6   :  { %v5878_v3 = vadd.f32 %v17962_v36, %v5808_v16  ;;  %v5807_v34 = vadd.f32 %v5594_v1, %v4959_v63  ;;  %6085 = vrot.lane.b32.xlu0 %v5938_v20, %s14899_s7  ;;  %6079 = vrot.lane.b32.xlu1 %v5935_v21, %s14899_s7  ;;  %v5937_v35 = vmax.f32 %v5875_v11, 0.0  ;;  %v20369_v21 = vld [vmem:[#allocation18_spill] sm:$0xff]  ;;  %v20370_v1 = vld [vmem:[#allocation23_spill] sm:$0xff] }
 0x4e7   :  { %v13757_v61 = vpop.f32.mrf.mxu0  ;;  %v5014_v20 = vadd.f32 %v20369_v21, %v20368_v48  ;;  %v5009_v14 = vadd.f32 %v20371_v9, %v20370_v1  ;;  %v20387_v48 = vld [vmem:[#allocation37_spill] sm:$0xff] }
 0x4e8   :  { %v5940_v0 = vmax.f32 %v5878_v3, 0.0  ;;  %v5877_v39 = vadd.f32 %v17962_v36, %v5807_v34  ;;  %v5810_v42 = vadd.f32 %v13757_v61, %v4974_v6  ;;  %v20372_v61 = vld [vmem:[#allocation25_spill] sm:$0xff] }
 0x4e9   :  { %v5604_v27 = vpop.f32.mrf.mxu0 }
 0x4ea   :  { %v5880_v60 = vadd.f32 %v17962_v36, %v5810_v42  ;;  %v5809_v32 = vadd.f32 %v5604_v27, %v4969_v49  ;;  %6083 = vrot.lane.b32.xlu0 %v5937_v35, %s14899_s7  ;;  %6089 = vrot.lane.b32.xlu1 %v5940_v0, %s14899_s7  ;;  %v5939_v45 = vmax.f32 %v5877_v39, 0.0  ;;  %v20373_v35 = vld [vmem:[#allocation22_spill] sm:$0xff]  ;;  %v20374_v27 = vld [vmem:[#allocation27_spill] sm:$0xff] }
 0x4eb   :  { %v13760_v56 = vpop.f32.mrf.mxu0  ;;  %v5024_v0 = vadd.f32 %v20373_v35, %v20372_v61  ;;  %v5019_v43 = vadd.f32 %v20375_v13, %v20374_v27  ;;  %v20390_v61 = vld [vmem:[#allocation48_spill] sm:$0xff]  ;;  %v20391_v35 = vld [vmem:[#allocation43_spill] sm:$0xff] }
 0x4ec   :  { %v5942_v58 = vmax.f32 %v5880_v60, 0.0  ;;  %v5879_v12 = vadd.f32 %v17962_v36, %v5809_v32  ;;  %v5812_v57 = vadd.f32 %v13760_v56, %v4984_v25  ;;  %v20376_v56 = vld [vmem:[#allocation29_spill] sm:$0xff] }
 0x4ed   :  { %v5614_v41 = vpop.f32.mrf.mxu0 }
 0x4ee   :  { %v5882_v22 = vadd.f32 %v17962_v36, %v5812_v57  ;;  %v5811_v29 = vadd.f32 %v5614_v41, %v4979_v55  ;;  %6093 = vrot.lane.b32.xlu0 %v5942_v58, %s14899_s7  ;;  %6087 = vrot.lane.b32.xlu1 %v5939_v45, %s14899_s7  ;;  %v5941_v31 = vmax.f32 %v5879_v12, 0.0  ;;  %v20377_v45 = vld [vmem:[#allocation26_spill] sm:$0xff]  ;;  %v20378_v41 = vld [vmem:[#allocation31_spill] sm:$0xff] }
 0x4ef   :  { %v13763_v26 = vpop.f32.mrf.mxu0  ;;  %v5034_v58 = vadd.f32 %v20377_v45, %v20376_v56  ;;  %v5029_v44 = vadd.f32 %v20379_v17, %v20378_v41  ;;  %v20394_v56 = vld [vmem:[#allocation53_spill] sm:$0xff] }
 0x4f0   :  { %v5944_v28 = vmax.f32 %v5882_v22, 0.0  ;;  %v5881_v54 = vadd.f32 %v17962_v36, %v5811_v29  ;;  %v5814_v62 = vadd.f32 %v13763_v26, %v4994_v33  ;;  %v20380_v26 = vld [vmem:[#allocation33_spill] sm:$0xff] }
 0x4f1   :  { %v5624_v23 = vpop.f32.mrf.mxu0  ;;  %v20395_v45 = vld [vmem:[#allocation49_spill] sm:$0xff] }
 0x4f2   :  { %v5884_v15 = vadd.f32 %v17962_v36, %v5814_v62  ;;  %v5813_v4 = vadd.f32 %v5624_v23, %v4989_v40  ;;  %6091 = vrot.lane.b32.xlu0 %v5941_v31, %s14899_s7  ;;  %6097 = vrot.lane.b32.xlu1 %v5944_v28, %s14899_s7  ;;  %v5943_v38 = vmax.f32 %v5881_v54, 0.0  ;;  %v20381_v31 = vld [vmem:[#allocation30_spill] sm:$0xff]  ;;  %v20382_v23 = vld [vmem:[#allocation36_spill] sm:$0xff] }
 0x4f3   :  { %v13766_v19 = vpop.f32.mrf.mxu0  ;;  %v5044_v28 = vadd.f32 %v20381_v31, %v20380_v26  ;;  %v5039_v50 = vadd.f32 %v20383_v51, %v20382_v23  ;;  %v20398_v26 = vld [vmem:[#allocation57_spill] sm:$0xff]  ;;  %v20399_v31 = vld [vmem:[#allocation54_spill] sm:$0xff] }
 0x4f4   :  { %v5946_v37 = vmax.f32 %v5884_v15, 0.0  ;;  %v5883_v52 = vadd.f32 %v17962_v36, %v5813_v4  ;;  %v5816_v10 = vadd.f32 %v13766_v19, %v5004_v7  ;;  %v20384_v19 = vld [vmem:[#allocation39_spill] sm:$0xff] }
 0x4f5   :  { %v5634_v63 = vpop.f32.mrf.mxu0 }
 0x4f6   :  { %v5886_v11 = vadd.f32 %v17962_v36, %v5816_v10  ;;  %v5815_v16 = vadd.f32 %v5634_v63, %v4999_v30  ;;  %6101 = vrot.lane.b32.xlu0 %v5946_v37, %s14899_s7  ;;  %6095 = vrot.lane.b32.xlu1 %v5943_v38, %s14899_s7  ;;  %v5945_v3 = vmax.f32 %v5883_v52, 0.0  ;;  %v20385_v38 = vld [vmem:[#allocation34_spill] sm:$0xff] }
 0x4f7   :  { %v13769_v6 = vpop.f32.mrf.mxu0  ;;  %v5054_v37 = vadd.f32 %v20385_v38, %v20384_v19  ;;  %v20386_v63 = vld [vmem:[#allocation42_spill] sm:$0xff]  ;;  %v20402_v19 = vld [vmem:[#allocation61_spill] sm:$0xff] }
 0x4f8   :  { %v5948_v34 = vmax.f32 %v5886_v11, 0.0  ;;  %v5885_v59 = vadd.f32 %v17962_v36, %v5815_v16  ;;  %v5818_v2 = vadd.f32 %v13769_v6, %v5014_v20  ;;  %v5049_v21 = vadd.f32 %v20387_v48, %v20386_v63  ;;  %v18193_v11 = vld [vmem:[%s20179_s3 + $0x298] sm:$0xff]  ;;  %v20403_v38 = vld [vmem:[#allocation58_spill] sm:$0xff] }
 0x4f9   :  { %v5644_v49 = vpop.f32.mrf.mxu0  ;;  %13878 = vmatprep.subr.mxu1 %v18193_v11 }
 0x4fa   :  { %v5888_v39 = vadd.f32 %v17962_v36, %v5818_v2  ;;  %v5817_v42 = vadd.f32 %v5644_v49, %v5009_v14  ;;  %6099 = vrot.lane.b32.xlu0 %v5945_v3, %s14899_s7  ;;  %6105 = vrot.lane.b32.xlu1 %v5948_v34, %s14899_s7  ;;  %v5947_v60 = vmax.f32 %v5885_v59, 0.0  ;;  %v20388_v3 = vld [vmem:[#allocation45_spill] sm:$0xff]  ;;  %v20389_v34 = vld [vmem:[#allocation40_spill] sm:$0xff] }
 0x4fb   :  { %v13772_v25 = vpop.f32.mrf.mxu0  ;;  %v5064_v59 = vadd.f32 %v20389_v34, %v20388_v3  ;;  %v20406_v3 = vld [vmem:[#allocation65_spill] sm:$0xff]  ;;  %v20407_v34 = vld [vmem:[#allocation62_spill] sm:$0xff] }
 0x4fc   :  { %v5950_v32 = vmax.f32 %v5888_v39, 0.0  ;;  %v5887_v47 = vadd.f32 %v17962_v36, %v5817_v42  ;;  %v5820_v8 = vadd.f32 %v13772_v25, %v5024_v0  ;;  %v5059_v0 = vadd.f32 %v20391_v35, %v20390_v61 }
 0x4fd   :  { %v5654_v55 = vpop.f32.mrf.mxu0 }
 0x4fe   :  { %v5890_v12 = vadd.f32 %v17962_v36, %v5820_v8  ;;  %v5819_v57 = vadd.f32 %v5654_v55, %v5019_v43  ;;  %6109 = vrot.lane.b32.xlu0 %v5950_v32, %s14899_s7  ;;  %6103 = vrot.lane.b32.xlu1 %v5947_v60, %s14899_s7  ;;  %v5949_v22 = vmax.f32 %v5887_v47, 0.0  ;;  %v20392_v60 = vld [vmem:[#allocation51_spill] sm:$0xff]  ;;  %v20393_v32 = vld [vmem:[#allocation46_spill] sm:$0xff] }
 0x4ff   :  { %v13775_v33 = vpop.f32.mrf.mxu0  ;;  %v5074_v47 = vadd.f32 %v20393_v32, %v20392_v60  ;;  %v20410_v60 = vld [vmem:[#allocation69_spill] sm:$0xff]  ;;  %v20411_v32 = vld [vmem:[#allocation66_spill] sm:$0xff] }
 0x500   :  { %v5952_v29 = vmax.f32 %v5890_v12, 0.0  ;;  %v5889_v18 = vadd.f32 %v17962_v36, %v5819_v57  ;;  %v5822_v46 = vadd.f32 %v13775_v33, %v5034_v58  ;;  %v5069_v58 = vadd.f32 %v20395_v45, %v20394_v56 }
 0x501   :  { %v5664_v40 = vpop.f32.mrf.mxu0 }
 0x502   :  { %v5892_v54 = vadd.f32 %v17962_v36, %v5822_v46  ;;  %v5821_v62 = vadd.f32 %v5664_v40, %v5029_v44  ;;  %6107 = vrot.lane.b32.xlu0 %v5949_v22, %s14899_s7  ;;  %6113 = vrot.lane.b32.xlu1 %v5952_v29, %s14899_s7  ;;  %v5951_v15 = vmax.f32 %v5889_v18, 0.0  ;;  %v20396_v22 = vld [vmem:[#allocation55_spill] sm:$0xff]  ;;  %v20397_v29 = vld [vmem:[#allocation52_spill] sm:$0xff] }
 0x503   :  { %v13778_v7 = vpop.f32.mrf.mxu0  ;;  %v5084_v18 = vadd.f32 %v20397_v29, %v20396_v22  ;;  %v20414_v29 = vld [vmem:[#allocation70_spill] sm:$0xff] }
 0x504   :  { %v5954_v4 = vmax.f32 %v5892_v54, 0.0  ;;  %v5891_v5 = vadd.f32 %v17962_v36, %v5821_v62  ;;  %v5824_v24 = vadd.f32 %v13778_v7, %v5044_v28  ;;  %v5079_v28 = vadd.f32 %v20399_v31, %v20398_v26 }
 0x505   :  { %v5674_v30 = vpop.f32.mrf.mxu0 }
 0x506   :  { %v5894_v52 = vadd.f32 %v17962_v36, %v5824_v24  ;;  %v5823_v10 = vadd.f32 %v5674_v30, %v5039_v50  ;;  %6117 = vrot.lane.b32.xlu0 %v5954_v4, %s14899_s7  ;;  %6111 = vrot.lane.b32.xlu1 %v5951_v15, %s14899_s7  ;;  %v5953_v16 = vmax.f32 %v5891_v5, 0.0  ;;  %v20400_v15 = vld [vmem:[#allocation59_spill] sm:$0xff]  ;;  %v20401_v4 = vld [vmem:[#allocation56_spill] sm:$0xff] }
 0x507   :  { %v13781_v20 = vpop.f32.mrf.mxu0  ;;  %v5094_v5 = vadd.f32 %v20401_v4, %v20400_v15  ;;  %v20418_v15 = vld [vmem:[#allocation73_spill] sm:$0xff] }
 0x508   :  { %v5956_v1 = vmax.f32 %v5894_v52, 0.0  ;;  %v5893_v9 = vadd.f32 %v17962_v36, %v5823_v10  ;;  %v5826_v14 = vadd.f32 %v13781_v20, %v5054_v37  ;;  %v5089_v37 = vadd.f32 %v20403_v38, %v20402_v19 }
 0x509   :  { %v5684_v6 = vpop.f32.mrf.mxu0 }
 0x50a   :  { %v5896_v2 = vadd.f32 %v17962_v36, %v5826_v14  ;;  %v5825_v49 = vadd.f32 %v5684_v6, %v5049_v21  ;;  %6115 = vrot.lane.b32.xlu0 %v5953_v16, %s14899_s7  ;;  %6121 = vrot.lane.b32.xlu1 %v5956_v1, %s14899_s7  ;;  %v5955_v42 = vmax.f32 %v5893_v9, 0.0  ;;  %v20404_v16 = vld [vmem:[#allocation63_spill] sm:$0xff]  ;;  %v20405_v1 = vld [vmem:[#allocation60_spill] sm:$0xff] }
 0x50b   :  { %v13784_v39 = vpop.f32.mrf.mxu0  ;;  %v5104_v9 = vadd.f32 %v20405_v1, %v20404_v16 }
 0x50c   :  { %v5958_v27 = vmax.f32 %v5896_v2, 0.0  ;;  %v5895_v13 = vadd.f32 %v17962_v36, %v5825_v49  ;;  %v5828_v43 = vadd.f32 %v13784_v39, %v5064_v59  ;;  %v5099_v59 = vadd.f32 %v20407_v34, %v20406_v3 }
 0x50d   :  { %v5694_v25 = vpop.f32.mrf.mxu0 }
 0x50e   :  { %v5898_v8 = vadd.f32 %v17962_v36, %v5828_v43  ;;  %v5827_v55 = vadd.f32 %v5694_v25, %v5059_v0  ;;  %6125 = vrot.lane.b32.xlu0 %v5958_v27, %s14899_s7  ;;  %6119 = vrot.lane.b32.xlu1 %v5955_v42, %s14899_s7  ;;  %v5957_v57 = vmax.f32 %v5895_v13, 0.0  ;;  %v20408_v42 = vld [vmem:[#allocation67_spill] sm:$0xff]  ;;  %v20409_v27 = vld [vmem:[#allocation64_spill] sm:$0xff] }
 0x50f   :  { %v13787_v12 = vpop.f32.mrf.mxu0  ;;  %v5114_v13 = vadd.f32 %v20409_v27, %v20408_v42 }
 0x510   :  { %v5960_v41 = vmax.f32 %v5898_v8, 0.0  ;;  %v5897_v17 = vadd.f32 %v17962_v36, %v5827_v55  ;;  %v5830_v44 = vadd.f32 %v13787_v12, %v5074_v47  ;;  %v5109_v47 = vadd.f32 %v20411_v32, %v20410_v60 }
 0x511   :  { %v5704_v33 = vpop.f32.mrf.mxu0 }
 0x512   :  { %v5900_v46 = vadd.f32 %v17962_v36, %v5830_v44  ;;  %v5829_v40 = vadd.f32 %v5704_v33, %v5069_v58  ;;  %6123 = vrot.lane.b32.xlu0 %v5957_v57, %s14899_s7  ;;  %6129 = vrot.lane.b32.xlu1 %v5960_v41, %s14899_s7  ;;  %v5959_v62 = vmax.f32 %v5897_v17, 0.0  ;;  %v20412_v17 = vld [vmem:[#allocation71_spill] sm:$0xff]  ;;  %v20413_v44 = vld [vmem:[#allocation68_spill] sm:$0xff] }
 0x513   :  { %v13790_v54 = vpop.f32.mrf.mxu0  ;;  %v5124_v33 = vadd.f32 %v20413_v44, %v20412_v17 }
 0x514   :  { %v5962_v23 = vmax.f32 %v5900_v46, 0.0  ;;  %v5899_v51 = vadd.f32 %v17962_v36, %v5829_v40  ;;  %v5832_v50 = vadd.f32 %v13790_v54, %v5084_v18  ;;  %v5119_v18 = vadd.f32 %v20414_v29, %v17948_v53 }
 0x515   :  { %v5714_v7 = vpop.f32.mrf.mxu0 }
 0x516   :  { %v5902_v24 = vadd.f32 %v17962_v36, %v5832_v50  ;;  %v5831_v30 = vadd.f32 %v5714_v7, %v5079_v28  ;;  %6133 = vrot.lane.b32.xlu0 %v5962_v23, %s14899_s7  ;;  %6127 = vrot.lane.b32.xlu1 %v5959_v62, %s14899_s7  ;;  %v5961_v10 = vmax.f32 %v5899_v51, 0.0  ;;  %v20415_v23 = vld [vmem:[#allocation74_spill] sm:$0xff]  ;;  %v20416_v51 = vld [vmem:[#allocation72_spill] sm:$0xff]  ;;  %v20417_v7 = vld [vmem:[#allocation75_spill] sm:$0xff] }
 0x517   :  { %v13793_v52 = vpop.f32.mrf.mxu0  ;;  %v5134_v50 = vadd.f32 %v20416_v51, %v20415_v23  ;;  %v5129_v4 = vadd.f32 %v20418_v15, %v20417_v7  ;;  %v11550_v23 = vld [vmem:[%s20179_s3 + $0x278] sm:$0xff] }
 0x518   :  { %v5964_v63 = vmax.f32 %v5902_v24, 0.0  ;;  %v5901_v48 = vadd.f32 %v17962_v36, %v5831_v30  ;;  %v5834_v21 = vadd.f32 %v13793_v52, %v5094_v5 }
 0x519   :  { %v5724_v20 = vpop.f32.mrf.mxu0 }
 0x51a   :  { %v5904_v14 = vadd.f32 %v17962_v36, %v5834_v21  ;;  %v5833_v6 = vadd.f32 %v5724_v20, %v5089_v37  ;;  %6131 = vrot.lane.b32.xlu0 %v5961_v10, %s14899_s7  ;;  %6137 = vrot.lane.b32.xlu1 %v5964_v63, %s14899_s7  ;;  %v5963_v49 = vmax.f32 %v5901_v48, 0.0  ;;  %v20419_v63 = vld [vmem:[#allocation76_spill] sm:$0xff] }
 0x51b   :  { %v13796_v2 = vpop.f32.mrf.mxu0 }
 0x51c   :  { %v5966_v61 = vmax.f32 %v5904_v14, 0.0  ;;  %v5903_v35 = vadd.f32 %v17962_v36, %v5833_v6  ;;  %v5836_v0 = vadd.f32 %v13796_v2, %v5104_v9 }
 0x51d   :  { %v5734_v39 = vpop.f32.mrf.mxu0 }
 0x51e   :  { %v5906_v43 = vadd.f32 %v17962_v36, %v5836_v0  ;;  %v5835_v25 = vadd.f32 %v5734_v39, %v5099_v59  ;;  %6141 = vrot.lane.b32.xlu0 %v5966_v61, %s14899_s7  ;;  %6135 = vrot.lane.b32.xlu1 %v5963_v49, %s14899_s7  ;;  %v5965_v55 = vmax.f32 %v5903_v35, 0.0 }
 0x51f   :  { %v13799_v8 = vpop.f32.mrf.mxu0 }
 0x520   :  { %v5968_v56 = vmax.f32 %v5906_v43, 0.0  ;;  %v5905_v45 = vadd.f32 %v17962_v36, %v5835_v25  ;;  %v5838_v58 = vadd.f32 %v13799_v8, %v5114_v13 }
 0x521   :  { %v5744_v12 = vpop.f32.mrf.mxu0 }
 0x522   :  { %v5908_v57 = vadd.f32 %v17962_v36, %v5838_v58  ;;  %v5837_v41 = vadd.f32 %v5744_v12, %v5109_v47  ;;  %6139 = vrot.lane.b32.xlu0 %v5965_v55, %s14899_s7  ;;  %6145 = vrot.lane.b32.xlu1 %v5968_v56, %s14899_s7  ;;  %v5967_v46 = vmax.f32 %v5905_v45, 0.0 }
 0x523   :  { %v13802_v22 = vpop.f32.mrf.mxu0 }
 0x524   :  { %v5970_v40 = vmax.f32 %v5908_v57, 0.0  ;;  %v5907_v26 = vadd.f32 %v17962_v36, %v5837_v41  ;;  %v5840_v28 = vadd.f32 %v13802_v22, %v5124_v33  ;;  %v11553_v41 = vld [vmem:[%s20179_s3 + $0x290] sm:$0xff] }
 0x525   :  { %v5754_v31 = vpop.f32.mrf.mxu0 }
 0x526   :  { %v5839_v54 = vadd.f32 %v5754_v31, %v5119_v18  ;;  %6149 = vrot.lane.b32.xlu0 %v5970_v40, %s14899_s7  ;;  %6143 = vrot.lane.b32.xlu1 %v5967_v46, %s14899_s7  ;;  %v5969_v5 = vmax.f32 %v5907_v26, 0.0  ;;  %v5910_v30 = vadd.f32 %v17962_v36, %v5840_v28  ;;  %v11552_v18 = vld [vmem:[%s20179_s3 + $0x288] sm:$0xff]  ;;  %v11551_v46 = vld [vmem:[%s20179_s3 + $0x280] sm:$0xff] }
 0x527   :  { %v13805_v62 = vpop.f32.mrf.mxu0 }
 0x528   :  { %v5909_v53 = vadd.f32 %v17962_v36, %v5839_v54  ;;  %v5842_v38 = vadd.f32 %v13805_v62, %v5134_v50  ;;  %v5972_v20 = vmax.f32 %v5910_v30, 0.0 }
 0x529   :  { %v5764_v24 = vpop.f32.mrf.mxu0 }
 0x52a   :  { %v5971_v19 = vmax.f32 %v5909_v53, 0.0  ;;  %v5841_v37 = vadd.f32 %v5764_v24, %v5129_v4  ;;  %6147 = vrot.lane.b32.xlu0 %v5969_v5, %s14899_s7  ;;  %v5912_v16 = vadd.f32 %v17962_v36, %v5842_v38  ;;  %v11549_v5 = vld [vmem:[%s20179_s3 + $0x270] sm:$0xff]  ;;  %v11548_v53 = vld [vmem:[%s20179_s3 + $0x268] sm:$0xff] }
 0x52b   :  { %v13808_v52 = vpop.f32.mrf.mxu0 }
 0x52c   :  { %v5911_v10 = vadd.f32 %v17962_v36, %v5841_v37  ;;  %v18264_v48 = vadd.f32 %v13808_v52, %v20419_v63  ;;  %v6042_v21 = vpop.permute.xlu1 %6041  ;;  %6151 = vrot.lane.b32.xlu1 %v5971_v19, %s14899_s7  ;;  %v5974_v6 = vmax.f32 %v5912_v16, 0.0  ;;  %v11547_v63 = vld [vmem:[%s20179_s3 + $0x260] sm:$0xff] }
 0x52d   :  { %6227 = vst.msk [vmem:[#allocation2 + $0x18] sm:$0xff] %vm6225_vm9, %v6042_v21 }
 0x52e   :  { %20420 = vst [vmem:[#allocation10_spill] sm:$0xff] %v18264_v48  ;;  %v5973_v1 = vmax.f32 %v5911_v10, 0.0  ;;  %v11806_v48 = vld [vmem:[%s20179_s3 + $0x4c8] sm:$0xff] }
 0x530   :  { %v6046_v9 = vpop.permute.xlu0 %6045  ;;  %6155 = vrot.lane.b32.xlu0 %v5973_v1, %s14899_s7  ;;  %6153 = vrot.lane.b32.xlu1 %v5972_v20, %s14899_s7  ;;  %v6040_v14 = vpop.permute.xlu1 %6039 }
 0x531   :  { %6229 = vst.msk [vmem:[#allocation2 + $0x28] sm:$0xff] %vm6225_vm9, %v6046_v9  ;;  %6226 = vst.msk [vmem:[#allocation2 + $0x10] sm:$0xff] %vm6225_vm9, %v6040_v14  ;;  %v11546_v14 = vld [vmem:[%s20179_s3 + $0x258] sm:$0xff] }
 0x534   :  { %6157 = vrot.lane.b32.xlu0 %v5974_v6, %s14899_s7  ;;  %v6044_v3 = vpop.permute.xlu0 %6043  ;;  %v6050_v34 = vpop.permute.xlu1 %6049  ;;  %v6289_v59 = vld [vmem:[#allocation2 + $0x18] sm:$0xff]  ;;  %v11545_v6 = vld [vmem:[%s20179_s3 + $0x250] sm:$0xff] }
 0x535   :  { %6228 = vst.msk [vmem:[#allocation2 + $0x20] sm:$0xff] %vm6225_vm9, %v6044_v3  ;;  %6231 = vst.msk [vmem:[#allocation2 + $0x38] sm:$0xff] %vm6225_vm9, %v6050_v34 }
 0x538   :  { %v6291_v2 = vld [vmem:[#allocation2 + $0x28] sm:$0xff]  ;;  %v6054_v49 = vpop.permute.xlu0 %6053  ;;  %v6048_v61 = vpop.permute.xlu1 %6047  ;;  %v6288_v0 = vld [vmem:[#allocation2 + $0x10] sm:$0xff] }
 0x539   :  { %v6349_v35 = vmax.f32 %v6289_v59, %v6291_v2  ;;  %6233 = vst.msk [vmem:[#allocation2 + $0x48] sm:$0xff] %vm6225_vm9, %v6054_v49  ;;  %6230 = vst.msk [vmem:[#allocation2 + $0x30] sm:$0xff] %vm6225_vm9, %v6048_v61 }
 0x53b   :  { %6379 = vst.msk [vmem:[#allocation2 + $0x18] sm:$0xff] %vm748_vm8, %v6349_v35 }
 0x53c   :  { %v6290_v39 = vld [vmem:[#allocation2 + $0x20] sm:$0xff]  ;;  %v6052_v42 = vpop.permute.xlu0 %6051  ;;  %v6058_v27 = vpop.permute.xlu1 %6057  ;;  %v6293_v43 = vld [vmem:[#allocation2 + $0x38] sm:$0xff] }
 0x53d   :  { %v6348_v13 = vmax.f32 %v6288_v0, %v6290_v39  ;;  %6232 = vst.msk [vmem:[#allocation2 + $0x40] sm:$0xff] %vm6225_vm9, %v6052_v42  ;;  %6235 = vst.msk [vmem:[#allocation2 + $0x58] sm:$0xff] %vm6225_vm9, %v6058_v27  ;;  %v11544_v0 = vld [vmem:[%s20179_s3 + $0x248] sm:$0xff] }
 0x53f   :  { %6378 = vst.msk [vmem:[#allocation2 + $0x10] sm:$0xff] %vm748_vm8, %v6348_v13 }
 0x540   :  { %v6295_v25 = vld [vmem:[#allocation2 + $0x48] sm:$0xff]  ;;  %v6062_v60 = vpop.permute.xlu0 %6061  ;;  %v6056_v32 = vpop.permute.xlu1 %6055  ;;  %v6292_v8 = vld [vmem:[#allocation2 + $0x30] sm:$0xff] }
 0x541   :  { %v6351_v47 = vmax.f32 %v6293_v43, %v6295_v25  ;;  %6237 = vst.msk [vmem:[#allocation2 + $0x68] sm:$0xff] %vm6225_vm9, %v6062_v60  ;;  %6234 = vst.msk [vmem:[#allocation2 + $0x50] sm:$0xff] %vm6225_vm9, %v6056_v32  ;;  %v11543_v25 = vld [vmem:[%s20179_s3 + $0x240] sm:$0xff] }
 0x542   :  { %v18292_v57 = vld [vmem:[#allocation2 + $0x18] sm:$0xff] }
 0x543   :  { %6381 = vst.msk [vmem:[#allocation2 + $0x28] sm:$0xff] %vm748_vm8, %v6351_v47 }
 0x544   :  { %v6294_v55 = vld [vmem:[#allocation2 + $0x40] sm:$0xff]  ;;  %v6060_v56 = vpop.permute.xlu0 %6059  ;;  %v6066_v45 = vpop.permute.xlu1 %6065  ;;  %v6297_v17 = vld [vmem:[#allocation2 + $0x58] sm:$0xff] }
 0x545   :  { %v6350_v58 = vmax.f32 %v6292_v8, %v6294_v55  ;;  %6236 = vst.msk [vmem:[#allocation2 + $0x60] sm:$0xff] %vm6225_vm9, %v6060_v56  ;;  %6239 = vst.msk [vmem:[#allocation2 + $0x78] sm:$0xff] %vm6225_vm9, %v6066_v45 }
 0x546   :  { %v18287_v12 = vld [vmem:[#allocation2 + $0x10] sm:$0xff] }
 0x547   :  { %6380 = vst.msk [vmem:[#allocation2 + $0x20] sm:$0xff] %vm748_vm8, %v6350_v58  ;;  %13833 = vmatprep.mubr.msk.f32.mxu1 %vm748_vm8, %v18287_v12 }
 0x548   :  { %v6299_v44 = vld [vmem:[#allocation2 + $0x68] sm:$0xff]  ;;  %v6070_v33 = vpop.permute.xlu0 %6069  ;;  %13834 = vmatmul.mubr.msk.f32.vlgmr.msra.gmra.mxu1 %vm748_vm8, %v18292_v57  ;;  %v6064_v22 = vpop.permute.xlu1 %6063  ;;  %v6296_v40 = vld [vmem:[#allocation2 + $0x50] sm:$0xff] }
 0x549   :  { %v6353_v29 = vmax.f32 %v6297_v17, %v6299_v44  ;;  %6241 = vst.msk [vmem:[#allocation2 + $0x88] sm:$0xff] %vm6225_vm9, %v6070_v33  ;;  %6238 = vst.msk [vmem:[#allocation2 + $0x70] sm:$0xff] %vm6225_vm9, %v6064_v22  ;;  %13879 = vmatpush3.msra.mxu1 %v18193_v11 }
 0x54a   :  { %13880 = vmatprep.subr.mxu1 %v11553_v41  ;;  %v18318_v62 = vld [vmem:[#allocation2 + $0x28] sm:$0xff] }
 0x54b   :  { %6383 = vst.msk [vmem:[#allocation2 + $0x38] sm:$0xff] %vm748_vm8, %v6353_v29  ;;  %13881 = vmatpush3.msra.mxu1 %v11553_v41 }
 0x54c   :  { %v6298_v26 = vld [vmem:[#allocation2 + $0x60] sm:$0xff]  ;;  %v6068_v31 = vpop.permute.xlu0 %6067  ;;  %v6074_v28 = vpop.permute.xlu1 %6073  ;;  %13882 = vmatprep.subr.mxu1 %v11552_v18  ;;  %v6301_v51 = vld [vmem:[#allocation2 + $0x78] sm:$0xff] }
 0x54d   :  { %v6352_v54 = vmax.f32 %v6296_v40, %v6298_v26  ;;  %6240 = vst.msk [vmem:[#allocation2 + $0x80] sm:$0xff] %vm6225_vm9, %v6068_v31  ;;  %6243 = vst.msk [vmem:[#allocation2 + $0x98] sm:$0xff] %vm6225_vm9, %v6074_v28  ;;  %13883 = vmatpush3.msra.mxu1 %v11552_v18 }
 0x54e   :  { %v18311_v11 = vld [vmem:[#allocation2 + $0x20] sm:$0xff]  ;;  %13884 = vmatprep.subr.mxu1 %v11551_v46 }
 0x54f   :  { %6382 = vst.msk [vmem:[#allocation2 + $0x30] sm:$0xff] %vm748_vm8, %v6352_v54  ;;  %13836 = vmatprep.mubr.msk.f32.mxu1 %vm748_vm8, %v18311_v11  ;;  %13971 = vmatprep.mubr.msk.f32.mxu0 %vm748_vm8, %v18311_v11 }
 0x550   :  { %v6303_v50 = vld [vmem:[#allocation2 + $0x88] sm:$0xff]  ;;  %v6078_v7 = vpop.permute.xlu0 %6077  ;;  %13837 = vmatmul.mubr.msk.f32.gmra.mxu1 %vm748_vm8, %v18318_v62  ;;  %13972 = vmatmul.mubr.msk.f32.vlgmr.msra.gmra.mxu0 %vm748_vm8, %v18318_v62  ;;  %v6072_v15 = vpop.permute.xlu1 %6071  ;;  %v6300_v24 = vld [vmem:[#allocation2 + $0x70] sm:$0xff] }
 0x551   :  { %v6355_v4 = vmax.f32 %v6301_v51, %v6303_v50  ;;  %6245 = vst.msk [vmem:[#allocation2 + $0xa8] sm:$0xff] %vm6225_vm9, %v6078_v7  ;;  %6242 = vst.msk [vmem:[#allocation2 + $0x90] sm:$0xff] %vm6225_vm9, %v6072_v15  ;;  %13885 = vmatpush3.msra.mxu1 %v11551_v46  ;;  %v20421_v7 = vmov 0.0  }
 0x552   :  { %13886 = vmatprep.subr.mxu1 %v11550_v23  ;;  %v18345_v10 = vld [vmem:[#allocation2 + $0x38] sm:$0xff] }
 0x553   :  { %6385 = vst.msk [vmem:[#allocation2 + $0x48] sm:$0xff] %vm748_vm8, %v6355_v4  ;;  %13887 = vmatpush3.msra.mxu1 %v11550_v23 }
 0x554   :  { %v6302_v30 = vld [vmem:[#allocation2 + $0x80] sm:$0xff]  ;;  %v6076_v19 = vpop.permute.xlu0 %6075  ;;  %v6082_v38 = vpop.permute.xlu1 %6081  ;;  %13888 = vmatprep.subr.mxu1 %v11549_v5  ;;  %v6305_v21 = vld [vmem:[#allocation2 + $0x98] sm:$0xff] }
 0x555   :  { %v6354_v37 = vmax.f32 %v6300_v24, %v6302_v30  ;;  %6244 = vst.msk [vmem:[#allocation2 + $0xa0] sm:$0xff] %vm6225_vm9, %v6076_v19  ;;  %6247 = vst.msk [vmem:[#allocation2 + $0xb8] sm:$0xff] %vm6225_vm9, %v6082_v38  ;;  %13889 = vmatpush3.msra.mxu1 %v11549_v5 }
 0x556   :  { %v18338_v52 = vld [vmem:[#allocation2 + $0x30] sm:$0xff]  ;;  %13890 = vmatprep.subr.mxu1 %v11548_v53 }
 0x557   :  { %6384 = vst.msk [vmem:[#allocation2 + $0x40] sm:$0xff] %vm748_vm8, %v6354_v37  ;;  %13839 = vmatprep.mubr.msk.f32.mxu1 %vm748_vm8, %v18338_v52  ;;  %13974 = vmatprep.mubr.msk.f32.mxu0 %vm748_vm8, %v18338_v52 }
 0x558   :  { %v6307_v20 = vld [vmem:[#allocation2 + $0xa8] sm:$0xff]  ;;  %v6086_v16 = vpop.permute.xlu0 %6085  ;;  %13840 = vmatmul.mubr.msk.f32.gmra.mxu1 %vm748_vm8, %v18345_v10  ;;  %13975 = vmatmul.mubr.msk.f32.gmra.mxu0 %vm748_vm8, %v18345_v10  ;;  %v6080_v1 = vpop.permute.xlu1 %6079  ;;  %v6304_v3 = vld [vmem:[#allocation2 + $0x90] sm:$0xff] }
 0x559   :  { %v6357_v9 = vmax.f32 %v6305_v21, %v6307_v20  ;;  %6249 = vst.msk [vmem:[#allocation2 + $0xc8] sm:$0xff] %vm6225_vm9, %v6086_v16  ;;  %6246 = vst.msk [vmem:[#allocation2 + $0xb0] sm:$0xff] %vm6225_vm9, %v6080_v1  ;;  %13891 = vmatpush3.msra.mxu1 %v11548_v53 }
 0x55a   :  { %13892 = vmatprep.subr.mxu1 %v11547_v63  ;;  %v18372_v35 = vld [vmem:[#allocation2 + $0x48] sm:$0xff] }
 0x55b   :  { %6387 = vst.msk [vmem:[#allocation2 + $0x58] sm:$0xff] %vm748_vm8, %v6357_v9  ;;  %13893 = vmatpush3.msra.mxu1 %v11547_v63 }
 0x55c   :  { %v6306_v34 = vld [vmem:[#allocation2 + $0xa0] sm:$0xff]  ;;  %v6084_v59 = vpop.permute.xlu0 %6083  ;;  %v6090_v2 = vpop.permute.xlu1 %6089  ;;  %13894 = vmatprep.subr.mxu1 %v11546_v14  ;;  %v6309_v39 = vld [vmem:[#allocation2 + $0xb8] sm:$0xff] }
 0x55d   :  { %v6356_v49 = vmax.f32 %v6304_v3, %v6306_v34  ;;  %6248 = vst.msk [vmem:[#allocation2 + $0xc0] sm:$0xff] %vm6225_vm9, %v6084_v59  ;;  %6251 = vst.msk [vmem:[#allocation2 + $0xd8] sm:$0xff] %vm6225_vm9, %v6090_v2  ;;  %13895 = vmatpush3.msra.mxu1 %v11546_v14 }
 0x55e   :  { %v18365_v61 = vld [vmem:[#allocation2 + $0x40] sm:$0xff]  ;;  %13896 = vmatprep.subr.mxu1 %v11545_v6 }
 0x55f   :  { %6386 = vst.msk [vmem:[#allocation2 + $0x50] sm:$0xff] %vm748_vm8, %v6356_v49  ;;  %13842 = vmatprep.mubr.msk.f32.mxu1 %vm748_vm8, %v18365_v61  ;;  %13977 = vmatprep.mubr.msk.f32.mxu0 %vm748_vm8, %v18365_v61 }
 0x560   :  { %v6311_v42 = vld [vmem:[#allocation2 + $0xc8] sm:$0xff]  ;;  %v6094_v27 = vpop.permute.xlu0 %6093  ;;  %13843 = vmatmul.mubr.msk.f32.gmra.mxu1 %vm748_vm8, %v18372_v35  ;;  %13978 = vmatmul.mubr.msk.f32.gmra.mxu0 %vm748_vm8, %v18372_v35  ;;  %v6088_v13 = vpop.permute.xlu1 %6087  ;;  %v6308_v60 = vld [vmem:[#allocation2 + $0xb0] sm:$0xff] }
 0x561   :  { %v6359_v43 = vmax.f32 %v6309_v39, %v6311_v42  ;;  %6253 = vst.msk [vmem:[#allocation2 + $0xe8] sm:$0xff] %vm6225_vm9, %v6094_v27  ;;  %6250 = vst.msk [vmem:[#allocation2 + $0xd0] sm:$0xff] %vm6225_vm9, %v6088_v13  ;;  %13897 = vmatpush3.msra.mxu1 %v11545_v6 }
 0x562   :  { %13898 = vmatprep.subr.mxu1 %v11544_v0  ;;  %v18396_v45 = vld [vmem:[#allocation2 + $0x58] sm:$0xff] }
 0x563   :  { %6389 = vst.msk [vmem:[#allocation2 + $0x68] sm:$0xff] %vm748_vm8, %v6359_v43  ;;  %13899 = vmatpush3.msra.mxu1 %v11544_v0 }
 0x564   :  { %v6310_v32 = vld [vmem:[#allocation2 + $0xc0] sm:$0xff]  ;;  %v6092_v47 = vpop.permute.xlu0 %6091  ;;  %v6098_v8 = vpop.permute.xlu1 %6097  ;;  %13900 = vmatprep.subr.mxu1 %v11543_v25  ;;  %v6313_v58 = vld [vmem:[#allocation2 + $0xd8] sm:$0xff] }
 0x565   :  { %v6358_v55 = vmax.f32 %v6308_v60, %v6310_v32  ;;  %6252 = vst.msk [vmem:[#allocation2 + $0xe0] sm:$0xff] %vm6225_vm9, %v6092_v47  ;;  %6255 = vst.msk [vmem:[#allocation2 + $0xf8] sm:$0xff] %vm6225_vm9, %v6098_v8  ;;  %13901 = vmatpush3.msra.mxu1 %v11543_v25 }
 0x566   :  { %v18389_v56 = vld [vmem:[#allocation2 + $0x50] sm:$0xff] }
 0x567   :  { %6388 = vst.msk [vmem:[#allocation2 + $0x60] sm:$0xff] %vm748_vm8, %v6358_v55  ;;  %13845 = vmatprep.mubr.msk.f32.mxu1 %vm748_vm8, %v18389_v56  ;;  %13980 = vmatprep.mubr.msk.f32.mxu0 %vm748_vm8, %v18389_v56 }
 0x568   :  { %v6315_v41 = vld [vmem:[#allocation2 + $0xe8] sm:$0xff]  ;;  %v6102_v17 = vpop.permute.xlu0 %6101  ;;  %13846 = vmatmul.mubr.msk.f32.gmra.mxu1 %vm748_vm8, %v18396_v45  ;;  %13981 = vmatmul.mubr.msk.f32.gmra.mxu0 %vm748_vm8, %v18396_v45  ;;  %v6096_v44 = vpop.permute.xlu1 %6095  ;;  %v6312_v22 = vld [vmem:[#allocation2 + $0xd0] sm:$0xff] }
 0x569   :  { %v6361_v33 = vmax.f32 %v6313_v58, %v6315_v41  ;;  %6257 = vst.msk [vmem:[#allocation2 + $0x108] sm:$0xff] %vm6225_vm9, %v6102_v17  ;;  %6254 = vst.msk [vmem:[#allocation2 + $0xf0] sm:$0xff] %vm6225_vm9, %v6096_v44  ;;  %v11669_v17 = vld [vmem:[%s20180_s4] ss:$0 sm:$0xff] }
 0x56a   :  { %v18414_v31 = vld [vmem:[#allocation2 + $0x68] sm:$0xff]  ;;  %7378 = vrot.lane.b32.xlu1 %v11669_v17, %s14900_s16 }
 0x56b   :  { %6391 = vst.msk [vmem:[#allocation2 + $0x78] sm:$0xff] %vm748_vm8, %v6361_v33 }
 0x56c   :  { %v6314_v29 = vld [vmem:[#allocation2 + $0xe0] sm:$0xff]  ;;  %v6100_v18 = vpop.permute.xlu0 %6099  ;;  %v6106_v46 = vpop.permute.xlu1 %6105  ;;  %v6317_v28 = vld [vmem:[#allocation2 + $0xf8] sm:$0xff] }
 0x56d   :  { %v6360_v40 = vmax.f32 %v6312_v22, %v6314_v29  ;;  %6256 = vst.msk [vmem:[#allocation2 + $0x100] sm:$0xff] %vm6225_vm9, %v6100_v18  ;;  %6259 = vst.msk [vmem:[#allocation2 + $0x118] sm:$0xff] %vm6225_vm9, %v6106_v46 }
 0x56e   :  { %v18407_v26 = vld [vmem:[#allocation2 + $0x60] sm:$0xff] }
 0x56f   :  { %6390 = vst.msk [vmem:[#allocation2 + $0x70] sm:$0xff] %vm748_vm8, %v6360_v40  ;;  %13848 = vmatprep.mubr.msk.f32.mxu1 %vm748_vm8, %v18407_v26  ;;  %13983 = vmatprep.mubr.msk.f32.mxu0 %vm748_vm8, %v18407_v26 }
 0x570   :  { %v6319_v54 = vld [vmem:[#allocation2 + $0x108] sm:$0xff]  ;;  %v6110_v23 = vpop.permute.xlu0 %6109  ;;  %13849 = vmatmul.mubr.msk.f32.gmra.mxu1 %vm748_vm8, %v18414_v31  ;;  %13984 = vmatmul.mubr.msk.f32.gmra.mxu0 %vm748_vm8, %v18414_v31  ;;  %v6104_v51 = vpop.permute.xlu1 %6103  ;;  %v6316_v15 = vld [vmem:[#allocation2 + $0xf0] sm:$0xff] }
 0x571   :  { %v6363_v50 = vmax.f32 %v6317_v28, %v6319_v54  ;;  %6409 = vst.msk [vmem:[#allocation2 + $0x108] sm:$0xff] %vm748_vm8, %v20421_v7 }
 0x572   :  { %6261 = vst.msk [vmem:[#allocation2 + $0x128] sm:$0xff] %vm6225_vm9, %v6110_v23  ;;  %6258 = vst.msk [vmem:[#allocation2 + $0x110] sm:$0xff] %vm6225_vm9, %v6104_v51  ;;  %v18436_v19 = vld [vmem:[#allocation2 + $0x78] sm:$0xff] }
 0x573   :  { %6393 = vst.msk [vmem:[#allocation2 + $0x88] sm:$0xff] %vm748_vm8, %v6363_v50 }
 0x574   :  { %v6318_v4 = vld [vmem:[#allocation2 + $0x100] sm:$0xff]  ;;  %v6108_v5 = vpop.permute.xlu0 %6107  ;;  %v6114_v53 = vpop.permute.xlu1 %6113  ;;  %v6321_v38 = vld [vmem:[#allocation2 + $0x118] sm:$0xff] }
 0x575   :  { %v6362_v24 = vmax.f32 %v6316_v15, %v6318_v4  ;;  %6408 = vst.msk [vmem:[#allocation2 + $0x100] sm:$0xff] %vm748_vm8, %v20421_v7 }
 0x576   :  { %6260 = vst.msk [vmem:[#allocation2 + $0x120] sm:$0xff] %vm6225_vm9, %v6108_v5  ;;  %6263 = vst.msk [vmem:[#allocation2 + $0x138] sm:$0xff] %vm6225_vm9, %v6114_v53  ;;  %v18429_v30 = vld [vmem:[#allocation2 + $0x70] sm:$0xff] }
 0x577   :  { %6392 = vst.msk [vmem:[#allocation2 + $0x80] sm:$0xff] %vm748_vm8, %v6362_v24  ;;  %13851 = vmatprep.mubr.msk.f32.mxu1 %vm748_vm8, %v18429_v30  ;;  %13986 = vmatprep.mubr.msk.f32.mxu0 %vm748_vm8, %v18429_v30 }
 0x578   :  { %v6118_v63 = vpop.permute.xlu0 %6117  ;;  %13852 = vmatmul.mubr.msk.f32.gmra.mxu1 %vm748_vm8, %v18436_v19  ;;  %13987 = vmatmul.mubr.msk.f32.gmra.mxu0 %vm748_vm8, %v18436_v19  ;;  %v6112_v21 = vpop.permute.xlu1 %6111 }
 0x579   :  { %v6323_v37 = vld [vmem:[#allocation2 + $0x128] sm:$0xff]  ;;  %6265 = vst.msk [vmem:[#allocation2 + $0x148] sm:$0xff] %vm6225_vm9, %v6118_v63  ;;  %6262 = vst.msk [vmem:[#allocation2 + $0x130] sm:$0xff] %vm6225_vm9, %v6112_v21  ;;  %v6320_v16 = vld [vmem:[#allocation2 + $0x110] sm:$0xff] }
 0x57a   :  { %v6365_v20 = vmax.f32 %v6321_v38, %v6323_v37  ;;  %v18454_v34 = vld [vmem:[#allocation2 + $0x88] sm:$0xff] }
 0x57c   :  { %6395 = vst.msk [vmem:[#allocation2 + $0x98] sm:$0xff] %vm748_vm8, %v6365_v20  ;;  %v6116_v9 = vpop.permute.xlu0 %6115  ;;  %v6122_v14 = vpop.permute.xlu1 %6121 }
 0x57d   :  { %v6322_v1 = vld [vmem:[#allocation2 + $0x120] sm:$0xff]  ;;  %6264 = vst.msk [vmem:[#allocation2 + $0x140] sm:$0xff] %vm6225_vm9, %v6116_v9  ;;  %6267 = vst.msk [vmem:[#allocation2 + $0x158] sm:$0xff] %vm6225_vm9, %v6122_v14  ;;  %v6325_v59 = vld [vmem:[#allocation2 + $0x138] sm:$0xff] }
 0x57e   :  { %v6364_v6 = vmax.f32 %v6320_v16, %v6322_v1  ;;  %v18447_v3 = vld [vmem:[#allocation2 + $0x80] sm:$0xff] }
 0x57f   :  { %13854 = vmatprep.mubr.msk.f32.mxu1 %vm748_vm8, %v18447_v3  ;;  %13989 = vmatprep.mubr.msk.f32.mxu0 %vm748_vm8, %v18447_v3 }
 0x580   :  { %6394 = vst.msk [vmem:[#allocation2 + $0x90] sm:$0xff] %vm748_vm8, %v6364_v6  ;;  %v6327_v2 = vld [vmem:[#allocation2 + $0x148] sm:$0xff]  ;;  %v6126_v49 = vpop.permute.xlu0 %6125  ;;  %13855 = vmatmul.mubr.msk.f32.gmra.mxu1 %vm748_vm8, %v18454_v34  ;;  %13990 = vmatmul.mubr.msk.f32.gmra.mxu0 %vm748_vm8, %v18454_v34  ;;  %v6120_v0 = vpop.permute.xlu1 %6119  ;;  %v6324_v42 = vld [vmem:[#allocation2 + $0x130] sm:$0xff] }
 0x581   :  { %v6367_v39 = vmax.f32 %v6325_v59, %v6327_v2  ;;  %6269 = vst.msk [vmem:[#allocation2 + $0x168] sm:$0xff] %vm6225_vm9, %v6126_v49  ;;  %6266 = vst.msk [vmem:[#allocation2 + $0x150] sm:$0xff] %vm6225_vm9, %v6120_v0 }
 0x583   :  { %6397 = vst.msk [vmem:[#allocation2 + $0xa8] sm:$0xff] %vm748_vm8, %v6367_v39  ;;  %v18472_v32 = vld [vmem:[#allocation2 + $0x98] sm:$0xff] }
 0x584   :  { %v6326_v27 = vld [vmem:[#allocation2 + $0x140] sm:$0xff]  ;;  %v6124_v13 = vpop.permute.xlu0 %6123  ;;  %v6130_v43 = vpop.permute.xlu1 %6129  ;;  %v6329_v47 = vld [vmem:[#allocation2 + $0x158] sm:$0xff] }
 0x585   :  { %v6366_v25 = vmax.f32 %v6324_v42, %v6326_v27  ;;  %6268 = vst.msk [vmem:[#allocation2 + $0x160] sm:$0xff] %vm6225_vm9, %v6124_v13  ;;  %6271 = vst.msk [vmem:[#allocation2 + $0x178] sm:$0xff] %vm6225_vm9, %v6130_v43 }
 0x587   :  { %v18465_v60 = vld [vmem:[#allocation2 + $0x90] sm:$0xff]  ;;  %6396 = vst.msk [vmem:[#allocation2 + $0xa0] sm:$0xff] %vm748_vm8, %v6366_v25 }
 0x588   :  { %13857 = vmatprep.mubr.msk.f32.mxu1 %vm748_vm8, %v18465_v60  ;;  %13992 = vmatprep.mubr.msk.f32.mxu0 %vm748_vm8, %v18465_v60  ;;  %v6331_v8 = vld [vmem:[#allocation2 + $0x168] sm:$0xff]  ;;  %v6134_v55 = vpop.permute.xlu0 %6133  ;;  %v6128_v58 = vpop.permute.xlu1 %6127  ;;  %v6328_v44 = vld [vmem:[#allocation2 + $0x150] sm:$0xff] }
 0x589   :  { %13858 = vmatmul.mubr.msk.f32.gmra.mxu1 %vm748_vm8, %v18472_v32  ;;  %13993 = vmatmul.mubr.msk.f32.gmra.mxu0 %vm748_vm8, %v18472_v32  ;;  %v6369_v41 = vmax.f32 %v6329_v47, %v6331_v8  ;;  %6273 = vst.msk [vmem:[#allocation2 + $0x188] sm:$0xff] %vm6225_vm9, %v6134_v55  ;;  %6270 = vst.msk [vmem:[#allocation2 + $0x170] sm:$0xff] %vm6225_vm9, %v6128_v58 }
 0x58a   :  { %v18493_v40 = vld [vmem:[#allocation2 + $0xa8] sm:$0xff] }
 0x58b   :  { %6399 = vst.msk [vmem:[#allocation2 + $0xb8] sm:$0xff] %vm748_vm8, %v6369_v41 }
 0x58c   :  { %v6330_v33 = vld [vmem:[#allocation2 + $0x160] sm:$0xff]  ;;  %v6132_v22 = vpop.permute.xlu0 %6131  ;;  %v6138_v29 = vpop.permute.xlu1 %6137  ;;  %v6333_v28 = vld [vmem:[#allocation2 + $0x178] sm:$0xff] }
 0x58d   :  { %v6368_v18 = vmax.f32 %v6328_v44, %v6330_v33  ;;  %6272 = vst.msk [vmem:[#allocation2 + $0x180] sm:$0xff] %vm6225_vm9, %v6132_v22  ;;  %6275 = vst.msk [vmem:[#allocation2 + $0x198] sm:$0xff] %vm6225_vm9, %v6138_v29 }
 0x58e   :  { %v18486_v46 = vld [vmem:[#allocation2 + $0xa0] sm:$0xff] }
 0x58f   :  { %6398 = vst.msk [vmem:[#allocation2 + $0xb0] sm:$0xff] %vm748_vm8, %v6368_v18  ;;  %13860 = vmatprep.mubr.msk.f32.mxu1 %vm748_vm8, %v18486_v46  ;;  %13995 = vmatprep.mubr.msk.f32.mxu0 %vm748_vm8, %v18486_v46 }
 0x590   :  { %v6335_v54 = vld [vmem:[#allocation2 + $0x188] sm:$0xff]  ;;  %v6142_v23 = vpop.permute.xlu0 %6141  ;;  %13861 = vmatmul.mubr.msk.f32.gmra.mxu1 %vm748_vm8, %v18493_v40  ;;  %13996 = vmatmul.mubr.msk.f32.gmra.mxu0 %vm748_vm8, %v18493_v40  ;;  %v6136_v51 = vpop.permute.xlu1 %6135  ;;  %v6332_v15 = vld [vmem:[#allocation2 + $0x170] sm:$0xff] }
 0x591   :  { %v6371_v50 = vmax.f32 %v6333_v28, %v6335_v54  ;;  %6277 = vst.msk [vmem:[#allocation2 + $0x1a8] sm:$0xff] %vm6225_vm9, %v6142_v23  ;;  %6274 = vst.msk [vmem:[#allocation2 + $0x190] sm:$0xff] %vm6225_vm9, %v6136_v51  ;;  %v6411_v51 = vld [vmem:[#allocation2] sm:$0xff] }
 0x592   :  { %v18511_v37 = vld [vmem:[#allocation2 + $0xb8] sm:$0xff] }
 0x593   :  { %6401 = vst.msk [vmem:[#allocation2 + $0xc8] sm:$0xff] %vm748_vm8, %v6371_v50  ;;  %v7023_v50 = vld [vmem:[#allocation2 + $0x100] sm:$0xff] }
 0x594   :  { %v6334_v4 = vld [vmem:[#allocation2 + $0x180] sm:$0xff]  ;;  %v6140_v5 = vpop.permute.xlu0 %6139  ;;  %v6146_v53 = vpop.permute.xlu1 %6145  ;;  %v6337_v63 = vld [vmem:[#allocation2 + $0x198] sm:$0xff] }
 0x595   :  { %v6370_v24 = vmax.f32 %v6332_v15, %v6334_v4  ;;  %6276 = vst.msk [vmem:[#allocation2 + $0x1a0] sm:$0xff] %vm6225_vm9, %v6140_v5  ;;  %6279 = vst.msk [vmem:[#allocation2 + $0x1b8] sm:$0xff] %vm6225_vm9, %v6146_v53  ;;  %v18555_v4 = vld [vmem:[#allocation2 + $0x8] sm:$0xff]  ;;  %v11678_v53 = vld [vmem:[%s20179_s3 + $0x3a0] sm:$0xff] }
 0x596   :  { %v18504_v38 = vld [vmem:[#allocation2 + $0xb0] sm:$0xff]  ;;  %v7024_v5 = vld [vmem:[#allocation2 + $0x108] sm:$0xff] }
 0x597   :  { %6400 = vst.msk [vmem:[#allocation2 + $0xc0] sm:$0xff] %vm748_vm8, %v6370_v24  ;;  %13863 = vmatprep.mubr.msk.f32.mxu1 %vm748_vm8, %v18504_v38  ;;  %13998 = vmatprep.mubr.msk.f32.mxu0 %vm748_vm8, %v18504_v38 }
 0x598   :  { %v6339_v21 = vld [vmem:[#allocation2 + $0x1a8] sm:$0xff]  ;;  %v6150_v20 = vpop.permute.xlu0 %6149  ;;  %13864 = vmatmul.mubr.msk.f32.gmra.mxu1 %vm748_vm8, %v18511_v37  ;;  %13999 = vmatmul.mubr.msk.f32.gmra.mxu0 %vm748_vm8, %v18511_v37  ;;  %v6144_v16 = vpop.permute.xlu1 %6143  ;;  %v6336_v9 = vld [vmem:[#allocation2 + $0x190] sm:$0xff] }
 0x599   :  { %v6373_v1 = vmax.f32 %v6337_v63, %v6339_v21  ;;  %6281 = vst.msk [vmem:[#allocation2 + $0x1c8] sm:$0xff] %vm6225_vm9, %v6150_v20  ;;  %6278 = vst.msk [vmem:[#allocation2 + $0x1b0] sm:$0xff] %vm6225_vm9, %v6144_v16  ;;  %v11687_v21 = vld [vmem:[%s20179_s3 + $0x3e8] sm:$0xff]  ;;  %v11676_v20 = vld [vmem:[%s20179_s3 + $0x390] sm:$0xff] }
 0x59a   :  { %v18529_v0 = vld [vmem:[#allocation2 + $0xc8] sm:$0xff]  ;;  %v11686_v16 = vld [vmem:[%s20179_s3 + $0x3e0] sm:$0xff] }
 0x59b   :  { %6403 = vst.msk [vmem:[#allocation2 + $0xd8] sm:$0xff] %vm748_vm8, %v6373_v1  ;;  %v11675_v1 = vld [vmem:[%s20179_s3 + $0x388] sm:$0xff] }
 0x59c   :  { %v6338_v14 = vld [vmem:[#allocation2 + $0x1a0] sm:$0xff]  ;;  %v6148_v6 = vpop.permute.xlu0 %6147  ;;  %v6341_v39 = vld [vmem:[#allocation2 + $0x1b8] sm:$0xff] }
 0x59d   :  { %v6372_v59 = vmax.f32 %v6336_v9, %v6338_v14  ;;  %6280 = vst.msk [vmem:[#allocation2 + $0x1c0] sm:$0xff] %vm6225_vm9, %v6148_v6  ;;  %v11685_v14 = vld [vmem:[%s20179_s3 + $0x3d8] sm:$0xff]  ;;  %v11674_v6 = vld [vmem:[%s20179_s3 + $0x380] sm:$0xff] }
 0x59e   :  { %v6152_v2 = vpop.permute.xlu1 %6151  ;;  %v18521_v49 = vld [vmem:[#allocation2 + $0xc0] sm:$0xff] }
 0x59f   :  { %6402 = vst.msk [vmem:[#allocation2 + $0xd0] sm:$0xff] %vm748_vm8, %v6372_v59  ;;  %13866 = vmatprep.mubr.msk.f32.mxu1 %vm748_vm8, %v18521_v49  ;;  %14001 = vmatprep.mubr.msk.f32.mxu0 %vm748_vm8, %v18521_v49 }
 0x5a0   :  { %6282 = vst.msk [vmem:[#allocation2 + $0x1d0] sm:$0xff] %vm6225_vm9, %v6152_v2  ;;  %v6343_v42 = vld [vmem:[#allocation2 + $0x1c8] sm:$0xff]  ;;  %13867 = vmatmul.mubr.msk.f32.gmra.mxu1 %vm748_vm8, %v18529_v0  ;;  %14002 = vmatmul.mubr.msk.f32.gmra.mxu0 %vm748_vm8, %v18529_v0  ;;  %v6340_v25 = vld [vmem:[#allocation2 + $0x1b0] sm:$0xff] }
 0x5a1   :  { %v6375_v27 = vmax.f32 %v6341_v39, %v6343_v42  ;;  %v11684_v2 = vld [vmem:[%s20179_s3 + $0x3d0] sm:$0xff] }
 0x5a2   :  { %v6156_v13 = vpop.permute.xlu0 %6155  ;;  %v6154_v43 = vpop.permute.xlu1 %6153  ;;  %v6438_v41 = vld [vmem:[#allocation2 + $0xd8] sm:$0xff] }
 0x5a3   :  { %6405 = vst.msk [vmem:[#allocation2 + $0xe8] sm:$0xff] %vm748_vm8, %v6375_v27 }
 0x5a4   :  { %6284 = vst.msk [vmem:[#allocation2 + $0x1e0] sm:$0xff] %vm6225_vm9, %v6156_v13  ;;  %6283 = vst.msk [vmem:[#allocation2 + $0x1d8] sm:$0xff] %vm6225_vm9, %v6154_v43  ;;  %v6342_v47 = vld [vmem:[#allocation2 + $0x1c0] sm:$0xff]  ;;  %v18711_v13 = vpop.f32.mrf.mxu0 }
 0x5a5   :  { %v6374_v8 = vmax.f32 %v6340_v25, %v6342_v47  ;;  %20423 = vst [vmem:[#allocation11_spill] sm:$0xff] %v18711_v13 }
 0x5a6   :  { %v6158_v55 = vpop.permute.xlu0 %6157  ;;  %v6437_v58 = vld [vmem:[#allocation2 + $0xd0] sm:$0xff] }
 0x5a7   :  { %6404 = vst.msk [vmem:[#allocation2 + $0xe0] sm:$0xff] %vm748_vm8, %v6374_v8  ;;  %13869 = vmatprep.mubr.msk.f32.mxu1 %vm748_vm8, %v6437_v58  ;;  %14004 = vmatprep.mubr.msk.f32.mxu0 %vm748_vm8, %v6437_v58  ;;  %v6344_v17 = vld [vmem:[#allocation2 + $0x1d0] sm:$0xff] }
 0x5a8   :  { %6285 = vst.msk [vmem:[#allocation2 + $0x1e8] sm:$0xff] %vm6225_vm9, %v6158_v55  ;;  %13870 = vmatmul.mubr.msk.f32.gmra.mxu1 %vm748_vm8, %v6438_v41  ;;  %14005 = vmatmul.mubr.msk.f32.gmra.mxu0 %vm748_vm8, %v6438_v41 }
 0x5aa   :  { %v6440_v54 = vld [vmem:[#allocation2 + $0xe8] sm:$0xff] }
 0x5ab   :  { %v6346_v44 = vld [vmem:[#allocation2 + $0x1e0] sm:$0xff]  ;;  %v6345_v22 = vld [vmem:[#allocation2 + $0x1d8] sm:$0xff] }
 0x5ac   :  { %v6376_v33 = vmax.f32 %v6344_v17, %v6346_v44 }
 0x5ae   :  { %6406 = vst.msk [vmem:[#allocation2 + $0xf0] sm:$0xff] %vm748_vm8, %v6376_v33  ;;  %v6439_v18 = vld [vmem:[#allocation2 + $0xe0] sm:$0xff] }
 0x5af   :  { %v6347_v29 = vld [vmem:[#allocation2 + $0x1e8] sm:$0xff]  ;;  %13872 = vmatprep.mubr.msk.f32.mxu1 %vm748_vm8, %v6439_v18  ;;  %14007 = vmatprep.mubr.msk.f32.mxu0 %vm748_vm8, %v6439_v18 }
 0x5b0   :  { %v6377_v28 = vmax.f32 %v6345_v22, %v6347_v29  ;;  %13873 = vmatmul.mubr.msk.f32.gmra.mxu1 %vm748_vm8, %v6440_v54  ;;  %14008 = vmatmul.mubr.msk.f32.gmra.mxu0 %vm748_vm8, %v6440_v54 }
 0x5b2   :  { %6407 = vst.msk [vmem:[#allocation2 + $0xf8] sm:$0xff] %vm748_vm8, %v6377_v28 }
 0x5b5   :  { %v6454_v23 = vld [vmem:[#allocation2 + $0xf0] sm:$0xff] }
 0x5b6   :  { %13875 = vmatprep.mubr.msk.f32.mxu1 %vm748_vm8, %v6454_v23  ;;  %14010 = vmatprep.mubr.msk.f32.mxu0 %vm748_vm8, %v6454_v23 }
 0x5b9   :  { %v6455_v15 = vld [vmem:[#allocation2 + $0xf8] sm:$0xff] }
 0x5ba   :  { %13876 = vmatmul.mubr.msk.f32.gmra.mxu1 %vm748_vm8, %v6455_v15  ;;  %14011 = vmatmul.mubr.msk.f32.gmra.mxu0 %vm748_vm8, %v6455_v15 }
 0x5bb   :  { %13902 = vmatprep.mubr.msk.f32.mxu1 %vm748_vm8, %v6411_v51  ;;  %14013 = vmatprep.mubr.msk.f32.mxu0 %vm748_vm8, %v7023_v50 }
 0x5be   :  { %13903 = vmatmul.mubr.msk.f32.vlgmr.msra.gmra.mxu1 %vm748_vm8, %v18555_v4  ;;  %14014 = vmatmul.mubr.msk.f32.gmra.mxu0 %vm748_vm8, %v7024_v5  ;;  %v11683_v5 = vld [vmem:[%s20179_s3 + $0x3c8] sm:$0xff] }
 0x5bf   :  { %13905 = vmatprep.mubr.msk.f32.mxu1 %vm748_vm8, %v18287_v12  ;;  %14109 = vmatprep.mubr.msk.f32.mxu0 %vm748_vm8, %v6411_v51  ;;  %v18614_v12 = vpop.f32.mrf.mxu1 }
 0x5c0   :  { %20422 = vst [vmem:[#allocation9_spill] sm:$0xff] %v18614_v12  ;;  %v11805_v12 = vld [vmem:[%s20179_s3 + $0x4c0] sm:$0xff] }
 0x5c2   :  { %13906 = vmatmul.mubr.msk.f32.gmra.mxu1 %vm748_vm8, %v18292_v57 }
 0x5c3   :  { %13908 = vmatprep.mubr.msk.f32.mxu1 %vm748_vm8, %v18311_v11 }
 0x5c6   :  { %13909 = vmatmul.mubr.msk.f32.gmra.mxu1 %vm748_vm8, %v18318_v62 }
 0x5c7   :  { %13911 = vmatprep.mubr.msk.f32.mxu1 %vm748_vm8, %v18338_v52 }
 0x5ca   :  { %13912 = vmatmul.mubr.msk.f32.gmra.mxu1 %vm748_vm8, %v18345_v10 }
 0x5cb   :  { %13914 = vmatprep.mubr.msk.f32.mxu1 %vm748_vm8, %v18365_v61 }
 0x5ce   :  { %13915 = vmatmul.mubr.msk.f32.gmra.mxu1 %vm748_vm8, %v18372_v35 }
 0x5cf   :  { %13917 = vmatprep.mubr.msk.f32.mxu1 %vm748_vm8, %v18389_v56 }
 0x5d2   :  { %13918 = vmatmul.mubr.msk.f32.gmra.mxu1 %vm748_vm8, %v18396_v45 }
 0x5d3   :  { %13920 = vmatprep.mubr.msk.f32.mxu1 %vm748_vm8, %v18407_v26  ;;  %v11693_v26 = vld [vmem:[%s20179_s3 + $0x418] sm:$0xff] }
 0x5d4   :  { %14016 = vmatprep.subr.mxu1 %v11693_v26 }
 0x5d5   :  { %14017 = vmatpush3.msra.mxu1 %v11693_v26  ;;  %v11672_v26 = vld [vmem:[%s20179_s3 + $0x370] sm:$0xff] }
 0x5d6   :  { %13921 = vmatmul.mubr.msk.f32.gmra.mxu1 %vm748_vm8, %v18414_v31  ;;  %v11692_v31 = vld [vmem:[%s20179_s3 + $0x410] sm:$0xff] }
 0x5d7   :  { %13923 = vmatprep.mubr.msk.f32.mxu1 %vm748_vm8, %v18429_v30  ;;  %14018 = vmatprep.subr.mxu1 %v11692_v31 }
 0x5d8   :  { %14019 = vmatpush3.msra.mxu1 %v11692_v31 }
 0x5da   :  { %13924 = vmatmul.mubr.msk.f32.gmra.mxu1 %vm748_vm8, %v18436_v19  ;;  %v11691_v19 = vld [vmem:[%s20179_s3 + $0x408] sm:$0xff] }
 0x5db   :  { %13926 = vmatprep.mubr.msk.f32.mxu1 %vm748_vm8, %v18447_v3  ;;  %v11681_v3 = vld [vmem:[%s20179_s3 + $0x3b8] sm:$0xff]  ;;  %14020 = vmatprep.subr.mxu1 %v11691_v19 }
 0x5dc   :  { %14085 = vmatprep.subr.mxu0 %v11681_v3  ;;  %14021 = vmatpush3.msra.mxu1 %v11691_v19  ;;  %v11671_v19 = vld [vmem:[%s20179_s3 + $0x368] sm:$0xff] }
 0x5dd   :  { %14086 = vmatpush3.msra.mxu0 %v11681_v3 }
 0x5de   :  { %13927 = vmatmul.mubr.msk.f32.gmra.mxu1 %vm748_vm8, %v18454_v34 }
 0x5df   :  { %13929 = vmatprep.mubr.msk.f32.mxu1 %vm748_vm8, %v18465_v60  ;;  %v11680_v60 = vld [vmem:[%s20179_s3 + $0x3b0] sm:$0xff] }
 0x5e0   :  { %14087 = vmatprep.subr.mxu0 %v11680_v60 }
 0x5e1   :  { %14088 = vmatpush3.msra.mxu0 %v11680_v60 }
 0x5e2   :  { %13930 = vmatmul.mubr.msk.f32.gmra.mxu1 %vm748_vm8, %v18472_v32  ;;  %v11690_v32 = vld [vmem:[%s20179_s3 + $0x400] sm:$0xff] }
 0x5e3   :  { %13932 = vmatprep.mubr.msk.f32.mxu1 %vm748_vm8, %v18486_v46  ;;  %v11679_v46 = vld [vmem:[%s20179_s3 + $0x3a8] sm:$0xff]  ;;  %14022 = vmatprep.subr.mxu1 %v11690_v32 }
 0x5e4   :  { %14089 = vmatprep.subr.mxu0 %v11679_v46  ;;  %14023 = vmatpush3.msra.mxu1 %v11690_v32  ;;  %v11682_v32 = vld [vmem:[%s20179_s3 + $0x3c0] sm:$0xff] }
 0x5e5   :  { %14090 = vmatpush3.msra.mxu0 %v11679_v46  ;;  %v11670_v46 = vld [vmem:[%s20179_s3 + $0x360] sm:$0xff] }
 0x5e6   :  { %13933 = vmatmul.mubr.msk.f32.gmra.mxu1 %vm748_vm8, %v18493_v40  ;;  %v11689_v40 = vld [vmem:[%s20179_s3 + $0x3f8] sm:$0xff]  ;;  %14091 = vmatprep.subr.mxu0 %v11678_v53 }
 0x5e7   :  { %13935 = vmatprep.mubr.msk.f32.mxu1 %vm748_vm8, %v18504_v38  ;;  %v11688_v38 = vld [vmem:[%s20179_s3 + $0x3f0] sm:$0xff]  ;;  %14024 = vmatprep.subr.mxu1 %v11689_v40 }
 0x5e8   :  { %14025 = vmatpush3.msra.mxu1 %v11689_v40  ;;  %14092 = vmatpush3.msra.mxu0 %v11678_v53  ;;  %v18759_v53 = vpop.permute.xlu1 %7378 }
 0x5e9   :  { %14026 = vmatprep.subr.mxu1 %v11688_v38 }
 0x5ea   :  { %13936 = vmatmul.mubr.msk.f32.gmra.mxu1 %vm748_vm8, %v18511_v37  ;;  %v11677_v37 = vld [vmem:[%s20179_s3 + $0x398] sm:$0xff] }
 0x5eb   :  { %13938 = vmatprep.mubr.msk.f32.mxu1 %vm748_vm8, %v18521_v49  ;;  %14093 = vmatprep.subr.mxu0 %v11677_v37  ;;  %v11673_v49 = vld [vmem:[%s20179_s3 + $0x378] sm:$0xff] }
 0x5ec   :  { %14027 = vmatpush3.msra.mxu1 %v11688_v38  ;;  %14094 = vmatpush3.msra.mxu0 %v11677_v37 }
 0x5ed   :  { %14028 = vmatprep.subr.mxu1 %v11687_v21  ;;  %14095 = vmatprep.subr.mxu0 %v11676_v20 }
 0x5ee   :  { %13939 = vmatmul.mubr.msk.f32.gmra.mxu1 %vm748_vm8, %v18529_v0  ;;  %14096 = vmatpush3.msra.mxu0 %v11676_v20 }
 0x5ef   :  { %13941 = vmatprep.mubr.msk.f32.mxu1 %vm748_vm8, %v6437_v58  ;;  %14029 = vmatpush3.msra.mxu1 %v11687_v21 }
 0x5f0   :  { %14030 = vmatprep.subr.mxu1 %v11686_v16  ;;  %14097 = vmatprep.subr.mxu0 %v11675_v1 }
 0x5f1   :  { %14031 = vmatpush3.msra.mxu1 %v11686_v16  ;;  %14098 = vmatpush3.msra.mxu0 %v11675_v1 }
 0x5f2   :  { %13942 = vmatmul.mubr.msk.f32.gmra.mxu1 %vm748_vm8, %v6438_v41  ;;  %14032 = vmatprep.subr.mxu1 %v11685_v14 }
 0x5f3   :  { %13944 = vmatprep.mubr.msk.f32.mxu1 %vm748_vm8, %v6439_v18  ;;  %14099 = vmatprep.subr.mxu0 %v11674_v6 }
 0x5f4   :  { %14033 = vmatpush3.msra.mxu1 %v11685_v14  ;;  %14100 = vmatpush3.msra.mxu0 %v11674_v6 }
 0x5f5   :  { %14034 = vmatprep.subr.mxu1 %v11684_v2  ;;  %14101 = vmatprep.subr.mxu0 %v11673_v49 }
 0x5f6   :  { %13945 = vmatmul.mubr.msk.f32.gmra.mxu1 %vm748_vm8, %v6440_v54  ;;  %14102 = vmatpush3.msra.mxu0 %v11673_v49  ;;  %v18773_v49 = vld [vmem:[%s20179_s3 + $0x478] sm:$0xff] }
 0x5f7   :  { %14035 = vmatpush3.msra.mxu1 %v11684_v2  ;;  %14103 = vmatprep.subr.mxu0 %v11672_v26 }
 0x5f8   :  { %14036 = vmatprep.subr.mxu1 %v11683_v5  ;;  %14104 = vmatpush3.msra.mxu0 %v11672_v26 }
 0x5f9   :  { %14037 = vmatpush3.msra.mxu1 %v11683_v5  ;;  %14105 = vmatprep.subr.mxu0 %v11671_v19 }
 0x5fa   :  { %14106 = vmatpush3.msra.mxu0 %v11671_v19  ;;  %14038 = vmatprep.subr.mxu1 %v11682_v32 }
 0x5fb   :  { %14107 = vmatprep.subr.mxu0 %v11670_v46  ;;  %14039 = vmatpush3.msra.mxu1 %v11682_v32 }
 0x5fc   :  { %14108 = vmatpush3.msra.mxu0 %v11670_v46  ;;  %14154 = vmatprep.subr.mxu1 %v18773_v49 }
 0x5fd   :  { %14110 = vmatmul.mubr.msk.f32.vlgmr.msra.gmra.mxu0 %vm748_vm8, %v18555_v4 }
 0x608   :  { %v18616_v57 = vpop.f32.mrf.mxu1 }
 0x60a   :  { %v18618_v11 = vpop.f32.mrf.mxu1 }
 0x610   :  { %v18620_v62 = vpop.f32.mrf.mxu1  ;;  %v13973_v25 = vpop.f32.mrf.mxu0 }
 0x612   :  { %v18622_v52 = vpop.f32.mrf.mxu1  ;;  %v7194_v8 = vpop.f32.mrf.mxu0 }
 0x618   :  { %v18624_v10 = vpop.f32.mrf.mxu1  ;;  %v13976_v58 = vpop.f32.mrf.mxu0 }
 0x61a   :  { %v18626_v61 = vpop.f32.mrf.mxu1  ;;  %v7204_v17 = vpop.f32.mrf.mxu0 }
 0x620   :  { %v18628_v35 = vpop.f32.mrf.mxu1  ;;  %v13979_v33 = vpop.f32.mrf.mxu0 }
 0x622   :  { %v18630_v56 = vpop.f32.mrf.mxu1  ;;  %v7214_v29 = vpop.f32.mrf.mxu0 }
 0x628   :  { %v18632_v45 = vpop.f32.mrf.mxu1  ;;  %v18727_v28 = vpop.f32.mrf.mxu0 }
 0x62a   :  { %v18640_v30 = vpop.f32.mrf.mxu1  ;;  %v18731_v23 = vpop.f32.mrf.mxu0 }
 0x630   :  { %v18648_v34 = vpop.f32.mrf.mxu1  ;;  %v18735_v50 = vpop.f32.mrf.mxu0 }
 0x632   :  { %v18665_v24 = vpop.f32.mrf.mxu1  ;;  %v18750_v3 = vpop.f32.mrf.mxu0 }
 0x638   :  { %v18673_v63 = vpop.f32.mrf.mxu1  ;;  %v18761_v38 = vpop.f32.mrf.mxu0 }
 0x63a   :  { %v18687_v9 = vpop.f32.mrf.mxu1  ;;  %v18768_v6 = vpop.f32.mrf.mxu0 }
 0x640   :  { %v18695_v59 = vpop.f32.mrf.mxu1 }
 0x642   :  { %v18703_v0 = vpop.f32.mrf.mxu1 }
 0x649   :  { %v18705_v39 = vpop.f32.mrf.mxu1 }
 0x64b   :  { %v18707_v42 = vpop.f32.mrf.mxu1 }
 0x650   :  { %v18709_v27 = vpop.f32.mrf.mxu1 }
 0x652   :  { %v18713_v43 = vpop.f32.mrf.mxu1 }
 0x658   :  { %v18715_v47 = vpop.f32.mrf.mxu1 }
 0x65a   :  { %v18717_v55 = vpop.f32.mrf.mxu1 }
 0x660   :  { %v18719_v41 = vpop.f32.mrf.mxu1 }
 0x662   :  { %v18721_v44 = vpop.f32.mrf.mxu1 }
 0x668   :  { %v18723_v22 = vpop.f32.mrf.mxu1 }
 0x66a   :  { %v18725_v18 = vpop.f32.mrf.mxu1 }
 0x670   :  { %v18729_v54 = vpop.f32.mrf.mxu1 }
 0x672   :  { %v18733_v51 = vpop.f32.mrf.mxu1 }
 0x67a   :  { %v18737_v15 = vpop.f32.mrf.mxu1 }
 0x67c   :  { %v18745_v31 = vpop.f32.mrf.mxu1 }
 0x67e   :  { %v13904_v60 = vpop.f32.mrf.mxu1 }
 0x67f   :  { %v6852_v40 = vadd.f32 %v13904_v60, %v18616_v57 }
 0x680   :  { %v6846_v37 = vpop.f32.mrf.mxu1 }
 0x681   :  { %v7344_v21 = vadd.f32 %v13973_v25, %v6852_v40  ;;  %v6847_v20 = vadd.f32 %v6846_v37, %v18618_v11 }
 0x682   :  { %v13907_v16 = vpop.f32.mrf.mxu1 }
 0x683   :  { %v7343_v1 = vadd.f32 %v7194_v8, %v6847_v20  ;;  %v6862_v14 = vadd.f32 %v13907_v16, %v18620_v62  ;;  %v7382_v57 = vadd.f32 %v18759_v53, %v7344_v21  ;;  %v18778_v8 = vpop.f32.mrf.mxu0 }
 0x684   :  { %v6856_v2 = vpop.f32.mrf.mxu1 }
 0x685   :  { %v7346_v25 = vadd.f32 %v13976_v58, %v6862_v14  ;;  %v6857_v11 = vadd.f32 %v6856_v2, %v18622_v52  ;;  %v7412_v5 = vmax.f32 %v7382_v57, 0.0  ;;  %v7381_v4 = vadd.f32 %v18759_v53, %v7343_v1  ;;  %v7254_v21 = vpop.f32.mrf.mxu0 }
 0x686   :  { %v13910_v62 = vpop.f32.mrf.mxu1 }
 0x687   :  { %v7345_v26 = vadd.f32 %v7204_v17, %v6857_v11  ;;  %v6872_v19 = vadd.f32 %v13910_v62, %v18624_v10  ;;  %7473 = vrot.lane.b32.xlu1 %v7412_v5, %s14897_s2  ;;  %v7411_v60 = vmax.f32 %v7381_v4, 0.0  ;;  %v7384_v32 = vadd.f32 %v18759_v53, %v7346_v25  ;;  %v13994_v14 = vpop.f32.mrf.mxu0 }
 0x688   :  { %v6866_v46 = vpop.f32.mrf.mxu1 }
 0x689   :  { %v7383_v58 = vadd.f32 %v18759_v53, %v7345_v26  ;;  %v7348_v52 = vadd.f32 %v13979_v33, %v6872_v19  ;;  %v6867_v40 = vadd.f32 %v6866_v46, %v18626_v61  ;;  %7471 = vrot.lane.b32.xlu0 %v7411_v60, %s14897_s2  ;;  %v7414_v37 = vmax.f32 %v7384_v32, 0.0  ;;  %v7264_v62 = vpop.f32.mrf.mxu0 }
 0x68a   :  { %v13913_v20 = vpop.f32.mrf.mxu1 }
 0x68b   :  { %v7413_v16 = vmax.f32 %v7383_v58, 0.0  ;;  %v7386_v17 = vadd.f32 %v18759_v53, %v7348_v52  ;;  %v7347_v10 = vadd.f32 %v7214_v29, %v6867_v40  ;;  %v6882_v1 = vadd.f32 %v13913_v20, %v18628_v35  ;;  %7477 = vrot.lane.b32.xlu1 %v7414_v37, %s14897_s2  ;;  %v13997_v32 = vpop.f32.mrf.mxu0 }
 0x68c   :  { %v6876_v57 = vpop.f32.mrf.mxu1 }
 0x68d   :  { %v7416_v2 = vmax.f32 %v7386_v17, 0.0  ;;  %v7385_v33 = vadd.f32 %v18759_v53, %v7347_v10  ;;  %v7350_v61 = vadd.f32 %v18727_v28, %v6882_v1  ;;  %v6877_v25 = vadd.f32 %v6876_v57, %v18630_v56  ;;  %7475 = vrot.lane.b32.xlu0 %v7413_v16, %s14897_s2  ;;  %v7274_v16 = vpop.f32.mrf.mxu0 }
 0x68e   :  { %v13916_v11 = vpop.f32.mrf.mxu1 }
 0x68f   :  { %v7415_v5 = vmax.f32 %v7385_v33, 0.0  ;;  %v7388_v4 = vadd.f32 %v18759_v53, %v7350_v61  ;;  %v7349_v29 = vadd.f32 %v18731_v23, %v6877_v25  ;;  %v6892_v35 = vadd.f32 %v13916_v11, %v18632_v45  ;;  %7481 = vrot.lane.b32.xlu1 %v7416_v2, %s14897_s2  ;;  %v14000_v57 = vpop.f32.mrf.mxu0 }
 0x690   :  { %v6886_v26 = vpop.f32.mrf.mxu1 }
 0x691   :  { %v7418_v19 = vmax.f32 %v7388_v4, 0.0  ;;  %v7387_v60 = vadd.f32 %v18759_v53, %v7349_v29  ;;  %v7352_v28 = vadd.f32 %v18735_v50, %v6892_v35  ;;  %v6887_v56 = vadd.f32 %v6886_v26, %v18640_v30  ;;  %7479 = vrot.lane.b32.xlu0 %v7415_v5, %s14897_s2  ;;  %v7284_v4 = vpop.f32.mrf.mxu0 }
 0x692   :  { %v13919_v46 = vpop.f32.mrf.mxu1 }
 0x693   :  { %v7417_v58 = vmax.f32 %v7387_v60, 0.0  ;;  %v7390_v23 = vadd.f32 %v18759_v53, %v7352_v28  ;;  %v7351_v45 = vadd.f32 %v18750_v3, %v6887_v56  ;;  %v6902_v52 = vadd.f32 %v13919_v46, %v18648_v34  ;;  %7485 = vrot.lane.b32.xlu1 %v7418_v19, %s14897_s2 }
 0x694   :  { %v6896_v40 = vpop.f32.mrf.mxu1 }
 0x695   :  { %v7420_v37 = vmax.f32 %v7390_v23, 0.0  ;;  %v7389_v20 = vadd.f32 %v18759_v53, %v7351_v45  ;;  %v7354_v50 = vadd.f32 %v18761_v38, %v6902_v52  ;;  %v6897_v30 = vadd.f32 %v6896_v40, %v18665_v24  ;;  %7483 = vrot.lane.b32.xlu0 %v7417_v58, %s14897_s2 }
 0x696   :  { %v13922_v17 = vpop.f32.mrf.mxu1 }
 0x697   :  { %v7419_v10 = vmax.f32 %v7389_v20, 0.0  ;;  %v7392_v1 = vadd.f32 %v18759_v53, %v7354_v50  ;;  %v7353_v3 = vadd.f32 %v18768_v6, %v6897_v30  ;;  %v6912_v34 = vadd.f32 %v13922_v17, %v18673_v63  ;;  %7489 = vrot.lane.b32.xlu1 %v7420_v37, %s14897_s2 }
 0x698   :  { %v6906_v2 = vpop.f32.mrf.mxu1 }
 0x699   :  { %v7422_v33 = vmax.f32 %v7392_v1, 0.0  ;;  %v7391_v38 = vadd.f32 %v18759_v53, %v7353_v3  ;;  %v7356_v24 = vadd.f32 %v18778_v8, %v6912_v34  ;;  %v6907_v61 = vadd.f32 %v6906_v2, %v18687_v9  ;;  %7487 = vrot.lane.b32.xlu0 %v7419_v10, %s14897_s2  ;;  %v14003_v9 = vpop.f32.mrf.mxu0 }
 0x69a   :  { %v13925_v25 = vpop.f32.mrf.mxu1 }
 0x69b   :  { %v7421_v11 = vmax.f32 %v7391_v38, 0.0  ;;  %v7394_v5 = vadd.f32 %v18759_v53, %v7356_v24  ;;  %v7355_v6 = vadd.f32 %v7254_v21, %v6907_v61  ;;  %v6922_v63 = vadd.f32 %v13925_v25, %v18695_v59  ;;  %7493 = vrot.lane.b32.xlu1 %v7422_v33, %s14897_s2 }
 0x69c   :  { %v6916_v29 = vpop.f32.mrf.mxu1 }
 0x69d   :  { %v7424_v35 = vmax.f32 %v7394_v5, 0.0  ;;  %v7393_v26 = vadd.f32 %v18759_v53, %v7355_v6  ;;  %v7358_v19 = vadd.f32 %v13994_v14, %v6922_v63  ;;  %v6917_v8 = vadd.f32 %v6916_v29, %v18703_v0  ;;  %7491 = vrot.lane.b32.xlu0 %v7421_v11, %s14897_s2  ;;  %v7294_v0 = vpop.f32.mrf.mxu0 }
 0x69e   :  { %v13928_v60 = vpop.f32.mrf.mxu1 }
 0x69f   :  { %v7423_v28 = vmax.f32 %v7393_v26, 0.0  ;;  %v7396_v56 = vadd.f32 %v18759_v53, %v7358_v19  ;;  %v7357_v21 = vadd.f32 %v7264_v62, %v6917_v8  ;;  %v6932_v59 = vadd.f32 %v13928_v60, %v18705_v39  ;;  %7497 = vrot.lane.b32.xlu1 %v7424_v35, %s14897_s2  ;;  %v14006_v39 = vpop.f32.mrf.mxu0 }
 0x6a0   :  { %v6926_v46 = vpop.f32.mrf.mxu1 }
 0x6a1   :  { %v7426_v58 = vmax.f32 %v7396_v56, 0.0  ;;  %v7395_v23 = vadd.f32 %v18759_v53, %v7357_v21  ;;  %v7360_v45 = vadd.f32 %v13997_v32, %v6932_v59  ;;  %v6927_v14 = vadd.f32 %v6926_v46, %v18707_v42  ;;  %7495 = vrot.lane.b32.xlu0 %v7423_v28, %s14897_s2 }
 0x6a2   :  { %v13931_v52 = vpop.f32.mrf.mxu1 }
 0x6a3   :  { %v7425_v40 = vmax.f32 %v7395_v23, 0.0  ;;  %v7398_v37 = vadd.f32 %v18759_v53, %v7360_v45  ;;  %v7359_v20 = vadd.f32 %v7274_v16, %v6927_v14  ;;  %v6942_v62 = vadd.f32 %v13931_v52, %v18709_v27  ;;  %7501 = vrot.lane.b32.xlu1 %v7426_v58, %s14897_s2  ;;  %v7304_v27 = vpop.f32.mrf.mxu0 }
 0x6a4   :  { %v6936_v50 = vpop.f32.mrf.mxu1 }
 0x6a5   :  { %v7428_v30 = vmax.f32 %v7398_v37, 0.0  ;;  %v7397_v17 = vadd.f32 %v18759_v53, %v7359_v20  ;;  %v7362_v32 = vadd.f32 %v14000_v57, %v6942_v62  ;;  %v6937_v42 = vadd.f32 %v6936_v50, %v18713_v43  ;;  %7499 = vrot.lane.b32.xlu0 %v7425_v40, %s14897_s2  ;;  %v14009_v43 = vpop.f32.mrf.mxu0 }
 0x6a6   :  { %v13934_v10 = vpop.f32.mrf.mxu1 }
 0x6a7   :  { %v7427_v1 = vmax.f32 %v7397_v17, 0.0  ;;  %v7400_v3 = vadd.f32 %v18759_v53, %v7362_v32  ;;  %v7361_v34 = vadd.f32 %v7284_v4, %v6937_v42  ;;  %v6952_v16 = vadd.f32 %v13934_v10, %v18715_v47  ;;  %7505 = vrot.lane.b32.xlu1 %v7428_v30, %s14897_s2 }
 0x6a8   :  { %v6946_v2 = vpop.f32.mrf.mxu1 }
 0x6a9   :  { %v7430_v33 = vmax.f32 %v7400_v3, 0.0  ;;  %v7399_v38 = vadd.f32 %v18759_v53, %v7361_v34  ;;  %v7364_v24 = vadd.f32 %v14003_v9, %v6952_v16  ;;  %v6947_v57 = vadd.f32 %v6946_v2, %v18717_v55  ;;  %7503 = vrot.lane.b32.xlu0 %v7427_v1, %s14897_s2  ;;  %v7314_v55 = vpop.f32.mrf.mxu0 }
 0x6aa   :  { %v13937_v61 = vpop.f32.mrf.mxu1 }
 0x6ab   :  { %v7429_v25 = vmax.f32 %v7399_v38, 0.0  ;;  %v7402_v11 = vadd.f32 %v18759_v53, %v7364_v24  ;;  %v7363_v5 = vadd.f32 %v7294_v0, %v6947_v57  ;;  %v6962_v47 = vadd.f32 %v13937_v61, %v18719_v41  ;;  %7509 = vrot.lane.b32.xlu1 %v7430_v33, %s14897_s2  ;;  %v14012_v41 = vpop.f32.mrf.mxu0  ;;  %v11796_v33 = vld [vmem:[%s20180_s4] ss:$0 sm:$0xff] }
 0x6ac   :  { %v6956_v6 = vpop.f32.mrf.mxu1 }
 0x6ad   :  { %v7432_v63 = vmax.f32 %v7402_v11, 0.0  ;;  %v7401_v4 = vadd.f32 %v18759_v53, %v7363_v5  ;;  %v7366_v29 = vadd.f32 %v14006_v39, %v6962_v47  ;;  %v6957_v35 = vadd.f32 %v6956_v6, %v18721_v44  ;;  %7507 = vrot.lane.b32.xlu0 %v7429_v25, %s14897_s2  ;;  %v11764_v11 = vld [vmem:[%s20179_s3 + $0x470] sm:$0xff] }
 0x6ae   :  { %v13940_v26 = vpop.f32.mrf.mxu1 }
 0x6af   :  { %v7431_v19 = vmax.f32 %v7401_v4, 0.0  ;;  %v7404_v8 = vadd.f32 %v18759_v53, %v7366_v29  ;;  %v7365_v9 = vadd.f32 %v7304_v27, %v6957_v35  ;;  %v6972_v60 = vadd.f32 %v13940_v26, %v18723_v22  ;;  %7513 = vrot.lane.b32.xlu1 %v7432_v63, %s14897_s2  ;;  %v7324_v22 = vpop.f32.mrf.mxu0  ;;  %v11763_v4 = vld [vmem:[%s20179_s3 + $0x468] sm:$0xff]  ;;  %v11762_v26 = vld [vmem:[%s20179_s3 + $0x460] sm:$0xff] }
 0x6b0   :  { %v6966_v28 = vpop.f32.mrf.mxu1 }
 0x6b1   :  { %v7434_v56 = vmax.f32 %v7404_v8, 0.0  ;;  %v7403_v21 = vadd.f32 %v18759_v53, %v7365_v9  ;;  %v7368_v59 = vadd.f32 %v14009_v43, %v6972_v60  ;;  %v6967_v44 = vadd.f32 %v6966_v28, %v18725_v18  ;;  %7511 = vrot.lane.b32.xlu0 %v7431_v19, %s14897_s2  ;;  %v14015_v62 = vpop.f32.mrf.mxu0 }
 0x6b2   :  { %v13943_v46 = vpop.f32.mrf.mxu1 }
 0x6b3   :  { %v7433_v58 = vmax.f32 %v7403_v21, 0.0  ;;  %v7406_v23 = vadd.f32 %v18759_v53, %v7368_v59  ;;  %v7367_v45 = vadd.f32 %v7314_v55, %v6967_v44  ;;  %v6982_v14 = vadd.f32 %v13943_v46, %v18729_v54  ;;  %7517 = vrot.lane.b32.xlu1 %v7434_v56, %s14897_s2  ;;  %v11760_v44 = vld [vmem:[%s20179_s3 + $0x450] sm:$0xff] }
 0x6b4   :  { %v6976_v0 = vpop.f32.mrf.mxu1 }
 0x6b5   :  { %v7436_v52 = vmax.f32 %v7406_v23, 0.0  ;;  %v7405_v40 = vadd.f32 %v18759_v53, %v7367_v45  ;;  %v7370_v37 = vadd.f32 %v14012_v41, %v6982_v14  ;;  %v6977_v20 = vadd.f32 %v6976_v0, %v18733_v51  ;;  %7515 = vrot.lane.b32.xlu0 %v7433_v58, %s14897_s2  ;;  %v7334_v51 = vpop.f32.mrf.mxu0  ;;  %v11761_v41 = vld [vmem:[%s20179_s3 + $0x458] sm:$0xff]  ;;  %v11759_v14 = vld [vmem:[%s20179_s3 + $0x448] sm:$0xff] }
 0x6b6   :  { %v13946_v18 = vpop.f32.mrf.mxu1 }
 0x6b7   :  { %v7435_v39 = vmax.f32 %v7405_v40, 0.0  ;;  %v7408_v50 = vadd.f32 %v18759_v53, %v7370_v37  ;;  %v7369_v30 = vadd.f32 %v7324_v22, %v6977_v20  ;;  %v6992_v54 = vadd.f32 %v13946_v18, %v18737_v15  ;;  %7521 = vrot.lane.b32.xlu1 %v7436_v52, %s14897_s2  ;;  %v11758_v37 = vld [vmem:[%s20179_s3 + $0x440] sm:$0xff] }
 0x6b8   :  { %v6986_v17 = vpop.f32.mrf.mxu1 }
 0x6b9   :  { %v7438_v32 = vmax.f32 %v7408_v50, 0.0  ;;  %v7407_v42 = vadd.f32 %v18759_v53, %v7369_v30  ;;  %v7372_v10 = vadd.f32 %v14015_v62, %v6992_v54  ;;  %v6987_v1 = vadd.f32 %v6986_v17, %v18745_v31  ;;  %7519 = vrot.lane.b32.xlu0 %v7435_v39, %s14897_s2  ;;  %v11757_v50 = vld [vmem:[%s20179_s3 + $0x438] sm:$0xff] }
 0x6bb   :  { %v7437_v3 = vmax.f32 %v7407_v42, 0.0  ;;  %v7410_v34 = vadd.f32 %v18759_v53, %v7372_v10  ;;  %v7371_v16 = vadd.f32 %v7334_v51, %v6987_v1  ;;  %7525 = vrot.lane.b32.xlu1 %v7438_v32, %s14897_s2  ;;  %v11756_v42 = vld [vmem:[%s20179_s3 + $0x430] sm:$0xff] }
 0x6bd   :  { %v7440_v27 = vmax.f32 %v7410_v34, 0.0  ;;  %v7409_v15 = vadd.f32 %v18759_v53, %v7371_v16  ;;  %7523 = vrot.lane.b32.xlu0 %v7437_v3, %s14897_s2  ;;  %v11755_v34 = vld [vmem:[%s20179_s3 + $0x428] sm:$0xff] }
 0x6bf   :  { %v7439_v2 = vmax.f32 %v7409_v15, 0.0  ;;  %7529 = vrot.lane.b32.xlu1 %v7440_v27, %s14897_s2 }
 0x6c1   :  { %7527 = vrot.lane.b32.xlu0 %v7439_v2, %s14897_s2 }
 0x6c5   :  { %8559 = vrot.lane.b32.xlu0 %v11796_v33, %s14901_s23 }
 0x6f9   :  { %v7474_v31 = vpop.permute.xlu1 %7473 }
 0x6fa   :  { %7562 = vst.msk [vmem:[#allocation2 + $0x18] sm:$0xff] %vm4051_vm7, %v7474_v31  ;;  %v11754_v31 = vld [vmem:[%s20179_s3 + $0x420] sm:$0xff] }
 0x6fb   :  { %v7472_v38 = vpop.permute.xlu0 %7471 }
 0x6fc   :  { %7561 = vst.msk [vmem:[#allocation2 + $0x10] sm:$0xff] %vm4051_vm7, %v7472_v38 }
 0x6fd   :  { %v7478_v53 = vpop.permute.xlu1 %7477 }
 0x6fe   :  { %7564 = vst.msk [vmem:[#allocation2 + $0x28] sm:$0xff] %vm4051_vm7, %v7478_v53 }
 0x6ff   :  { %v7476_v24 = vpop.permute.xlu0 %7475 }
 0x700   :  { %7563 = vst.msk [vmem:[#allocation2 + $0x20] sm:$0xff] %vm4051_vm7, %v7476_v24 }
 0x701   :  { %v7482_v57 = vpop.permute.xlu1 %7481  ;;  %v7595_v25 = vld [vmem:[#allocation2 + $0x18] sm:$0xff] }
 0x702   :  { %7566 = vst.msk [vmem:[#allocation2 + $0x38] sm:$0xff] %vm4051_vm7, %v7482_v57 }
 0x703   :  { %v7480_v43 = vpop.permute.xlu0 %7479  ;;  %v7594_v61 = vld [vmem:[#allocation2 + $0x10] sm:$0xff] }
 0x704   :  { %7565 = vst.msk [vmem:[#allocation2 + $0x30] sm:$0xff] %vm4051_vm7, %v7480_v43  ;;  %14040 = vmatprep.mubr.msk.f32.mxu1 %vm748_vm8, %v7594_v61  ;;  %14112 = vmatprep.mubr.msk.f32.mxu0 %vm748_vm8, %v7594_v61 }
 0x705   :  { %v7486_v5 = vpop.permute.xlu1 %7485  ;;  %14041 = vmatmul.mubr.msk.f32.vlgmr.msra.gmra.mxu1 %vm748_vm8, %v7595_v25  ;;  %14113 = vmatmul.mubr.msk.f32.gmra.mxu0 %vm748_vm8, %v7595_v25  ;;  %v18896_v63 = vld [vmem:[#allocation2 + $0x28] sm:$0xff] }
 0x706   :  { %7568 = vst.msk [vmem:[#allocation2 + $0x48] sm:$0xff] %vm4051_vm7, %v7486_v5  ;;  %14155 = vmatpush3.msra.mxu1 %v18773_v49 }
 0x707   :  { %v7484_v47 = vpop.permute.xlu0 %7483  ;;  %v18889_v6 = vld [vmem:[#allocation2 + $0x20] sm:$0xff]  ;;  %14156 = vmatprep.subr.mxu1 %v11764_v11 }
 0x708   :  { %7567 = vst.msk [vmem:[#allocation2 + $0x40] sm:$0xff] %vm4051_vm7, %v7484_v47  ;;  %14043 = vmatprep.mubr.msk.f32.mxu1 %vm748_vm8, %v18889_v6  ;;  %14115 = vmatprep.mubr.msk.f32.mxu0 %vm748_vm8, %v18889_v6 }
 0x709   :  { %v7490_v29 = vpop.permute.xlu1 %7489  ;;  %14044 = vmatmul.mubr.msk.f32.gmra.mxu1 %vm748_vm8, %v18896_v63  ;;  %14116 = vmatmul.mubr.msk.f32.gmra.mxu0 %vm748_vm8, %v18896_v63  ;;  %v18913_v55 = vld [vmem:[#allocation2 + $0x38] sm:$0xff] }
 0x70a   :  { %7570 = vst.msk [vmem:[#allocation2 + $0x58] sm:$0xff] %vm4051_vm7, %v7490_v29  ;;  %14157 = vmatpush3.msra.mxu1 %v11764_v11  ;;  %v19116_v29 = vpop.f32.mrf.mxu0 }
 0x70b   :  { %v7488_v49 = vpop.permute.xlu0 %7487  ;;  %v18906_v35 = vld [vmem:[#allocation2 + $0x30] sm:$0xff]  ;;  %14158 = vmatprep.subr.mxu1 %v11763_v4 }
 0x70c   :  { %7569 = vst.msk [vmem:[#allocation2 + $0x50] sm:$0xff] %vm4051_vm7, %v7488_v49  ;;  %14046 = vmatprep.mubr.msk.f32.mxu1 %vm748_vm8, %v18906_v35  ;;  %14118 = vmatprep.mubr.msk.f32.mxu0 %vm748_vm8, %v18906_v35  ;;  %v19118_v49 = vpop.f32.mrf.mxu0 }
 0x70d   :  { %v7494_v19 = vpop.permute.xlu1 %7493  ;;  %14047 = vmatmul.mubr.msk.f32.gmra.mxu1 %vm748_vm8, %v18913_v55  ;;  %14119 = vmatmul.mubr.msk.f32.gmra.mxu0 %vm748_vm8, %v18913_v55  ;;  %v18930_v60 = vld [vmem:[#allocation2 + $0x48] sm:$0xff] }
 0x70e   :  { %7572 = vst.msk [vmem:[#allocation2 + $0x68] sm:$0xff] %vm4051_vm7, %v7494_v19  ;;  %14159 = vmatpush3.msra.mxu1 %v11763_v4 }
 0x70f   :  { %v7492_v8 = vpop.permute.xlu0 %7491  ;;  %v18923_v9 = vld [vmem:[#allocation2 + $0x40] sm:$0xff]  ;;  %14160 = vmatprep.subr.mxu1 %v11762_v26 }
 0x710   :  { %7571 = vst.msk [vmem:[#allocation2 + $0x60] sm:$0xff] %vm4051_vm7, %v7492_v8  ;;  %14049 = vmatprep.mubr.msk.f32.mxu1 %vm748_vm8, %v18923_v9  ;;  %14121 = vmatprep.mubr.msk.f32.mxu0 %vm748_vm8, %v18923_v9 }
 0x711   :  { %v7498_v28 = vpop.permute.xlu1 %7497  ;;  %14050 = vmatmul.mubr.msk.f32.gmra.mxu1 %vm748_vm8, %v18930_v60  ;;  %14122 = vmatmul.mubr.msk.f32.gmra.mxu0 %vm748_vm8, %v18930_v60  ;;  %v18947_v59 = vld [vmem:[#allocation2 + $0x58] sm:$0xff] }
 0x712   :  { %7574 = vst.msk [vmem:[#allocation2 + $0x78] sm:$0xff] %vm4051_vm7, %v7498_v28  ;;  %14161 = vmatpush3.msra.mxu1 %v11762_v26  ;;  %v11808_v26 = vld [vmem:[%s20179_s3 + $0x4d8] sm:$0xff] }
 0x713   :  { %v7496_v56 = vpop.permute.xlu0 %7495  ;;  %v18940_v21 = vld [vmem:[#allocation2 + $0x50] sm:$0xff]  ;;  %14162 = vmatprep.subr.mxu1 %v11761_v41 }
 0x714   :  { %7573 = vst.msk [vmem:[#allocation2 + $0x70] sm:$0xff] %vm4051_vm7, %v7496_v56  ;;  %14052 = vmatprep.mubr.msk.f32.mxu1 %vm748_vm8, %v18940_v21  ;;  %14124 = vmatprep.mubr.msk.f32.mxu0 %vm748_vm8, %v18940_v21 }
 0x715   :  { %v7502_v46 = vpop.permute.xlu1 %7501  ;;  %14053 = vmatmul.mubr.msk.f32.gmra.mxu1 %vm748_vm8, %v18947_v59  ;;  %14125 = vmatmul.mubr.msk.f32.gmra.mxu0 %vm748_vm8, %v18947_v59  ;;  %v18964_v45 = vld [vmem:[#allocation2 + $0x68] sm:$0xff] }
 0x716   :  { %7576 = vst.msk [vmem:[#allocation2 + $0x88] sm:$0xff] %vm4051_vm7, %v7502_v46  ;;  %14163 = vmatpush3.msra.mxu1 %v11761_v41 }
 0x717   :  { %v7500_v58 = vpop.permute.xlu0 %7499  ;;  %v18957_v23 = vld [vmem:[#allocation2 + $0x60] sm:$0xff]  ;;  %14164 = vmatprep.subr.mxu1 %v11760_v44 }
 0x718   :  { %7575 = vst.msk [vmem:[#allocation2 + $0x80] sm:$0xff] %vm4051_vm7, %v7500_v58  ;;  %14055 = vmatprep.mubr.msk.f32.mxu1 %vm748_vm8, %v18957_v23  ;;  %14127 = vmatprep.mubr.msk.f32.mxu0 %vm748_vm8, %v18957_v23 }
 0x719   :  { %v7506_v22 = vpop.permute.xlu1 %7505  ;;  %14056 = vmatmul.mubr.msk.f32.gmra.mxu1 %vm748_vm8, %v18964_v45  ;;  %14128 = vmatmul.mubr.msk.f32.gmra.mxu0 %vm748_vm8, %v18964_v45  ;;  %v18981_v40 = vld [vmem:[#allocation2 + $0x78] sm:$0xff] }
 0x71a   :  { %7578 = vst.msk [vmem:[#allocation2 + $0x98] sm:$0xff] %vm4051_vm7, %v7506_v22  ;;  %14165 = vmatpush3.msra.mxu1 %v11760_v44 }
 0x71b   :  { %v7504_v0 = vpop.permute.xlu0 %7503  ;;  %v18974_v52 = vld [vmem:[#allocation2 + $0x70] sm:$0xff]  ;;  %14166 = vmatprep.subr.mxu1 %v11759_v14 }
 0x71c   :  { %7577 = vst.msk [vmem:[#allocation2 + $0x90] sm:$0xff] %vm4051_vm7, %v7504_v0  ;;  %14058 = vmatprep.mubr.msk.f32.mxu1 %vm748_vm8, %v18974_v52  ;;  %14130 = vmatprep.mubr.msk.f32.mxu0 %vm748_vm8, %v18974_v52 }
 0x71d   :  { %v7510_v20 = vpop.permute.xlu1 %7509  ;;  %14059 = vmatmul.mubr.msk.f32.gmra.mxu1 %vm748_vm8, %v18981_v40  ;;  %14131 = vmatmul.mubr.msk.f32.gmra.mxu0 %vm748_vm8, %v18981_v40  ;;  %v18998_v39 = vld [vmem:[#allocation2 + $0x88] sm:$0xff] }
 0x71e   :  { %7580 = vst.msk [vmem:[#allocation2 + $0xa8] sm:$0xff] %vm4051_vm7, %v7510_v20  ;;  %14167 = vmatpush3.msra.mxu1 %v11759_v14 }
 0x71f   :  { %v7508_v18 = vpop.permute.xlu0 %7507  ;;  %v18991_v62 = vld [vmem:[#allocation2 + $0x80] sm:$0xff]  ;;  %14168 = vmatprep.subr.mxu1 %v11758_v37 }
 0x720   :  { %7579 = vst.msk [vmem:[#allocation2 + $0xa0] sm:$0xff] %vm4051_vm7, %v7508_v18  ;;  %14061 = vmatprep.mubr.msk.f32.mxu1 %vm748_vm8, %v18991_v62  ;;  %14133 = vmatprep.mubr.msk.f32.mxu0 %vm748_vm8, %v18991_v62 }
 0x721   :  { %v7514_v30 = vpop.permute.xlu1 %7513  ;;  %14062 = vmatmul.mubr.msk.f32.gmra.mxu1 %vm748_vm8, %v18998_v39  ;;  %14134 = vmatmul.mubr.msk.f32.gmra.mxu0 %vm748_vm8, %v18998_v39  ;;  %v19015_v32 = vld [vmem:[#allocation2 + $0x98] sm:$0xff] }
 0x722   :  { %7582 = vst.msk [vmem:[#allocation2 + $0xb8] sm:$0xff] %vm4051_vm7, %v7514_v30  ;;  %14169 = vmatpush3.msra.mxu1 %v11758_v37 }
 0x723   :  { %v7512_v54 = vpop.permute.xlu0 %7511  ;;  %v19008_v17 = vld [vmem:[#allocation2 + $0x90] sm:$0xff]  ;;  %14170 = vmatprep.subr.mxu1 %v11757_v50 }
 0x724   :  { %7581 = vst.msk [vmem:[#allocation2 + $0xb0] sm:$0xff] %vm4051_vm7, %v7512_v54  ;;  %14064 = vmatprep.mubr.msk.f32.mxu1 %vm748_vm8, %v19008_v17  ;;  %14136 = vmatprep.mubr.msk.f32.mxu0 %vm748_vm8, %v19008_v17 }
 0x725   :  { %v7518_v10 = vpop.permute.xlu1 %7517  ;;  %14065 = vmatmul.mubr.msk.f32.gmra.mxu1 %vm748_vm8, %v19015_v32  ;;  %14137 = vmatmul.mubr.msk.f32.gmra.mxu0 %vm748_vm8, %v19015_v32  ;;  %v19032_v3 = vld [vmem:[#allocation2 + $0xa8] sm:$0xff] }
 0x726   :  { %7584 = vst.msk [vmem:[#allocation2 + $0xc8] sm:$0xff] %vm4051_vm7, %v7518_v10  ;;  %14171 = vmatpush3.msra.mxu1 %v11757_v50 }
 0x727   :  { %v7516_v1 = vpop.permute.xlu0 %7515  ;;  %v19025_v51 = vld [vmem:[#allocation2 + $0xa0] sm:$0xff]  ;;  %14172 = vmatprep.subr.mxu1 %v11756_v42 }
 0x728   :  { %7583 = vst.msk [vmem:[#allocation2 + $0xc0] sm:$0xff] %vm4051_vm7, %v7516_v1  ;;  %14067 = vmatprep.mubr.msk.f32.mxu1 %vm748_vm8, %v19025_v51  ;;  %14139 = vmatprep.mubr.msk.f32.mxu0 %vm748_vm8, %v19025_v51 }
 0x729   :  { %v7522_v16 = vpop.permute.xlu1 %7521  ;;  %14068 = vmatmul.mubr.msk.f32.gmra.mxu1 %vm748_vm8, %v19032_v3  ;;  %14140 = vmatmul.mubr.msk.f32.gmra.mxu0 %vm748_vm8, %v19032_v3  ;;  %v7615_v2 = vld [vmem:[#allocation2 + $0xb8] sm:$0xff] }
 0x72a   :  { %7586 = vst.msk [vmem:[#allocation2 + $0xd8] sm:$0xff] %vm4051_vm7, %v7522_v16  ;;  %14173 = vmatpush3.msra.mxu1 %v11756_v42 }
 0x72b   :  { %v7520_v27 = vpop.permute.xlu0 %7519  ;;  %v7614_v15 = vld [vmem:[#allocation2 + $0xb0] sm:$0xff]  ;;  %14174 = vmatprep.subr.mxu1 %v11755_v34 }
 0x72c   :  { %7585 = vst.msk [vmem:[#allocation2 + $0xd0] sm:$0xff] %vm4051_vm7, %v7520_v27  ;;  %14070 = vmatprep.mubr.msk.f32.mxu1 %vm748_vm8, %v7614_v15  ;;  %14142 = vmatprep.mubr.msk.f32.mxu0 %vm748_vm8, %v7614_v15 }
 0x72d   :  { %v7526_v33 = vpop.permute.xlu1 %7525  ;;  %14071 = vmatmul.mubr.msk.f32.gmra.mxu1 %vm748_vm8, %v7615_v2  ;;  %14143 = vmatmul.mubr.msk.f32.gmra.mxu0 %vm748_vm8, %v7615_v2  ;;  %v7617_v24 = vld [vmem:[#allocation2 + $0xc8] sm:$0xff] }
 0x72e   :  { %7588 = vst.msk [vmem:[#allocation2 + $0xe8] sm:$0xff] %vm4051_vm7, %v7526_v33  ;;  %14175 = vmatpush3.msra.mxu1 %v11755_v34 }
 0x72f   :  { %v7524_v38 = vpop.permute.xlu0 %7523  ;;  %v7616_v53 = vld [vmem:[#allocation2 + $0xc0] sm:$0xff]  ;;  %14176 = vmatprep.subr.mxu1 %v11754_v31 }
 0x730   :  { %7587 = vst.msk [vmem:[#allocation2 + $0xe0] sm:$0xff] %vm4051_vm7, %v7524_v38  ;;  %14073 = vmatprep.mubr.msk.f32.mxu1 %vm748_vm8, %v7616_v53  ;;  %14145 = vmatprep.mubr.msk.f32.mxu0 %vm748_vm8, %v7616_v53 }
 0x731   :  { %v7530_v57 = vpop.permute.xlu1 %7529  ;;  %14074 = vmatmul.mubr.msk.f32.gmra.mxu1 %vm748_vm8, %v7617_v24  ;;  %14146 = vmatmul.mubr.msk.f32.gmra.mxu0 %vm748_vm8, %v7617_v24  ;;  %v7619_v25 = vld [vmem:[#allocation2 + $0xd8] sm:$0xff] }
 0x732   :  { %7590 = vst.msk [vmem:[#allocation2 + $0xf8] sm:$0xff] %vm4051_vm7, %v7530_v57  ;;  %14177 = vmatpush3.msra.mxu1 %v11754_v31 }
 0x733   :  { %v7528_v43 = vpop.permute.xlu0 %7527  ;;  %v7618_v61 = vld [vmem:[#allocation2 + $0xd0] sm:$0xff]  ;;  %14268 = vmatprep.subr.mxu1 %v11808_v26 }
 0x734   :  { %7589 = vst.msk [vmem:[#allocation2 + $0xf0] sm:$0xff] %vm4051_vm7, %v7528_v43  ;;  %14076 = vmatprep.mubr.msk.f32.mxu1 %vm748_vm8, %v7618_v61  ;;  %14148 = vmatprep.mubr.msk.f32.mxu0 %vm748_vm8, %v7618_v61 }
 0x735   :  { %14077 = vmatmul.mubr.msk.f32.gmra.mxu1 %vm748_vm8, %v7619_v25  ;;  %14149 = vmatmul.mubr.msk.f32.gmra.mxu0 %vm748_vm8, %v7619_v25  ;;  %v7621_v5 = vld [vmem:[#allocation2 + $0xe8] sm:$0xff] }
 0x737   :  { %v7620_v11 = vld [vmem:[#allocation2 + $0xe0] sm:$0xff] }
 0x738   :  { %14079 = vmatprep.mubr.msk.f32.mxu1 %vm748_vm8, %v7620_v11  ;;  %14151 = vmatprep.mubr.msk.f32.mxu0 %vm748_vm8, %v7620_v11 }
 0x739   :  { %14080 = vmatmul.mubr.msk.f32.gmra.mxu1 %vm748_vm8, %v7621_v5  ;;  %14152 = vmatmul.mubr.msk.f32.gmra.mxu0 %vm748_vm8, %v7621_v5  ;;  %v7636_v4 = vld [vmem:[#allocation2 + $0xf8] sm:$0xff] }
 0x73b   :  { %v7635_v47 = vld [vmem:[#allocation2 + $0xf0] sm:$0xff] }
 0x73c   :  { %14082 = vmatprep.mubr.msk.f32.mxu1 %vm748_vm8, %v7635_v47 }
 0x73d   :  { %14083 = vmatmul.mubr.msk.f32.gmra.mxu1 %vm748_vm8, %v7636_v4 }
 0x73e   :  { %14178 = vmatprep.mubr.msk.f32.mxu1 %vm748_vm8, %v18889_v6  ;;  %v8204_v6 = vld [vmem:[#allocation2 + $0x100] sm:$0xff] }
 0x741   :  { %14179 = vmatmul.mubr.msk.f32.vlgmr.msra.gmra.mxu1 %vm748_vm8, %v18896_v63  ;;  %v8205_v63 = vld [vmem:[#allocation2 + $0x108] sm:$0xff] }
 0x742   :  { %14181 = vmatprep.mubr.msk.f32.mxu1 %vm748_vm8, %v18906_v35  ;;  %v11820_v35 = vld [vmem:[%s20179_s3 + $0x538] sm:$0xff]  ;;  %14269 = vmatpush3.msra.mxu1 %v11808_v26 }
 0x743   :  { %14223 = vmatprep.subr.mxu0 %v11820_v35 }
 0x744   :  { %14224 = vmatpush3.msra.mxu0 %v11820_v35  ;;  %v11807_v35 = vld [vmem:[%s20179_s3 + $0x4d0] sm:$0xff] }
 0x745   :  { %14182 = vmatmul.mubr.msk.f32.gmra.mxu1 %vm748_vm8, %v18913_v55  ;;  %v11819_v55 = vld [vmem:[%s20179_s3 + $0x530] sm:$0xff]  ;;  %14270 = vmatprep.subr.mxu1 %v11807_v35 }
 0x746   :  { %14184 = vmatprep.mubr.msk.f32.mxu1 %vm748_vm8, %v18923_v9  ;;  %14225 = vmatprep.subr.mxu0 %v11819_v55 }
 0x747   :  { %14226 = vmatpush3.msra.mxu0 %v11819_v55  ;;  %14271 = vmatpush3.msra.mxu1 %v11807_v35  ;;  %v19252_v35 = vpop.permute.xlu0 %8559 }
 0x748   :  { %14272 = vmatprep.subr.mxu1 %v11806_v48 }
 0x749   :  { %14185 = vmatmul.mubr.msk.f32.gmra.mxu1 %vm748_vm8, %v18930_v60 }
 0x74a   :  { %14187 = vmatprep.mubr.msk.f32.mxu1 %vm748_vm8, %v18940_v21  ;;  %14273 = vmatpush3.msra.mxu1 %v11806_v48  ;;  %v11804_v48 = vld [vmem:[%s20179_s3 + $0x4b8] sm:$0xff] }
 0x74b   :  { %14274 = vmatprep.subr.mxu1 %v11805_v12 }
 0x74c   :  { %14275 = vmatpush3.msra.mxu1 %v11805_v12  ;;  %v11803_v12 = vld [vmem:[%s20179_s3 + $0x4b0] sm:$0xff] }
 0x74d   :  { %14188 = vmatmul.mubr.msk.f32.gmra.mxu1 %vm748_vm8, %v18947_v59  ;;  %14276 = vmatprep.subr.mxu1 %v11804_v48 }
 0x74e   :  { %14190 = vmatprep.mubr.msk.f32.mxu1 %vm748_vm8, %v18957_v23  ;;  %14277 = vmatpush3.msra.mxu1 %v11804_v48 }
 0x74f   :  { %14278 = vmatprep.subr.mxu1 %v11803_v12 }
 0x750   :  { %14279 = vmatpush3.msra.mxu1 %v11803_v12  ;;  %v11814_v12 = vld [vmem:[%s20179_s3 + $0x508] sm:$0xff] }
 0x751   :  { %14191 = vmatmul.mubr.msk.f32.gmra.mxu1 %vm748_vm8, %v18964_v45 }
 0x752   :  { %14193 = vmatprep.mubr.msk.f32.mxu1 %vm748_vm8, %v18974_v52 }
 0x755   :  { %14194 = vmatmul.mubr.msk.f32.gmra.mxu1 %vm748_vm8, %v18981_v40 }
 0x756   :  { %14196 = vmatprep.mubr.msk.f32.mxu1 %vm748_vm8, %v18991_v62 }
 0x759   :  { %14197 = vmatmul.mubr.msk.f32.gmra.mxu1 %vm748_vm8, %v18998_v39 }
 0x75a   :  { %14199 = vmatprep.mubr.msk.f32.mxu1 %vm748_vm8, %v19008_v17 }
 0x75d   :  { %14200 = vmatmul.mubr.msk.f32.gmra.mxu1 %vm748_vm8, %v19015_v32 }
 0x75e   :  { %14202 = vmatprep.mubr.msk.f32.mxu1 %vm748_vm8, %v19025_v51 }
 0x761   :  { %14203 = vmatmul.mubr.msk.f32.gmra.mxu1 %vm748_vm8, %v19032_v3 }
 0x762   :  { %14205 = vmatprep.mubr.msk.f32.mxu1 %vm748_vm8, %v7614_v15 }
 0x765   :  { %14206 = vmatmul.mubr.msk.f32.gmra.mxu1 %vm748_vm8, %v7615_v2 }
 0x766   :  { %14208 = vmatprep.mubr.msk.f32.mxu1 %vm748_vm8, %v7616_v53 }
 0x769   :  { %14209 = vmatmul.mubr.msk.f32.gmra.mxu1 %vm748_vm8, %v7617_v24 }
 0x76a   :  { %14211 = vmatprep.mubr.msk.f32.mxu1 %vm748_vm8, %v7618_v61 }
 0x76d   :  { %14212 = vmatmul.mubr.msk.f32.gmra.mxu1 %vm748_vm8, %v7619_v25 }
 0x76e   :  { %14214 = vmatprep.mubr.msk.f32.mxu1 %vm748_vm8, %v7620_v11 }
 0x771   :  { %14215 = vmatmul.mubr.msk.f32.gmra.mxu1 %vm748_vm8, %v7621_v5 }
 0x772   :  { %14217 = vmatprep.mubr.msk.f32.mxu1 %vm748_vm8, %v7635_v47 }
 0x775   :  { %14218 = vmatmul.mubr.msk.f32.gmra.mxu1 %vm748_vm8, %v7636_v4 }
 0x776   :  { %14220 = vmatprep.mubr.msk.f32.mxu1 %vm748_vm8, %v8204_v6 }
 0x779   :  { %14221 = vmatmul.mubr.msk.f32.gmra.mxu1 %vm748_vm8, %v8205_v63 }
 0x7c5   :  { %v19129_v19 = vpop.f32.mrf.mxu1  ;;  %v19131_v8 = vpop.f32.mrf.mxu0 }
 0x7c6   :  { %v8033_v7 = vadd.f32 %v19116_v29, %v19129_v19  ;;  %v11817_v19 = vld [vmem:[%s20179_s3 + $0x520] sm:$0xff] }
 0x7c7   :  { %v19133_v9 = vpop.f32.mrf.mxu1  ;;  %v19135_v60 = vpop.f32.mrf.mxu0 }
 0x7c9   :  { %v19137_v41 = vpop.f32.mrf.mxu1  ;;  %v19139_v28 = vpop.f32.mrf.mxu0 }
 0x7cb   :  { %v19141_v56 = vpop.f32.mrf.mxu1  ;;  %v19143_v21 = vpop.f32.mrf.mxu0 }
 0x7cd   :  { %v19145_v59 = vpop.f32.mrf.mxu1  ;;  %v19147_v44 = vpop.f32.mrf.mxu0 }
 0x7cf   :  { %v19149_v46 = vpop.f32.mrf.mxu1  ;;  %v19151_v58 = vpop.f32.mrf.mxu0 }
 0x7d1   :  { %v19153_v23 = vpop.f32.mrf.mxu1  ;;  %v19155_v45 = vpop.f32.mrf.mxu0 }
 0x7d3   :  { %v19157_v14 = vpop.f32.mrf.mxu1  ;;  %v19159_v22 = vpop.f32.mrf.mxu0 }
 0x7d5   :  { %v19161_v0 = vpop.f32.mrf.mxu1  ;;  %v19163_v52 = vpop.f32.mrf.mxu0 }
 0x7d7   :  { %v19165_v40 = vpop.f32.mrf.mxu1  ;;  %v19167_v37 = vpop.f32.mrf.mxu0 }
 0x7d9   :  { %v19169_v20 = vpop.f32.mrf.mxu1  ;;  %v19171_v18 = vpop.f32.mrf.mxu0 }
 0x7db   :  { %v19173_v62 = vpop.f32.mrf.mxu1  ;;  %v19175_v39 = vpop.f32.mrf.mxu0 }
 0x7dd   :  { %v19177_v50 = vpop.f32.mrf.mxu1  ;;  %v19179_v30 = vpop.f32.mrf.mxu0 }
 0x7df   :  { %v19181_v54 = vpop.f32.mrf.mxu1  ;;  %v19183_v17 = vpop.f32.mrf.mxu0 }
 0x7e1   :  { %v19185_v32 = vpop.f32.mrf.mxu1  ;;  %v19187_v42 = vpop.f32.mrf.mxu0 }
 0x7e3   :  { %v19189_v10 = vpop.f32.mrf.mxu1  ;;  %v19191_v1 = vpop.f32.mrf.mxu0 }
 0x7e5   :  { %v19193_v51 = vpop.f32.mrf.mxu1  ;;  %v19195_v3 = vpop.f32.mrf.mxu0 }
 0x7e7   :  { %v19197_v34 = vpop.f32.mrf.mxu1  ;;  %v19199_v16 = vpop.f32.mrf.mxu0 }
 0x7e9   :  { %v19201_v27 = vpop.f32.mrf.mxu1  ;;  %v19203_v15 = vpop.f32.mrf.mxu0 }
 0x7eb   :  { %v19205_v2 = vpop.f32.mrf.mxu1  ;;  %v19207_v31 = vpop.f32.mrf.mxu0 }
 0x7ed   :  { %v19209_v33 = vpop.f32.mrf.mxu1  ;;  %v19211_v38 = vpop.f32.mrf.mxu0 }
 0x7ef   :  { %v19213_v53 = vpop.f32.mrf.mxu1  ;;  %v19215_v24 = vpop.f32.mrf.mxu0 }
 0x7f1   :  { %v19217_v57 = vpop.f32.mrf.mxu1  ;;  %v19219_v43 = vpop.f32.mrf.mxu0 }
 0x7f3   :  { %v19221_v61 = vpop.f32.mrf.mxu1  ;;  %v19223_v25 = vpop.f32.mrf.mxu0 }
 0x7f5   :  { %v19225_v11 = vpop.f32.mrf.mxu1  ;;  %v19227_v5 = vpop.f32.mrf.mxu0 }
 0x7f7   :  { %v19229_v47 = vpop.f32.mrf.mxu1  ;;  %v19231_v4 = vpop.f32.mrf.mxu0 }
 0x7f8   :  { %20424 = vst [vmem:[#allocation35_spill] sm:$0xff] %v19231_v4 }
 0x7f9   :  { %v19233_v6 = vpop.f32.mrf.mxu1  ;;  %v14153_v55 = vpop.f32.mrf.mxu0 }
 0x7fb   :  { %v19235_v63 = vpop.f32.mrf.mxu1 }
 0x7fc   :  { %20425 = vst [vmem:[#allocation12_spill] sm:$0xff] %v19235_v63 }
 0x7fd   :  { %v14084_v26 = vpop.f32.mrf.mxu1 }
 0x7fe   :  { %v19243_v36 = vadd.f32 %v14153_v55, %v14084_v26  ;;  %v11818_v55 = vld [vmem:[%s20179_s3 + $0x528] sm:$0xff]  ;;  %v8028_v26 = vadd.f32 %v19118_v49, %v19133_v9  ;;  %v11816_v9 = vld [vmem:[%s20179_s3 + $0x518] sm:$0xff] }
 0x7ff   :  { %v19245_v13 = vpop.f32.mrf.mxu1  ;;  %14227 = vmatprep.subr.mxu0 %v11818_v55 }
 0x800   :  { %20426 = vst [vmem:[#allocation38_spill] sm:$0xff] %v19243_v36  ;;  %20427 = vst [vmem:[#allocation13_spill] sm:$0xff] %v19245_v13  ;;  %14228 = vmatpush3.msra.mxu0 %v11818_v55  ;;  %v8043_v36 = vadd.f32 %v19131_v8, %v19137_v41  ;;  %v8038_v55 = vadd.f32 %v19135_v60, %v19141_v56  ;;  %v8053_v60 = vadd.f32 %v19139_v28, %v19145_v59  ;;  %v11800_v28 = vld [vmem:[%s20179_s3 + $0x498] sm:$0xff] }
 0x801   :  { %v14180_v4 = vpop.f32.mrf.mxu1  ;;  %14229 = vmatprep.subr.mxu0 %v11817_v19 }
 0x802   :  { %v8525_v13 = vadd.f32 %v14180_v4, %v8033_v7  ;;  %14230 = vmatpush3.msra.mxu0 %v11817_v19  ;;  %v11802_v4 = vld [vmem:[%s20179_s3 + $0x4a8] sm:$0xff] }
 0x803   :  { %v8375_v29 = vpop.f32.mrf.mxu1  ;;  %14231 = vmatprep.subr.mxu0 %v11816_v9  ;;  %14280 = vmatprep.subr.mxu1 %v11802_v4 }
 0x804   :  { %v8524_v63 = vadd.f32 %v8375_v29, %v8028_v26  ;;  %v8563_v49 = vadd.f32 %v19252_v35, %v8525_v13  ;;  %14232 = vmatpush3.msra.mxu0 %v11816_v9  ;;  %14281 = vmatpush3.msra.mxu1 %v11802_v4  ;;  %v11815_v26 = vld [vmem:[%s20179_s3 + $0x510] sm:$0xff]  ;;  %v11801_v29 = vld [vmem:[%s20179_s3 + $0x4a0] sm:$0xff] }
 0x805   :  { %v14183_v7 = vpop.f32.mrf.mxu1  ;;  %14233 = vmatprep.subr.mxu0 %v11815_v26  ;;  %14282 = vmatprep.subr.mxu1 %v11801_v29 }
 0x806   :  { %v8527_v8 = vadd.f32 %v14183_v7, %v8043_v36  ;;  %v8593_v41 = vmax.f32 %v8563_v49, 0.0  ;;  %v8562_v13 = vadd.f32 %v19252_v35, %v8524_v63  ;;  %v8048_v63 = vadd.f32 %v19143_v21, %v19149_v46  ;;  %14234 = vmatpush3.msra.mxu0 %v11815_v26  ;;  %14283 = vmatpush3.msra.mxu1 %v11801_v29  ;;  %v11813_v21 = vld [vmem:[%s20179_s3 + $0x500] sm:$0xff]  ;;  %v11799_v46 = vld [vmem:[%s20179_s3 + $0x490] sm:$0xff]  ;;  %v11812_v26 = vld [vmem:[%s20179_s3 + $0x4f8] sm:$0xff] }
 0x807   :  { %v8385_v48 = vpop.f32.mrf.mxu1  ;;  %14235 = vmatprep.subr.mxu0 %v11814_v12  ;;  %14284 = vmatprep.subr.mxu1 %v11800_v28 }
 0x808   :  { %v8565_v36 = vadd.f32 %v19252_v35, %v8527_v8  ;;  %v8526_v56 = vadd.f32 %v8385_v48, %v8038_v55  ;;  %8654 = vrot.lane.b32.xlu1 %v8593_v41, %s14902_s30  ;;  %v8592_v9 = vmax.f32 %v8562_v13, 0.0  ;;  %14236 = vmatpush3.msra.mxu0 %v11814_v12  ;;  %v8063_v55 = vadd.f32 %v19147_v44, %v19153_v23  ;;  %v11797_v12 = vld [vmem:[%s20179_s3 + $0x480] sm:$0xff] }
 0x809   :  { %v14186_v19 = vpop.f32.mrf.mxu1  ;;  %v8058_v13 = vadd.f32 %v19151_v58, %v19157_v14  ;;  %14285 = vmatpush3.msra.mxu1 %v11800_v28  ;;  %14237 = vmatprep.subr.mxu0 %v11813_v21  ;;  %v11811_v58 = vld [vmem:[%s20179_s3 + $0x4f0] sm:$0xff]  ;;  %v8073_v14 = vadd.f32 %v19155_v45, %v19161_v0  ;;  %v8068_v28 = vadd.f32 %v19159_v22, %v19165_v40  ;;  %v19338_v22 = vld [vmem:[#allocation2 + $0x8] sm:$0xff] }
 0x80a   :  { %v8595_v59 = vmax.f32 %v8565_v36, 0.0  ;;  %v8564_v49 = vadd.f32 %v19252_v35, %v8526_v56  ;;  %v8529_v7 = vadd.f32 %v14186_v19, %v8053_v60  ;;  %14286 = vmatprep.subr.mxu1 %v11799_v46  ;;  %14238 = vmatpush3.msra.mxu0 %v11813_v21  ;;  %v11798_v36 = vld [vmem:[%s20179_s3 + $0x488] sm:$0xff]  ;;  %v8083_v40 = vadd.f32 %v19163_v52, %v19169_v20  ;;  %v11809_v20 = vld [vmem:[%s20179_s3 + $0x4e0] sm:$0xff] }
 0x80b   :  { %v8395_v4 = vpop.f32.mrf.mxu1  ;;  %14287 = vmatpush3.msra.mxu1 %v11799_v46  ;;  %14239 = vmatprep.subr.mxu0 %v11812_v26  ;;  %v11810_v21 = vld [vmem:[%s20179_s3 + $0x4e8] sm:$0xff] }
 0x80c   :  { %v8567_v8 = vadd.f32 %v19252_v35, %v8529_v7  ;;  %v8528_v41 = vadd.f32 %v8395_v4, %v8048_v63  ;;  %8658 = vrot.lane.b32.xlu0 %v8595_v59, %s14902_s30  ;;  %8652 = vrot.lane.b32.xlu1 %v8592_v9, %s14902_s30  ;;  %v8594_v29 = vmax.f32 %v8564_v49, 0.0  ;;  %v19333_v9 = vld [vmem:[#allocation2] sm:$0xff] }
 0x80d   :  { %v14189_v48 = vpop.f32.mrf.mxu1  ;;  %14288 = vmatprep.subr.mxu1 %v11798_v36  ;;  %14240 = vmatpush3.msra.mxu0 %v11812_v26 }
 0x80e   :  { %v8597_v60 = vmax.f32 %v8567_v8, 0.0  ;;  %v8566_v44 = vadd.f32 %v19252_v35, %v8528_v41  ;;  %v8531_v23 = vadd.f32 %v14189_v48, %v8063_v55  ;;  %14289 = vmatpush3.msra.mxu1 %v11798_v36  ;;  %14241 = vmatprep.subr.mxu0 %v11811_v58  ;;  %v8078_v8 = vadd.f32 %v19167_v37, %v19173_v62 }
 0x80f   :  { %v8405_v56 = vpop.f32.mrf.mxu1  ;;  %14290 = vmatprep.subr.mxu1 %v11797_v12  ;;  %14242 = vmatpush3.msra.mxu0 %v11811_v58  ;;  %v8093_v37 = vadd.f32 %v19171_v18, %v19177_v50  ;;  %v8103_v18 = vadd.f32 %v19179_v30, %v19185_v32  ;;  %v8113_v30 = vadd.f32 %v19187_v42, %v19193_v51 }
 0x810   :  { %v8569_v63 = vadd.f32 %v19252_v35, %v8531_v23  ;;  %v8530_v19 = vadd.f32 %v8405_v56, %v8058_v13  ;;  %8656 = vrot.lane.b32.xlu0 %v8594_v29, %s14902_s30  ;;  %8662 = vrot.lane.b32.xlu1 %v8597_v60, %s14902_s30  ;;  %v8596_v49 = vmax.f32 %v8566_v44, 0.0  ;;  %v8088_v44 = vadd.f32 %v19175_v39, %v19181_v54 }
 0x811   :  { %v14192_v59 = vpop.f32.mrf.mxu1  ;;  %14291 = vmatpush3.msra.mxu1 %v11797_v12  ;;  %14292 = vmatprep.mubr.msk.f32.mxu1 %vm748_vm8, %v19333_v9  ;;  %v8098_v39 = vadd.f32 %v19183_v17, %v19189_v10  ;;  %v8108_v17 = vadd.f32 %v19191_v1, %v19197_v34  ;;  %v8123_v42 = vadd.f32 %v19195_v3, %v19201_v27 }
 0x812   :  { %v8599_v7 = vmax.f32 %v8569_v63, 0.0  ;;  %v8568_v45 = vadd.f32 %v19252_v35, %v8530_v19  ;;  %v8533_v0 = vadd.f32 %v14192_v59, %v8073_v14  ;;  %14243 = vmatprep.subr.mxu0 %v11810_v21  ;;  %14293 = vmatmul.mubr.msk.f32.vlgmr.msra.gmra.mxu1 %vm748_vm8, %v19338_v22  ;;  %v8118_v1 = vadd.f32 %v19199_v16, %v19205_v2 }
 0x813   :  { %v8415_v4 = vpop.f32.mrf.mxu1  ;;  %14244 = vmatpush3.msra.mxu0 %v11810_v21  ;;  %v8133_v3 = vadd.f32 %v19203_v15, %v19209_v33  ;;  %v8128_v16 = vadd.f32 %v19207_v31, %v19213_v53  ;;  %v8143_v15 = vadd.f32 %v19211_v38, %v19217_v57  ;;  %v8138_v31 = vadd.f32 %v19215_v24, %v19221_v61 }
 0x814   :  { %v8571_v46 = vadd.f32 %v19252_v35, %v8533_v0  ;;  %v8532_v55 = vadd.f32 %v8415_v4, %v8068_v28  ;;  %8666 = vrot.lane.b32.xlu0 %v8599_v7, %s14902_s30  ;;  %8660 = vrot.lane.b32.xlu1 %v8596_v49, %s14902_s30  ;;  %v8598_v13 = vmax.f32 %v8568_v45, 0.0  ;;  %v8153_v57 = vadd.f32 %v19219_v43, %v19225_v11  ;;  %v20428_v11 = vld [vmem:[#allocation12_spill] sm:$0xff] }
 0x815   :  { %v14195_v41 = vpop.f32.mrf.mxu1  ;;  %14245 = vmatprep.subr.mxu0 %v11809_v20  ;;  %v8148_v24 = vadd.f32 %v19223_v25, %v19229_v47  ;;  %v8163_v25 = vadd.f32 %v19227_v5, %v19233_v6  ;;  %v20429_v47 = vld [vmem:[#allocation35_spill] sm:$0xff] }
 0x816   :  { %v8601_v48 = vmax.f32 %v8571_v46, 0.0  ;;  %v8570_v26 = vadd.f32 %v19252_v35, %v8532_v55  ;;  %v8535_v52 = vadd.f32 %v14195_v41, %v8083_v40  ;;  %14246 = vmatpush3.msra.mxu0 %v11809_v20 }
 0x817   :  { %v8425_v29 = vpop.f32.mrf.mxu1 }
 0x818   :  { %v8573_v62 = vadd.f32 %v19252_v35, %v8535_v52  ;;  %v8534_v60 = vadd.f32 %v8425_v29, %v8078_v8  ;;  %8664 = vrot.lane.b32.xlu0 %v8598_v13, %s14902_s30  ;;  %8670 = vrot.lane.b32.xlu1 %v8601_v48, %s14902_s30  ;;  %v8600_v36 = vmax.f32 %v8570_v26, 0.0 }
 0x819   :  { %v14198_v23 = vpop.f32.mrf.mxu1 }
 0x81a   :  { %v8603_v56 = vmax.f32 %v8573_v62, 0.0  ;;  %v8572_v58 = vadd.f32 %v19252_v35, %v8534_v60  ;;  %v8537_v14 = vadd.f32 %v14198_v23, %v8093_v37 }
 0x81b   :  { %v8435_v63 = vpop.f32.mrf.mxu1 }
 0x81c   :  { %v8575_v50 = vadd.f32 %v19252_v35, %v8537_v14  ;;  %v8536_v19 = vadd.f32 %v8435_v63, %v8088_v44  ;;  %8674 = vrot.lane.b32.xlu0 %v8603_v56, %s14902_s30  ;;  %8668 = vrot.lane.b32.xlu1 %v8600_v36, %s14902_s30  ;;  %v8602_v12 = vmax.f32 %v8572_v58, 0.0 }
 0x81d   :  { %v14201_v54 = vpop.f32.mrf.mxu1 }
 0x81e   :  { %v8605_v28 = vmax.f32 %v8575_v50, 0.0  ;;  %v8574_v59 = vadd.f32 %v19252_v35, %v8536_v19  ;;  %v8539_v49 = vadd.f32 %v14201_v54, %v8103_v18 }
 0x81f   :  { %v8445_v7 = vpop.f32.mrf.mxu1 }
 0x820   :  { %v8577_v32 = vadd.f32 %v19252_v35, %v8539_v49  ;;  %v8538_v45 = vadd.f32 %v8445_v7, %v8098_v39  ;;  %8672 = vrot.lane.b32.xlu0 %v8602_v12, %s14902_s30  ;;  %8678 = vrot.lane.b32.xlu1 %v8605_v28, %s14902_s30  ;;  %v8604_v0 = vmax.f32 %v8574_v59, 0.0  ;;  %v19414_v39 = vld [vmem:[%s20179_s3 + $0x598] sm:$0xff]  ;;  %v8158_v59 = vadd.f32 %v20429_v47, %v20428_v11 }
 0x821   :  { %v14204_v10 = vpop.f32.mrf.mxu1  ;;  %14313 = vmatprep.subr.mxu0 %v19414_v39  ;;  %v11856_v11 = vld [vmem:[%s20179_s3 + $0x578] sm:$0xff] }
 0x822   :  { %v8607_v4 = vmax.f32 %v8577_v32, 0.0  ;;  %v8576_v21 = vadd.f32 %v19252_v35, %v8538_v45  ;;  %v8541_v40 = vadd.f32 %v14204_v10, %v8113_v30 }
 0x823   :  { %v8455_v46 = vpop.f32.mrf.mxu1 }
 0x824   :  { %v8579_v51 = vadd.f32 %v19252_v35, %v8541_v40  ;;  %v8540_v55 = vadd.f32 %v8455_v46, %v8108_v17  ;;  %8682 = vrot.lane.b32.xlu0 %v8607_v4, %s14902_s30  ;;  %8676 = vrot.lane.b32.xlu1 %v8604_v0, %s14902_s30  ;;  %v8606_v8 = vmax.f32 %v8576_v21, 0.0  ;;  %v20430_v21 = vld [vmem:[#allocation38_spill] sm:$0xff] }
 0x825   :  { %v14207_v34 = vpop.f32.mrf.mxu1 }
 0x826   :  { %v8609_v41 = vmax.f32 %v8579_v51, 0.0  ;;  %v8578_v13 = vadd.f32 %v19252_v35, %v8540_v55  ;;  %v8543_v48 = vadd.f32 %v14207_v34, %v8123_v42  ;;  %v19438_v51 = vld [vmem:[%s20180_s4] ss:$0 sm:$0xff] }
 0x827   :  { %v8465_v26 = vpop.f32.mrf.mxu1 }
 0x828   :  { %v8581_v27 = vadd.f32 %v19252_v35, %v8543_v48  ;;  %v8542_v52 = vadd.f32 %v8465_v26, %v8118_v1  ;;  %8680 = vrot.lane.b32.xlu0 %v8606_v8, %s14902_s30  ;;  %8686 = vrot.lane.b32.xlu1 %v8609_v41, %s14902_s30  ;;  %v8608_v20 = vmax.f32 %v8578_v13, 0.0 }
 0x829   :  { %v14210_v2 = vpop.f32.mrf.mxu1 }
 0x82a   :  { %v8611_v29 = vmax.f32 %v8581_v27, 0.0  ;;  %v8580_v37 = vadd.f32 %v19252_v35, %v8542_v52  ;;  %v8545_v62 = vadd.f32 %v14210_v2, %v8133_v3 }
 0x82b   :  { %v8475_v60 = vpop.f32.mrf.mxu1 }
 0x82c   :  { %v8583_v33 = vadd.f32 %v19252_v35, %v8545_v62  ;;  %v8544_v44 = vadd.f32 %v8475_v60, %v8128_v16  ;;  %8690 = vrot.lane.b32.xlu0 %v8611_v29, %s14902_s30  ;;  %8684 = vrot.lane.b32.xlu1 %v8608_v20, %s14902_s30  ;;  %v8610_v23 = vmax.f32 %v8580_v37, 0.0 }
 0x82d   :  { %v14213_v53 = vpop.f32.mrf.mxu1 }
 0x82e   :  { %v8613_v36 = vmax.f32 %v8583_v33, 0.0  ;;  %v8582_v56 = vadd.f32 %v19252_v35, %v8544_v44  ;;  %v8547_v58 = vadd.f32 %v14213_v53, %v8143_v15 }
 0x82f   :  { %v8485_v14 = vpop.f32.mrf.mxu1 }
 0x830   :  { %v8585_v63 = vadd.f32 %v19252_v35, %v8547_v58  ;;  %v8546_v38 = vadd.f32 %v8485_v14, %v8138_v31  ;;  %8688 = vrot.lane.b32.xlu0 %v8610_v23, %s14902_s30  ;;  %8694 = vrot.lane.b32.xlu1 %v8613_v36, %s14902_s30  ;;  %v8612_v61 = vmax.f32 %v8582_v56, 0.0  ;;  %v11859_v14 = vld [vmem:[%s20179_s3 + $0x590] sm:$0xff] }
 0x831   :  { %v14216_v18 = vpop.f32.mrf.mxu1 }
 0x832   :  { %v8615_v50 = vmax.f32 %v8585_v63, 0.0  ;;  %v8584_v19 = vadd.f32 %v19252_v35, %v8546_v38  ;;  %v8549_v12 = vadd.f32 %v14216_v18, %v8153_v57 }
 0x833   :  { %v8495_v54 = vpop.f32.mrf.mxu1 }
 0x834   :  { %v8548_v28 = vadd.f32 %v8495_v54, %v8148_v24  ;;  %8698 = vrot.lane.b32.xlu0 %v8615_v50, %s14902_s30  ;;  %8692 = vrot.lane.b32.xlu1 %v8612_v61, %s14902_s30  ;;  %v8614_v49 = vmax.f32 %v8584_v19, 0.0  ;;  %v8587_v32 = vadd.f32 %v19252_v35, %v8549_v12  ;;  %v11858_v61 = vld [vmem:[%s20179_s3 + $0x588] sm:$0xff]  ;;  %v11857_v50 = vld [vmem:[%s20179_s3 + $0x580] sm:$0xff] }
 0x835   :  { %v14219_v43 = vpop.f32.mrf.mxu1 }
 0x836   :  { %v8586_v7 = vadd.f32 %v19252_v35, %v8548_v28  ;;  %v8551_v17 = vadd.f32 %v14219_v43, %v8163_v25  ;;  %v8617_v5 = vmax.f32 %v8587_v32, 0.0  ;;  %v20431_v32 = vmov 0.0  }
 0x837   :  { %v8505_v30 = vpop.f32.mrf.mxu1 }
 0x838   :  { %v8616_v45 = vmax.f32 %v8586_v7, 0.0  ;;  %v8550_v10 = vadd.f32 %v8505_v30, %v8158_v59  ;;  %8696 = vrot.lane.b32.xlu0 %v8614_v49, %s14902_s30  ;;  %v8589_v6 = vadd.f32 %v19252_v35, %v8551_v17  ;;  %v11854_v17 = vld [vmem:[%s20179_s3 + $0x568] sm:$0xff] }
 0x839   :  { %v14222_v0 = vpop.f32.mrf.mxu1 }
 0x83a   :  { %v8588_v4 = vadd.f32 %v19252_v35, %v8550_v10  ;;  %v19428_v40 = vadd.f32 %v14222_v0, %v20430_v21  ;;  %8700 = vrot.lane.b32.xlu1 %v8616_v45, %s14902_s30  ;;  %v8619_v42 = vmax.f32 %v8589_v6, 0.0  ;;  %v11855_v45 = vld [vmem:[%s20179_s3 + $0x570] sm:$0xff] }
 0x83c   :  { %v8618_v46 = vmax.f32 %v8588_v4, 0.0 }
 0x83e   :  { %8704 = vrot.lane.b32.xlu0 %v8618_v46, %s14902_s30  ;;  %8702 = vrot.lane.b32.xlu1 %v8617_v5, %s14902_s30 }
 0x842   :  { %8706 = vrot.lane.b32.xlu0 %v8619_v42, %s14902_s30  ;;  %9415 = vrot.lane.b32.xlu1 %v19438_v51, %s14903_s15  ;;  %v11853_v42 = vld [vmem:[%s20179_s3 + $0x560] sm:$0xff] }
 0x87a   :  { %v8655_v55 = vpop.permute.xlu1 %8654 }
 0x87b   :  { %8744 = vst.msk [vmem:[#allocation2 + $0x18] sm:$0xff] %vm8742_vm10, %v8655_v55 }
 0x87e   :  { %v8659_v1 = vpop.permute.xlu0 %8658  ;;  %v8653_v34 = vpop.permute.xlu1 %8652 }
 0x87f   :  { %8746 = vst.msk [vmem:[#allocation2 + $0x28] sm:$0xff] %vm8742_vm10, %v8659_v1  ;;  %8743 = vst.msk [vmem:[#allocation2 + $0x10] sm:$0xff] %vm8742_vm10, %v8653_v34 }
 0x882   :  { %v8657_v8 = vpop.permute.xlu0 %8656  ;;  %v8663_v41 = vpop.permute.xlu1 %8662  ;;  %v8774_v13 = vld [vmem:[#allocation2 + $0x18] sm:$0xff] }
 0x883   :  { %8745 = vst.msk [vmem:[#allocation2 + $0x20] sm:$0xff] %vm8742_vm10, %v8657_v8  ;;  %8748 = vst.msk [vmem:[#allocation2 + $0x38] sm:$0xff] %vm8742_vm10, %v8663_v41 }
 0x886   :  { %v8776_v48 = vld [vmem:[#allocation2 + $0x28] sm:$0xff]  ;;  %v8667_v26 = vpop.permute.xlu0 %8666  ;;  %v8661_v3 = vpop.permute.xlu1 %8660  ;;  %v8773_v52 = vld [vmem:[#allocation2 + $0x10] sm:$0xff] }
 0x887   :  { %v8802_v27 = vmax.f32 %v8774_v13, %v8776_v48  ;;  %8750 = vst.msk [vmem:[#allocation2 + $0x48] sm:$0xff] %vm8742_vm10, %v8667_v26  ;;  %8747 = vst.msk [vmem:[#allocation2 + $0x30] sm:$0xff] %vm8742_vm10, %v8661_v3  ;;  %v11852_v13 = vld [vmem:[%s20179_s3 + $0x558] sm:$0xff]  ;;  %v11851_v48 = vld [vmem:[%s20179_s3 + $0x550] sm:$0xff] }
 0x889   :  { %8816 = vst.msk [vmem:[#allocation2 + $0x18] sm:$0xff] %vm748_vm8, %v8802_v27 }
 0x88a   :  { %v8775_v16 = vld [vmem:[#allocation2 + $0x20] sm:$0xff]  ;;  %v8665_v2 = vpop.permute.xlu0 %8664  ;;  %v8671_v20 = vpop.permute.xlu1 %8670  ;;  %v8778_v15 = vld [vmem:[#allocation2 + $0x38] sm:$0xff] }
 0x88b   :  { %v8801_v29 = vmax.f32 %v8773_v52, %v8775_v16  ;;  %8749 = vst.msk [vmem:[#allocation2 + $0x40] sm:$0xff] %vm8742_vm10, %v8665_v2  ;;  %8752 = vst.msk [vmem:[#allocation2 + $0x58] sm:$0xff] %vm8742_vm10, %v8671_v20 }
 0x88d   :  { %8815 = vst.msk [vmem:[#allocation2 + $0x10] sm:$0xff] %vm748_vm8, %v8801_v29  ;;  %v11850_v29 = vld [vmem:[%s20179_s3 + $0x548] sm:$0xff] }
 0x88e   :  { %v8675_v37 = vpop.permute.xlu0 %8674  ;;  %v8669_v62 = vpop.permute.xlu1 %8668  ;;  %v8780_v60 = vld [vmem:[#allocation2 + $0x48] sm:$0xff]  ;;  %v8777_v23 = vld [vmem:[#allocation2 + $0x30] sm:$0xff] }
 0x88f   :  { %8754 = vst.msk [vmem:[#allocation2 + $0x68] sm:$0xff] %vm8742_vm10, %v8675_v37  ;;  %8751 = vst.msk [vmem:[#allocation2 + $0x50] sm:$0xff] %vm8742_vm10, %v8669_v62  ;;  %v8804_v33 = vmax.f32 %v8778_v15, %v8780_v60  ;;  %v11849_v15 = vld [vmem:[%s20179_s3 + $0x540] sm:$0xff] }
 0x890   :  { %v8835_v58 = vld [vmem:[#allocation2 + $0x18] sm:$0xff] }
 0x891   :  { %8818 = vst.msk [vmem:[#allocation2 + $0x28] sm:$0xff] %vm748_vm8, %v8804_v33 }
 0x892   :  { %v8673_v44 = vpop.permute.xlu0 %8672  ;;  %v8679_v31 = vpop.permute.xlu1 %8678  ;;  %v8779_v53 = vld [vmem:[#allocation2 + $0x40] sm:$0xff]  ;;  %v8782_v63 = vld [vmem:[#allocation2 + $0x58] sm:$0xff] }
 0x893   :  { %8753 = vst.msk [vmem:[#allocation2 + $0x60] sm:$0xff] %vm8742_vm10, %v8673_v44  ;;  %8756 = vst.msk [vmem:[#allocation2 + $0x78] sm:$0xff] %vm8742_vm10, %v8679_v31  ;;  %v8803_v36 = vmax.f32 %v8777_v23, %v8779_v53 }
 0x894   :  { %v8834_v56 = vld [vmem:[#allocation2 + $0x10] sm:$0xff] }
 0x895   :  { %14247 = vmatprep.mubr.msk.f32.mxu0 %vm748_vm8, %v8834_v56  ;;  %14295 = vmatprep.mubr.msk.f32.mxu1 %vm748_vm8, %v8834_v56  ;;  %8817 = vst.msk [vmem:[#allocation2 + $0x20] sm:$0xff] %vm748_vm8, %v8803_v36 }
 0x896   :  { %v8784_v38 = vld [vmem:[#allocation2 + $0x68] sm:$0xff]  ;;  %v8683_v57 = vpop.permute.xlu0 %8682  ;;  %14248 = vmatmul.mubr.msk.f32.vlgmr.msra.gmra.mxu0 %vm748_vm8, %v8835_v58  ;;  %14296 = vmatmul.mubr.msk.f32.gmra.mxu1 %vm748_vm8, %v8835_v58  ;;  %v8677_v18 = vpop.permute.xlu1 %8676  ;;  %v8781_v19 = vld [vmem:[#allocation2 + $0x50] sm:$0xff] }
 0x897   :  { %v8806_v24 = vmax.f32 %v8782_v63, %v8784_v38  ;;  %8758 = vst.msk [vmem:[#allocation2 + $0x88] sm:$0xff] %vm8742_vm10, %v8683_v57  ;;  %8755 = vst.msk [vmem:[#allocation2 + $0x70] sm:$0xff] %vm8742_vm10, %v8677_v18  ;;  %14314 = vmatpush3.msra.mxu0 %v19414_v39 }
 0x898   :  { %14315 = vmatprep.subr.mxu0 %v11859_v14  ;;  %v19484_v25 = vld [vmem:[#allocation2 + $0x28] sm:$0xff] }
 0x899   :  { %8820 = vst.msk [vmem:[#allocation2 + $0x38] sm:$0xff] %vm748_vm8, %v8806_v24  ;;  %14316 = vmatpush3.msra.mxu0 %v11859_v14 }
 0x89a   :  { %v8783_v54 = vld [vmem:[#allocation2 + $0x60] sm:$0xff]  ;;  %v8681_v12 = vpop.permute.xlu0 %8680  ;;  %v8687_v28 = vpop.permute.xlu1 %8686  ;;  %14317 = vmatprep.subr.mxu0 %v11858_v61  ;;  %v8786_v47 = vld [vmem:[#allocation2 + $0x78] sm:$0xff] }
 0x89b   :  { %v8805_v43 = vmax.f32 %v8781_v19, %v8783_v54  ;;  %8757 = vst.msk [vmem:[#allocation2 + $0x80] sm:$0xff] %vm8742_vm10, %v8681_v12  ;;  %8760 = vst.msk [vmem:[#allocation2 + $0x98] sm:$0xff] %vm8742_vm10, %v8687_v28  ;;  %14318 = vmatpush3.msra.mxu0 %v11858_v61 }
 0x89c   :  { %v19477_v39 = vld [vmem:[#allocation2 + $0x20] sm:$0xff]  ;;  %14319 = vmatprep.subr.mxu0 %v11857_v50 }
 0x89d   :  { %8819 = vst.msk [vmem:[#allocation2 + $0x30] sm:$0xff] %vm748_vm8, %v8805_v43  ;;  %14250 = vmatprep.mubr.msk.f32.mxu0 %vm748_vm8, %v19477_v39  ;;  %14298 = vmatprep.mubr.msk.f32.mxu1 %vm748_vm8, %v19477_v39  ;;  %v11899_v43 = vld [vmem:[%s20179_s3 + $0x658] sm:$0xff] }
 0x89e   :  { %v8788_v59 = vld [vmem:[#allocation2 + $0x88] sm:$0xff]  ;;  %v8691_v49 = vpop.permute.xlu0 %8690  ;;  %14251 = vmatmul.mubr.msk.f32.gmra.mxu0 %vm748_vm8, %v19484_v25  ;;  %14299 = vmatmul.mubr.msk.f32.gmra.mxu1 %vm748_vm8, %v19484_v25  ;;  %v8685_v7 = vpop.permute.xlu1 %8684  ;;  %v8785_v10 = vld [vmem:[#allocation2 + $0x70] sm:$0xff] }
 0x89f   :  { %v8808_v30 = vmax.f32 %v8786_v47, %v8788_v59  ;;  %8830 = vst.msk [vmem:[#allocation2 + $0x88] sm:$0xff] %vm748_vm8, %v20431_v32  ;;  %14320 = vmatpush3.msra.mxu0 %v11857_v50  ;;  %14358 = vmatprep.subr.mxu1 %v11899_v43  ;;  %v11885_v47 = vld [vmem:[%s20179_s3 + $0x5e8] sm:$0xff]  ;;  %v11896_v59 = vld [vmem:[%s20179_s3 + $0x640] sm:$0xff] }
 0x8a0   :  { %8762 = vst.msk [vmem:[#allocation2 + $0xa8] sm:$0xff] %vm8742_vm10, %v8691_v49  ;;  %8759 = vst.msk [vmem:[#allocation2 + $0x90] sm:$0xff] %vm8742_vm10, %v8685_v7  ;;  %14321 = vmatprep.subr.mxu0 %v11856_v11  ;;  %v19515_v46 = vld [vmem:[#allocation2 + $0x38] sm:$0xff]  ;;  %14359 = vmatpush3.msra.mxu1 %v11899_v43  ;;  %v11884_v49 = vld [vmem:[%s20179_s3 + $0x5e0] sm:$0xff] }
 0x8a1   :  { %8822 = vst.msk [vmem:[#allocation2 + $0x48] sm:$0xff] %vm748_vm8, %v8808_v30  ;;  %14322 = vmatpush3.msra.mxu0 %v11856_v11  ;;  %v11886_v11 = vld [vmem:[%s20179_s3 + $0x5f0] sm:$0xff]  ;;  %v11883_v7 = vld [vmem:[%s20179_s3 + $0x5d8] sm:$0xff] }
 0x8a2   :  { %v8787_v0 = vld [vmem:[#allocation2 + $0x80] sm:$0xff]  ;;  %v8689_v4 = vpop.permute.xlu0 %8688  ;;  %v8695_v21 = vpop.permute.xlu1 %8694  ;;  %14323 = vmatprep.subr.mxu0 %v11855_v45  ;;  %v8790_v55 = vld [vmem:[#allocation2 + $0x98] sm:$0xff] }
 0x8a3   :  { %v8807_v5 = vmax.f32 %v8785_v10, %v8787_v0  ;;  %8829 = vst.msk [vmem:[#allocation2 + $0x80] sm:$0xff] %vm748_vm8, %v20431_v32  ;;  %14324 = vmatpush3.msra.mxu0 %v11855_v45  ;;  %v11895_v30 = vld [vmem:[%s20179_s3 + $0x638] sm:$0xff]  ;;  %v11882_v45 = vld [vmem:[%s20179_s3 + $0x5d0] sm:$0xff]  ;;  %v11881_v10 = vld [vmem:[%s20179_s3 + $0x5c8] sm:$0xff] }
 0x8a4   :  { %8761 = vst.msk [vmem:[#allocation2 + $0xa0] sm:$0xff] %vm8742_vm10, %v8689_v4  ;;  %8764 = vst.msk [vmem:[#allocation2 + $0xb8] sm:$0xff] %vm8742_vm10, %v8695_v21  ;;  %v19508_v6 = vld [vmem:[#allocation2 + $0x30] sm:$0xff]  ;;  %14325 = vmatprep.subr.mxu0 %v11854_v17  ;;  %v11893_v0 = vld [vmem:[%s20179_s3 + $0x628] sm:$0xff] }
 0x8a5   :  { %8821 = vst.msk [vmem:[#allocation2 + $0x40] sm:$0xff] %vm748_vm8, %v8807_v5  ;;  %14253 = vmatprep.mubr.msk.f32.mxu0 %vm748_vm8, %v19508_v6  ;;  %14301 = vmatprep.mubr.msk.f32.mxu1 %vm748_vm8, %v19508_v6  ;;  %v11880_v4 = vld [vmem:[%s20179_s3 + $0x5c0] sm:$0xff]  ;;  %v11879_v5 = vld [vmem:[%s20179_s3 + $0x5b8] sm:$0xff] }
 0x8a6   :  { %v8699_v34 = vpop.permute.xlu0 %8698  ;;  %14254 = vmatmul.mubr.msk.f32.gmra.mxu0 %vm748_vm8, %v19515_v46  ;;  %14302 = vmatmul.mubr.msk.f32.gmra.mxu1 %vm748_vm8, %v19515_v46  ;;  %v8693_v8 = vpop.permute.xlu1 %8692  ;;  %v19583_v28 = vld [vmem:[#allocation2 + $0x88] sm:$0xff]  ;;  %v11892_v21 = vld [vmem:[%s20179_s3 + $0x620] sm:$0xff]  ;;  %v19691_v43 = vld [vmem:[%s20179_s3 + $0x6b8] sm:$0xff] }
 0x8a7   :  { %v8792_v1 = vld [vmem:[#allocation2 + $0xa8] sm:$0xff]  ;;  %8766 = vst.msk [vmem:[#allocation2 + $0xc8] sm:$0xff] %vm8742_vm10, %v8699_v34  ;;  %8763 = vst.msk [vmem:[#allocation2 + $0xb0] sm:$0xff] %vm8742_vm10, %v8693_v8  ;;  %14326 = vmatpush3.msra.mxu0 %v11854_v17  ;;  %v8789_v26 = vld [vmem:[#allocation2 + $0x90] sm:$0xff] }
 0x8a8   :  { %v8810_v41 = vmax.f32 %v8790_v55, %v8792_v1  ;;  %14327 = vmatprep.subr.mxu0 %v11853_v42  ;;  %v8841_v20 = vld [vmem:[#allocation2 + $0x48] sm:$0xff]  ;;  %v11894_v17 = vld [vmem:[%s20179_s3 + $0x630] sm:$0xff] }
 0x8a9   :  { %14328 = vmatpush3.msra.mxu0 %v11853_v42 }
 0x8aa   :  { %8824 = vst.msk [vmem:[#allocation2 + $0x58] sm:$0xff] %vm748_vm8, %v8810_v41  ;;  %v8697_v27 = vpop.permute.xlu0 %8696  ;;  %14329 = vmatprep.subr.mxu0 %v11852_v13  ;;  %v19578_v12 = vld [vmem:[#allocation2 + $0x80] sm:$0xff] }
 0x8ab   :  { %v8791_v3 = vld [vmem:[#allocation2 + $0xa0] sm:$0xff]  ;;  %8765 = vst.msk [vmem:[#allocation2 + $0xc0] sm:$0xff] %vm8742_vm10, %v8697_v27  ;;  %14330 = vmatpush3.msra.mxu0 %v11852_v13  ;;  %v8794_v37 = vld [vmem:[#allocation2 + $0xb8] sm:$0xff]  ;;  %v19646_v13 = vpop.f32.mrf.mxu1 }
 0x8ac   :  { %v8809_v52 = vmax.f32 %v8789_v26, %v8791_v3  ;;  %v8701_v16 = vpop.permute.xlu1 %8700  ;;  %v8840_v2 = vld [vmem:[#allocation2 + $0x40] sm:$0xff]  ;;  %14331 = vmatprep.subr.mxu0 %v11851_v48 }
 0x8ad   :  { %8767 = vst.msk [vmem:[#allocation2 + $0xd0] sm:$0xff] %vm8742_vm10, %v8701_v16  ;;  %14256 = vmatprep.mubr.msk.f32.mxu0 %vm748_vm8, %v8840_v2  ;;  %14304 = vmatprep.mubr.msk.f32.mxu1 %vm748_vm8, %v8840_v2 }
 0x8ae   :  { %8823 = vst.msk [vmem:[#allocation2 + $0x50] sm:$0xff] %vm748_vm8, %v8809_v52  ;;  %v8796_v62 = vld [vmem:[#allocation2 + $0xc8] sm:$0xff]  ;;  %14257 = vmatmul.mubr.msk.f32.gmra.mxu0 %vm748_vm8, %v8841_v20  ;;  %14305 = vmatmul.mubr.msk.f32.gmra.mxu1 %vm748_vm8, %v8841_v20  ;;  %v8793_v31 = vld [vmem:[#allocation2 + $0xb0] sm:$0xff] }
 0x8af   :  { %v8812_v60 = vmax.f32 %v8794_v37, %v8796_v62  ;;  %14332 = vmatpush3.msra.mxu0 %v11851_v48  ;;  %v11891_v37 = vld [vmem:[%s20179_s3 + $0x618] sm:$0xff]  ;;  %v11878_v62 = vld [vmem:[%s20179_s3 + $0x5b0] sm:$0xff] }
 0x8b0   :  { %v8705_v33 = vpop.permute.xlu0 %8704  ;;  %v8703_v44 = vpop.permute.xlu1 %8702  ;;  %14333 = vmatprep.subr.mxu0 %v11850_v29 }
 0x8b1   :  { %8826 = vst.msk [vmem:[#allocation2 + $0x68] sm:$0xff] %vm748_vm8, %v8812_v60  ;;  %14334 = vmatpush3.msra.mxu0 %v11850_v29  ;;  %v8843_v58 = vld [vmem:[#allocation2 + $0x58] sm:$0xff] }
 0x8b2   :  { %8769 = vst.msk [vmem:[#allocation2 + $0xe0] sm:$0xff] %vm8742_vm10, %v8705_v33  ;;  %8768 = vst.msk [vmem:[#allocation2 + $0xd8] sm:$0xff] %vm8742_vm10, %v8703_v44  ;;  %v8795_v53 = vld [vmem:[#allocation2 + $0xc0] sm:$0xff]  ;;  %14335 = vmatprep.subr.mxu0 %v11849_v15  ;;  %v11890_v33 = vld [vmem:[%s20179_s3 + $0x610] sm:$0xff] }
 0x8b3   :  { %v8811_v23 = vmax.f32 %v8793_v31, %v8795_v53  ;;  %14336 = vmatpush3.msra.mxu0 %v11849_v15  ;;  %v11877_v44 = vld [vmem:[%s20179_s3 + $0x5a8] sm:$0xff]  ;;  %v11876_v53 = vld [vmem:[%s20179_s3 + $0x5a0] sm:$0xff] }
 0x8b4   :  { %v8707_v36 = vpop.permute.xlu0 %8706  ;;  %v8797_v14 = vld [vmem:[#allocation2 + $0xd0] sm:$0xff] }
 0x8b5   :  { %v8842_v56 = vld [vmem:[#allocation2 + $0x50] sm:$0xff]  ;;  %8825 = vst.msk [vmem:[#allocation2 + $0x60] sm:$0xff] %vm748_vm8, %v8811_v23 }
 0x8b6   :  { %8770 = vst.msk [vmem:[#allocation2 + $0xe8] sm:$0xff] %vm8742_vm10, %v8707_v36  ;;  %14259 = vmatprep.mubr.msk.f32.mxu0 %vm748_vm8, %v8842_v56  ;;  %14307 = vmatprep.mubr.msk.f32.mxu1 %vm748_vm8, %v8842_v56  ;;  %v19677_v36 = vpop.permute.xlu1 %9415 }
 0x8b7   :  { %14260 = vmatmul.mubr.msk.f32.gmra.mxu0 %vm748_vm8, %v8843_v58  ;;  %14308 = vmatmul.mubr.msk.f32.gmra.mxu1 %vm748_vm8, %v8843_v58 }
 0x8b8   :  { %v8845_v50 = vld [vmem:[#allocation2 + $0x68] sm:$0xff] }
 0x8b9   :  { %v8799_v63 = vld [vmem:[#allocation2 + $0xe0] sm:$0xff]  ;;  %v8798_v57 = vld [vmem:[#allocation2 + $0xd8] sm:$0xff] }
 0x8ba   :  { %v8813_v38 = vmax.f32 %v8797_v14, %v8799_v63  ;;  %v11889_v14 = vld [vmem:[%s20179_s3 + $0x608] sm:$0xff] }
 0x8bc   :  { %8827 = vst.msk [vmem:[#allocation2 + $0x70] sm:$0xff] %vm748_vm8, %v8813_v38  ;;  %v8844_v24 = vld [vmem:[#allocation2 + $0x60] sm:$0xff] }
 0x8bd   :  { %v8800_v18 = vld [vmem:[#allocation2 + $0xe8] sm:$0xff]  ;;  %14262 = vmatprep.mubr.msk.f32.mxu0 %vm748_vm8, %v8844_v24  ;;  %14310 = vmatprep.mubr.msk.f32.mxu1 %vm748_vm8, %v8844_v24 }
 0x8be   :  { %v8814_v61 = vmax.f32 %v8798_v57, %v8800_v18  ;;  %14263 = vmatmul.mubr.msk.f32.gmra.mxu0 %vm748_vm8, %v8845_v50  ;;  %14311 = vmatmul.mubr.msk.f32.gmra.mxu1 %vm748_vm8, %v8845_v50 }
 0x8c0   :  { %8828 = vst.msk [vmem:[#allocation2 + $0x78] sm:$0xff] %vm748_vm8, %v8814_v61 }
 0x8c3   :  { %v8859_v19 = vld [vmem:[#allocation2 + $0x70] sm:$0xff] }
 0x8c4   :  { %14265 = vmatprep.mubr.msk.f32.mxu0 %vm748_vm8, %v8859_v19 }
 0x8c7   :  { %v8860_v54 = vld [vmem:[#allocation2 + $0x78] sm:$0xff] }
 0x8c8   :  { %14266 = vmatmul.mubr.msk.f32.gmra.mxu0 %vm748_vm8, %v8860_v54 }
 0x8c9   :  { %14337 = vmatprep.mubr.msk.f32.mxu0 %vm748_vm8, %v19477_v39  ;;  %v11887_v39 = vld [vmem:[%s20179_s3 + $0x5f8] sm:$0xff] }
 0x8ca   :  { %14403 = vmatprep.subr.mxu0 %v11887_v39 }
 0x8cc   :  { %14338 = vmatmul.mubr.msk.f32.vlgmr.msra.gmra.mxu0 %vm748_vm8, %v19484_v25  ;;  %v11898_v25 = vld [vmem:[%s20179_s3 + $0x650] sm:$0xff] }
 0x8cd   :  { %14340 = vmatprep.mubr.msk.f32.mxu0 %vm748_vm8, %v19508_v6  ;;  %14404 = vmatpush3.msra.mxu0 %v11887_v39  ;;  %v19640_v6 = vpop.f32.mrf.mxu0 }
 0x8ce   :  { %14360 = vmatprep.subr.mxu1 %v11898_v25  ;;  %14405 = vmatprep.subr.mxu0 %v11886_v11 }
 0x8cf   :  { %14361 = vmatpush3.msra.mxu1 %v11898_v25  ;;  %14406 = vmatpush3.msra.mxu0 %v11886_v11 }
 0x8d0   :  { %14341 = vmatmul.mubr.msk.f32.gmra.mxu0 %vm748_vm8, %v19515_v46  ;;  %14407 = vmatprep.subr.mxu0 %v11885_v47 }
 0x8d1   :  { %14343 = vmatprep.mubr.msk.f32.mxu0 %vm748_vm8, %v8840_v2  ;;  %14408 = vmatpush3.msra.mxu0 %v11885_v47 }
 0x8d2   :  { %14409 = vmatprep.subr.mxu0 %v11884_v49  ;;  %v14294_v48 = vpop.f32.mrf.mxu1 }
 0x8d3   :  { %14410 = vmatpush3.msra.mxu0 %v11884_v49 }
 0x8d4   :  { %14344 = vmatmul.mubr.msk.f32.gmra.mxu0 %vm748_vm8, %v8841_v20  ;;  %14411 = vmatprep.subr.mxu0 %v11883_v7  ;;  %v9123_v27 = vpop.f32.mrf.mxu1 }
 0x8d5   :  { %14346 = vmatprep.mubr.msk.f32.mxu0 %vm748_vm8, %v8842_v56  ;;  %14412 = vmatpush3.msra.mxu0 %v11883_v7 }
 0x8d6   :  { %14413 = vmatprep.subr.mxu0 %v11882_v45 }
 0x8d7   :  { %14414 = vmatpush3.msra.mxu0 %v11882_v45 }
 0x8d8   :  { %14347 = vmatmul.mubr.msk.f32.gmra.mxu0 %vm748_vm8, %v8843_v58  ;;  %14415 = vmatprep.subr.mxu0 %v11881_v10 }
 0x8d9   :  { %14349 = vmatprep.mubr.msk.f32.mxu0 %vm748_vm8, %v8844_v24  ;;  %14416 = vmatpush3.msra.mxu0 %v11881_v10  ;;  %v11888_v24 = vld [vmem:[%s20179_s3 + $0x600] sm:$0xff] }
 0x8da   :  { %14417 = vmatprep.subr.mxu0 %v11880_v4 }
 0x8db   :  { %14418 = vmatpush3.msra.mxu0 %v11880_v4 }
 0x8dc   :  { %14350 = vmatmul.mubr.msk.f32.gmra.mxu0 %vm748_vm8, %v8845_v50  ;;  %14419 = vmatprep.subr.mxu0 %v11879_v5 }
 0x8dd   :  { %14352 = vmatprep.mubr.msk.f32.mxu0 %vm748_vm8, %v8859_v19  ;;  %14420 = vmatpush3.msra.mxu0 %v11879_v5 }
 0x8de   :  { %14421 = vmatprep.subr.mxu0 %v11878_v62 }
 0x8df   :  { %14422 = vmatpush3.msra.mxu0 %v11878_v62 }
 0x8e0   :  { %14353 = vmatmul.mubr.msk.f32.gmra.mxu0 %vm748_vm8, %v8860_v54  ;;  %14423 = vmatprep.subr.mxu0 %v11877_v44 }
 0x8e1   :  { %14355 = vmatprep.mubr.msk.f32.mxu0 %vm748_vm8, %v19578_v12  ;;  %14424 = vmatpush3.msra.mxu0 %v11877_v44 }
 0x8e2   :  { %14425 = vmatprep.subr.mxu0 %v11876_v53 }
 0x8e3   :  { %14426 = vmatpush3.msra.mxu0 %v11876_v53 }
 0x8e4   :  { %14356 = vmatmul.mubr.msk.f32.gmra.mxu0 %vm748_vm8, %v19583_v28 }
 0x8e5   :  { %14427 = vmatprep.mubr.msk.f32.mxu0 %vm748_vm8, %v19333_v9  ;;  %v11897_v9 = vld [vmem:[%s20179_s3 + $0x648] sm:$0xff] }
 0x8e6   :  { %14362 = vmatprep.subr.mxu1 %v11897_v9 }
 0x8e7   :  { %14363 = vmatpush3.msra.mxu1 %v11897_v9 }
 0x8e8   :  { %14364 = vmatprep.subr.mxu1 %v11896_v59  ;;  %14428 = vmatmul.mubr.msk.f32.vlgmr.msra.gmra.mxu0 %vm748_vm8, %v19338_v22 }
 0x8e9   :  { %14365 = vmatpush3.msra.mxu1 %v11896_v59 }
 0x8ea   :  { %14366 = vmatprep.subr.mxu1 %v11895_v30 }
 0x8eb   :  { %14367 = vmatpush3.msra.mxu1 %v11895_v30 }
 0x8ec   :  { %14368 = vmatprep.subr.mxu1 %v11894_v17 }
 0x8ed   :  { %14369 = vmatpush3.msra.mxu1 %v11894_v17 }
 0x8ee   :  { %14370 = vmatprep.subr.mxu1 %v11893_v0 }
 0x8ef   :  { %14371 = vmatpush3.msra.mxu1 %v11893_v0 }
 0x8f0   :  { %14372 = vmatprep.subr.mxu1 %v11892_v21 }
 0x8f1   :  { %14373 = vmatpush3.msra.mxu1 %v11892_v21 }
 0x8f2   :  { %14374 = vmatprep.subr.mxu1 %v11891_v37 }
 0x8f3   :  { %14375 = vmatpush3.msra.mxu1 %v11891_v37 }
 0x8f4   :  { %14376 = vmatprep.subr.mxu1 %v11890_v33 }
 0x8f5   :  { %14377 = vmatpush3.msra.mxu1 %v11890_v33 }
 0x8f6   :  { %14378 = vmatprep.subr.mxu1 %v11889_v14 }
 0x8f7   :  { %14379 = vmatpush3.msra.mxu1 %v11889_v14 }
 0x8f8   :  { %14380 = vmatprep.subr.mxu1 %v11888_v24 }
 0x8f9   :  { %14381 = vmatpush3.msra.mxu1 %v11888_v24 }
 0x8fa   :  { %14448 = vmatprep.subr.mxu1 %v19691_v43 }
 0x956   :  { %v14249_v46 = vpop.f32.mrf.mxu0  ;;  %v14297_v16 = vpop.f32.mrf.mxu1 }
 0x957   :  { %v9129_v23 = vadd.f32 %v14294_v48, %v14249_v46 }
 0x958   :  { %v8982_v42 = vpop.f32.mrf.mxu0  ;;  %v9133_v20 = vpop.f32.mrf.mxu1 }
 0x959   :  { %v9124_v63 = vadd.f32 %v9123_v27, %v8982_v42 }
 0x95e   :  { %v14252_v55 = vpop.f32.mrf.mxu0  ;;  %v14300_v60 = vpop.f32.mrf.mxu1 }
 0x95f   :  { %v9139_v61 = vadd.f32 %v14297_v16, %v14252_v55 }
 0x960   :  { %v8992_v1 = vpop.f32.mrf.mxu0  ;;  %v9143_v56 = vpop.f32.mrf.mxu1 }
 0x961   :  { %v9134_v22 = vadd.f32 %v9133_v20, %v8992_v1 }
 0x966   :  { %v14255_v34 = vpop.f32.mrf.mxu0  ;;  %v14303_v57 = vpop.f32.mrf.mxu1 }
 0x967   :  { %v9149_v59 = vadd.f32 %v14300_v60, %v14255_v34 }
 0x968   :  { %v19642_v8 = vpop.f32.mrf.mxu0  ;;  %v9153_v9 = vpop.f32.mrf.mxu1 }
 0x969   :  { %v9144_v10 = vadd.f32 %v9143_v56, %v19642_v8 }
 0x96e   :  { %v19644_v41 = vpop.f32.mrf.mxu0  ;;  %v14306_v45 = vpop.f32.mrf.mxu1 }
 0x96f   :  { %v9159_v46 = vadd.f32 %v14303_v57, %v19644_v41 }
 0x970   :  { %v19648_v26 = vpop.f32.mrf.mxu0  ;;  %v9163_v34 = vpop.f32.mrf.mxu1 }
 0x971   :  { %v9154_v27 = vadd.f32 %v9153_v9, %v19648_v26 }
 0x977   :  { %v19650_v3 = vpop.f32.mrf.mxu0  ;;  %v14309_v37 = vpop.f32.mrf.mxu1 }
 0x978   :  { %v9169_v41 = vadd.f32 %v14306_v45, %v19650_v3 }
 0x979   :  { %v19652_v52 = vpop.f32.mrf.mxu0  ;;  %v9173_v14 = vpop.f32.mrf.mxu1 }
 0x97e   :  { %v19654_v2 = vpop.f32.mrf.mxu0  ;;  %v14312_v24 = vpop.f32.mrf.mxu1 }
 0x980   :  { %v19656_v29 = vpop.f32.mrf.mxu0  ;;  %v9183_v9 = vpop.f32.mrf.mxu1 }
 0x988   :  { %v19664_v15 = vpop.f32.mrf.mxu0 }
 0x98a   :  { %v19672_v31 = vpop.f32.mrf.mxu0 }
 0x98c   :  { %v14339_v58 = vpop.f32.mrf.mxu0 }
 0x98d   :  { %v9397_v38 = vadd.f32 %v14339_v58, %v9129_v23  ;;  %v9164_v23 = vadd.f32 %v9163_v34, %v19652_v52  ;;  %v9174_v52 = vadd.f32 %v9173_v14, %v19656_v29 }
 0x98e   :  { %v9327_v18 = vpop.f32.mrf.mxu0 }
 0x98f   :  { %v9396_v50 = vadd.f32 %v9327_v18, %v9124_v63  ;;  %v9419_v19 = vadd.f32 %v19677_v36, %v9397_v38  ;;  %v9179_v38 = vadd.f32 %v14309_v37, %v19654_v2 }
 0x990   :  { %v14342_v54 = vpop.f32.mrf.mxu0 }
 0x991   :  { %v9399_v39 = vadd.f32 %v14342_v54, %v9139_v61  ;;  %v9433_v25 = vmax.f32 %v9419_v19, 0.0  ;;  %v9418_v11 = vadd.f32 %v19677_v36, %v9396_v50 }
 0x992   :  { %v9337_v47 = vpop.f32.mrf.mxu0 }
 0x993   :  { %v9421_v49 = vadd.f32 %v19677_v36, %v9399_v39  ;;  %v9398_v7 = vadd.f32 %v9337_v47, %v9134_v22  ;;  %9462 = vrot.lane.b32.xlu1 %v9433_v25, %s14897_s2  ;;  %v9432_v30 = vmax.f32 %v9418_v11, 0.0  ;;  %v9189_v39 = vadd.f32 %v14312_v24, %v19664_v15  ;;  %v11930_v24 = vld [vmem:[%s20179_s3 + $0x670] sm:$0xff] }
 0x994   :  { %v14345_v17 = vpop.f32.mrf.mxu0 }
 0x995   :  { %v9435_v0 = vmax.f32 %v9421_v49, 0.0  ;;  %v9420_v4 = vadd.f32 %v19677_v36, %v9398_v7  ;;  %v9401_v21 = vadd.f32 %v14345_v17, %v9149_v59  ;;  %9460 = vrot.lane.b32.xlu0 %v9432_v30, %s14897_s2  ;;  %v9184_v59 = vadd.f32 %v9183_v9, %v19672_v31 }
 0x996   :  { %v9347_v5 = vpop.f32.mrf.mxu0 }
 0x997   :  { %v9434_v42 = vmax.f32 %v9420_v4, 0.0  ;;  %v9423_v55 = vadd.f32 %v19677_v36, %v9401_v21  ;;  %v9400_v1 = vadd.f32 %v9347_v5, %v9144_v10  ;;  %9466 = vrot.lane.b32.xlu1 %v9435_v0, %s14897_s2 }
 0x998   :  { %v14348_v48 = vpop.f32.mrf.mxu0 }
 0x999   :  { %v9437_v8 = vmax.f32 %v9423_v55, 0.0  ;;  %v9422_v16 = vadd.f32 %v19677_v36, %v9400_v1  ;;  %v9403_v20 = vadd.f32 %v14348_v48, %v9159_v46  ;;  %9464 = vrot.lane.b32.xlu0 %v9434_v42, %s14897_s2  ;;  %v11938_v1 = vld [vmem:[%s20179_s3 + $0x6b0] sm:$0xff] }
 0x99a   :  { %v9357_v62 = vpop.f32.mrf.mxu0 }
 0x99b   :  { %v9436_v60 = vmax.f32 %v9422_v16, 0.0  ;;  %v9425_v33 = vadd.f32 %v19677_v36, %v9403_v20  ;;  %v9402_v44 = vadd.f32 %v9357_v62, %v9154_v27  ;;  %9470 = vrot.lane.b32.xlu1 %v9437_v8, %s14897_s2  ;;  %v11937_v8 = vld [vmem:[%s20179_s3 + $0x6a8] sm:$0xff]  ;;  %v11936_v20 = vld [vmem:[%s20179_s3 + $0x6a0] sm:$0xff] }
 0x99c   :  { %v14351_v53 = vpop.f32.mrf.mxu0 }
 0x99d   :  { %v9439_v26 = vmax.f32 %v9425_v33, 0.0  ;;  %v9424_v56 = vadd.f32 %v19677_v36, %v9402_v44  ;;  %v9405_v58 = vadd.f32 %v14351_v53, %v9169_v41  ;;  %9468 = vrot.lane.b32.xlu0 %v9436_v60, %s14897_s2  ;;  %v11935_v41 = vld [vmem:[%s20179_s3 + $0x698] sm:$0xff]  ;;  %v11934_v44 = vld [vmem:[%s20179_s3 + $0x690] sm:$0xff] }
 0x99e   :  { %v9367_v63 = vpop.f32.mrf.mxu0 }
 0x99f   :  { %v9438_v3 = vmax.f32 %v9424_v56, 0.0  ;;  %v9427_v57 = vadd.f32 %v19677_v36, %v9405_v58  ;;  %v9404_v18 = vadd.f32 %v9367_v63, %v9164_v23  ;;  %9474 = vrot.lane.b32.xlu1 %v9439_v26, %s14897_s2  ;;  %v11933_v58 = vld [vmem:[%s20179_s3 + $0x688] sm:$0xff] }
 0x9a0   :  { %v14354_v61 = vpop.f32.mrf.mxu0 }
 0x9a1   :  { %v9441_v50 = vmax.f32 %v9427_v57, 0.0  ;;  %v9426_v19 = vadd.f32 %v19677_v36, %v9404_v18  ;;  %v9407_v54 = vadd.f32 %v14354_v61, %v9179_v38  ;;  %9472 = vrot.lane.b32.xlu0 %v9438_v3, %s14897_s2  ;;  %v11932_v38 = vld [vmem:[%s20179_s3 + $0x680] sm:$0xff]  ;;  %v11931_v57 = vld [vmem:[%s20179_s3 + $0x678] sm:$0xff] }
 0x9a2   :  { %v9377_v22 = vpop.f32.mrf.mxu0 }
 0x9a3   :  { %v9440_v2 = vmax.f32 %v9426_v19, 0.0  ;;  %v9429_v25 = vadd.f32 %v19677_v36, %v9407_v54  ;;  %v9406_v11 = vadd.f32 %v9377_v22, %v9174_v52  ;;  %9478 = vrot.lane.b32.xlu1 %v9441_v50, %s14897_s2  ;;  %v11929_v52 = vld [vmem:[%s20179_s3 + $0x668] sm:$0xff]  ;;  %v11928_v19 = vld [vmem:[%s20179_s3 + $0x660] sm:$0xff]  ;;  %v11966_v22 = vld [vmem:[%s20181_s5 + $0xb8] sm:$0xff] }
 0x9a4   :  { %v14357_v47 = vpop.f32.mrf.mxu0  ;;  %14493 = vmatprep.subr.mxu0 %v11966_v22 }
 0x9a5   :  { %v9443_v29 = vmax.f32 %v9429_v25, 0.0  ;;  %v9428_v49 = vadd.f32 %v19677_v36, %v9406_v11  ;;  %v9409_v7 = vadd.f32 %v14357_v47, %v9189_v39  ;;  %9476 = vrot.lane.b32.xlu0 %v9440_v2, %s14897_s2  ;;  %14494 = vmatpush3.msra.mxu0 %v11966_v22 }
 0x9a6   :  { %v9387_v30 = vpop.f32.mrf.mxu0 }
 0x9a7   :  { %v9442_v45 = vmax.f32 %v9428_v49, 0.0  ;;  %v9431_v15 = vadd.f32 %v19677_v36, %v9409_v7  ;;  %v9408_v17 = vadd.f32 %v9387_v30, %v9184_v59  ;;  %9482 = vrot.lane.b32.xlu1 %v9443_v29, %s14897_s2 }
 0x9a8   :  { %v19841_v9 = vpop.f32.mrf.mxu0 }
 0x9a9   :  { %v9445_v10 = vmax.f32 %v9431_v15, 0.0  ;;  %v9430_v0 = vadd.f32 %v19677_v36, %v9408_v17  ;;  %9480 = vrot.lane.b32.xlu0 %v9442_v45, %s14897_s2 }
 0x9aa   :  { %v9808_v29 = vpop.f32.mrf.mxu0 }
 0x9ab   :  { %v9444_v4 = vmax.f32 %v9430_v0, 0.0  ;;  %9486 = vrot.lane.b32.xlu1 %v9445_v10, %s14897_s2 }
 0x9ad   :  { %9484 = vrot.lane.b32.xlu0 %v9444_v4, %s14897_s2 }
 0x9b1   :  { %10100 = vrot.lane.b32.xlu0 %v19438_v51, %s14904_s22 }
 0xa05   :  { %v9463_v31 = vpop.permute.xlu1 %9462 }
 0xa06   :  { %9503 = vst.msk [vmem:[#allocation2 + $0x18] sm:$0xff] %vm4051_vm7, %v9463_v31 }
 0xa07   :  { %v9461_v21 = vpop.permute.xlu0 %9460 }
 0xa08   :  { %9502 = vst.msk [vmem:[#allocation2 + $0x10] sm:$0xff] %vm4051_vm7, %v9461_v21 }
 0xa09   :  { %v9467_v5 = vpop.permute.xlu1 %9466 }
 0xa0a   :  { %9505 = vst.msk [vmem:[#allocation2 + $0x28] sm:$0xff] %vm4051_vm7, %v9467_v5 }
 0xa0b   :  { %v9465_v36 = vpop.permute.xlu0 %9464 }
 0xa0c   :  { %9504 = vst.msk [vmem:[#allocation2 + $0x20] sm:$0xff] %vm4051_vm7, %v9465_v36 }
 0xa0d   :  { %v9471_v46 = vpop.permute.xlu1 %9470  ;;  %v9520_v51 = vld [vmem:[#allocation2 + $0x18] sm:$0xff] }
 0xa0e   :  { %9507 = vst.msk [vmem:[#allocation2 + $0x38] sm:$0xff] %vm4051_vm7, %v9471_v46  ;;  %v11965_v46 = vld [vmem:[%s20181_s5 + $0xb0] sm:$0xff] }
 0xa0f   :  { %v9469_v42 = vpop.permute.xlu0 %9468  ;;  %v9519_v55 = vld [vmem:[#allocation2 + $0x10] sm:$0xff]  ;;  %14495 = vmatprep.subr.mxu0 %v11965_v46 }
 0xa10   :  { %9506 = vst.msk [vmem:[#allocation2 + $0x30] sm:$0xff] %vm4051_vm7, %v9469_v42  ;;  %14382 = vmatprep.mubr.msk.f32.mxu1 %vm748_vm8, %v9519_v55  ;;  %14430 = vmatprep.mubr.msk.f32.mxu0 %vm748_vm8, %v9519_v55 }
 0xa11   :  { %v9475_v34 = vpop.permute.xlu1 %9474  ;;  %14383 = vmatmul.mubr.msk.f32.vlgmr.msra.gmra.mxu1 %vm748_vm8, %v9520_v51  ;;  %14431 = vmatmul.mubr.msk.f32.gmra.mxu0 %vm748_vm8, %v9520_v51  ;;  %v19756_v16 = vld [vmem:[#allocation2 + $0x28] sm:$0xff] }
 0xa12   :  { %9509 = vst.msk [vmem:[#allocation2 + $0x48] sm:$0xff] %vm4051_vm7, %v9475_v34  ;;  %14449 = vmatpush3.msra.mxu1 %v19691_v43  ;;  %14496 = vmatpush3.msra.mxu0 %v11965_v46  ;;  %v11958_v46 = vld [vmem:[%s20181_s5 + $0x78] sm:$0xff] }
 0xa13   :  { %14450 = vmatprep.subr.mxu1 %v11938_v1  ;;  %v9473_v48 = vpop.permute.xlu0 %9472  ;;  %v19746_v27 = vld [vmem:[#allocation2 + $0x20] sm:$0xff] }
 0xa14   :  { %9508 = vst.msk [vmem:[#allocation2 + $0x40] sm:$0xff] %vm4051_vm7, %v9473_v48  ;;  %14385 = vmatprep.mubr.msk.f32.mxu1 %vm748_vm8, %v19746_v27  ;;  %14433 = vmatprep.mubr.msk.f32.mxu0 %vm748_vm8, %v19746_v27  ;;  %v11964_v48 = vld [vmem:[%s20181_s5 + $0xa8] sm:$0xff] }
 0xa15   :  { %14451 = vmatpush3.msra.mxu1 %v11938_v1  ;;  %v9479_v43 = vpop.permute.xlu1 %9478  ;;  %14434 = vmatmul.mubr.msk.f32.gmra.mxu0 %vm748_vm8, %v19756_v16  ;;  %v9524_v33 = vld [vmem:[#allocation2 + $0x38] sm:$0xff] }
 0xa16   :  { %9511 = vst.msk [vmem:[#allocation2 + $0x58] sm:$0xff] %vm4051_vm7, %v9479_v43  ;;  %14386 = vmatmul.mubr.msk.f32.gmra.mxu1 %vm748_vm8, %v19756_v16  ;;  %14452 = vmatprep.subr.mxu1 %v11937_v8 }
 0xa17   :  { %14453 = vmatpush3.msra.mxu1 %v11937_v8  ;;  %v9477_v37 = vpop.permute.xlu0 %9476  ;;  %v19766_v62 = vld [vmem:[#allocation2 + $0x30] sm:$0xff]  ;;  %14497 = vmatprep.subr.mxu0 %v11964_v48 }
 0xa18   :  { %14454 = vmatprep.subr.mxu1 %v11936_v20  ;;  %9510 = vst.msk [vmem:[#allocation2 + $0x50] sm:$0xff] %vm4051_vm7, %v9477_v37  ;;  %14388 = vmatprep.mubr.msk.f32.mxu1 %vm748_vm8, %v19766_v62 }
 0xa19   :  { %14436 = vmatprep.mubr.msk.f32.mxu0 %vm748_vm8, %v19766_v62  ;;  %14455 = vmatpush3.msra.mxu1 %v11936_v20  ;;  %v9483_v60 = vpop.permute.xlu1 %9482  ;;  %v9526_v56 = vld [vmem:[#allocation2 + $0x48] sm:$0xff] }
 0xa1a   :  { %9513 = vst.msk [vmem:[#allocation2 + $0x68] sm:$0xff] %vm4051_vm7, %v9483_v60  ;;  %14389 = vmatmul.mubr.msk.f32.gmra.mxu1 %vm748_vm8, %v9524_v33  ;;  %14437 = vmatmul.mubr.msk.f32.gmra.mxu0 %vm748_vm8, %v9524_v33 }
 0xa1b   :  { %14456 = vmatprep.subr.mxu1 %v11935_v41  ;;  %v9481_v53 = vpop.permute.xlu0 %9480  ;;  %v9525_v23 = vld [vmem:[#allocation2 + $0x40] sm:$0xff]  ;;  %14498 = vmatpush3.msra.mxu0 %v11964_v48  ;;  %v11957_v48 = vld [vmem:[%s20181_s5 + $0x70] sm:$0xff] }
 0xa1c   :  { %14457 = vmatpush3.msra.mxu1 %v11935_v41  ;;  %9512 = vst.msk [vmem:[#allocation2 + $0x60] sm:$0xff] %vm4051_vm7, %v9481_v53  ;;  %14391 = vmatprep.mubr.msk.f32.mxu1 %vm748_vm8, %v9525_v23  ;;  %v10241_v41 = vld [vmem:[%s20181_s5 + $0x58] sm:$0xff] }
 0xa1d   :  { %14439 = vmatprep.mubr.msk.f32.mxu0 %vm748_vm8, %v9525_v23  ;;  %14458 = vmatprep.subr.mxu1 %v11934_v44  ;;  %v9487_v26 = vpop.permute.xlu1 %9486  ;;  %v9528_v3 = vld [vmem:[#allocation2 + $0x58] sm:$0xff] }
 0xa1e   :  { %9515 = vst.msk [vmem:[#allocation2 + $0x78] sm:$0xff] %vm4051_vm7, %v9487_v26  ;;  %14392 = vmatmul.mubr.msk.f32.gmra.mxu1 %vm748_vm8, %v9526_v56  ;;  %14440 = vmatmul.mubr.msk.f32.gmra.mxu0 %vm748_vm8, %v9526_v56  ;;  %v11962_v26 = vld [vmem:[%s20181_s5 + $0x98] sm:$0xff] }
 0xa1f   :  { %14459 = vmatpush3.msra.mxu1 %v11934_v44  ;;  %v9485_v14 = vpop.permute.xlu0 %9484  ;;  %v9527_v63 = vld [vmem:[#allocation2 + $0x50] sm:$0xff] }
 0xa20   :  { %14460 = vmatprep.subr.mxu1 %v11933_v58  ;;  %9514 = vst.msk [vmem:[#allocation2 + $0x70] sm:$0xff] %vm4051_vm7, %v9485_v14  ;;  %14394 = vmatprep.mubr.msk.f32.mxu1 %vm748_vm8, %v9527_v63 }
 0xa21   :  { %14461 = vmatpush3.msra.mxu1 %v11933_v58  ;;  %14442 = vmatprep.mubr.msk.f32.mxu0 %vm748_vm8, %v9527_v63  ;;  %v9530_v61 = vld [vmem:[#allocation2 + $0x68] sm:$0xff] }
 0xa22   :  { %14395 = vmatmul.mubr.msk.f32.gmra.mxu1 %vm748_vm8, %v9528_v3  ;;  %14443 = vmatmul.mubr.msk.f32.gmra.mxu0 %vm748_vm8, %v9528_v3 }
 0xa23   :  { %14462 = vmatprep.subr.mxu1 %v11932_v38  ;;  %v9529_v18 = vld [vmem:[#allocation2 + $0x60] sm:$0xff]  ;;  %v19863_v8 = vpop.permute.xlu0 %10100 }
 0xa24   :  { %14463 = vmatpush3.msra.mxu1 %v11932_v38  ;;  %14397 = vmatprep.mubr.msk.f32.mxu1 %vm748_vm8, %v9529_v18 }
 0xa25   :  { %14464 = vmatprep.subr.mxu1 %v11931_v57  ;;  %14445 = vmatprep.mubr.msk.f32.mxu0 %vm748_vm8, %v9529_v18  ;;  %v9545_v54 = vld [vmem:[#allocation2 + $0x78] sm:$0xff] }
 0xa26   :  { %14465 = vmatpush3.msra.mxu1 %v11931_v57  ;;  %14446 = vmatmul.mubr.msk.f32.gmra.mxu0 %vm748_vm8, %v9530_v61 }
 0xa27   :  { %14398 = vmatmul.mubr.msk.f32.gmra.mxu1 %vm748_vm8, %v9530_v61  ;;  %14466 = vmatprep.subr.mxu1 %v11930_v24  ;;  %v9544_v50 = vld [vmem:[#allocation2 + $0x70] sm:$0xff] }
 0xa28   :  { %14467 = vmatpush3.msra.mxu1 %v11930_v24  ;;  %14400 = vmatprep.mubr.msk.f32.mxu1 %vm748_vm8, %v9544_v50 }
 0xa29   :  { %14468 = vmatprep.subr.mxu1 %v11929_v52 }
 0xa2a   :  { %14469 = vmatpush3.msra.mxu1 %v11929_v52  ;;  %v10239_v52 = vld [vmem:[%s20181_s5 + $0x48] sm:$0xff] }
 0xa2b   :  { %14401 = vmatmul.mubr.msk.f32.gmra.mxu1 %vm748_vm8, %v9545_v54  ;;  %14470 = vmatprep.subr.mxu1 %v11928_v19 }
 0xa2c   :  { %14472 = vmatprep.mubr.msk.f32.mxu1 %vm748_vm8, %v19746_v27  ;;  %14471 = vmatpush3.msra.mxu1 %v11928_v19 }
 0xa2d   :  { %14520 = vmatprep.subr.mxu1 %v10241_v41 }
 0xa2f   :  { %14473 = vmatmul.mubr.msk.f32.vlgmr.msra.gmra.mxu1 %vm748_vm8, %v19756_v16 }
 0xa30   :  { %14475 = vmatprep.mubr.msk.f32.mxu1 %vm748_vm8, %v19766_v62  ;;  %v11963_v62 = vld [vmem:[%s20181_s5 + $0xa0] sm:$0xff]  ;;  %14521 = vmatpush3.msra.mxu1 %v10241_v41 }
 0xa31   :  { %14499 = vmatprep.subr.mxu0 %v11963_v62 }
 0xa32   :  { %14500 = vmatpush3.msra.mxu0 %v11963_v62 }
 0xa33   :  { %14476 = vmatmul.mubr.msk.f32.gmra.mxu1 %vm748_vm8, %v9524_v33  ;;  %14501 = vmatprep.subr.mxu0 %v11962_v26 }
 0xa34   :  { %14478 = vmatprep.mubr.msk.f32.mxu1 %vm748_vm8, %v9525_v23  ;;  %14502 = vmatpush3.msra.mxu0 %v11962_v26 }
 0xa37   :  { %14479 = vmatmul.mubr.msk.f32.gmra.mxu1 %vm748_vm8, %v9526_v56  ;;  %v10240_v56 = vld [vmem:[%s20181_s5 + $0x50] sm:$0xff] }
 0xa38   :  { %14481 = vmatprep.mubr.msk.f32.mxu1 %vm748_vm8, %v9527_v63  ;;  %14522 = vmatprep.subr.mxu1 %v10240_v56 }
 0xa39   :  { %14523 = vmatpush3.msra.mxu1 %v10240_v56  ;;  %v11955_v56 = vld [vmem:[%s20181_s5 + $0x60] sm:$0xff] }
 0xa3a   :  { %14524 = vmatprep.subr.mxu1 %v10239_v52 }
 0xa3b   :  { %14482 = vmatmul.mubr.msk.f32.gmra.mxu1 %vm748_vm8, %v9528_v3 }
 0xa3c   :  { %14484 = vmatprep.mubr.msk.f32.mxu1 %vm748_vm8, %v9529_v18  ;;  %14525 = vmatpush3.msra.mxu1 %v10239_v52  ;;  %v19953_v52 = vld [vmem:[%s20181_s5 + $0x118] sm:$0xff] }
 0xa3f   :  { %14485 = vmatmul.mubr.msk.f32.gmra.mxu1 %vm748_vm8, %v9530_v61  ;;  %v11961_v61 = vld [vmem:[%s20181_s5 + $0x90] sm:$0xff] }
 0xa40   :  { %14487 = vmatprep.mubr.msk.f32.mxu1 %vm748_vm8, %v9544_v50  ;;  %14503 = vmatprep.subr.mxu0 %v11961_v61 }
 0xa41   :  { %14504 = vmatpush3.msra.mxu0 %v11961_v61 }
 0xa43   :  { %14488 = vmatmul.mubr.msk.f32.gmra.mxu1 %vm748_vm8, %v9545_v54 }
 0xa44   :  { %14490 = vmatprep.mubr.msk.f32.mxu1 %vm748_vm8, %v19578_v12 }
 0xa47   :  { %14491 = vmatmul.mubr.msk.f32.gmra.mxu1 %vm748_vm8, %v19583_v28 }
 0xad1   :  { %v19839_v39 = vpop.f32.mrf.mxu1  ;;  %v14432_v7 = vpop.f32.mrf.mxu0 }
 0xad3   :  { %v9667_v2 = vpop.f32.mrf.mxu1  ;;  %v9818_v45 = vpop.f32.mrf.mxu0 }
 0xad4   :  { %v9809_v3 = vadd.f32 %v9808_v29, %v9667_v2 }
 0xad5   :  { %v14435_v17 = vpop.f32.mrf.mxu0 }
 0xad6   :  { %v14387_v25 = vpop.f32.mrf.mxu1 }
 0xad7   :  { %v9828_v4 = vpop.f32.mrf.mxu0  ;;  %v9824_v57 = vadd.f32 %v14432_v7, %v14387_v25  ;;  %v11960_v25 = vld [vmem:[%s20181_s5 + $0x88] sm:$0xff] }
 0xad8   :  { %v9677_v11 = vpop.f32.mrf.mxu1  ;;  %14505 = vmatprep.subr.mxu0 %v11960_v25 }
 0xad9   :  { %v9819_v43 = vadd.f32 %v9818_v45, %v9677_v11  ;;  %v10238_v11 = vld [vmem:[%s20181_s5 + $0x40] sm:$0xff]  ;;  %14506 = vmatpush3.msra.mxu0 %v11960_v25 }
 0xada   :  { %v14390_v47 = vpop.f32.mrf.mxu1  ;;  %v14438_v5 = vpop.f32.mrf.mxu0  ;;  %14526 = vmatprep.subr.mxu1 %v10238_v11 }
 0xadb   :  { %v9834_v1 = vadd.f32 %v14435_v17, %v14390_v47  ;;  %v11959_v17 = vld [vmem:[%s20181_s5 + $0x80] sm:$0xff]  ;;  %14527 = vmatpush3.msra.mxu1 %v10238_v11 }
 0xadc   :  { %v9687_v59 = vpop.f32.mrf.mxu1  ;;  %v9838_v55 = vpop.f32.mrf.mxu0  ;;  %14507 = vmatprep.subr.mxu0 %v11959_v17 }
 0xadd   :  { %v9829_v27 = vadd.f32 %v9828_v4, %v9687_v59  ;;  %v10237_v4 = vld [vmem:[%s20181_s5 + $0x38] sm:$0xff]  ;;  %14508 = vmatpush3.msra.mxu0 %v11959_v17 }
 0xade   :  { %v14393_v12 = vpop.f32.mrf.mxu1  ;;  %v19865_v20 = vpop.f32.mrf.mxu0  ;;  %14528 = vmatprep.subr.mxu1 %v10237_v4  ;;  %14509 = vmatprep.subr.mxu0 %v11958_v46 }
 0xadf   :  { %v9844_v60 = vadd.f32 %v14438_v5, %v14393_v12  ;;  %14529 = vmatpush3.msra.mxu1 %v10237_v4  ;;  %14510 = vmatpush3.msra.mxu0 %v11958_v46  ;;  %v8591_v46 = vadd.f32 %v19252_v35, %v19428_v40 }
 0xae0   :  { %v9697_v49 = vpop.f32.mrf.mxu1  ;;  %v9848_v18 = vpop.f32.mrf.mxu0  ;;  %14511 = vmatprep.subr.mxu0 %v11957_v48 }
 0xae1   :  { %v9839_v53 = vadd.f32 %v9838_v55, %v9697_v49  ;;  %v9814_v49 = vadd.f32 %v19841_v9, %v19839_v39  ;;  %14512 = vmatpush3.msra.mxu0 %v11957_v48 }
 0xae2   :  { %v19843_v28 = vpop.f32.mrf.mxu1  ;;  %v14444_v7 = vpop.f32.mrf.mxu0 }
 0xae4   :  { %v19845_v30 = vpop.f32.mrf.mxu1 }
 0xae5   :  { %v9849_v5 = vadd.f32 %v9848_v18, %v19845_v30 }
 0xae7   :  { %v19847_v15 = vpop.f32.mrf.mxu1 }
 0xae8   :  { %v9864_v26 = vadd.f32 %v14444_v7, %v19847_v15  ;;  %v10233_v15 = vld [vmem:[%s20181_s5 + $0x18] sm:$0xff] }
 0xae9   :  { %v19849_v10 = vpop.f32.mrf.mxu1 }
 0xaeb   :  { %v19851_v0 = vpop.f32.mrf.mxu1 }
 0xaed   :  { %v19853_v31 = vpop.f32.mrf.mxu1 }
 0xaef   :  { %v19855_v21 = vpop.f32.mrf.mxu1 }
 0xaf0   :  { %v10082_v39 = vadd.f32 %v19855_v21, %v9814_v49  ;;  %v10236_v21 = vld [vmem:[%s20181_s5 + $0x30] sm:$0xff]  ;;  %v20437_v49 = vld [vmem:[#allocation10_spill] sm:$0xff] }
 0xaf1   :  { %v10012_v36 = vpop.f32.mrf.mxu1  ;;  %14530 = vmatprep.subr.mxu1 %v10236_v21 }
 0xaf2   :  { %v10081_v54 = vadd.f32 %v10012_v36, %v9809_v3  ;;  %v10104_v62 = vadd.f32 %v19863_v8, %v10082_v39  ;;  %14531 = vmatpush3.msra.mxu1 %v10236_v21  ;;  %v10230_v39 = vld [vmem:[%s20181_s5] sm:$0xff] }
 0xaf3   :  { %v14477_v42 = vpop.f32.mrf.mxu1 }
 0xaf4   :  { %v10084_v22 = vadd.f32 %v14477_v42, %v9824_v57  ;;  %v10103_v36 = vadd.f32 %v19863_v8, %v10081_v54  ;;  %v10232_v54 = vld [vmem:[%s20181_s5 + $0x10] sm:$0xff] }
 0xaf5   :  { %v10022_v51 = vpop.f32.mrf.mxu1 }
 0xaf6   :  { %v10083_v58 = vadd.f32 %v10022_v51, %v9819_v43  ;;  %v10106_v42 = vadd.f32 %v19863_v8, %v10084_v22  ;;  %v10235_v43 = vld [vmem:[%s20181_s5 + $0x28] sm:$0xff] }
 0xaf7   :  { %v14480_v34 = vpop.f32.mrf.mxu1  ;;  %14532 = vmatprep.subr.mxu1 %v10235_v43  ;;  %v20436_v22 = vld [vmem:[#allocation78_spill] sm:$0xff] }
 0xaf8   :  { %v10086_v16 = vadd.f32 %v14480_v34, %v9834_v1  ;;  %v10105_v47 = vadd.f32 %v19863_v8, %v10083_v58  ;;  %v9858_v1 = vpop.f32.mrf.mxu0  ;;  %v10120_v41 = vmax.f32 %v10106_v42, 0.0  ;;  %v20434_v58 = vld [vmem:[#allocation11_spill] sm:$0xff]  ;;  %14533 = vmatpush3.msra.mxu1 %v10235_v43  ;;  %v5914_v7 = vadd.f32 %v20436_v22, %v20437_v49 }
 0xaf9   :  { %v10032_v37 = vpop.f32.mrf.mxu1 }
 0xafa   :  { %v10108_v33 = vadd.f32 %v19863_v8, %v10086_v16  ;;  %v10085_v44 = vadd.f32 %v10032_v37, %v9829_v27  ;;  %v10119_v55 = vmax.f32 %v10105_v47, 0.0  ;;  %v9854_v27 = vadd.f32 %v19865_v20, %v19843_v28  ;;  %v20432_v20 = vld [vmem:[#allocation77_spill] sm:$0xff] }
 0xafb   :  { %v14483_v23 = vpop.f32.mrf.mxu1  ;;  %v9859_v16 = vadd.f32 %v9858_v1, %v19849_v10  ;;  %v10117_v37 = vmax.f32 %v10103_v36, 0.0  ;;  %v11956_v10 = vld [vmem:[%s20181_s5 + $0x68] sm:$0xff] }
 0xafc   :  { %v10122_v14 = vmax.f32 %v10108_v33, 0.0  ;;  %v10107_v63 = vadd.f32 %v19863_v8, %v10085_v44  ;;  %v10088_v38 = vadd.f32 %v14483_v23, %v9844_v60  ;;  %v20433_v44 = vld [vmem:[#allocation9_spill] sm:$0xff]  ;;  %14513 = vmatprep.subr.mxu0 %v11956_v10 }
 0xafd   :  { %v10042_v24 = vpop.f32.mrf.mxu1  ;;  %v10234_v23 = vld [vmem:[%s20181_s5 + $0x20] sm:$0xff]  ;;  %14514 = vmatpush3.msra.mxu0 %v11956_v10 }
 0xafe   :  { %v10110_v50 = vadd.f32 %v19863_v8, %v10088_v38  ;;  %v10087_v19 = vadd.f32 %v10042_v24, %v9839_v53  ;;  %10155 = vrot.lane.b32.xlu1 %v10122_v14, %s14905_s18  ;;  %v10121_v59 = vmax.f32 %v10107_v63, 0.0  ;;  %v5139_v53 = vadd.f32 %v20433_v44, %v20432_v20  ;;  %14534 = vmatprep.subr.mxu1 %v10234_v23  ;;  %v14447_v24 = vpop.f32.mrf.mxu0 }
 0xaff   :  { %v14486_v2 = vpop.f32.mrf.mxu1  ;;  %v10118_v63 = vmax.f32 %v10104_v62, 0.0  ;;  %14535 = vmatpush3.msra.mxu1 %v10234_v23  ;;  %14515 = vmatprep.subr.mxu0 %v11955_v56  ;;  %v9874_v36 = vadd.f32 %v14447_v24, %v19851_v0 }
 0xb00   :  { %v10124_v29 = vmax.f32 %v10110_v50, 0.0  ;;  %v10109_v12 = vadd.f32 %v19863_v8, %v10087_v19  ;;  %v10090_v60 = vadd.f32 %v14486_v2, %v9854_v27  ;;  %v5843_v14 = vadd.f32 %v20434_v58, %v5139_v53  ;;  %v20435_v50 = vld [vmem:[#allocation13_spill] sm:$0xff]  ;;  %14536 = vmatprep.subr.mxu1 %v10233_v15  ;;  %14516 = vmatpush3.msra.mxu0 %v11955_v56  ;;  %v20438_v58 = vld [vmem:[#allocation3_spill] sm:$0xff] }
 0xb01   :  { %v10052_v45 = vpop.f32.mrf.mxu1  ;;  %v8168_v19 = vadd.f32 %v19640_v6, %v20435_v50  ;;  %14537 = vmatpush3.msra.mxu1 %v10233_v15  ;;  %14547 = vmatprep.subr.mxu0 %v19953_v52  ;;  %v9868_v6 = vpop.f32.mrf.mxu0  ;;  %v14894_v56 = vld [vmem:[%s20178_s10 + $0x4] sm:$0x3] }
 0xb02   :  { %10159 = vrot.lane.b32.xlu0 %v10124_v29, %s14905_s18  ;;  %10153 = vrot.lane.b32.xlu1 %v10121_v59, %s14905_s18  ;;  %v10123_v51 = vmax.f32 %v10109_v12, 0.0  ;;  %v10089_v30 = vadd.f32 %v10052_v45, %v9849_v5  ;;  %v10112_v38 = vadd.f32 %v19863_v8, %v10090_v60  ;;  %v5913_v2 = vadd.f32 %v20436_v22, %v5843_v14  ;;  %v10231_v12 = vld [vmem:[%s20181_s5 + $0x8] sm:$0xff]  ;;  %v20442_v22 = vld [vmem:[#allocation8_spill] sm:$0xff] }
 0xb03   :  { %v14489_v9 = vpop.f32.mrf.mxu1  ;;  %v8552_v25 = vadd.f32 %v19646_v13, %v8168_v19  ;;  %14538 = vmatprep.subr.mxu1 %v10232_v54  ;;  %v9869_v45 = vadd.f32 %v9868_v6, %v19853_v31  ;;  %v14860_v31 = vld [vmem:[%s20182_s8 + $0x88] sm:$0xff]   ;;  %v20439_v14 = vsub.s32 1, %v20438_v58 }
 0xb04   :  { %v10111_v33 = vadd.f32 %v19863_v8, %v10089_v30  ;;  %v10092_v57 = vadd.f32 %v14489_v9, %v9864_v26  ;;  %v10126_v11 = vmax.f32 %v10112_v38, 0.0  ;;  %v5975_v13 = vmax.f32 %v5913_v2, 0.0  ;;  %14539 = vmatpush3.msra.mxu1 %v10232_v54  ;;  %v14876_v58 = vld [vmem:[%s20182_s8 + $0x8] sm:$0xff]  }
 0xb05   :  { %v10062_v34 = vpop.f32.mrf.mxu1  ;;  %v8590_v17 = vadd.f32 %v19252_v35, %v8552_v25  ;;  %14540 = vmatprep.subr.mxu1 %v10231_v12  ;;  %v5976_v9 = vmax.f32 %v5914_v7, 0.0  ;;  %v8621_v30 = vmax.f32 %v8591_v46, 0.0  ;;  %v11981_v25 = vld [vmem:[%s20181_s5 + $0x110] sm:$0xff] }
 0xb06   :  { %10157 = vrot.lane.b32.xlu0 %v10123_v51, %s14905_s18  ;;  %10149 = vrot.lane.b32.xlu1 %v10119_v55, %s14905_s18  ;;  %v10091_v28 = vadd.f32 %v10062_v34, %v9859_v16  ;;  %v10125_v3 = vmax.f32 %v10111_v33, 0.0  ;;  %v10114_v47 = vadd.f32 %v19863_v8, %v10092_v57 }
 0xb07   :  { %v14492_v61 = vpop.f32.mrf.mxu1  ;;  %14541 = vmatpush3.msra.mxu1 %v10231_v12  ;;  %v8620_v42 = vmax.f32 %v8590_v17, 0.0  ;;  %v20443_v12 = vld [vmem:[#allocation5_spill] sm:$0xff] }
 0xb08   :  { %v10113_v18 = vadd.f32 %v19863_v8, %v10091_v28  ;;  %v10128_v4 = vmax.f32 %v10114_v47, 0.0  ;;  %14542 = vmatprep.subr.mxu1 %v10230_v39  ;;  %v10094_v55 = vadd.f32 %v14492_v61, %v9874_v36  ;;  %v20441_v61 = vld [vmem:[#allocation4_spill] sm:$0xff] }
 0xb09   :  { %v10072_v29 = vpop.f32.mrf.mxu1  ;;  %14543 = vmatpush3.msra.mxu1 %v10230_v39 }
 0xb0a   :  { %10151 = vrot.lane.b32.xlu0 %v10120_v41, %s14905_s18  ;;  %10145 = vrot.lane.b32.xlu1 %v10117_v37, %s14905_s18  ;;  %v10127_v59 = vmax.f32 %v10113_v18, 0.0  ;;  %v10093_v5 = vadd.f32 %v10072_v29, %v9869_v45  ;;  %v10116_v0 = vadd.f32 %v19863_v8, %v10094_v55  ;;  %v11978_v55 = vld [vmem:[%s20181_s5 + $0xf8] sm:$0xff] }
 0xb0b   :  { %12974 = vmatprep.subr.bf16.mxu1 %v14860_v31 }
 0xb0c   :  { %v10115_v51 = vadd.f32 %v19863_v8, %v10093_v5  ;;  %v10130_v1 = vmax.f32 %v10116_v0, 0.0 }
 0xb0e   :  { %10147 = vrot.lane.b32.xlu0 %v10118_v63, %s14905_s18  ;;  %10161 = vrot.lane.b32.xlu1 %v10125_v3, %s14905_s18  ;;  %v10129_v21 = vmax.f32 %v10115_v51, 0.0  ;;  %v335_v63 = vrot.slane %v14894_v56, %v20439_v14  ;;  %v20440_v3 = vld [vmem:[#allocation6_spill] sm:$0xff]  ;;  %v14862_v51 = vld [vmem:[%s20182_s8 + $0x80] sm:$0xff]   ;;  %v20444_v56 = vld [vmem:[#allocation7_spill] sm:$0xff] }
 0xb0f   :  { %v14877_v14 = vld [vmem:[%s20182_s8] sm:$0xff]  }
 0xb10   :  { %v699_v57 = vadd.f32 %v20440_v3, %v335_v63  ;;  %v695_v50 = vadd.f32 %v20441_v61, %v335_v63  ;;  %v14878_v63 = vld [vmem:[%s20183_s9 + $0x38] sm:$0xff]   ;;  %v14880_v3 = vld [vmem:[%s20183_s9 + $0x28] sm:$0xff]  }
 0xb12   :  { %10165 = vrot.lane.b32.xlu0 %v10127_v59, %s14905_s18  ;;  %10163 = vrot.lane.b32.xlu1 %v10126_v11, %s14905_s18  ;;  %v742_v2 = vadd.f32 %v20442_v22, %v699_v57  ;;  %v738_v49 = vadd.f32 %v20443_v12, %v695_v50  ;;  %v14881_v57 = vld [vmem:[%s20183_s9 + $0x20] sm:$0xff]   ;;  %v11985_v22 = vld [vmem:[%s20180_s4 + $0x8] ss:$0 sm:$0xff] }
 0xb14   :  { %v747_v17 = vmax.f32 %v742_v2, 0.0  ;;  %v745_v36 = vmax.f32 %v738_v49, 0.0 }
 0xb16   :  { %10167 = vrot.lane.b32.xlu0 %v10128_v4, %s14905_s18  ;;  %6159 = vrot.lane.b32.xlu1 %v5975_v13, %s14899_s7  ;;  %v11980_v13 = vld [vmem:[%s20181_s5 + $0x108] sm:$0xff]  ;;  %v11979_v4 = vld [vmem:[%s20181_s5 + $0x100] sm:$0xff] }
 0xb1a   :  { %6161 = vrot.lane.b32.xlu0 %v5976_v9, %s14899_s7  ;;  %8708 = vrot.lane.b32.xlu1 %v8620_v42, %s14902_s30  ;;  %v14861_v9 = vld [vmem:[%s20182_s8 + $0x48] sm:$0xff]  }
 0xb1e   :  { %8710 = vrot.lane.b32.xlu0 %v8621_v30, %s14902_s30  ;;  %10169 = vrot.lane.b32.xlu1 %v10129_v21, %s14905_s18  ;;  %v10532_v30 = vpack.c.bf16 %v747_v17, %v745_v36  ;;  %v11977_v21 = vld [vmem:[%s20181_s5 + $0xf0] sm:$0xff]  ;;  %v12005_v36 = vld [vmem:[%s20178_s10 + $0x6] ss:$0 sm:$0xff] }
 0xb22   :  { %10171 = vrot.lane.b32.xlu0 %v10130_v1, %s14905_s18  ;;  %v14863_v1 = vld [vmem:[%s20182_s8 + $0x40] sm:$0xff]  }
 0xb70   :  { %v10156_v35 = vpop.permute.xlu1 %10155 }
 0xb71   :  { %10193 = vst.msk [vmem:[#allocation2 + $0x38] sm:$0xff] %vm10187_vm11, %v10156_v35  ;;  %v14864_v35 = vld [vmem:[%s20182_s8 + $0x78] sm:$0xff]  }
 0xb74   :  { %v10160_v40 = vpop.permute.xlu0 %10159  ;;  %v10154_v34 = vpop.permute.xlu1 %10153 }
 0xb75   :  { %10195 = vst.msk [vmem:[#allocation2 + $0x48] sm:$0xff] %vm10187_vm11, %v10160_v40  ;;  %10192 = vst.msk [vmem:[#allocation2 + $0x30] sm:$0xff] %vm10187_vm11, %v10154_v34  ;;  %v11976_v34 = vld [vmem:[%s20181_s5 + $0xe8] sm:$0xff] }
 0xb78   :  { %v10158_v48 = vpop.permute.xlu0 %10157  ;;  %v10150_v8 = vpop.permute.xlu1 %10149  ;;  %v10207_v28 = vld [vmem:[#allocation2 + $0x38] sm:$0xff] }
 0xb79   :  { %10194 = vst.msk [vmem:[#allocation2 + $0x40] sm:$0xff] %vm10187_vm11, %v10158_v48  ;;  %10190 = vst.msk [vmem:[#allocation2 + $0x20] sm:$0xff] %vm10187_vm11, %v10150_v8  ;;  %v11975_v48 = vld [vmem:[%s20181_s5 + $0xe0] sm:$0xff]  ;;  %v14865_v8 = vld [vmem:[%s20182_s8 + $0x38] sm:$0xff]  }
 0xb7c   :  { %v10209_v27 = vld [vmem:[#allocation2 + $0x48] sm:$0xff]  ;;  %v10152_v16 = vpop.permute.xlu0 %10151  ;;  %v10146_v43 = vpop.permute.xlu1 %10145  ;;  %v10206_v37 = vld [vmem:[#allocation2 + $0x30] sm:$0xff] }
 0xb7d   :  { %10227 = vst.msk [vmem:[#allocation2 + $0x48] sm:$0xff] %vm748_vm8, %v20431_v32  ;;  %v10217_v20 = vmax.f32 %v10207_v28, %v10209_v27  ;;  %v14866_v27 = vld [vmem:[%s20182_s8 + $0x70] sm:$0xff]   ;;  %v14870_v28 = vld [vmem:[%s20182_s8 + $0x60] sm:$0xff]  }
 0xb7e   :  { %10191 = vst.msk [vmem:[#allocation2 + $0x28] sm:$0xff] %vm10187_vm11, %v10152_v16  ;;  %10188 = vst.msk [vmem:[#allocation2 + $0x10] sm:$0xff] %vm10187_vm11, %v10146_v43  ;;  %v11974_v16 = vld [vmem:[%s20181_s5 + $0xd8] sm:$0xff]  ;;  %v11973_v43 = vld [vmem:[%s20181_s5 + $0xd0] sm:$0xff] }
 0xb80   :  { %v10208_v62 = vld [vmem:[#allocation2 + $0x40] sm:$0xff]  ;;  %v10148_v41 = vpop.permute.xlu0 %10147  ;;  %v10162_v60 = vpop.permute.xlu1 %10161 }
 0xb81   :  { %v10216_v33 = vmax.f32 %v10206_v37, %v10208_v62  ;;  %10226 = vst.msk [vmem:[#allocation2 + $0x40] sm:$0xff] %vm748_vm8, %v20431_v32  ;;  %v10204_v10 = vld [vmem:[#allocation2 + $0x20] sm:$0xff]  ;;  %v14867_v37 = vld [vmem:[%s20182_s8 + $0x30] sm:$0xff]   ;;  %v14868_v62 = vld [vmem:[%s20182_s8 + $0x68] sm:$0xff]  }
 0xb82   :  { %10189 = vst.msk [vmem:[#allocation2 + $0x18] sm:$0xff] %vm10187_vm11, %v10148_v41  ;;  %10196 = vst.msk [vmem:[#allocation2 + $0x50] sm:$0xff] %vm10187_vm11, %v10162_v60  ;;  %v11972_v41 = vld [vmem:[%s20181_s5 + $0xc8] sm:$0xff]  ;;  %v11971_v60 = vld [vmem:[%s20181_s5 + $0xc0] sm:$0xff] }
 0xb83   :  { %10222 = vst.msk [vmem:[#allocation2 + $0x20] sm:$0xff] %vm748_vm8, %v10216_v33  ;;  %v14869_v33 = vld [vmem:[%s20182_s8 + $0x28] sm:$0xff]  }
 0xb84   :  { %v10166_v23 = vpop.permute.xlu0 %10165  ;;  %v10164_v26 = vpop.permute.xlu1 %10163 }
 0xb85   :  { %v10205_v44 = vld [vmem:[#allocation2 + $0x28] sm:$0xff]  ;;  %v10202_v53 = vld [vmem:[#allocation2 + $0x10] sm:$0xff]  ;;  %10198 = vst.msk [vmem:[#allocation2 + $0x60] sm:$0xff] %vm10187_vm11, %v10166_v23  ;;  %10197 = vst.msk [vmem:[#allocation2 + $0x58] sm:$0xff] %vm10187_vm11, %v10164_v26 }
 0xb86   :  { %10223 = vst.msk [vmem:[#allocation2 + $0x28] sm:$0xff] %vm748_vm8, %v10217_v20  ;;  %v10214_v38 = vmax.f32 %v10202_v53, %v10204_v10  ;;  %v14871_v20 = vld [vmem:[%s20182_s8 + $0x20] sm:$0xff]   ;;  %v14873_v53 = vld [vmem:[%s20182_s8 + $0x18] sm:$0xff]   ;;  %v14874_v23 = vld [vmem:[%s20182_s8 + $0x50] sm:$0xff]  }
 0xb87   :  { %v14875_v26 = vld [vmem:[%s20182_s8 + $0x10] sm:$0xff]  }
 0xb88   :  { %10220 = vst.msk [vmem:[#allocation2 + $0x10] sm:$0xff] %vm748_vm8, %v10214_v38  ;;  %v10168_v15 = vpop.permute.xlu0 %10167  ;;  %v6160_v24 = vpop.permute.xlu1 %6159  ;;  %v14879_v38 = vld [vmem:[%s20183_s9 + $0x30] sm:$0xff]  }
 0xb89   :  { %v10203_v18 = vld [vmem:[#allocation2 + $0x18] sm:$0xff]  ;;  %10199 = vst.msk [vmem:[#allocation2 + $0x68] sm:$0xff] %vm10187_vm11, %v10168_v15  ;;  %v10210_v11 = vld [vmem:[#allocation2 + $0x50] sm:$0xff] }
 0xb8a   :  { %v10215_v19 = vmax.f32 %v10203_v18, %v10205_v44  ;;  %6286 = vst.msk [vmem:[#allocation2 + $0x1f0] sm:$0xff] %vm6225_vm9, %v6160_v24  ;;  %v10242_v54 = vld [vmem:[#allocation2 + $0x20] sm:$0xff]  ;;  %v14872_v44 = vld [vmem:[%s20182_s8 + $0x58] sm:$0xff]  }
 0xb8b   :  { %14517 = vmatprep.mubr.msk.f32.mxu0 %vm748_vm8, %v10242_v54  ;;  %v14882_v18 = vld [vmem:[%s20183_s9 + $0x18] sm:$0xff]  }
 0xb8c   :  { %10221 = vst.msk [vmem:[#allocation2 + $0x18] sm:$0xff] %vm748_vm8, %v10215_v19  ;;  %v10212_v47 = vld [vmem:[#allocation2 + $0x60] sm:$0xff]  ;;  %v6162_v59 = vpop.permute.xlu0 %6161  ;;  %v8709_v6 = vpop.permute.xlu1 %8708  ;;  %v10211_v5 = vld [vmem:[#allocation2 + $0x58] sm:$0xff] }
 0xb8d   :  { %v10243_v29 = vld [vmem:[#allocation2 + $0x28] sm:$0xff]  ;;  %v10218_v7 = vmax.f32 %v10210_v11, %v10212_v47  ;;  %6287 = vst.msk [vmem:[#allocation2 + $0x1f8] sm:$0xff] %vm6225_vm9, %v6162_v59 }
 0xb8e   :  { %8771 = vst.msk [vmem:[#allocation2 + $0xf0] sm:$0xff] %vm8742_vm10, %v8709_v6  ;;  %14518 = vmatmul.mubr.msk.f32.vlgmr.msra.gmra.mxu0 %vm748_vm8, %v10243_v29 }
 0xb8f   :  { %14548 = vmatpush3.msra.mxu0 %v19953_v52  ;;  %v10228_v45 = vld [vmem:[#allocation2 + $0x10] sm:$0xff]  ;;  %10224 = vst.msk [vmem:[#allocation2 + $0x30] sm:$0xff] %vm748_vm8, %v10218_v7 }
 0xb90   :  { %14549 = vmatprep.subr.mxu0 %v11981_v25  ;;  %14544 = vmatprep.mubr.msk.f32.mxu1 %vm748_vm8, %v10228_v45  ;;  %v10213_v39 = vld [vmem:[#allocation2 + $0x68] sm:$0xff]  ;;  %v8711_v31 = vpop.permute.xlu0 %8710  ;;  %v10170_v52 = vpop.permute.xlu1 %10169  ;;  %v14883_v7 = vld [vmem:[%s20183_s9 + $0x10] sm:$0xff]  }
 0xb91   :  { %14550 = vmatpush3.msra.mxu0 %v11981_v25  ;;  %v10219_v46 = vmax.f32 %v10211_v5, %v10213_v39  ;;  %8772 = vst.msk [vmem:[#allocation2 + $0xf8] sm:$0xff] %vm8742_vm10, %v8711_v31  ;;  %v14884_v45 = vld [vmem:[%s20183_s9 + $0x8] sm:$0xff]  }
 0xb92   :  { %14551 = vmatprep.subr.mxu0 %v11980_v13  ;;  %10200 = vst.msk [vmem:[#allocation2 + $0x70] sm:$0xff] %vm10187_vm11, %v10170_v52 }
 0xb93   :  { %14552 = vmatpush3.msra.mxu0 %v11980_v13  ;;  %v10229_v42 = vld [vmem:[#allocation2 + $0x18] sm:$0xff]  ;;  %10225 = vst.msk [vmem:[#allocation2 + $0x38] sm:$0xff] %vm748_vm8, %v10219_v46  ;;  %v14885_v13 = vld [vmem:[%s20183_s9] sm:$0xff]  }
 0xb94   :  { %14553 = vmatprep.subr.mxu0 %v11979_v4  ;;  %14545 = vmatmul.mubr.msk.f32.vlgmr.msra.gmra.mxu1 %vm748_vm8, %v10229_v42  ;;  %v10172_v0 = vpop.permute.xlu0 %10171 }
 0xb95   :  { %14554 = vmatpush3.msra.mxu0 %v11979_v4  ;;  %12975 = vmatpush3.bf16.msra.mxu1 %v14861_v9  ;;  %10201 = vst.msk [vmem:[#allocation2 + $0x78] sm:$0xff] %vm10187_vm11, %v10172_v0 }
 0xb96   :  { %14555 = vmatprep.subr.mxu0 %v11978_v55  ;;  %10693 = vmatprep.mubr.bf16.mxu1 %v10532_v30  ;;  %v10419_v40 = vld [vmem:[#allocation2 + $0x30] sm:$0xff] }
 0xb97   :  { %14556 = vmatpush3.msra.mxu0 %v11978_v55  ;;  %12976 = vmatprep.subr.bf16.mxu1 %v14862_v51 }
 0xb98   :  { %14557 = vmatprep.subr.mxu0 %v11977_v21  ;;  %14571 = vmatprep.mubr.msk.f32.mxu0 %vm748_vm8, %v10419_v40  ;;  %v12006_v40 = vld [vmem:[%s20178_s10 + $0x7] ss:$0 sm:$0xff] }
 0xb99   :  { %14558 = vmatpush3.msra.mxu0 %v11977_v21  ;;  %12977 = vmatpush3.bf16.msra.mxu1 %v14863_v1 }
 0xb9a   :  { %14559 = vmatprep.subr.mxu0 %v11976_v34  ;;  %12978 = vmatprep.subr.bf16.mxu1 %v14864_v35  ;;  %v10420_v10 = vld [vmem:[#allocation2 + $0x38] sm:$0xff] }
 0xb9b   :  { %14560 = vmatpush3.msra.mxu0 %v11976_v34 }
 0xb9c   :  { %14561 = vmatprep.subr.mxu0 %v11975_v48 }
 0xb9d   :  { %14562 = vmatpush3.msra.mxu0 %v11975_v48  ;;  %12979 = vmatpush3.bf16.msra.mxu1 %v14865_v8 }
 0xb9e   :  { %14563 = vmatprep.subr.mxu0 %v11974_v16  ;;  %12980 = vmatprep.subr.bf16.mxu1 %v14866_v27 }
 0xb9f   :  { %14564 = vmatpush3.msra.mxu0 %v11974_v16 }
 0xba0   :  { %14565 = vmatprep.subr.mxu0 %v11973_v43 }
 0xba1   :  { %14566 = vmatpush3.msra.mxu0 %v11973_v43  ;;  %12981 = vmatpush3.bf16.msra.mxu1 %v14867_v37 }
 0xba2   :  { %14567 = vmatprep.subr.mxu0 %v11972_v41  ;;  %12982 = vmatprep.subr.bf16.mxu1 %v14868_v62 }
 0xba3   :  { %14568 = vmatpush3.msra.mxu0 %v11972_v41 }
 0xba4   :  { %14569 = vmatprep.subr.mxu0 %v11971_v60 }
 0xba5   :  { %14570 = vmatpush3.msra.mxu0 %v11971_v60  ;;  %12983 = vmatpush3.bf16.msra.mxu1 %v14869_v33 }
 0xba6   :  { %14572 = vmatmul.mubr.msk.f32.vlgmr.msra.gmra.mxu0 %vm748_vm8, %v10420_v10  ;;  %12984 = vmatprep.subr.bf16.mxu1 %v14870_v28  ;;  %vm14906_vm8 = vmmov 0  }
 0xba7   :  { %14582 = vmatprep.subr.bf16.mxu0 %v20431_v32  ;;  %14598 = vmatprep.mubr.msk.bf16.mxu0 %vm14906_vm8, %v20431_v32 }
 0xba8   :  { %14583 = vmatpush3.bf16.msra.mxu0 %v14878_v63 }
 0xba9   :  { %12985 = vmatpush3.bf16.msra.mxu1 %v14871_v20  ;;  %14584 = vmatprep.subr.bf16.mxu0 %v20431_v32 }
 0xbaa   :  { %12986 = vmatprep.subr.bf16.mxu1 %v14872_v44 }
 0xbac   :  { %14585 = vmatpush3.bf16.msra.mxu0 %v14879_v38 }
 0xbad   :  { %12987 = vmatpush3.bf16.msra.mxu1 %v14873_v53  ;;  %14586 = vmatprep.subr.bf16.mxu0 %v20431_v32 }
 0xbae   :  { %12988 = vmatprep.subr.bf16.mxu1 %v14874_v23 }
 0xbb0   :  { %14587 = vmatpush3.bf16.msra.mxu0 %v14880_v3 }
 0xbb1   :  { %12989 = vmatpush3.bf16.msra.mxu1 %v14875_v26  ;;  %14588 = vmatprep.subr.bf16.mxu0 %v20431_v32 }
 0xbb2   :  { %14574 = vmatprep.subr.bf16.mxu1 %v20431_v32 }
 0xbb4   :  { %10694 = vmatmul.mubr.bf16.vlgmr.msra.gmra.mxu1 %v20444_v56  ;;  %14589 = vmatpush3.bf16.msra.mxu0 %v14881_v57 }
 0xbb5   :  { %14575 = vmatpush3.bf16.msra.mxu1 %v14876_v58  ;;  %14578 = vmatprep.mubr.msk.bf16.mxu1 %vm14906_vm8, %v20431_v32 }
 0xbb6   :  { %14576 = vmatprep.subr.bf16.mxu1 %v20431_v32  ;;  %14590 = vmatprep.subr.bf16.mxu0 %v20431_v32 }
 0xbb8   :  { %14591 = vmatpush3.bf16.msra.mxu0 %v14882_v18 }
 0xbb9   :  { %14577 = vmatpush3.bf16.msra.mxu1 %v14877_v14  ;;  %14592 = vmatprep.subr.bf16.mxu0 %v20431_v32 }
 0xbbc   :  { %14593 = vmatpush3.bf16.msra.mxu0 %v14883_v7 }
 0xbbd   :  { %14594 = vmatprep.subr.bf16.mxu0 %v20431_v32 }
 0xbc0   :  { %14595 = vmatpush3.bf16.msra.mxu0 %v14884_v45 }
 0xbc1   :  { %14596 = vmatprep.subr.bf16.mxu0 %v20431_v32 }
 0xbc4   :  { %14597 = vmatpush3.bf16.msra.mxu0 %v14885_v13 }
 0xc4e   :  { %v14519_v15 = vpop.f32.mrf.mxu0 }
 0xc50   :  { %v10329_v61 = vpop.f32.mrf.mxu0 }
 0xc54   :  { %v14546_v24 = vpop.f32.mrf.mxu1 }
 0xc55   :  { %v10416_v19 = vadd.f32 %v14546_v24, %v14519_v15 }
 0xc56   :  { %v10410_v50 = vpop.f32.mrf.mxu1 }
 0xc57   :  { %v10411_v2 = vadd.f32 %v10410_v50, %v10329_v61 }
 0xc66   :  { %v14573_v54 = vpop.f32.mrf.mxu0 }
 0xc67   :  { %v10516_v25 = vadd.f32 %v14573_v54, %v10416_v19 }
 0xc68   :  { %v10506_v11 = vpop.f32.mrf.mxu0 }
 0xc69   :  { %v10523_v47 = vadd.f32 %v11985_v22, %v10516_v25  ;;  %v10515_v59 = vadd.f32 %v10506_v11, %v10411_v2 }
 0xc6b   :  { %v10522_v6 = vadd.f32 %v11985_v22, %v10515_v59  ;;  %v10525_v29 = vmax.f32 %v10523_v47, 0.0 }
 0xc6d   :  { %v10524_v12 = vmax.f32 %v10522_v6, 0.0 }
 0xc6f   :  { %v10526_v49 = vpack.c.bf16 %v10525_v29, %v10524_v12 }
 0xc71   :  { %14579 = vmatmul.mubr.msk.bf16.vlgmr.msra.gmra.mxu1 %vm10714_vm12, %v10526_v49 }
 0xc74   :  { %v12990_v17 = vpop.f32.mrf.mxu1 }
 0xc76   :  { %v12991_v4 = vpop.f32.mrf.mxu1 }
 0xc77   :  { %v12992_v31 = vadd.f32 %v12991_v4, %v12990_v17 }
 0xc78   :  { %v12993_v5 = vpop.f32.mrf.mxu1 }
 0xc7a   :  { %v12994_v39 = vpop.f32.mrf.mxu1 }
 0xc7b   :  { %v12995_v42 = vadd.f32 %v12994_v39, %v12993_v5 }
 0xd31   :  { %v10752_v52 = vpop.f32.mrf.mxu1 }
 0xd32   :  { %v10753_v9 = vadd.f32 %v12992_v31, %v10752_v52 }
 0xd33   :  { %v14580_v46 = vpop.f32.mrf.mxu1 }
 0xd34   :  { %v10766_v32 = vadd.f32 %v12005_v36, %v10753_v9 }
 0xd35   :  { %v10755_v55 = vpop.f32.mrf.mxu1 }
 0xd36   :  { %v10756_v51 = vadd.f32 %v12995_v42, %v10755_v55  ;;  %v10768_v21 = vmax.f32 %v10766_v32, 0.0 }
 0xd37   :  { %v14581_v30 = vpop.f32.mrf.mxu1 }
 0xd38   :  { %v10767_v0 = vadd.f32 %v12005_v36, %v10756_v51 }
 0xd3a   :  { %v10769_v1 = vmax.f32 %v10767_v0, 0.0 }
 0xd3c   :  { %v10770_v35 = vpack.c.bf16 %v10769_v1, %v10768_v21 }
 0xd3e   :  { %14599 = vmatmul.mubr.bf16.vlgmr.msra.gmra.mxu0 %v10770_v35 }
 0xdfe   :  { %v10876_v34 = vpop.f32.mrf.mxu0 }
 0xdff   :  { %v10877_v48 = vadd.f32 %v12006_v40, %v10876_v34 }
 0xe00   :  { %v14600_v8 = vpop.f32.mrf.mxu0 }
 0xe01   :  { %v10883_v27 = vsub.f32 0.0, %v10877_v48 }
 0xe02   :  { %v10879_v16 = vpop.f32.mrf.mxu0 }
 0xe03   :  { %v10885_v43 = vmul.f32 1.442695, %v10883_v27  ;;  %v10880_v37 = vadd.f32 %v12006_v40, %v10879_v16 }
 0xe04   :  { %v14601_v62 = vpop.f32.mrf.mxu0 }
 0xe05   :  { %14886 = vpow2.f32 %v10885_v43  ;;  %v10884_v41 = vsub.f32 0.0, %v10880_v37 }
 0xe07   :  { %v10887_v60 = vmul.f32 1.442695, %v10884_v41 }
 0xe09   :  { %14888 = vpow2.f32 %v10887_v60 }
 0xe12   :  { %v14887_v33 = vpop.eup %14886 }
 0xe13   :  { %v10889_v28 = vadd.f32 1.0, %v14887_v33 }
 0xe15   :  { %14890 = vrcp.f32 %v10889_v28 }
 0xe16   :  { %v14889_v10 = vpop.eup %14888 }
 0xe17   :  { %v10890_v20 = vadd.f32 1.0, %v14889_v10 }
 0xe19   :  { %14892 = vrcp.f32 %v10890_v20 }
 0xe22   :  { %v14891_v44 = vpop.eup %14890 }
 0xe23   :  { %10896 = vst.msk [vmem:[%s20184_s11] sm:$0xff] %vm10895_vm13, %v14891_v44 }
 0xe26   :  { %v14893_v53 = vpop.eup %14892 }
 0xe27   :  { %10897 = vst.msk [vmem:[%s20184_s11 + $0x8] sm:$0xff] %vm10895_vm13, %v14893_v53 }

</bundles_post_ra>
